<compile_context>
chip_gen: v5e
topology: v5e:2x2
jax: 0.10.0
libtpu: 0.0.40
codegen_flags: <defaults>
</compile_context>

<pallas_src>
import functools

import jax
import jax.numpy as jnp
import numpy as np
from jax.experimental import pallas as pl
from jax.experimental.pallas import tpu as pltpu


def _nearest_upsample_kernel(x_ref, o_ref, *, s):
    """x_ref: (TB, TH, W) input tile.  o_ref: (TB, TH*s, W*s) output tile."""
    x = x_ref[...]
    # H replication (second-minor / sublane axis), then W replication (lane
    # axis). Each is broadcast + reshape (XLU only; zero VPU/MXU work here),
    # finished with a single dense store of the whole output tile.
    y = jnp.repeat(x, s, axis=1)    # (TB, TH*s, W)
    y = jnp.repeat(y, s, axis=2)    # (TB, TH*s, W*s)
    o_ref[...] = y


def _choose_tiles(nc, h, w, s, itemsize, target_out_bytes=2 * 1024 * 1024):
    """Pick (TB, TH): output block ~target_out_bytes, block shapes respect the
    TPU (8,128) rule (second-minor dim multiple of 8 or full extent; the minor
    dim is always the full W / W*s extent here)."""
    out_row_bytes = (w * s) * s * itemsize            # output bytes per input row
    th = max(1, min(h, target_out_bytes // out_row_bytes))
    if th < h:
        cand = th - (th % 8)
        while cand >= 8 and h % cand != 0:            # prefer a divisor of H
            cand -= 8
        th = cand if cand >= 8 else h
    tb = 1
    if th == h:                                       # whole image fits: group planes
        plane_out_bytes = h * s * (w * s) * itemsize
        tb = max(1, min(nc, target_out_bytes // max(plane_out_bytes, 1)))
        while nc % tb != 0:
            tb -= 1
    return tb, th


def upsample_interpolate(x_nchw, scale_factor=2.0):
    """Equivalent of UpsampleInterpolate(scale_factor).forward(x) for 4-D NCHW input."""
    s = int(scale_factor)
    assert float(s) == float(scale_factor) and s >= 1, "integer scale factors only"
    n, c, h, w = x_nchw.shape
    oh, ow = h * s, w * s
    if s == 1:
        return x_nchw

    nc = n * c
    # Free reshape (no transpose): keep native NCHW memory order, W on lanes.
    x = x_nchw.reshape(nc, h, w)
    itemsize = jnp.dtype(x.dtype).itemsize
    tb, th = _choose_tiles(nc, h, w, s, itemsize)

    kernel = functools.partial(_nearest_upsample_kernel, s=s)

    cost = pl.CostEstimate(
        flops=0,
        transcendentals=0,
        bytes_accessed=int((1 + s * s) * nc * h * w * itemsize),
    )

    out = pl.pallas_call(
        kernel,
        out_shape=jax.ShapeDtypeStruct((nc, oh, ow), x.dtype),
        grid=(nc // tb, h // th),
        in_specs=[pl.BlockSpec((tb, th, w), lambda b, t: (b, t, 0))],
        out_specs=pl.BlockSpec((tb, th * s, ow), lambda b, t: (b, t, 0)),
        compiler_params=pltpu.CompilerParams(
            dimension_semantics=("parallel", "parallel"),
        ),
        cost_estimate=cost,
    )(x)

    # Free reshape back to NCHW.
    return out.reshape(n, c, oh, ow)


if __name__ == "__main__":
    key = jax.random.PRNGKey(0)
    x = jax.random.normal(key, (2, 4, 16, 16), dtype=jnp.float32)  # NCHW

    y = upsample_interpolate(x, scale_factor=2.0)
    y = jax.block_until_ready(y)

    # Pure-JAX reference of F.interpolate(x, scale_factor=2.0) (nearest).
    ref = jnp.repeat(jnp.repeat(x, 2, axis=2), 2, axis=3)
    assert y.shape == (2, 4, 32, 32), y.shape
    assert y.dtype == x.dtype
    np.testing.assert_array_equal(np.asarray(y), np.asarray(ref))

    print("KERNEL_OK")
</pallas_src>

<mosaic_0001>
module attributes {stable_mosaic.version = 11 : i64} {
  func.func @_nearest_upsample_kernel(%arg0: i32, %arg1: i32, %arg2: memref<8x16x16xf32, #tpu.memory_space<vmem>>, %arg3: memref<8x32x32xf32, #tpu.memory_space<vmem>>) attributes {dimension_semantics = [#tpu.dimension_semantics<parallel>, #tpu.dimension_semantics<parallel>], iteration_bounds = array<i64: 1, 1>, scalar_prefetch = 0 : i64, scratch_operands = 0 : i64, tpu.core_type = #tpu.core_type<tc>, window_params = [{transform_indices = @transform_0, window_bounds = array<i64: 8, 16, 16>}, {transform_indices = @transform_1, window_bounds = array<i64: 8, 32, 32>}]} {
    %c0 = arith.constant 0 : index
    %c0_0 = arith.constant 0 : index
    %c0_1 = arith.constant 0 : index
    %0 = vector.load %arg2[%c0, %c0_0, %c0_1] : memref<8x16x16xf32, #tpu.memory_space<vmem>>, vector<8x16x16xf32>
    %1 = vector.shape_cast %0 : vector<8x16x16xf32> to vector<8x16x1x16xf32>
    %2 = vector.broadcast %1 : vector<8x16x1x16xf32> to vector<8x16x2x16xf32>
    %3 = vector.shape_cast %2 : vector<8x16x2x16xf32> to vector<8x32x16xf32>
    %4 = vector.shape_cast %3 : vector<8x32x16xf32> to vector<8x32x16x1xf32>
    %5 = vector.broadcast %4 : vector<8x32x16x1xf32> to vector<8x32x16x2xf32>
    %6 = vector.shape_cast %5 : vector<8x32x16x2xf32> to vector<8x32x32xf32>
    %c0_2 = arith.constant 0 : index
    %c0_3 = arith.constant 0 : index
    %c0_4 = arith.constant 0 : index
    %7 = vector.load %arg3[%c0_2, %c0_3, %c0_4] : memref<8x32x32xf32, #tpu.memory_space<vmem>>, vector<8x32x32xf32>
    tpu.vector_store %arg3[%c0_2, %c0_3, %c0_4], %6 {strides = array<i32>} : memref<8x32x32xf32, #tpu.memory_space<vmem>>, vector<8x32x32xf32>,
    return
  }
  func.func @transform_0(%arg0: i32, %arg1: i32) -> (i32, i32, i32) {
    %c0_i32 = arith.constant 0 : i32
    %c0_i32_0 = arith.constant 0 : i32
    return %arg0, %arg1, %c0_i32 : i32, i32, i32
  }
  func.func @transform_1(%arg0: i32, %arg1: i32) -> (i32, i32, i32) {
    %c0_i32 = arith.constant 0 : i32
    %c0_i32_0 = arith.constant 0 : i32
    return %arg0, %arg1, %c0_i32 : i32, i32, i32
  }
}

</mosaic_0001>

<bundles_post_ra>
// kernel: tpu_custom_call.1
= control target key start
LH: loop header
LB: loop body
LE: loop exit
PB: predicated region body
PF: predicated region fallthrough
CT: control target
= control target key end

     0   :  { %6 = vsyncpa [#allocation3], 0  ;;  %s19190_s0 = inlined_call_operand.hbm [shape: f32[8,16,16], index: 0, kind: input, shape index: {}]   ;;  %s19191_s1 = inlined_call_operand.hbm [shape: f32[8,32,32], index: 1, kind: output, shape index: {}]  }
   0x1   :  { %7 = vsyncpa [#allocation4], 0  ;;  %s12_s8 = sshll.u32 %s19190_s0, 4  ;;  %s10002_s9 = smov [#allocation2]   ;;  %s13_s8 = int_to_ptr.hbm [resolvable:$true] %s12_s8 }
   0x2   :  { %s14_s10 = sshll.u32 %s10002_s9, 4  ;;  %s10003_s11 = smov 128   ;;  %s15_s10 = int_to_ptr.vmem [resolvable:$true] %s14_s10 }
   0x3   :  { %s10004_s12 = smov 8  }
   0x4   :  { %20 = dma.hbm_to_vmem [thread:$0]  %s13_s8, 2048, %s15_s10, [#allocation3], %s10003_s11, %s10003_s11, %s10004_s12  }
   0x5   :  { %9998 = dma.done.wait [#allocation3], 2048  }
   0x6   :  { %9999 = vsyncadd [#allocation3], 4294965248  ;;  %v425_v0 = vlaneseq  ;;  %v10043_v2 = vld [vmem:[#allocation2] sm:$0xff]  ;;  %v10054_v11 = vld [vmem:[#allocation2 + $0x8] sm:$0xff]  ;;  %v10005_v60 = vmov 1983009808  }
   0x7   :  { %v58_v3 = vrot.slane %v10043_v2, 2  ;;  %v57_v4 = vrot.slane %v10043_v2, 1  ;;  %v19199_v5 = vperm.slane %v10043_v2, 0  ;;  %v60_v8 = vrot.slane %v10043_v2, 4  ;;  %v10066_v18 = vld [vmem:[#allocation2 + $0x10] sm:$0xff]  ;;  %v10076_v22 = vld [vmem:[#allocation2 + $0x18] sm:$0xff] }
   0x8   :  { %v10038_v1 = vshrl.u32 %v425_v0, 7  ;;  %v64_v12 = vrot.slane %v10054_v11, 1  ;;  %v59_v14 = vrot.slane %v10043_v2, 3  ;;  %v69_v15 = vrot.slane %v10054_v11, 6  ;;  %v10088_v29 = vld [vmem:[#allocation2 + $0x20] sm:$0xff]  ;;  %v10101_v36 = vld [vmem:[#allocation2 + $0x28] sm:$0xff] }
   0x9   :  { %v171_v6 = vperm.slane %v58_v3, 0  ;;  %v170_v7 = vperm.slane %v57_v4, 0  ;;  %v173_v10 = vperm.slane %v60_v8, 0  ;;  %v73_v19 = vrot.slane %v10066_v18, 3  ;;  %v10109_v40 = vld [vmem:[#allocation2 + $0x30] sm:$0xff]  ;;  %v10121_v47 = vld [vmem:[#allocation2 + $0x38] sm:$0xff] }
   0xa   :  { %9827 = vset.pattern.permute.xlu2 %v10038_v1  ;;  %9826 = vset.pattern.permute.xlu1 %v10038_v1  ;;  %v10052_v9 = vadd.s32 8, %v10038_v1  ;;  %v10059_v13 = vperm.slane %v64_v12, 0  ;;  %v172_v16 = vperm.slane %v59_v14, 0  ;;  %v10064_v17 = vperm.slane %v69_v15, 0  ;;  %v10136_v53 = vld [vmem:[#allocation2 + $0x40] sm:$0xff]  ;;  %v10146_v62 = vld [vmem:[#allocation2 + $0x48] sm:$0xff] }
   0xb   :  { %9825 = vset.pattern.permute.xlu0 %v10038_v1  ;;  %v10071_v20 = vperm.slane %v73_v19, 0  ;;  %v61_v21 = vrot.slane %v10043_v2, 5  ;;  %v19197_v24 = vperm.slane %v10076_v22, 0  ;;  %v62_v25 = vrot.slane %v10043_v2, 6  ;;  %s10007_s0 = smov 2   ;;  %s10008_s13 = smov 4  }
   0xc   :  { %v82_v26 = vrot.slane %v10076_v22, 5  ;;  %v86_v30 = vrot.slane %v10088_v29, 2  ;;  %v63_v32 = vrot.slane %v10043_v2, 7  ;;  %v91_v33 = vrot.slane %v10088_v29, 7  ;;  %s10009_s14 = smov 6   ;;  %s10010_s15 = smov 10  }
   0xd   :  { %v174_v23 = vperm.slane %v61_v21, 0  ;;  %v10084_v27 = vperm.slane %v62_v25, 0  ;;  %v95_v37 = vrot.slane %v10101_v36, 4  ;;  %v177_v38 = vperm.slane %v10054_v11, 0  ;;  %s10011_s16 = smov 12   ;;  %s10012_s17 = smov 14  }
   0xe   :  { %v10086_v28 = vperm.slane %v82_v26, 0  ;;  %v10093_v31 = vperm.slane %v86_v30, 0  ;;  %v176_v34 = vperm.slane %v63_v32, 0  ;;  %v10099_v35 = vperm.slane %v91_v33, 0  ;;  %s10013_s18 = smov 16   ;;  %s10014_s19 = smov 18  }
   0xf   :  { %v10107_v39 = vperm.slane %v95_v37, 0  ;;  %v99_v41 = vrot.slane %v10109_v40, 1  ;;  %v65_v43 = vrot.slane %v10054_v11, 2  ;;  %v104_v44 = vrot.slane %v10109_v40, 6  ;;  %s10015_s20 = smov 20   ;;  %s10016_s21 = smov 22  }
  0x10   :  { %v66_v48 = vrot.slane %v10054_v11, 3  ;;  %v108_v49 = vrot.slane %v10121_v47, 3  ;;  %v19196_v54 = vperm.slane %v10136_v53, 0  ;;  %v67_v55 = vrot.slane %v10054_v11, 4  ;;  %s10017_s22 = smov 24   ;;  %s10018_s23 = smov 26  }
  0x11   :  { %v10113_v42 = vperm.slane %v99_v41, 0  ;;  %v179_v45 = vperm.slane %v65_v43, 0  ;;  %v10119_v46 = vperm.slane %v104_v44, 0  ;;  %v117_v56 = vrot.slane %v10136_v53, 5  ;;  %s10019_s24 = smov 28   ;;  %s10020_s25 = smov 30  }
  0x12   :  { %453 = vperm.xlu2 %9827, %v171_v6   ;;  %441 = vperm.xlu1 %9826, %v170_v7   ;;  %v10127_v50 = vperm.slane %v66_v48, 0  ;;  %v10129_v51 = vperm.slane %v108_v49, 0  ;;  %v181_v58 = vperm.slane %v67_v55, 0  ;;  %v1967_v61 = vunpack.c.l.s4 %v10005_v60  ;;  %v36_v55 = vld [vmem:[#allocation2 + $0x58] sm:$0xff]  ;;  %s10021_s26 = smov [#allocation5]   ;;  %s9792_s30 = sshll.u32 %s19191_s1, 4  ;;  %s9793_s30 = int_to_ptr.hbm [resolvable:$true] %s9792_s30 }
  0x13   :  { %429 = vperm.xlu0 %9825, %v19199_v5   ;;  %19759 = vst [vmem:[#allocation8_spill] sm:$0xff] %v10119_v46  ;;  %v10144_v59 = vperm.slane %v117_v56, 0  ;;  %v68_v0 = vrot.slane %v10054_v11, 5  ;;  %v121_v3 = vrot.slane %v10146_v62, 2  ;;  %vm1962_vm0 = vcmask 1047556   ;;  %s9790_s27 = sshll.u32 %s10021_s26, 4  ;;  %s9791_s27 = int_to_ptr.vmem [resolvable:$true] %s9790_s27 }
  0x14   :  { %19760 = vst [vmem:[#allocation9_spill] sm:$0xff] %v10129_v51  ;;  %v10152_v4 = vunpack.c.0.s8 %v1967_v61  ;;  %v126_v26 = vrot.slane %v10146_v62, 7  ;;  %v70_v37 = vrot.slane %v10054_v11, 7  ;;  %vm9258_vm1 = vcmask 15360  }
  0x15   :  { %19761 = vst [vmem:[#allocation10_spill] sm:$0xff] %v10144_v59  ;;  %v182_v12 = vperm.slane %v68_v0, 0  ;;  %v10158_v15 = vperm.slane %v121_v3, 0  ;;  %vm9291_vm2 = vcmask 31744   ;;  %vm9324_vm3 = vcmask 48128  }
  0x16   :  { %v10180_v33 = vperm.slane %v126_v26, 0  ;;  %v184_v44 = vperm.slane %v70_v37, 0  ;;  %vm9357_vm4 = vcmask 64512   ;;  %vm9390_vm5 = vcmask 80896  }
  0x17   :  { %19763 = vst [vmem:[#allocation12_spill] sm:$0xff] %v10158_v15  ;;  %vm9423_vm6 = vcmask 97280   ;;  %vm9456_vm7 = vcmask 113664   ;;  %vm9489_vm8 = vcmask 130048   ;;  %vm9522_vm9 = vcmask 146432  }
  0x18   :  { %19766 = vst [vmem:[#allocation15_spill] sm:$0xff] %v10180_v33  ;;  %vm9555_vm10 = vcmask 162816   ;;  %vm9588_vm11 = vcmask 179200   ;;  %vm9621_vm12 = vcmask 195584   ;;  %vm9654_vm13 = vcmask 211968  }
  0x19   :  { %vm9687_vm14 = vcmask 228352   ;;  %vm9720_vm15 = vcmask 244736  }
  0x1a   :  { %9830 = vset.pattern.permute.xlu2 %v10052_v9  ;;  %9828 = vset.pattern.permute.xlu1 %v10052_v9 }
  0x1b   :  { %477 = vperm.xlu0 %9825, %v173_v10  }
  0x22   :  { %459 = vperm.xlu2 %9830, %v171_v6   ;;  %447 = vperm.xlu1 %9828, %v170_v7  }
  0x23   :  { %537 = vperm.xlu0 %9825, %v10059_v13  }
  0x2a   :  { %471 = vperm.xlu2 %9830, %v172_v16   ;;  %9829 = vset.pattern.permute.xlu1 %v10038_v1 }
  0x2b   :  { %597 = vperm.xlu0 %9825, %v10064_v17  }
  0x32   :  { %9832 = vset.pattern.permute.xlu2 %v10038_v1  ;;  %465 = vperm.xlu1 %9829, %v172_v16  }
  0x33   :  { %657 = vperm.xlu0 %9825, %v10071_v20  }
  0x3a   :  { %489 = vperm.xlu2 %9832, %v174_v23   ;;  %9831 = vset.pattern.permute.xlu1 %v10052_v9 }
  0x3b   :  { %717 = vperm.xlu0 %9825, %v19197_v24  }
  0x42   :  { %501 = vperm.xlu2 %9832, %v10084_v27   ;;  %483 = vperm.xlu1 %9831, %v173_v10  }
  0x43   :  { %777 = vperm.xlu0 %9825, %v10086_v28  }
  0x4a   :  { %9834 = vset.pattern.permute.xlu2 %v10052_v9  ;;  %495 = vperm.xlu1 %9831, %v174_v23  }
  0x4b   :  { %837 = vperm.xlu0 %9825, %v10093_v31  }
  0x52   :  { %519 = vperm.xlu2 %9834, %v176_v34   ;;  %9833 = vset.pattern.permute.xlu1 %v10038_v1 }
  0x53   :  { %897 = vperm.xlu0 %9825, %v10099_v35  }
  0x5a   :  { %531 = vperm.xlu2 %9834, %v177_v38   ;;  %513 = vperm.xlu1 %9833, %v176_v34   ;;  %v10182_v34 = vld [vmem:[#allocation2 + $0x50] sm:$0xff] }
  0x5b   :  { %957 = vperm.xlu0 %9825, %v10107_v39   ;;  %v130_v41 = vrot.slane %v10182_v34, 4 }
  0x5d   :  { %v10191_v49 = vperm.slane %v130_v41, 0  ;;  %v139_v41 = vrot.slane %v36_v55, 6 }
  0x5f   :  { %19767 = vst [vmem:[#allocation16_spill] sm:$0xff] %v10191_v49 }
  0x62   :  { %9836 = vset.pattern.permute.xlu2 %v10038_v1  ;;  %525 = vperm.xlu1 %9833, %v177_v38  }
  0x63   :  { %1017 = vperm.xlu0 %9825, %v10113_v42  }
  0x6a   :  { %549 = vperm.xlu2 %9836, %v179_v45   ;;  %9835 = vset.pattern.permute.xlu1 %v10052_v9 }
  0x6b   :  { %1077 = vperm.xlu0 %9825, %v10119_v46  }
  0x6c   :  { %v10133_v52 = vpop.permute.xlu2 %453 }
  0x6d   :  { %v1976_v26 = vrot.slane %v10133_v52, 4 }
  0x72   :  { %561 = vperm.xlu2 %9836, %v10127_v50   ;;  %543 = vperm.xlu1 %9835, %v10059_v13  }
  0x73   :  { %1137 = vperm.xlu0 %9825, %v10129_v51  }
  0x7a   :  { %9838 = vset.pattern.permute.xlu2 %v10052_v9  ;;  %555 = vperm.xlu1 %9835, %v179_v45  }
  0x7b   :  { %1197 = vperm.xlu0 %9825, %v19196_v54  }
  0x7c   :  { %v460_v57 = vpop.permute.xlu2 %459 }
  0x7d   :  { %v2312_v63 = vrot.slane %v460_v57, 4 }
  0x82   :  { %579 = vperm.xlu2 %9838, %v181_v58   ;;  %9837 = vset.pattern.permute.xlu1 %v10038_v1 }
  0x83   :  { %1257 = vperm.xlu0 %9825, %v10144_v59  }
  0x84   :  { %v472_v6 = vpop.permute.xlu2 %471  ;;  %v442_v14 = vpop.permute.xlu1 %441 }
  0x85   :  { %v430_v7 = vpop.permute.xlu0 %429  ;;  %v2313_v8 = vsel %vm1962_vm0, %v472_v6, %v2312_v63  ;;  %v2310_v38 = vrot.slane %v472_v6, 4  ;;  %v1961_v48 = vrot.slane %v442_v14, 4  ;;  %v19198_v6 = vperm.slane %v10066_v18, 0 }
  0x86   :  { %v1964_v10 = vrot.slane %v430_v7, 4  ;;  %v10156_v13 = vperm.slane %v2313_v8, %v10152_v4 }
  0x87   :  { %v2311_v45 = vsel %vm1962_vm0, %v2310_v38, %v460_v57  ;;  %v1963_v11 = vsel %vm1962_vm0, %v1961_v48, %v430_v7  ;;  %v10006_v7 = vmov 1934713408  }
  0x88   :  { %19762 = vst [vmem:[#allocation11_spill] sm:$0xff] %v10156_v13  ;;  %v1965_v16 = vsel %vm1962_vm0, %v442_v14, %v1964_v10  ;;  %v19192_v19 = vrot.slane %v10156_v13, 4  ;;  %v10194_v56 = vperm.slane %v2311_v45, %v10152_v4  ;;  %v1969_v3 = vperm.slane %v1963_v11, %v10152_v4 }
  0x89   :  { %v10163_v21 = vperm.slane %v1965_v16, %v10152_v4 }
  0x8a   :  { %591 = vperm.xlu2 %9838, %v182_v12   ;;  %573 = vperm.xlu1 %9837, %v181_v58   ;;  %v10169_v23 = vsel %vm1962_vm0, %v10156_v13, %v19192_v19  ;;  %19768 = vst [vmem:[#allocation17_spill] sm:$0xff] %v10194_v56  ;;  %v134_v58 = vrot.slane %v36_v55, 1  ;;  %v19193_v57 = vrot.slane %v10194_v56, 4  ;;  %v1986_v16 = vrot.slane %v1969_v3, 4 }
  0x8b   :  { %19764 = vst [vmem:[#allocation13_spill] sm:$0xff] %v10163_v21  ;;  %v19194_v25 = vrot.slane %v10163_v21, 4  ;;  %1317 = vperm.xlu0 %9825, %v10158_v15  }
  0x8c   :  { %19765 = vst [vmem:[#allocation14_spill] sm:$0xff] %v10169_v23  ;;  %v10206_v8 = vperm.slane %v134_v58, 0  ;;  %v10213_v14 = vsel %vm1962_vm0, %v10194_v56, %v19193_v57  ;;  %v10238_v57 = vperm.slane %v139_v41, 0  ;;  %v10307_v23 = vld [vmem:[#allocation2 + $0x68] sm:$0xff] }
  0x8d   :  { %v478_v30 = vpop.permute.xlu0 %477  ;;  %v10178_v32 = vsel %vm1962_vm0, %v10163_v21, %v19194_v25  ;;  %19781 = vst [vmem:[#allocation30_spill] sm:$0xff] %v10307_v23  ;;  %v19206_v56 = vperm.slane %v10307_v23, 0 }
  0x8e   :  { %19769 = vst [vmem:[#allocation18_spill] sm:$0xff] %v10206_v8  ;;  %v2048_v37 = vrot.slane %v478_v30, 4 }
  0x8f   :  { %19771 = vst [vmem:[#allocation20_spill] sm:$0xff] %v10238_v57 }
  0x92   :  { %9840 = vset.pattern.permute.xlu2 %v10038_v1  ;;  %585 = vperm.xlu1 %9837, %v182_v12   ;;  %v1990_v12 = vunpack.c.l.s4 %v10006_v7 }
  0x93   :  { %1377 = vperm.xlu0 %9825, %v10180_v33  }
  0x94   :  { %v490_v60 = vpop.permute.xlu2 %489  ;;  %v10199_v61 = vpop.permute.xlu1 %447 }
  0x95   :  { %v10188_v43 = vpop.permute.xlu0 %537  ;;  %v2046_v63 = vrot.slane %v490_v60, 4  ;;  %v2049_v55 = vsel %vm1962_vm0, %v490_v60, %v2048_v37  ;;  %v71_v60 = vrot.slane %v10066_v18, 1 }
  0x96   :  { %v2130_v33 = vrot.slane %v10188_v43, 4 }
  0x97   :  { %v2047_v10 = vsel %vm1962_vm0, %v2046_v63, %v478_v30  ;;  %v10226_v63 = vunpack.c.0.s8 %v1990_v12  ;;  %v1988_v30 = vsel %vm1962_vm0, %v1969_v3, %v1986_v16 }
  0x98   :  { %v10221_v38 = vperm.slane %v2047_v10, %v10152_v4 }
  0x9a   :  { %609 = vperm.xlu2 %9840, %v184_v44   ;;  %9839 = vset.pattern.permute.xlu1 %v10052_v9  ;;  %v19200_v19 = vrot.slane %v10221_v38, 4 }
  0x9b   :  { %1437 = vperm.xlu0 %9825, %v10191_v49  }
  0x9d   :  { %v10202_v0 = vpop.permute.xlu0 %597 }
  0xa2   :  { %621 = vperm.xlu2 %9840, %v19198_v6   ;;  %603 = vperm.xlu1 %9839, %v10064_v17   ;;  %v10231_v17 = vpop.permute.xlu2 %501  ;;  %v186_v6 = vperm.slane %v71_v60, 0  ;;  %v72_v60 = vrot.slane %v10066_v18, 2 }
  0xa3   :  { %1497 = vperm.xlu0 %9825, %v10206_v8  }
  0xa4   :  { %v466_v45 = vpop.permute.xlu1 %465 }
  0xa5   :  { %v1974_v48 = vrot.slane %v466_v45, 4  ;;  %v1977_v11 = vsel %vm1962_vm0, %v466_v45, %v1976_v26  ;;  %v10224_v58 = vpop.permute.xlu0 %657  ;;  %v37_v45 = vld [vmem:[#allocation2 + $0x60] sm:$0xff] }
  0xa6   :  { %v10229_v7 = vperm.slane %v1977_v11, %v10152_v4  ;;  %v10243_v11 = vperm.slane %v1988_v30, %v10226_v63  ;;  %v143_v41 = vrot.slane %v37_v45, 3 }
  0xa7   :  { %v1975_v10 = vsel %vm1962_vm0, %v1974_v48, %v10133_v52  ;;  %v10250_v52 = vperm.slane %v2049_v55, %v10152_v4  ;;  %v10259_v48 = vsel %vm1962_vm0, %v10221_v38, %v19200_v19  ;;  %v2007_v55 = vperm.slane %v10178_v32, %v10226_v63 }
  0xa8   :  { %19770 = vst [vmem:[#allocation19_spill] sm:$0xff] %v10229_v7  ;;  %v1981_v26 = vperm.slane %v1975_v10, %v10152_v4  ;;  %v19195_v12 = vrot.slane %v10229_v7, 4  ;;  %v2036_v5 = vrot.slane %v10243_v11, 4 }
  0xa9   :  { %19772 = vst [vmem:[#allocation21_spill] sm:$0xff] %v10243_v11  ;;  %v19205_v24 = vrot.slane %v10250_v52, 4  ;;  %v75_v11 = vrot.slane %v10066_v18, 5 }
  0xaa   :  { %v2021_v25 = vsel %vm1962_vm0, %v10229_v7, %v19195_v12  ;;  %19773 = vst [vmem:[#allocation22_spill] sm:$0xff] %v10250_v52  ;;  %9842 = vset.pattern.permute.xlu2 %v10052_v9  ;;  %615 = vperm.xlu1 %9839, %v184_v44   ;;  %v2008_v37 = vrot.slane %v1981_v26, 4  ;;  %v1987_v12 = vsel %vm1962_vm0, %v1986_v16, %v1969_v3 }
  0xab   :  { %1557 = vperm.xlu0 %9825, %v10238_v57   ;;  %v10282_v19 = vperm.slane %v1987_v12, %v10226_v63  ;;  %v10299_v12 = vsel %vm1962_vm0, %v10250_v52, %v19205_v24  ;;  %v10361_v8 = vperm.slane %v75_v11, 0 }
  0xac   :  { %v2009_v30 = vsel %vm1962_vm0, %v2008_v37, %v1981_v26  ;;  %v2010_v10 = vsel %vm1962_vm0, %v1981_v26, %v2008_v37  ;;  %v2029_v26 = vperm.slane %v2021_v25, %v10226_v63  ;;  %v10277_v37 = vperm.slane %v143_v41, 0  ;;  %v10279_v32 = vpop.permute.xlu2 %519 }
  0xad   :  { %v10265_v44 = vpop.permute.xlu0 %717  ;;  %v10269_v54 = vperm.slane %v2009_v30, %v10226_v63  ;;  %v10272_v45 = vperm.slane %v2010_v10, %v10226_v63  ;;  %19777 = vst [vmem:[#allocation26_spill] sm:$0xff] %v10282_v19  ;;  %v2044_v30 = vrot.slane %v2007_v55, 4 }
  0xae   :  { %19776 = vst [vmem:[#allocation25_spill] sm:$0xff] %v10277_v37  ;;  %v2042_v41 = vrot.slane %v2029_v26, 4 }
  0xaf   :  { %19774 = vst [vmem:[#allocation23_spill] sm:$0xff] %v10269_v54  ;;  %v2030_v3 = vrot.slane %v10269_v54, 4  ;;  %v10287_v16 = vsel %vm1962_vm0, %v10272_v45, %v2036_v5  ;;  %v10302_v5 = vsel %vm1962_vm0, %v2029_v26, %v2044_v30  ;;  %v152_v26 = vrot.slane %v10307_v23, 5 }
  0xb0   :  { %19775 = vst [vmem:[#allocation24_spill] sm:$0xff] %v10272_v45  ;;  %v10310_v13 = vsel %vm1962_vm0, %v2042_v41, %v2007_v55  ;;  %v2060_v45 = vrot.slane %v10231_v17, 4 }
  0xb1   :  { %19778 = vst [vmem:[#allocation27_spill] sm:$0xff] %v10287_v16  ;;  %v10293_v25 = vsel %vm1962_vm0, %v2030_v3, %v10282_v19  ;;  %v10327_v41 = vperm.slane %v152_v26, 0 }
  0xb2   :  { %639 = vperm.xlu2 %9842, %v186_v6   ;;  %9841 = vset.pattern.permute.xlu1 %v10038_v1  ;;  %19779 = vst [vmem:[#allocation28_spill] sm:$0xff] %v10293_v25  ;;  %v187_v25 = vperm.slane %v72_v60, 0 }
  0xb3   :  { %19780 = vst [vmem:[#allocation29_spill] sm:$0xff] %v10302_v5  ;;  %1617 = vperm.xlu0 %9825, %v10277_v37  }
  0xb4   :  { %v10305_v10 = vpop.permute.xlu1 %483  ;;  %19782 = vst [vmem:[#allocation31_spill] sm:$0xff] %v10310_v13  ;;  %v10315_v24 = vpop.permute.xlu2 %531  ;;  %v39_v13 = vld [vmem:[#allocation2 + $0x70] sm:$0xff] }
  0xb5   :  { %v10312_v3 = vpop.permute.xlu0 %777  ;;  %19783 = vst [vmem:[#allocation32_spill] sm:$0xff] %v10315_v24  ;;  %v156_v21 = vrot.slane %v39_v13, 2  ;;  %v161_v54 = vrot.slane %v39_v13, 7 }
  0xb6   :  { %19784 = vst [vmem:[#allocation33_spill] sm:$0xff] %v10327_v41 }
  0xb7   :  { %v10346_v16 = vperm.slane %v156_v21, 0  ;;  %v10366_v49 = vperm.slane %v161_v54, 0 }
  0xb9   :  { %19786 = vst [vmem:[#allocation35_spill] sm:$0xff] %v10346_v16 }
  0xba   :  { %651 = vperm.xlu2 %9842, %v187_v25   ;;  %633 = vperm.xlu1 %9841, %v186_v6   ;;  %19789 = vst [vmem:[#allocation38_spill] sm:$0xff] %v10366_v49 }
  0xbb   :  { %1677 = vperm.xlu0 %9825, %v19206_v56   ;;  %v74_v56 = vrot.slane %v10066_v18, 4 }
  0xbc   :  { %v10320_v30 = vpop.permute.xlu1 %495 }
  0xbd   :  { %v2382_v5 = vrot.slane %v10320_v30, 4  ;;  %v10323_v55 = vpop.permute.xlu0 %837 }
  0xbf   :  { %v2383_v60 = vsel %vm1962_vm0, %v2382_v5, %v10305_v10 }
  0xc0   :  { %v10330_v6 = vperm.slane %v2383_v60, %v10152_v4  ;;  %v10344_v60 = vperm.slane %v74_v56, 0 }
  0xc2   :  { %19785 = vst [vmem:[#allocation34_spill] sm:$0xff] %v10330_v6  ;;  %9844 = vset.pattern.permute.xlu2 %v10038_v1  ;;  %645 = vperm.xlu1 %9841, %v187_v25   ;;  %v19216_v52 = vrot.slane %v10330_v6, 4 }
  0xc3   :  { %1737 = vperm.xlu0 %9825, %v10327_v41  }
  0xc4   :  { %v550_v7 = vpop.permute.xlu2 %549  ;;  %v10340_v5 = vsel %vm1962_vm0, %v10330_v6, %v19216_v52 }
  0xc5   :  { %v10342_v26 = vpop.permute.xlu0 %897  ;;  %v2144_v25 = vrot.slane %v550_v7, 4 }
  0xca   :  { %669 = vperm.xlu2 %9844, %v10344_v60   ;;  %9843 = vset.pattern.permute.xlu1 %v10052_v9 }
  0xcb   :  { %1797 = vperm.xlu0 %9825, %v10346_v16  }
  0xcc   :  { %v514_v52 = vpop.permute.xlu1 %513  ;;  %v562_v6 = vpop.permute.xlu2 %561 }
  0xcd   :  { %v2058_v19 = vrot.slane %v514_v52, 4  ;;  %v2061_v56 = vsel %vm1962_vm0, %v514_v52, %v2060_v45  ;;  %v2142_v41 = vrot.slane %v562_v6, 4  ;;  %v2145_v21 = vsel %vm1962_vm0, %v562_v6, %v2144_v25  ;;  %v10355_v23 = vpop.permute.xlu0 %957 }
  0xce   :  { %19787 = vst [vmem:[#allocation36_spill] sm:$0xff] %v10355_v23  ;;  %v10358_v37 = vperm.slane %v2061_v56, %v10152_v4  ;;  %v2153_v57 = vperm.slane %v2145_v21, %v10152_v4  ;;  %v40_v56 = vld [vmem:[#allocation2 + $0x78] sm:$0xff] }
  0xcf   :  { %v2059_v13 = vsel %vm1962_vm0, %v2058_v19, %v10231_v17  ;;  %v2143_v16 = vsel %vm1962_vm0, %v2142_v41, %v550_v7  ;;  %v165_v54 = vrot.slane %v40_v56, 4  ;;  %v19790_v17 = vrot.slane %v10221_v38, 4 }
  0xd0   :  { %19788 = vst [vmem:[#allocation37_spill] sm:$0xff] %v10358_v37  ;;  %v2065_v52 = vperm.slane %v2059_v13, %v10152_v4  ;;  %v19228_v45 = vrot.slane %v10358_v37, 4  ;;  %v2149_v6 = vperm.slane %v2143_v16, %v10152_v4  ;;  %v2187_v25 = vrot.slane %v2153_v57, 4 }
  0xd1   :  { %v2071_v16 = vsel %vm1962_vm0, %v19790_v17, %v10221_v38  ;;  %v2080_v13 = vperm.slane %v10259_v48, %v10226_v63  ;;  %v10403_v48 = vperm.slane %v165_v54, 0 }
  0xd2   :  { %v2105_v11 = vsel %vm1962_vm0, %v10358_v37, %v19228_v45  ;;  %v2189_v19 = vsel %vm1962_vm0, %v2153_v57, %v2187_v25  ;;  %681 = vperm.xlu2 %9844, %v10361_v8   ;;  %663 = vperm.xlu1 %9843, %v10071_v20   ;;  %v2176_v7 = vrot.slane %v2149_v6, 4  ;;  %v2092_v41 = vrot.slane %v2065_v52, 4 }
  0xd3   :  { %1857 = vperm.xlu0 %9825, %v10366_v49   ;;  %v10396_v38 = vperm.slane %v2071_v16, %v10226_v63  ;;  %19794 = vst [vmem:[#allocation42_spill] sm:$0xff] %v10403_v48  ;;  %v2091_v16 = vperm.slane %v10299_v12, %v10226_v63 }
  0xd4   :  { %v526_v21 = vpop.permute.xlu1 %525  ;;  %v2177_v49 = vsel %vm1962_vm0, %v2176_v7, %v2149_v6  ;;  %v2093_v20 = vsel %vm1962_vm0, %v2092_v41, %v2065_v52  ;;  %v2178_v51 = vsel %vm1962_vm0, %v2149_v6, %v2176_v7 }
  0xd5   :  { %v2131_v45 = vsel %vm1962_vm0, %v2130_v33, %v526_v21  ;;  %v2132_v37 = vrot.slane %v526_v21, 4  ;;  %v10387_v15 = vpop.permute.xlu0 %1017  ;;  %v10393_v59 = vperm.slane %v2177_v49, %v10226_v63  ;;  %19792 = vst [vmem:[#allocation40_spill] sm:$0xff] %v10396_v38  ;;  %v10399_v17 = vperm.slane %v2093_v20, %v10226_v63 }
  0xd6   :  { %19791 = vst [vmem:[#allocation39_spill] sm:$0xff] %v10387_v15  ;;  %v2137_v56 = vperm.slane %v2131_v45, %v10152_v4  ;;  %v2094_v21 = vsel %vm1962_vm0, %v2065_v52, %v2092_v41  ;;  %v2120_v49 = vrot.slane %v2080_v13, 4  ;;  %v76_v52 = vrot.slane %v10066_v18, 6 }
  0xd7   :  { %19793 = vst [vmem:[#allocation41_spill] sm:$0xff] %v10399_v17  ;;  %v2133_v33 = vsel %vm1962_vm0, %v10188_v43, %v2132_v37  ;;  %v2198_v46 = vrot.slane %v10393_v59, 4  ;;  %v2114_v20 = vrot.slane %v10399_v17, 4  ;;  %v2102_v23 = vperm.slane %v2094_v21, %v10226_v63 }
  0xd8   :  { %v2141_v45 = vperm.slane %v2133_v33, %v10152_v4  ;;  %v2154_v15 = vrot.slane %v2137_v56, 4  ;;  %v2186_v43 = vperm.slane %v2178_v51, %v10226_v63 }
  0xd9   :  { %v10425_v7 = vsel %vm1962_vm0, %v2114_v20, %v10396_v38  ;;  %v2118_v51 = vrot.slane %v2102_v23, 4  ;;  %v10428_v41 = vsel %vm1962_vm0, %v2102_v23, %v2120_v49  ;;  %v2197_v23 = vperm.slane %v2189_v19, %v10226_v63 }
  0xda   :  { %v2155_v37 = vsel %vm1962_vm0, %v2154_v15, %v2137_v56  ;;  %9846 = vset.pattern.permute.xlu2 %v10052_v9  ;;  %v2156_v6 = vsel %vm1962_vm0, %v2137_v56, %v2154_v15  ;;  %v2165_v54 = vrot.slane %v2141_v45, 4  ;;  %675 = vperm.xlu1 %9843, %v10344_v60   ;;  %19795 = vst [vmem:[#allocation43_spill] sm:$0xff] %v10425_v7  ;;  %v2202_v21 = vrot.slane %v2186_v43, 4 }
  0xdb   :  { %1917 = vperm.xlu0 %9825, %v10403_v48   ;;  %v10421_v12 = vperm.slane %v2155_v37, %v10226_v63  ;;  %19796 = vst [vmem:[#allocation44_spill] sm:$0xff] %v10428_v41  ;;  %v2164_v33 = vperm.slane %v2156_v6, %v10226_v63  ;;  %v2113_v56 = vperm.slane %v2105_v11, %v10226_v63  ;;  %v191_v49 = vperm.slane %v76_v52, 0 }
  0xdc   :  { %v2166_v15 = vsel %vm1962_vm0, %v2165_v54, %v2141_v45  ;;  %v2188_v60 = vsel %vm1962_vm0, %v2187_v25, %v2153_v57  ;;  %v10441_v20 = vsel %vm1962_vm0, %v2118_v51, %v2080_v13  ;;  %v2128_v57 = vrot.slane %v2091_v16, 4  ;;  %v10450_v25 = vpop.permute.xlu2 %579 }
  0xdd   :  { %v10434_v17 = vpop.permute.xlu0 %1077  ;;  %v10438_v37 = vsel %vm1962_vm0, %v2198_v46, %v10421_v12  ;;  %19798 = vst [vmem:[#allocation46_spill] sm:$0xff] %v10441_v20  ;;  %v10445_v6 = vsel %vm1962_vm0, %v2202_v21, %v2164_v33  ;;  %v2204_v7 = vrot.slane %v2164_v33, 4  ;;  %v10448_v11 = vperm.slane %v2166_v15, %v10226_v63 }
  0xde   :  { %19797 = vst [vmem:[#allocation45_spill] sm:$0xff] %v10438_v37  ;;  %v10456_v46 = vperm.slane %v2188_v60, %v10226_v63  ;;  %v2126_v13 = vrot.slane %v2113_v56, 4  ;;  %v2384_v52 = vrot.slane %v10305_v10, 4  ;;  %v2167_v51 = vsel %vm1962_vm0, %v2141_v45, %v2165_v54 }
  0xdf   :  { %19799 = vst [vmem:[#allocation47_spill] sm:$0xff] %v10445_v6  ;;  %v10453_v41 = vsel %vm1962_vm0, %v2186_v43, %v2204_v7  ;;  %v2208_v19 = vrot.slane %v10448_v11, 4  ;;  %v2210_v33 = vrot.slane %v2197_v23, 4  ;;  %v10462_v21 = vsel %vm1962_vm0, %v2113_v56, %v2128_v57 }
  0xe0   :  { %19800 = vst [vmem:[#allocation48_spill] sm:$0xff] %v10448_v11  ;;  %v77_v15 = vrot.slane %v10066_v18, 7  ;;  %v10466_v43 = vsel %vm1962_vm0, %v2126_v13, %v2091_v16  ;;  %v2175_v60 = vperm.slane %v2167_v51, %v10226_v63  ;;  %v2385_v10 = vsel %vm1962_vm0, %v10320_v30, %v2384_v52 }
  0xe1   :  { %19801 = vst [vmem:[#allocation49_spill] sm:$0xff] %v10450_v25  ;;  %v10470_v7 = vsel %vm1962_vm0, %v10456_v46, %v2208_v19  ;;  %v10489_v51 = vperm.slane %v2385_v10, %v10152_v4 }
  0xe2   :  { %19802 = vst [vmem:[#allocation50_spill] sm:$0xff] %v10453_v41  ;;  %699 = vperm.xlu2 %9846, %v191_v49   ;;  %9845 = vset.pattern.permute.xlu1 %v10038_v1  ;;  %v10480_v54 = vsel %vm1962_vm0, %v2210_v33, %v2175_v60  ;;  %v2212_v16 = vrot.slane %v2175_v60, 4  ;;  %v192_v13 = vperm.slane %v77_v15, 0  ;;  %v19814_v15 = vperm.slane %v10043_v2, 0 }
  0xe3   :  { %19803 = vst [vmem:[#allocation51_spill] sm:$0xff] %v10456_v46  ;;  %9927 = vset.pattern.permute.xlu0 %v10052_v9  ;;  %v19241_v37 = vrot.slane %v10489_v51, 4  ;;  %v78_v2 = vrot.slane %v10076_v22, 1 }
  0xe4   :  { %19804 = vst [vmem:[#allocation52_spill] sm:$0xff] %v10462_v21  ;;  %v10477_v45 = vpop.permute.xlu1 %543  ;;  %v10486_v19 = vsel %vm1962_vm0, %v2197_v23, %v2212_v16  ;;  %v10496_v33 = vpop.permute.xlu2 %591 }
  0xe5   :  { %19805 = vst [vmem:[#allocation53_spill] sm:$0xff] %v10466_v43  ;;  %v2466_v56 = vrot.slane %v10477_v45, 4  ;;  %v10483_v57 = vpop.permute.xlu0 %1137  ;;  %v10514_v16 = vsel %vm1962_vm0, %v10489_v51, %v19241_v37 }
  0xe6   :  { %19806 = vst [vmem:[#allocation54_spill] sm:$0xff] %v10470_v7 }
  0xe7   :  { %19807 = vst [vmem:[#allocation55_spill] sm:$0xff] %v10477_v45  ;;  %v2467_v30 = vsel %vm1962_vm0, %v2466_v56, %v10315_v24  ;;  %v2228_v56 = vrot.slane %v10202_v0, 4  ;;  %v194_v24 = vperm.slane %v78_v2, 0 }
  0xe8   :  { %19808 = vst [vmem:[#allocation56_spill] sm:$0xff] %v10480_v54  ;;  %v10494_v52 = vperm.slane %v2467_v30, %v10152_v4 }
  0xe9   :  { %19809 = vst [vmem:[#allocation57_spill] sm:$0xff] %v10483_v57 }
  0xea   :  { %19810 = vst [vmem:[#allocation58_spill] sm:$0xff] %v10486_v19  ;;  %711 = vperm.xlu2 %9846, %v192_v13   ;;  %v19239_v60 = vrot.slane %v10494_v52, 4  ;;  %693 = vperm.xlu1 %9845, %v191_v49   ;;  %v2550_v49 = vrot.slane %v10496_v33, 4 }
  0xeb   :  { %19811 = vst [vmem:[#allocation59_spill] sm:$0xff] %v10489_v51  ;;  %435 = vperm.xlu0 %9927, %v19814_v15  }
  0xec   :  { %19812 = vst [vmem:[#allocation60_spill] sm:$0xff] %v10494_v52  ;;  %v10506_v23 = vsel %vm1962_vm0, %v10494_v52, %v19239_v60  ;;  %v10521_v30 = vpop.permute.xlu1 %555  ;;  %v2551_v51 = vsel %vm1962_vm0, %v2550_v49, %v10450_v25  ;;  %v79_v52 = vrot.slane %v10076_v22, 2  ;;  %v19821_v25 = vperm.slane %v10076_v22, 0 }
  0xed   :  { %19813 = vst [vmem:[#allocation61_spill] sm:$0xff] %v10496_v33  ;;  %v10508_v10 = vpop.permute.xlu0 %1197 }
  0xee   :  { %19815 = vst [vmem:[#allocation62_spill] sm:$0xff] %v10506_v23 }
  0xef   :  { %19816 = vst [vmem:[#allocation63_spill] sm:$0xff] %v10508_v10 }
  0xf2   :  { %9848 = vset.pattern.permute.xlu2 %v10038_v1  ;;  %705 = vperm.xlu1 %9845, %v192_v13  }
  0xf3   :  { %507 = vperm.xlu0 %9927, %v10084_v27   ;;  %v10533_v27 = vperm.slane %v2551_v51, %v10152_v4 }
  0xf4   :  { %v610_v15 = vpop.permute.xlu2 %609 }
  0xf5   :  { %v10523_v60 = vpop.permute.xlu0 %1257  ;;  %v2226_v45 = vrot.slane %v610_v15, 4  ;;  %v2229_v37 = vsel %vm1962_vm0, %v610_v15, %v2228_v56  ;;  %v19250_v49 = vrot.slane %v10533_v27, 4 }
  0xf6   :  { %19817 = vst [vmem:[#allocation64_spill] sm:$0xff] %v10523_v60  ;;  %v10529_v23 = vperm.slane %v2229_v37, %v10152_v4 }
  0xf7   :  { %v2227_v13 = vsel %vm1962_vm0, %v2226_v45, %v10202_v0  ;;  %v195_v0 = vperm.slane %v79_v52, 0  ;;  %v10552_v15 = vsel %vm1962_vm0, %v10533_v27, %v19250_v49 }
  0xf8   :  { %19818 = vst [vmem:[#allocation65_spill] sm:$0xff] %v10529_v23  ;;  %v19248_v33 = vrot.slane %v10529_v23, 4  ;;  %v2233_v2 = vperm.slane %v2227_v13, %v10152_v4 }
  0xfa   :  { %729 = vperm.xlu2 %9848, %v194_v24   ;;  %v2273_v56 = vsel %vm1962_vm0, %v10529_v23, %v19248_v33  ;;  %9847 = vset.pattern.permute.xlu1 %v10052_v9  ;;  %v2260_v45 = vrot.slane %v2233_v2, 4 }
  0xfb   :  { %567 = vperm.xlu0 %9927, %v10127_v50   ;;  %v19820_v50 = vperm.slane %v10066_v18, 0  ;;  %v2281_v49 = vperm.slane %v2273_v56, %v10226_v63 }
  0xfc   :  { %v574_v37 = vpop.permute.xlu1 %573  ;;  %v2261_v21 = vsel %vm1962_vm0, %v2260_v45, %v2233_v2  ;;  %v10585_v11 = vpop.permute.xlu2 %621 }
  0xfd   :  { %v10545_v51 = vpop.permute.xlu0 %1317  ;;  %v2216_v33 = vrot.slane %v574_v37, 4  ;;  %v10568_v18 = vperm.slane %v2261_v21, %v10226_v63  ;;  %v2294_v56 = vrot.slane %v2281_v49, 4 }
  0xfe   :  { %19819 = vst [vmem:[#allocation66_spill] sm:$0xff] %v10545_v51 }
  0xff   :  { %19824 = vst [vmem:[#allocation69_spill] sm:$0xff] %v10568_v18  ;;  %v2282_v21 = vrot.slane %v10568_v18, 4 }
 0x102   :  { %741 = vperm.xlu2 %9848, %v195_v0   ;;  %723 = vperm.xlu1 %9847, %v19821_v25  }
 0x103   :  { %627 = vperm.xlu0 %9927, %v19820_v50  }
 0x104   :  { %v586_v13 = vpop.permute.xlu1 %585 }
 0x105   :  { %v2214_v19 = vrot.slane %v586_v13, 4  ;;  %v2217_v52 = vsel %vm1962_vm0, %v586_v13, %v2216_v33  ;;  %v10560_v54 = vpop.permute.xlu0 %1377  ;;  %v80_v33 = vrot.slane %v10076_v22, 3 }
 0x106   :  { %19822 = vst [vmem:[#allocation67_spill] sm:$0xff] %v10560_v54  ;;  %v10563_v7 = vperm.slane %v2217_v52, %v10152_v4 }
 0x107   :  { %v2215_v43 = vsel %vm1962_vm0, %v2214_v19, %v574_v37 }
 0x108   :  { %19823 = vst [vmem:[#allocation68_spill] sm:$0xff] %v10563_v7  ;;  %v2221_v25 = vperm.slane %v2215_v43, %v10152_v4  ;;  %v19255_v50 = vrot.slane %v10563_v7, 4 }
 0x10a   :  { %v2238_v23 = vrot.slane %v2221_v25, 4  ;;  %9850 = vset.pattern.permute.xlu2 %v10052_v9  ;;  %v2251_v13 = vsel %vm1962_vm0, %v10563_v7, %v19255_v50  ;;  %735 = vperm.xlu1 %9847, %v194_v24   ;;  %v2262_v24 = vsel %vm1962_vm0, %v2233_v2, %v2260_v45  ;;  %v81_v2 = vrot.slane %v10076_v22, 4 }
 0x10b   :  { %687 = vperm.xlu0 %9927, %v10361_v8   ;;  %v2259_v43 = vperm.slane %v2251_v13, %v10226_v63  ;;  %v196_v8 = vperm.slane %v80_v33, 0  ;;  %v84_v33 = vrot.slane %v10076_v22, 7 }
 0x10c   :  { %v2239_v19 = vsel %vm1962_vm0, %v2238_v23, %v2221_v25  ;;  %v2240_v37 = vsel %vm1962_vm0, %v2221_v25, %v2238_v23  ;;  %v10602_v25 = vperm.slane %v2262_v24, %v10226_v63 }
 0x10d   :  { %v10583_v52 = vpop.permute.xlu0 %1437  ;;  %v10588_v46 = vperm.slane %v2239_v19, %v10226_v63  ;;  %v10591_v50 = vperm.slane %v2240_v37, %v10226_v63  ;;  %v10595_v7 = vsel %vm1962_vm0, %v2294_v56, %v2259_v43  ;;  %v2296_v13 = vrot.slane %v2259_v43, 4  ;;  %v10617_v43 = vpop.permute.xlu2 %639 }
 0x10e   :  { %19825 = vst [vmem:[#allocation70_spill] sm:$0xff] %v10583_v52  ;;  %v197_v37 = vperm.slane %v81_v2, 0 }
 0x10f   :  { %19826 = vst [vmem:[#allocation71_spill] sm:$0xff] %v10588_v46  ;;  %v10599_v23 = vsel %vm1962_vm0, %v2282_v21, %v10588_v46  ;;  %v2288_v19 = vrot.slane %v10591_v50, 4  ;;  %v10606_v41 = vsel %vm1962_vm0, %v2281_v49, %v2296_v13  ;;  %v200_v49 = vperm.slane %v84_v33, 0 }
 0x110   :  { %19827 = vst [vmem:[#allocation72_spill] sm:$0xff] %v10591_v50  ;;  %v88_v13 = vrot.slane %v10088_v29, 4 }
 0x111   :  { %19828 = vst [vmem:[#allocation73_spill] sm:$0xff] %v10595_v7  ;;  %v10611_v45 = vsel %vm1962_vm0, %v10602_v25, %v2288_v19 }
 0x112   :  { %19829 = vst [vmem:[#allocation74_spill] sm:$0xff] %v10599_v23  ;;  %759 = vperm.xlu2 %9850, %v196_v8   ;;  %9849 = vset.pattern.permute.xlu1 %v10038_v1  ;;  %v10631_v6 = vperm.slane %v88_v13, 0 }
 0x113   :  { %19830 = vst [vmem:[#allocation75_spill] sm:$0xff] %v10602_v25  ;;  %747 = vperm.xlu0 %9927, %v195_v0  }
 0x114   :  { %19831 = vst [vmem:[#allocation76_spill] sm:$0xff] %v10606_v41  ;;  %v604_v56 = vpop.permute.xlu1 %603 }
 0x115   :  { %19832 = vst [vmem:[#allocation77_spill] sm:$0xff] %v10611_v45  ;;  %v10615_v21 = vpop.permute.xlu0 %1497  ;;  %v2564_v24 = vrot.slane %v604_v56, 4  ;;  %v19836_v45 = vrot.slane %v10533_v27, 4 }
 0x116   :  { %19833 = vst [vmem:[#allocation78_spill] sm:$0xff] %v10615_v21 }
 0x117   :  { %v2575_v2 = vsel %vm1962_vm0, %v19836_v45, %v10533_v27  ;;  %v83_v27 = vrot.slane %v10076_v22, 6  ;;  %v92_v45 = vrot.slane %v10101_v36, 1 }
 0x11a   :  { %771 = vperm.xlu2 %9850, %v197_v37   ;;  %753 = vperm.xlu1 %9849, %v196_v8   ;;  %v10633_v8 = vpop.permute.xlu2 %651 }
 0x11b   :  { %807 = vperm.xlu0 %9927, %v200_v49  }
 0x11c   :  { %v616_v19 = vpop.permute.xlu1 %615 }
 0x11d   :  { %v2562_v23 = vrot.slane %v616_v19, 4  ;;  %v2565_v0 = vsel %vm1962_vm0, %v616_v19, %v2564_v24  ;;  %v10621_v41 = vpop.permute.xlu0 %1557  ;;  %v10638_v19 = vperm.slane %v2575_v2, %v10226_v63 }
 0x11e   :  { %19834 = vst [vmem:[#allocation79_spill] sm:$0xff] %v10621_v41  ;;  %v10624_v7 = vperm.slane %v2565_v0, %v10152_v4 }
 0x11f   :  { %v2563_v33 = vsel %vm1962_vm0, %v2562_v23, %v604_v56  ;;  %19837 = vst [vmem:[#allocation81_spill] sm:$0xff] %v10638_v19  ;;  %v2584_v23 = vperm.slane %v10552_v15, %v10226_v63 }
 0x120   :  { %19835 = vst [vmem:[#allocation80_spill] sm:$0xff] %v10624_v7  ;;  %v2569_v20 = vperm.slane %v2563_v33, %v10152_v4  ;;  %v19259_v24 = vrot.slane %v10624_v7, 4 }
 0x121   :  { %v2624_v15 = vrot.slane %v2584_v23, 4 }
 0x122   :  { %v2596_v0 = vrot.slane %v2569_v20, 4  ;;  %v10644_v50 = vsel %vm1962_vm0, %v10624_v7, %v19259_v24  ;;  %9852 = vset.pattern.permute.xlu2 %v10038_v1  ;;  %765 = vperm.xlu1 %9849, %v197_v37   ;;  %v2620_v24 = vrot.slane %v10638_v19, 4  ;;  %v10661_v7 = vperm.slane %v92_v45, 0 }
 0x123   :  { %19838 = vst [vmem:[#allocation82_spill] sm:$0xff] %v10644_v50  ;;  %867 = vperm.xlu0 %9927, %v10631_v6   ;;  %v199_v50 = vperm.slane %v83_v27, 0  ;;  %v97_v27 = vrot.slane %v10101_v36, 6  ;;  %v2646_v19 = vrot.slane %v10224_v58, 4 }
 0x124   :  { %v2597_v56 = vsel %vm1962_vm0, %v2596_v0, %v2569_v20  ;;  %v2598_v13 = vsel %vm1962_vm0, %v2569_v20, %v2596_v0  ;;  %v670_v37 = vpop.permute.xlu2 %669 }
 0x125   :  { %v10654_v2 = vpop.permute.xlu0 %1617  ;;  %v10657_v33 = vperm.slane %v2597_v56, %v10226_v63  ;;  %v2606_v22 = vperm.slane %v2598_v13, %v10226_v63  ;;  %v2636_v56 = vrot.slane %v10585_v11, 4 }
 0x126   :  { %19839 = vst [vmem:[#allocation83_spill] sm:$0xff] %v10654_v2 }
 0x127   :  { %19840 = vst [vmem:[#allocation84_spill] sm:$0xff] %v10657_v33  ;;  %v10665_v25 = vsel %vm1962_vm0, %v10657_v33, %v2620_v24  ;;  %v2622_v18 = vrot.slane %v2606_v22, 4  ;;  %v10668_v20 = vsel %vm1962_vm0, %v2606_v22, %v2624_v15 }
 0x128   :  { %19841 = vst [vmem:[#allocation85_spill] sm:$0xff] %v10665_v25 }
 0x129   :  { %19842 = vst [vmem:[#allocation86_spill] sm:$0xff] %v10668_v20  ;;  %v10671_v0 = vsel %vm1962_vm0, %v2622_v18, %v2584_v23  ;;  %v10685_v23 = vperm.slane %v97_v27, 0  ;;  %v101_v27 = vrot.slane %v10109_v40, 3 }
 0x12a   :  { %789 = vperm.xlu2 %9852, %v199_v50   ;;  %19843 = vst [vmem:[#allocation87_spill] sm:$0xff] %v10671_v0  ;;  %9851 = vset.pattern.permute.xlu1 %v10052_v9 }
 0x12b   :  { %927 = vperm.xlu0 %9927, %v10661_v7   ;;  %v10710_v40 = vperm.slane %v101_v27, 0 }
 0x12c   :  { %v634_v45 = vpop.permute.xlu1 %633  ;;  %v682_v15 = vpop.permute.xlu2 %681 }
 0x12d   :  { %v2634_v13 = vrot.slane %v634_v45, 4  ;;  %v2637_v24 = vsel %vm1962_vm0, %v634_v45, %v2636_v56  ;;  %v10678_v25 = vpop.permute.xlu0 %1677  ;;  %v2718_v36 = vrot.slane %v682_v15, 4  ;;  %v2720_v56 = vrot.slane %v670_v37, 4 }
 0x12e   :  { %19844 = vst [vmem:[#allocation88_spill] sm:$0xff] %v10678_v25  ;;  %v10681_v22 = vperm.slane %v2637_v24, %v10152_v4  ;;  %v10861_v25 = vperm.slane %v10213_v14, %v10226_v63 }
 0x12f   :  { %v2635_v18 = vsel %vm1962_vm0, %v2634_v13, %v10585_v11  ;;  %v2719_v45 = vsel %vm1962_vm0, %v2718_v36, %v670_v37 }
 0x130   :  { %19845 = vst [vmem:[#allocation89_spill] sm:$0xff] %v10681_v22  ;;  %v2641_v20 = vperm.slane %v2635_v18, %v10152_v4  ;;  %v19267_v0 = vrot.slane %v10681_v22, 4  ;;  %v10699_v13 = vperm.slane %v2719_v45, %v10152_v4 }
 0x132   :  { %v2658_v33 = vrot.slane %v2641_v20, 4  ;;  %801 = vperm.xlu2 %9852, %v200_v49   ;;  %v2671_v11 = vsel %vm1962_vm0, %v10681_v22, %v19267_v0  ;;  %783 = vperm.xlu1 %9851, %v10086_v28   ;;  %v2721_v0 = vsel %vm1962_vm0, %v682_v15, %v2720_v56  ;;  %v19271_v22 = vrot.slane %v10699_v13, 4 }
 0x133   :  { %987 = vperm.xlu0 %9927, %v10685_v23  }
 0x134   :  { %v646_v24 = vpop.permute.xlu1 %645  ;;  %v2660_v49 = vsel %vm1962_vm0, %v2641_v20, %v2658_v33  ;;  %v10728_v27 = vsel %vm1962_vm0, %v10699_v13, %v19271_v22  ;;  %v201_v22 = vperm.slane %v10088_v29, 0 }
 0x135   :  { %v2647_v18 = vsel %vm1962_vm0, %v2646_v19, %v646_v24  ;;  %v2648_v37 = vrot.slane %v646_v24, 4  ;;  %v10703_v36 = vpop.permute.xlu0 %1737  ;;  %v2668_v19 = vperm.slane %v2660_v49, %v10226_v63  ;;  %v10717_v24 = vperm.slane %v2721_v0, %v10152_v4 }
 0x136   :  { %19846 = vst [vmem:[#allocation90_spill] sm:$0xff] %v10703_v36  ;;  %v2653_v46 = vperm.slane %v2647_v18, %v10152_v4  ;;  %v2659_v18 = vsel %vm1962_vm0, %v2658_v33, %v2641_v20  ;;  %v2752_v54 = vperm.slane %v10728_v27, %v10226_v63 }
 0x137   :  { %v2649_v28 = vsel %vm1962_vm0, %v10224_v58, %v2648_v37  ;;  %v2708_v49 = vrot.slane %v2668_v19, 4  ;;  %v2679_v37 = vperm.slane %v2671_v11, %v10226_v63  ;;  %v19854_v36 = vrot.slane %v10717_v24, 4 }
 0x138   :  { %v10713_v45 = vperm.slane %v2649_v28, %v10152_v4  ;;  %v2680_v38 = vrot.slane %v2653_v46, 4  ;;  %v10742_v28 = vperm.slane %v2659_v18, %v10226_v63 }
 0x13a   :  { %19847 = vst [vmem:[#allocation91_spill] sm:$0xff] %v10713_v45  ;;  %v2682_v15 = vsel %vm1962_vm0, %v2653_v46, %v2680_v38  ;;  %v19273_v56 = vrot.slane %v10713_v45, 4  ;;  %9854 = vset.pattern.permute.xlu2 %v10052_v9  ;;  %v2681_v58 = vsel %vm1962_vm0, %v2680_v38, %v2653_v46  ;;  %795 = vperm.xlu1 %9851, %v199_v50  }
 0x13b   :  { %1047 = vperm.xlu0 %9927, %v10710_v40   ;;  %v10732_v0 = vperm.slane %v2681_v58, %v10226_v63  ;;  %v2690_v33 = vperm.slane %v2682_v15, %v10226_v63  ;;  %19849 = vst [vmem:[#allocation93_spill] sm:$0xff] %v10742_v28 }
 0x13c   :  { %v700_v20 = vpop.permute.xlu2 %699  ;;  %v2693_v38 = vsel %vm1962_vm0, %v10713_v45, %v19273_v56  ;;  %v2716_v45 = vrot.slane %v2679_v37, 4 }
 0x13d   :  { %19848 = vst [vmem:[#allocation92_spill] sm:$0xff] %v10732_v0  ;;  %v2702_v50 = vrot.slane %v10732_v0, 4  ;;  %v2706_v58 = vrot.slane %v2690_v33, 4  ;;  %v10747_v15 = vsel %vm1962_vm0, %v2690_v33, %v2708_v49  ;;  %v10750_v48 = vpop.permute.xlu0 %1797  ;;  %v2701_v18 = vperm.slane %v2693_v38, %v10226_v63 }
 0x13e   :  { %19850 = vst [vmem:[#allocation94_spill] sm:$0xff] %v10747_v15  ;;  %v3068_v0 = vrot.slane %v700_v20, 4  ;;  %v10764_v33 = vsel %vm1962_vm0, %v10717_v24, %v19854_v36  ;;  %v85_v49 = vrot.slane %v10088_v29, 1  ;;  %v110_v38 = vrot.slane %v10121_v47, 5 }
 0x13f   :  { %19851 = vst [vmem:[#allocation95_spill] sm:$0xff] %v10750_v48  ;;  %v10754_v56 = vsel %vm1962_vm0, %v2702_v50, %v10742_v28  ;;  %v10757_v46 = vsel %vm1962_vm0, %v2706_v58, %v2668_v19  ;;  %v2714_v11 = vrot.slane %v2701_v18, 4  ;;  %v10768_v50 = vsel %vm1962_vm0, %v2701_v18, %v2716_v45 }
 0x140   :  { %19852 = vst [vmem:[#allocation96_spill] sm:$0xff] %v10754_v56  ;;  %v19856_v19 = vperm.slane %v10121_v47, 0  ;;  %v2984_v58 = vrot.slane %v10633_v8, 4  ;;  %v202_v18 = vperm.slane %v85_v49, 0  ;;  %v10786_v28 = vperm.slane %v110_v38, 0 }
 0x141   :  { %19853 = vst [vmem:[#allocation97_spill] sm:$0xff] %v10757_v46  ;;  %v10776_v36 = vsel %vm1962_vm0, %v2714_v11, %v2679_v37 }
 0x142   :  { %819 = vperm.xlu2 %9854, %v201_v22   ;;  %19855 = vst [vmem:[#allocation98_spill] sm:$0xff] %v10768_v50  ;;  %9853 = vset.pattern.permute.xlu1 %v10038_v1 }
 0x143   :  { %1107 = vperm.xlu0 %9927, %v19856_v19   ;;  %19857 = vst [vmem:[#allocation99_spill] sm:$0xff] %v10776_v36 }
 0x144   :  { %v712_v56 = vpop.permute.xlu2 %711  ;;  %v664_v15 = vpop.permute.xlu1 %663 }
 0x145   :  { %v3069_v29 = vsel %vm1962_vm0, %v712_v56, %v3068_v0  ;;  %v2982_v46 = vrot.slane %v664_v15, 4  ;;  %v2985_v45 = vsel %vm1962_vm0, %v664_v15, %v2984_v58  ;;  %v10795_v15 = vpop.permute.xlu0 %1857 }
 0x146   :  { %v10781_v50 = vperm.slane %v3069_v29, %v10152_v4  ;;  %v10784_v19 = vperm.slane %v2985_v45, %v10152_v4  ;;  %19861 = vst [vmem:[#allocation103_spill] sm:$0xff] %v10795_v15  ;;  %v10821_v29 = vld [vmem:[#allocation2 + $0x20] sm:$0xff] }
 0x147   :  { %v2983_v48 = vsel %vm1962_vm0, %v2982_v46, %v10633_v8  ;;  %v87_v45 = vrot.slane %v10821_v29, 3  ;;  %v89_v27 = vrot.slane %v10821_v29, 5 }
 0x148   :  { %19858 = vst [vmem:[#allocation100_spill] sm:$0xff] %v10781_v50  ;;  %v19280_v37 = vrot.slane %v10781_v50, 4  ;;  %v10792_v11 = vperm.slane %v2983_v48, %v10152_v4  ;;  %v19281_v0 = vrot.slane %v10784_v19, 4  ;;  %v114_v48 = vrot.slane %v10136_v53, 2 }
 0x149   :  { %19859 = vst [vmem:[#allocation101_spill] sm:$0xff] %v10784_v19 }
 0x14a   :  { %19860 = vst [vmem:[#allocation102_spill] sm:$0xff] %v10792_v11  ;;  %831 = vperm.xlu2 %9854, %v202_v18   ;;  %v10801_v49 = vsel %vm1962_vm0, %v10781_v50, %v19280_v37  ;;  %v19284_v38 = vrot.slane %v10792_v11, 4  ;;  %v10808_v8 = vsel %vm1962_vm0, %v10784_v19, %v19281_v0  ;;  %813 = vperm.xlu1 %9853, %v201_v22   ;;  %v10818_v58 = vperm.slane %v114_v48, 0 }
 0x14b   :  { %1167 = vperm.xlu0 %9927, %v10786_v28   ;;  %v3066_v37 = vrot.slane %v712_v56, 4  ;;  %v119_v0 = vrot.slane %v10136_v53, 7  ;;  %v123_v56 = vrot.slane %v10146_v62, 4 }
 0x14c   :  { %v10816_v46 = vsel %vm1962_vm0, %v10792_v11, %v19284_v38  ;;  %v10828_v50 = vpop.permute.xlu1 %675  ;;  %v204_v38 = vperm.slane %v87_v45, 0 }
 0x14d   :  { %v10825_v22 = vpop.permute.xlu0 %1917  ;;  %v3067_v48 = vsel %vm1962_vm0, %v3066_v37, %v700_v20  ;;  %v10831_v19 = vperm.slane %v119_v0, 0 }
 0x14e   :  { %19862 = vst [vmem:[#allocation104_spill] sm:$0xff] %v10825_v22  ;;  %v10834_v11 = vperm.slane %v3067_v48, %v10152_v4  ;;  %v10850_v48 = vperm.slane %v123_v56, 0  ;;  %v127_v56 = vrot.slane %v10182_v34, 1 }
 0x14f   :  { %19863 = vst [vmem:[#allocation105_spill] sm:$0xff] %v10831_v19 }
 0x150   :  { %19864 = vst [vmem:[#allocation106_spill] sm:$0xff] %v10834_v11  ;;  %v19292_v20 = vrot.slane %v10834_v11, 4  ;;  %v10888_v21 = vperm.slane %v127_v56, 0 }
 0x151   :  { %19866 = vst [vmem:[#allocation108_spill] sm:$0xff] %v10850_v48 }
 0x152   :  { %9856 = vset.pattern.permute.xlu2 %v10038_v1  ;;  %825 = vperm.xlu1 %9853, %v202_v18   ;;  %v2298_v18 = vrot.slane %v10199_v61, 4  ;;  %v10857_v62 = vsel %vm1962_vm0, %v10834_v11, %v19292_v20  ;;  %v2370_v11 = vrot.slane %v10861_v25, 4  ;;  %19869 = vst [vmem:[#allocation111_spill] sm:$0xff] %v10888_v21 }
 0x153   :  { %1227 = vperm.xlu0 %9927, %v10818_v58   ;;  %19867 = vst [vmem:[#allocation109_spill] sm:$0xff] %v10857_v62 }
 0x154   :  { %v10840_v36 = vpop.permute.xlu2 %729 }
 0x15a   :  { %849 = vperm.xlu2 %9856, %v204_v38   ;;  %9855 = vset.pattern.permute.xlu1 %v10052_v9 }
 0x15b   :  { %1287 = vperm.xlu0 %9927, %v10831_v19  }
 0x15c   :  { %v694_v45 = vpop.permute.xlu1 %693 }
 0x15d   :  { %v10842_v22 = vpop.permute.xlu0 %435  ;;  %v2732_v20 = vrot.slane %v694_v45, 4 }
 0x15e   :  { %v2299_v37 = vsel %vm1962_vm0, %v2298_v18, %v10842_v22 }
 0x15f   :  { %v10848_v0 = vperm.slane %v2299_v37, %v10152_v4  ;;  %v2394_v37 = vrot.slane %v10279_v32, 4 }
 0x161   :  { %19865 = vst [vmem:[#allocation107_spill] sm:$0xff] %v10848_v0  ;;  %v19297_v15 = vrot.slane %v10848_v0, 4 }
 0x162   :  { %861 = vperm.xlu2 %9856, %v10631_v6   ;;  %843 = vperm.xlu1 %9855, %v10093_v31   ;;  %v2804_v31 = vrot.slane %v10265_v44, 4 }
 0x163   :  { %1347 = vperm.xlu0 %9927, %v10850_v48   ;;  %v2324_v18 = vsel %vm1962_vm0, %v10848_v0, %v19297_v15  ;;  %v10882_v15 = vpop.permute.xlu2 %741 }
 0x164   :  { %v10873_v62 = vperm.slane %v2324_v18, %v10226_v63  ;;  %v706_v6 = vpop.permute.xlu1 %705 }
 0x165   :  { %v10875_v14 = vpop.permute.xlu0 %507  ;;  %v2730_v2 = vrot.slane %v706_v6, 4  ;;  %v2733_v41 = vsel %vm1962_vm0, %v706_v6, %v2732_v20 }
 0x166   :  { %v2395_v34 = vsel %vm1962_vm0, %v2394_v37, %v10875_v14  ;;  %v2741_v18 = vperm.slane %v2733_v41, %v10152_v4  ;;  %v10895_v37 = vsel %vm1962_vm0, %v2370_v11, %v10873_v62  ;;  %v19872_v11 = vrot.slane %v10717_v24, 4 }
 0x167   :  { %v10885_v0 = vperm.slane %v2395_v34, %v10152_v4  ;;  %v2731_v52 = vsel %vm1962_vm0, %v2730_v2, %v694_v45  ;;  %19870 = vst [vmem:[#allocation112_spill] sm:$0xff] %v10895_v37  ;;  %v19871_v34 = vrot.slane %v10699_v13, 4  ;;  %v2805_v2 = vsel %vm1962_vm0, %v10840_v36, %v2804_v31 }
 0x168   :  { %v2737_v6 = vperm.slane %v2731_v52, %v10152_v4  ;;  %v2775_v51 = vrot.slane %v2741_v18, 4  ;;  %v2754_v45 = vsel %vm1962_vm0, %v19872_v11, %v10717_v24  ;;  %v2480_v52 = vrot.slane %v10521_v30, 4 }
 0x169   :  { %19868 = vst [vmem:[#allocation110_spill] sm:$0xff] %v10885_v0  ;;  %v19307_v20 = vrot.slane %v10885_v0, 4  ;;  %v2743_v41 = vsel %vm1962_vm0, %v19871_v34, %v10699_v13  ;;  %v9933_v13 = vld [vmem:[#allocation2 + $0x50] sm:$0xff]  ;;  %v2792_v24 = vrot.slane %v2752_v54, 4  ;;  %v10925_v48 = vperm.slane %v2805_v2, %v10152_v4 }
 0x16a   :  { %9858 = vset.pattern.permute.xlu2 %v10052_v9  ;;  %855 = vperm.xlu1 %9855, %v204_v38   ;;  %v132_v31 = vrot.slane %v9933_v13, 6  ;;  %v2777_v34 = vsel %vm1962_vm0, %v2741_v18, %v2775_v51  ;;  %v10921_v37 = vperm.slane %v2743_v41, %v10226_v63  ;;  %v2764_v60 = vrot.slane %v2737_v6, 4 }
 0x16b   :  { %v10916_v56 = vsel %vm1962_vm0, %v10885_v0, %v19307_v20  ;;  %1407 = vperm.xlu0 %9927, %v10888_v21   ;;  %v2776_v11 = vsel %vm1962_vm0, %v2775_v51, %v2741_v18  ;;  %19873 = vst [vmem:[#allocation113_spill] sm:$0xff] %v10925_v48  ;;  %v10928_v20 = vperm.slane %v2754_v45, %v10226_v63  ;;  %v206_v21 = vperm.slane %v89_v27, 0 }
 0x16c   :  { %v2763_v38 = vperm.slane %v10764_v33, %v10226_v63  ;;  %v2765_v41 = vsel %vm1962_vm0, %v2764_v60, %v2737_v6  ;;  %v10937_v51 = vperm.slane %v132_v31, 0  ;;  %v2766_v2 = vsel %vm1962_vm0, %v2737_v6, %v2764_v60  ;;  %v10945_v33 = vpop.permute.xlu2 %759 }
 0x16d   :  { %v568_v10 = vpop.permute.xlu0 %567  ;;  %19874 = vst [vmem:[#allocation114_spill] sm:$0xff] %v10928_v20  ;;  %v10940_v18 = vperm.slane %v2765_v41, %v10226_v63  ;;  %v10949_v27 = vperm.slane %v2776_v11, %v10226_v63  ;;  %v2796_v60 = vrot.slane %v10928_v20, 4 }
 0x16e   :  { %v2478_v13 = vrot.slane %v568_v10, 4  ;;  %v2481_v0 = vsel %vm1962_vm0, %v568_v10, %v2480_v52  ;;  %19876 = vst [vmem:[#allocation116_spill] sm:$0xff] %v10937_v51  ;;  %v2774_v10 = vperm.slane %v2766_v2, %v10226_v63  ;;  %v9934_v2 = vld [vmem:[#allocation2 + $0x58] sm:$0xff] }
 0x16f   :  { %v10935_v19 = vperm.slane %v2481_v0, %v10152_v4  ;;  %19877 = vst [vmem:[#allocation117_spill] sm:$0xff] %v10949_v27  ;;  %v2785_v0 = vperm.slane %v2777_v34, %v10226_v63  ;;  %v2786_v41 = vrot.slane %v10940_v18, 4 }
 0x170   :  { %v2479_v45 = vsel %vm1962_vm0, %v2478_v13, %v10521_v30  ;;  %v90_v30 = vrot.slane %v10821_v29, 6  ;;  %v2790_v13 = vrot.slane %v2774_v10, 4  ;;  %v10961_v11 = vsel %vm1962_vm0, %v2774_v10, %v2792_v24 }
 0x171   :  { %19875 = vst [vmem:[#allocation115_spill] sm:$0xff] %v10935_v19  ;;  %v19312_v31 = vrot.slane %v10935_v19, 4  ;;  %v10957_v6 = vperm.slane %v2479_v45, %v10152_v4  ;;  %v136_v45 = vrot.slane %v9934_v2, 3  ;;  %v10973_v52 = vsel %vm1962_vm0, %v2786_v41, %v10921_v37 }
 0x172   :  { %879 = vperm.xlu2 %9858, %v206_v21   ;;  %19879 = vst [vmem:[#allocation119_spill] sm:$0xff] %v10961_v11  ;;  %9857 = vset.pattern.permute.xlu1 %v10038_v1  ;;  %v2800_v29 = vrot.slane %v2763_v38, 4  ;;  %v2970_v24 = vrot.slane %v10617_v43, 4  ;;  %v10977_v10 = vsel %vm1962_vm0, %v2790_v13, %v2752_v54  ;;  %v19885_v41 = vrot.slane %v10925_v48, 4 }
 0x173   :  { %19878 = vst [vmem:[#allocation118_spill] sm:$0xff] %v10957_v6  ;;  %v10967_v34 = vsel %vm1962_vm0, %v10935_v19, %v19312_v31  ;;  %1467 = vperm.xlu0 %9927, %v10937_v51   ;;  %v10981_v31 = vsel %vm1962_vm0, %v10949_v27, %v2796_v60  ;;  %v19317_v54 = vrot.slane %v10957_v6, 4  ;;  %v207_v13 = vperm.slane %v90_v30, 0 }
 0x174   :  { %19880 = vst [vmem:[#allocation120_spill] sm:$0xff] %v10967_v34  ;;  %v2798_v34 = vrot.slane %v2785_v0, 4  ;;  %v10985_v20 = vpop.permute.xlu1 %723  ;;  %v10988_v2 = vsel %vm1962_vm0, %v2785_v0, %v2800_v29  ;;  %v11002_v27 = vperm.slane %v136_v45, 0  ;;  %v2372_v30 = vrot.slane %v10873_v62, 4 }
 0x175   :  { %19881 = vst [vmem:[#allocation121_spill] sm:$0xff] %v10973_v52  ;;  %v10983_v19 = vpop.permute.xlu0 %627  ;;  %v10994_v52 = vsel %vm1962_vm0, %v10925_v48, %v19885_v41  ;;  %v11014_v41 = vsel %vm1962_vm0, %v10957_v6, %v19317_v54  ;;  %v2802_v62 = vrot.slane %v10840_v36, 4  ;;  %v3150_v6 = vrot.slane %v10945_v33, 4 }
 0x176   :  { %19882 = vst [vmem:[#allocation122_spill] sm:$0xff] %v10977_v10  ;;  %v2971_v60 = vsel %vm1962_vm0, %v2970_v24, %v10983_v19  ;;  %v11005_v0 = vsel %vm1962_vm0, %v2798_v34, %v2763_v38  ;;  %v2438_v38 = vperm.slane %v10916_v56, %v10226_v63 }
 0x177   :  { %19883 = vst [vmem:[#allocation123_spill] sm:$0xff] %v10981_v31  ;;  %v11000_v31 = vperm.slane %v2971_v60, %v10152_v4  ;;  %v11030_v60 = vsel %vm1962_vm0, %v10861_v25, %v2372_v30 }
 0x178   :  { %19884 = vst [vmem:[#allocation124_spill] sm:$0xff] %v10988_v2  ;;  %v11008_v2 = vpop.permute.xlu2 %771 }
 0x179   :  { %19886 = vst [vmem:[#allocation125_spill] sm:$0xff] %v11000_v31  ;;  %v19318_v29 = vrot.slane %v11000_v31, 4 }
 0x17a   :  { %19887 = vst [vmem:[#allocation126_spill] sm:$0xff] %v11002_v27  ;;  %891 = vperm.xlu2 %9858, %v207_v13   ;;  %873 = vperm.xlu1 %9857, %v206_v21   ;;  %v3026_v21 = vperm.slane %v10816_v46, %v10226_v63 }
 0x17b   :  { %19888 = vst [vmem:[#allocation127_spill] sm:$0xff] %v11005_v0  ;;  %1527 = vperm.xlu0 %9927, %v11002_v27   ;;  %v2996_v34 = vsel %vm1962_vm0, %v11000_v31, %v19318_v29  ;;  %v2416_v29 = vperm.slane %v10340_v5, %v10226_v63  ;;  %v2454_v31 = vrot.slane %v2438_v38, 4  ;;  %v2803_v5 = vsel %vm1962_vm0, %v2802_v62, %v10265_v44 }
 0x17c   :  { %19889 = vst [vmem:[#allocation128_spill] sm:$0xff] %v11014_v41  ;;  %v11026_v24 = vpop.permute.xlu1 %735  ;;  %v11039_v41 = vld [vmem:[#allocation2 + $0x60] sm:$0xff]  ;;  %v3004_v25 = vperm.slane %v2996_v34, %v10226_v63  ;;  %v3042_v0 = vrot.slane %v3026_v21, 4 }
 0x17d   :  { %v11024_v45 = vpop.permute.xlu0 %687  ;;  %19890 = vst [vmem:[#allocation129_spill] sm:$0xff] %v11030_v60  ;;  %v3138_v54 = vrot.slane %v11026_v24, 4  ;;  %v145_v34 = vrot.slane %v11039_v41, 5  ;;  %v2456_v48 = vrot.slane %v2416_v29, 4 }
 0x17e   :  { %v3054_v56 = vrot.slane %v11024_v45, 4  ;;  %19891 = vst [vmem:[#allocation130_spill] sm:$0xff] %v11039_v41  ;;  %v11063_v11 = vsel %vm1962_vm0, %v3042_v0, %v3004_v25  ;;  %v3044_v10 = vrot.slane %v3004_v25, 4  ;;  %v11079_v0 = vld [vmem:[#allocation2 + $0x28] sm:$0xff] }
 0x17f   :  { %v3139_v36 = vsel %vm1962_vm0, %v3138_v54, %v10985_v20  ;;  %19895 = vst [vmem:[#allocation133_spill] sm:$0xff] %v11063_v11  ;;  %v11066_v62 = vsel %vm1962_vm0, %v2438_v38, %v2456_v48  ;;  %v11084_v25 = vperm.slane %v145_v34, 0 }
 0x180   :  { %v3055_v30 = vsel %vm1962_vm0, %v3054_v56, %v10828_v50  ;;  %v3145_v60 = vperm.slane %v3139_v36, %v10152_v4  ;;  %v19893_v56 = vperm.slane %v11039_v41, 0  ;;  %v11060_v36 = vsel %vm1962_vm0, %v2454_v31, %v2416_v29  ;;  %19896 = vst [vmem:[#allocation134_spill] sm:$0xff] %v11066_v62 }
 0x181   :  { %v11048_v46 = vperm.slane %v3055_v30, %v10152_v4  ;;  %19894 = vst [vmem:[#allocation132_spill] sm:$0xff] %v11060_v36  ;;  %v19327_v29 = vperm.slane %v11079_v0, 0 }
 0x182   :  { %9860 = vset.pattern.permute.xlu2 %v10038_v1  ;;  %885 = vperm.xlu1 %9857, %v207_v13   ;;  %v3162_v54 = vrot.slane %v3145_v60, 4  ;;  %19898 = vst [vmem:[#allocation136_spill] sm:$0xff] %v11084_v25 }
 0x183   :  { %19892 = vst [vmem:[#allocation131_spill] sm:$0xff] %v11048_v46  ;;  %1587 = vperm.xlu0 %9927, %v19893_v56   ;;  %v19326_v30 = vrot.slane %v11048_v46, 4  ;;  %v2809_v56 = vperm.slane %v2803_v5, %v10152_v4 }
 0x184   :  { %v790_v44 = vpop.permute.xlu2 %789  ;;  %v3163_v48 = vsel %vm1962_vm0, %v3162_v54, %v3145_v60  ;;  %v11087_v62 = vsel %vm1962_vm0, %v3145_v60, %v3162_v54  ;;  %v9937_v60 = vld [vmem:[#allocation2 + $0x68] sm:$0xff] }
 0x185   :  { %v11068_v27 = vpop.permute.xlu0 %747  ;;  %v11074_v13 = vsel %vm1962_vm0, %v11048_v46, %v19326_v30  ;;  %v11090_v30 = vsel %vm1962_vm0, %v3026_v21, %v3044_v10  ;;  %v2900_v11 = vrot.slane %v790_v44, 4  ;;  %v2826_v36 = vrot.slane %v2809_v56, 4 }
 0x186   :  { %19897 = vst [vmem:[#allocation135_spill] sm:$0xff] %v11074_v13  ;;  %v3151_v31 = vsel %vm1962_vm0, %v3150_v6, %v11068_v27  ;;  %v11093_v6 = vperm.slane %v3163_v48, %v10226_v63  ;;  %v149_v10 = vrot.slane %v9937_v60, 2  ;;  %v2816_v21 = vrot.slane %v10882_v15, 4 }
 0x187   :  { %v3157_v38 = vperm.slane %v3151_v31, %v10152_v4  ;;  %19899 = vst [vmem:[#allocation137_spill] sm:$0xff] %v11090_v30 }
 0x188   :  { %19900 = vst [vmem:[#allocation138_spill] sm:$0xff] %v11093_v6  ;;  %v3208_v46 = vrot.slane %v11093_v6, 4  ;;  %v11116_v57 = vperm.slane %v149_v10, 0 }
 0x189   :  { %v3184_v5 = vrot.slane %v3157_v38, 4 }
 0x18a   :  { %909 = vperm.xlu2 %9860, %v19327_v29   ;;  %9859 = vset.pattern.permute.xlu1 %v10052_v9 }
 0x18b   :  { %v3185_v13 = vsel %vm1962_vm0, %v3184_v5, %v3157_v38  ;;  %v3186_v34 = vsel %vm1962_vm0, %v3157_v38, %v3184_v5  ;;  %1647 = vperm.xlu0 %9927, %v11084_v25   ;;  %v2828_v25 = vsel %vm1962_vm0, %v2809_v56, %v2826_v36 }
 0x18c   :  { %v802_v54 = vpop.permute.xlu2 %801  ;;  %v11103_v31 = vperm.slane %v3185_v13, %v10226_v63  ;;  %v754_v48 = vpop.permute.xlu1 %753  ;;  %v11129_v6 = vperm.slane %v2828_v25, %v10226_v63  ;;  %v154_v25 = vrot.slane %v9937_v60, 7 }
 0x18d   :  { %v2898_v30 = vrot.slane %v802_v54, 4  ;;  %v2901_v29 = vsel %vm1962_vm0, %v802_v54, %v2900_v11  ;;  %v2814_v41 = vrot.slane %v754_v48, 4  ;;  %v2817_v38 = vsel %vm1962_vm0, %v754_v48, %v2816_v21 }
 0x18e   :  { %19901 = vst [vmem:[#allocation139_spill] sm:$0xff] %v11103_v31  ;;  %v11109_v5 = vperm.slane %v2901_v29, %v10152_v4  ;;  %v11113_v51 = vperm.slane %v2817_v38, %v10152_v4  ;;  %v11120_v11 = vsel %vm1962_vm0, %v11103_v31, %v3208_v46 }
 0x18f   :  { %v2899_v13 = vsel %vm1962_vm0, %v2898_v30, %v790_v44  ;;  %19904 = vst [vmem:[#allocation142_spill] sm:$0xff] %v11120_v11  ;;  %v2815_v54 = vsel %vm1962_vm0, %v2814_v41, %v10882_v15  ;;  %v2886_v30 = vrot.slane %v10312_v3, 4  ;;  %v2827_v41 = vsel %vm1962_vm0, %v2826_v36, %v2809_v56 }
 0x190   :  { %19902 = vst [vmem:[#allocation140_spill] sm:$0xff] %v11109_v5  ;;  %v2905_v21 = vperm.slane %v2899_v13, %v10152_v4  ;;  %v19335_v29 = vrot.slane %v11109_v5, 4  ;;  %v2821_v48 = vperm.slane %v2815_v54, %v10152_v4  ;;  %v19336_v38 = vrot.slane %v11113_v51, 4 }
 0x191   :  { %19903 = vst [vmem:[#allocation141_spill] sm:$0xff] %v11113_v51  ;;  %v2396_v13 = vrot.slane %v10875_v14, 4  ;;  %v11148_v36 = vperm.slane %v2827_v41, %v10226_v63  ;;  %v2876_v11 = vrot.slane %v11129_v6, 4 }
 0x192   :  { %19905 = vst [vmem:[#allocation143_spill] sm:$0xff] %v11129_v6  ;;  %v2945_v46 = vsel %vm1962_vm0, %v11109_v5, %v19335_v29  ;;  %921 = vperm.xlu2 %9860, %v10661_v7   ;;  %v2932_v15 = vrot.slane %v2905_v21, 4  ;;  %v2861_v44 = vsel %vm1962_vm0, %v11113_v51, %v19336_v38  ;;  %903 = vperm.xlu1 %9859, %v10099_v35   ;;  %v2848_v10 = vrot.slane %v2821_v48, 4 }
 0x193   :  { %1707 = vperm.xlu0 %9927, %v11116_v57   ;;  %19906 = vst [vmem:[#allocation144_spill] sm:$0xff] %v11148_v36 }
 0x194   :  { %v2933_v54 = vsel %vm1962_vm0, %v2932_v15, %v2905_v21  ;;  %v2934_v7 = vsel %vm1962_vm0, %v2905_v21, %v2932_v15  ;;  %v766_v29 = vpop.permute.xlu1 %765  ;;  %v2849_v56 = vsel %vm1962_vm0, %v2848_v10, %v2821_v48  ;;  %v2850_v38 = vsel %vm1962_vm0, %v2821_v48, %v2848_v10 }
 0x195   :  { %v2887_v35 = vsel %vm1962_vm0, %v2886_v30, %v766_v29  ;;  %v2888_v60 = vrot.slane %v766_v29, 4  ;;  %v11155_v31 = vperm.slane %v2933_v54, %v10226_v63  ;;  %v2942_v14 = vperm.slane %v2934_v7, %v10226_v63 }
 0x196   :  { %v2893_v21 = vperm.slane %v2887_v35, %v10152_v4  ;;  %v11159_v15 = vperm.slane %v154_v25, 0  ;;  %v11162_v41 = vperm.slane %v2849_v56, %v10226_v63  ;;  %v11165_v5 = vperm.slane %v2850_v38, %v10226_v63 }
 0x197   :  { %v2889_v48 = vsel %vm1962_vm0, %v10312_v3, %v2888_v60  ;;  %v93_v29 = vrot.slane %v11079_v0, 2  ;;  %v2847_v30 = vperm.slane %v10994_v52, %v10226_v63  ;;  %v3194_v10 = vperm.slane %v3186_v34, %v10226_v63  ;;  %v9938_v60 = vld [vmem:[#allocation2 + $0x70] sm:$0xff] }
 0x198   :  { %19907 = vst [vmem:[#allocation145_spill] sm:$0xff] %v11162_v41  ;;  %v11174_v54 = vperm.slane %v2889_v48, %v10152_v4  ;;  %v2910_v25 = vrot.slane %v2893_v21, 4  ;;  %v2953_v7 = vperm.slane %v2945_v46, %v10226_v63  ;;  %v3172_v38 = vperm.slane %v11087_v62, %v10226_v63 }
 0x199   :  { %19908 = vst [vmem:[#allocation146_spill] sm:$0xff] %v11165_v5  ;;  %v2954_v3 = vrot.slane %v11155_v31, 4  ;;  %v2958_v56 = vrot.slane %v2942_v14, 4  ;;  %v2870_v35 = vrot.slane %v11162_v41, 4  ;;  %v11184_v52 = vsel %vm1962_vm0, %v11165_v5, %v2876_v11 }
 0x19a   :  { %19909 = vst [vmem:[#allocation147_spill] sm:$0xff] %v11174_v54  ;;  %9862 = vset.pattern.permute.xlu2 %v10052_v9  ;;  %v2911_v34 = vsel %vm1962_vm0, %v2910_v25, %v2893_v21  ;;  %v19911_v46 = vperm.slane %v11079_v0, 0  ;;  %v158_v62 = vrot.slane %v9938_v60, 4  ;;  %v2912_v48 = vsel %vm1962_vm0, %v2893_v21, %v2910_v25 }
 0x19b   :  { %19910 = vst [vmem:[#allocation148_spill] sm:$0xff] %v11184_v52  ;;  %1767 = vperm.xlu0 %9927, %v11159_v15   ;;  %v19346_v51 = vrot.slane %v11174_v54, 4  ;;  %v11193_v6 = vperm.slane %v2911_v34, %v10226_v63  ;;  %v2920_v41 = vperm.slane %v2912_v48, %v10226_v63  ;;  %v11198_v11 = vsel %vm1962_vm0, %v2870_v35, %v11148_v36 }
 0x19c   :  { %915 = vperm.xlu1 %9859, %v19911_v46   ;;  %19912 = vst [vmem:[#allocation149_spill] sm:$0xff] %v11198_v11  ;;  %v3210_v52 = vrot.slane %v3194_v10, 4  ;;  %v2300_v5 = vrot.slane %v10842_v22, 4  ;;  %v2397_v46 = vsel %vm1962_vm0, %v10279_v32, %v2396_v13  ;;  %v2966_v25 = vrot.slane %v2953_v7, 4  ;;  %v11218_v36 = vpop.permute.xlu2 %819 }
 0x19d   :  { %v2923_v21 = vsel %vm1962_vm0, %v11174_v54, %v19346_v51  ;;  %v211_v34 = vperm.slane %v93_v29, 0  ;;  %v11209_v60 = vsel %vm1962_vm0, %v2954_v3, %v11193_v6  ;;  %v11212_v35 = vsel %vm1962_vm0, %v2958_v56, %v2920_v41 }
 0x19e   :  { %19913 = vst [vmem:[#allocation150_spill] sm:$0xff] %v11209_v60  ;;  %v3212_v48 = vrot.slane %v3172_v38, 4  ;;  %v11214_v11 = vperm.slane %v158_v62, 0  ;;  %v2960_v22 = vrot.slane %v2920_v41, 4  ;;  %v2931_v32 = vperm.slane %v2923_v21, %v10226_v63 }
 0x19f   :  { %19914 = vst [vmem:[#allocation151_spill] sm:$0xff] %v11212_v35  ;;  %v2869_v13 = vperm.slane %v2861_v44, %v10226_v63  ;;  %v2884_v51 = vrot.slane %v2847_v30, 4  ;;  %v11221_v29 = vsel %vm1962_vm0, %v3210_v52, %v3172_v38  ;;  %v2301_v56 = vsel %vm1962_vm0, %v10199_v61, %v2300_v5  ;;  %v9939_v61 = vld [vmem:[#allocation2 + $0x78] sm:$0xff] }
 0x1a0   :  { %19915 = vst [vmem:[#allocation152_spill] sm:$0xff] %v11221_v29  ;;  %v11224_v3 = vsel %vm1962_vm0, %v3194_v10, %v3212_v48  ;;  %v11229_v62 = vperm.slane %v2397_v46, %v10152_v4  ;;  %v11232_v41 = vsel %vm1962_vm0, %v2942_v14, %v2960_v22  ;;  %v11235_v44 = vsel %vm1962_vm0, %v2966_v25, %v2931_v32 }
 0x1a1   :  { %19916 = vst [vmem:[#allocation153_spill] sm:$0xff] %v11224_v3  ;;  %v94_v21 = vrot.slane %v11079_v0, 3  ;;  %v2882_v38 = vrot.slane %v2869_v13, 4  ;;  %v11239_v52 = vsel %vm1962_vm0, %v2869_v13, %v2884_v51  ;;  %v2968_v10 = vrot.slane %v2931_v32, 4 }
 0x1a2   :  { %19917 = vst [vmem:[#allocation154_spill] sm:$0xff] %v11229_v62  ;;  %939 = vperm.xlu2 %9862, %v211_v34   ;;  %v162_v5 = vrot.slane %v9939_v61, 1  ;;  %v11250_v25 = vperm.slane %v2301_v56, %v10152_v4  ;;  %v3140_v22 = vrot.slane %v10985_v20, 4  ;;  %v3152_v20 = vrot.slane %v11068_v27, 4 }
 0x1a3   :  { %19918 = vst [vmem:[#allocation155_spill] sm:$0xff] %v11232_v41  ;;  %1827 = vperm.xlu0 %9927, %v11214_v11   ;;  %v11244_v14 = vsel %vm1962_vm0, %v2882_v38, %v2847_v30  ;;  %v11247_v46 = vsel %vm1962_vm0, %v2953_v7, %v2968_v10  ;;  %v212_v13 = vperm.slane %v94_v21, 0  ;;  %v11263_v38 = vpop.permute.xlu0 %807 }
 0x1a4   :  { %19919 = vst [vmem:[#allocation156_spill] sm:$0xff] %v11235_v44  ;;  %9861 = vset.pattern.permute.xlu1 %v10038_v1  ;;  %v11252_v48 = vpop.permute.xlu1 %783  ;;  %v11257_v60 = vperm.slane %v162_v5, 0  ;;  %v3141_v30 = vsel %vm1962_vm0, %v11026_v24, %v3140_v22  ;;  %v19349_v10 = vrot.slane %v11250_v25, 4  ;;  %v3234_v51 = vrot.slane %v11263_v38, 4  ;;  %v11271_v21 = vpop.permute.xlu2 %831 }
 0x1a5   :  { %19920 = vst [vmem:[#allocation157_spill] sm:$0xff] %v11239_v52  ;;  %v3222_v32 = vrot.slane %v11252_v48, 4  ;;  %v19925_v5 = vrot.slane %v11229_v62, 4  ;;  %v11278_v22 = vperm.slane %v3141_v30, %v10152_v4 }
 0x1a6   :  { %19921 = vst [vmem:[#allocation158_spill] sm:$0xff] %v11244_v14  ;;  %v11286_v27 = vsel %vm1962_vm0, %v11250_v25, %v19349_v10  ;;  %v2200_v14 = vrot.slane %v10421_v12, 4 }
 0x1a7   :  { %19922 = vst [vmem:[#allocation159_spill] sm:$0xff] %v11247_v46  ;;  %v3223_v7 = vsel %vm1962_vm0, %v3222_v32, %v11008_v2  ;;  %v2441_v24 = vsel %vm1962_vm0, %v11229_v62, %v19925_v5  ;;  %v167_v32 = vrot.slane %v9939_v61, 6  ;;  %v3153_v5 = vsel %vm1962_vm0, %v10945_v33, %v3152_v20 }
 0x1a8   :  { %19923 = vst [vmem:[#allocation160_spill] sm:$0xff] %v11250_v25  ;;  %v11266_v56 = vperm.slane %v3223_v7, %v10152_v4  ;;  %v19358_v61 = vrot.slane %v11278_v22, 4  ;;  %v3320_v25 = vrot.slane %v10323_v55, 4  ;;  %v11307_v29 = vperm.slane %v3153_v5, %v10152_v4 }
 0x1a9   :  { %19926 = vst [vmem:[#allocation162_spill] sm:$0xff] %v11278_v22  ;;  %v11302_v10 = vperm.slane %v167_v32, 0  ;;  %v3642_v20 = vrot.slane %v11271_v21, 4 }
 0x1aa   :  { %19924 = vst [vmem:[#allocation161_spill] sm:$0xff] %v11266_v56  ;;  %951 = vperm.xlu2 %9862, %v212_v13   ;;  %v19352_v7 = vrot.slane %v11266_v56, 4  ;;  %v11323_v32 = vsel %vm1962_vm0, %v11278_v22, %v19358_v61 }
 0x1ab   :  { %1887 = vperm.xlu0 %9927, %v11257_v60   ;;  %19927 = vst [vmem:[#allocation163_spill] sm:$0xff] %v11286_v27  ;;  %v2972_v27 = vrot.slane %v10983_v19, 4 }
 0x1ac   :  { %933 = vperm.xlu1 %9861, %v211_v34   ;;  %v11288_v3 = vpop.permute.xlu1 %795  ;;  %v3248_v30 = vsel %vm1962_vm0, %v11266_v56, %v19352_v7  ;;  %19929 = vst [vmem:[#allocation165_spill] sm:$0xff] %v11307_v29 }
 0x1ad   :  { %v3235_v34 = vsel %vm1962_vm0, %v3234_v51, %v11288_v3  ;;  %v3256_v33 = vperm.slane %v3248_v30, %v10226_v63  ;;  %v96_v51 = vrot.slane %v11079_v0, 5  ;;  %19930 = vst [vmem:[#allocation166_spill] sm:$0xff] %v11323_v32  ;;  %v2973_v30 = vsel %vm1962_vm0, %v10617_v43, %v2972_v27 }
 0x1ae   :  { %v11300_v62 = vperm.slane %v3235_v34, %v10152_v4  ;;  %v11340_v56 = vperm.slane %v2973_v30, %v10152_v4 }
 0x1af   :  { %v214_v52 = vperm.slane %v96_v51, 0 }
 0x1b0   :  { %19928 = vst [vmem:[#allocation164_spill] sm:$0xff] %v11300_v62  ;;  %v19355_v7 = vrot.slane %v11300_v62, 4 }
 0x1b1   :  { %19932 = vst [vmem:[#allocation168_spill] sm:$0xff] %v11340_v56 }
 0x1b2   :  { %9864 = vset.pattern.permute.xlu2 %v10038_v1  ;;  %v3270_v19 = vsel %vm1962_vm0, %v11300_v62, %v19355_v7  ;;  %v3296_v62 = vrot.slane %v3256_v33, 4 }
 0x1b3   :  { %1947 = vperm.xlu0 %9927, %v11302_v10   ;;  %v3278_v34 = vperm.slane %v3270_v19, %v10226_v63 }
 0x1b4   :  { %945 = vperm.xlu1 %9861, %v212_v13   ;;  %v850_v5 = vpop.permute.xlu2 %849  ;;  %v3643_v13 = vsel %vm1962_vm0, %v3642_v20, %v11218_v36 }
 0x1b5   :  { %v3318_v46 = vrot.slane %v850_v5, 4  ;;  %v3321_v7 = vsel %vm1962_vm0, %v850_v5, %v3320_v25  ;;  %v3294_v27 = vrot.slane %v3278_v34, 4  ;;  %v11337_v19 = vsel %vm1962_vm0, %v3278_v34, %v3296_v62 }
 0x1b6   :  { %v3329_v61 = vperm.slane %v3321_v7, %v10152_v4  ;;  %19931 = vst [vmem:[#allocation167_spill] sm:$0xff] %v11337_v19  ;;  %v2449_v5 = vperm.slane %v2441_v24, %v10226_v63  ;;  %v11345_v20 = vperm.slane %v3643_v13, %v10152_v4 }
 0x1b7   :  { %v3319_v43 = vsel %vm1962_vm0, %v3318_v46, %v10323_v55  ;;  %v11348_v12 = vsel %vm1962_vm0, %v3294_v27, %v3256_v33  ;;  %v19935_v55 = vrot.slane %v11307_v29, 4  ;;  %v2201_v46 = vsel %vm1962_vm0, %v10393_v59, %v2200_v14 }
 0x1b8   :  { %v3325_v25 = vperm.slane %v3319_v43, %v10152_v4  ;;  %v3363_v51 = vrot.slane %v3329_v61, 4  ;;  %19933 = vst [vmem:[#allocation169_spill] sm:$0xff] %v11345_v20  ;;  %v19359_v33 = vrot.slane %v11340_v56, 4  ;;  %v2462_v34 = vrot.slane %v2449_v5, 4 }
 0x1b9   :  { %19934 = vst [vmem:[#allocation170_spill] sm:$0xff] %v11348_v12  ;;  %v11354_v62 = vsel %vm1962_vm0, %v11307_v29, %v19935_v55  ;;  %v19360_v43 = vrot.slane %v11345_v20, 4  ;;  %v2427_v27 = vperm.slane %v10514_v16, %v10226_v63  ;;  %v2788_v59 = vrot.slane %v10921_v37, 4 }
 0x1ba   :  { %19936 = vst [vmem:[#allocation171_spill] sm:$0xff] %v11354_v62  ;;  %969 = vperm.xlu2 %9864, %v214_v52   ;;  %v3365_v7 = vsel %vm1962_vm0, %v3329_v61, %v3363_v51  ;;  %v3352_v30 = vrot.slane %v3325_v25, 4  ;;  %v3007_v55 = vsel %vm1962_vm0, %v11340_v56, %v19359_v33 }
 0x1bb   :  { %7374 = vrot.lane.b32.xlu0 %v2201_v46, %s10007_s0  ;;  %v11368_v14 = vsel %vm1962_vm0, %v2462_v34, %v2427_v27  ;;  %v11378_v46 = vsel %vm1962_vm0, %v11345_v20, %v19360_v43  ;;  %v2789_v16 = vsel %vm1962_vm0, %v10940_v18, %v2788_v59  ;;  %v2464_v37 = vrot.slane %v2427_v27, 4 }
 0x1bc   :  { %9863 = vset.pattern.permute.xlu1 %v10052_v9  ;;  %v3354_v24 = vsel %vm1962_vm0, %v3325_v25, %v3352_v30  ;;  %v814_v13 = vpop.permute.xlu1 %813  ;;  %19937 = vst [vmem:[#allocation172_spill] sm:$0xff] %v11368_v14  ;;  %v3353_v32 = vsel %vm1962_vm0, %v3352_v30, %v3325_v25  ;;  %v11390_v29 = vpop.permute.xlu2 %861  ;;  %v3373_v18 = vperm.slane %v3365_v7, %v10226_v63  ;;  %v98_v7 = vrot.slane %v11079_v0, 7 }
 0x1bd   :  { %v3308_v34 = vrot.slane %v814_v13, 4  ;;  %v11386_v14 = vsel %vm1962_vm0, %v2449_v5, %v2464_v37  ;;  %v3358_v59 = vperm.slane %v3353_v32, %v10226_v63  ;;  %v3362_v25 = vperm.slane %v3354_v24, %v10226_v63 }
 0x1be   :  { %19938 = vst [vmem:[#allocation173_spill] sm:$0xff] %v11386_v14  ;;  %v11530_v14 = vpop.permute.xlu0 %867 }
 0x1bf   :  { %v3374_v37 = vrot.slane %v3358_v59, 4  ;;  %19960 = vst [vmem:[#allocation195_spill] sm:$0xff] %v11530_v14 }
 0x1c2   :  { %981 = vperm.xlu2 %9864, %v10685_v23  }
 0x1c3   :  { %7380 = vrot.lane.b32.xlu0 %v2789_v16, %s10007_s0 }
 0x1c4   :  { %963 = vperm.xlu1 %9863, %v10107_v39   ;;  %v826_v33 = vpop.permute.xlu1 %825  ;;  %v3056_v39 = vrot.slane %v10828_v50, 4 }
 0x1c5   :  { %v3306_v62 = vrot.slane %v826_v33, 4  ;;  %v3309_v43 = vsel %vm1962_vm0, %v826_v33, %v3308_v34  ;;  %v3224_v33 = vrot.slane %v11008_v2, 4  ;;  %v3236_v2 = vrot.slane %v11288_v3, 4 }
 0x1c6   :  { %v3317_v23 = vperm.slane %v3309_v43, %v10152_v4  ;;  %v3057_v30 = vsel %vm1962_vm0, %v11024_v45, %v3056_v39  ;;  %v216_v39 = vperm.slane %v98_v7, 0 }
 0x1c7   :  { %v3307_v27 = vsel %vm1962_vm0, %v3306_v62, %v814_v13  ;;  %v3386_v62 = vrot.slane %v3373_v18, 4  ;;  %v3364_v13 = vsel %vm1962_vm0, %v3363_v51, %v3329_v61  ;;  %v3037_v61 = vperm.slane %v10808_v8, %v10226_v63 }
 0x1c8   :  { %v3313_v5 = vperm.slane %v3307_v27, %v10152_v4  ;;  %v3341_v16 = vrot.slane %v3317_v23, 4  ;;  %v11419_v51 = vperm.slane %v3057_v30, %v10152_v4  ;;  %v3015_v8 = vperm.slane %v3007_v55, %v10226_v63 }
 0x1ca   :  { %9866 = vset.pattern.permute.xlu2 %v10052_v9  ;;  %v3330_v43 = vrot.slane %v3313_v5, 4  ;;  %v3342_v50 = vsel %vm1962_vm0, %v3341_v16, %v3317_v23  ;;  %v3343_v32 = vsel %vm1962_vm0, %v3317_v23, %v3341_v16  ;;  %19940 = vst [vmem:[#allocation175_spill] sm:$0xff] %v11419_v51  ;;  %v11422_v16 = vperm.slane %v3364_v13, %v10226_v63 }
 0x1cb   :  { %v11408_v24 = vperm.slane %v3342_v50, %v10226_v63  ;;  %v3351_v45 = vperm.slane %v3343_v32, %v10226_v63 }
 0x1cc   :  { %975 = vperm.xlu1 %9863, %v214_v52   ;;  %v3331_v34 = vsel %vm1962_vm0, %v3330_v43, %v3313_v5  ;;  %v3332_v0 = vsel %vm1962_vm0, %v3313_v5, %v3330_v43  ;;  %v3378_v52 = vrot.slane %v3362_v25, 4  ;;  %19941 = vst [vmem:[#allocation176_spill] sm:$0xff] %v11422_v16  ;;  %v3225_v5 = vsel %vm1962_vm0, %v11252_v48, %v3224_v33  ;;  %v11430_v43 = vpop.permute.xlu2 %879 }
 0x1cd   :  { %19939 = vst [vmem:[#allocation174_spill] sm:$0xff] %v11408_v24  ;;  %v3336_v27 = vperm.slane %v3331_v34, %v10226_v63  ;;  %v3340_v23 = vperm.slane %v3332_v0, %v10226_v63  ;;  %v3384_v3 = vrot.slane %v11408_v24, 4  ;;  %v11426_v50 = vsel %vm1962_vm0, %v3386_v62, %v3351_v45 }
 0x1ce   :  { %19942 = vst [vmem:[#allocation177_spill] sm:$0xff] %v11426_v50  ;;  %v3388_v62 = vrot.slane %v3351_v45, 4  ;;  %v3237_v48 = vsel %vm1962_vm0, %v11263_v38, %v3236_v2  ;;  %v3050_v0 = vrot.slane %v3037_v61, 4  ;;  %v11448_v55 = vperm.slane %v3225_v5, %v10152_v4 }
 0x1cf   :  { %v3376_v7 = vrot.slane %v3336_v27, 4  ;;  %19943 = vst [vmem:[#allocation178_spill] sm:$0xff] %v11430_v43  ;;  %v11433_v32 = vsel %vm1962_vm0, %v3374_v37, %v3336_v27  ;;  %v11437_v30 = vsel %vm1962_vm0, %v3378_v52, %v3340_v23  ;;  %v3380_v13 = vrot.slane %v3340_v23, 4 }
 0x1d0   :  { %19944 = vst [vmem:[#allocation179_spill] sm:$0xff] %v11433_v32  ;;  %v11441_v34 = vsel %vm1962_vm0, %v11422_v16, %v3384_v3  ;;  %v19363_v37 = vrot.slane %v11419_v51, 4  ;;  %v11456_v45 = vsel %vm1962_vm0, %v3373_v18, %v3388_v62  ;;  %v11459_v38 = vsel %vm1962_vm0, %v3050_v0, %v3015_v8  ;;  %v11466_v3 = vld [vmem:[#allocation2 + $0x30] sm:$0xff] }
 0x1d1   :  { %19945 = vst [vmem:[#allocation180_spill] sm:$0xff] %v11437_v30  ;;  %v3377_v33 = vsel %vm1962_vm0, %v3358_v59, %v3376_v7  ;;  %v11453_v52 = vsel %vm1962_vm0, %v3362_v25, %v3380_v13  ;;  %v3052_v59 = vrot.slane %v3015_v8, 4  ;;  %v3121_v2 = vperm.slane %v10801_v49, %v10226_v63 }
 0x1d2   :  { %19946 = vst [vmem:[#allocation181_spill] sm:$0xff] %v11441_v34  ;;  %999 = vperm.xlu2 %9866, %v216_v39   ;;  %7386 = vrot.lane.b32.xlu0 %v3377_v33, %s10007_s0  ;;  %v11464_v27 = vperm.slane %v3237_v48, %v10152_v4  ;;  %v217_v5 = vperm.slane %v11466_v3, 0  ;;  %v19364_v18 = vrot.slane %v11448_v55, 4  ;;  %v3091_v7 = vsel %vm1962_vm0, %v11419_v51, %v19363_v37 }
 0x1d3   :  { %19947 = vst [vmem:[#allocation182_spill] sm:$0xff] %v11448_v55  ;;  %v11470_v25 = vsel %vm1962_vm0, %v3037_v61, %v3052_v59  ;;  %v3099_v49 = vperm.slane %v3091_v7, %v10226_v63  ;;  %v3134_v8 = vrot.slane %v3121_v2, 4 }
 0x1d4   :  { %9865 = vset.pattern.permute.xlu1 %v10038_v1  ;;  %19948 = vst [vmem:[#allocation183_spill] sm:$0xff] %v11453_v52  ;;  %v844_v23 = vpop.permute.xlu1 %843  ;;  %v19365_v13 = vrot.slane %v11464_v27, 4  ;;  %v11479_v62 = vpop.permute.xlu2 %891  ;;  %v3258_v33 = vsel %vm1962_vm0, %v19364_v18, %v11448_v55 }
 0x1d5   :  { %19949 = vst [vmem:[#allocation184_spill] sm:$0xff] %v11456_v45  ;;  %v11482_v48 = vsel %vm1962_vm0, %v3134_v8, %v3099_v49  ;;  %v3136_v61 = vrot.slane %v3099_v49, 4  ;;  %v3656_v0 = vrot.slane %v844_v23, 4 }
 0x1d6   :  { %19950 = vst [vmem:[#allocation185_spill] sm:$0xff] %v11459_v38  ;;  %v3280_v37 = vsel %vm1962_vm0, %v19365_v13, %v11464_v27 }
 0x1d7   :  { %19951 = vst [vmem:[#allocation186_spill] sm:$0xff] %v11464_v27  ;;  %v11489_v59 = vsel %vm1962_vm0, %v3121_v2, %v3136_v61  ;;  %v11504_v2 = vperm.slane %v3280_v37, %v10226_v63  ;;  %v3726_v37 = vrot.slane %v11430_v43, 4 }
 0x1d8   :  { %19952 = vst [vmem:[#allocation187_spill] sm:$0xff] %v11470_v25 }
 0x1d9   :  { %19953 = vst [vmem:[#allocation188_spill] sm:$0xff] %v11482_v48 }
 0x1da   :  { %1011 = vperm.xlu2 %9866, %v217_v5   ;;  %19954 = vst [vmem:[#allocation189_spill] sm:$0xff] %v11489_v59 }
 0x1db   :  { %19957 = vst [vmem:[#allocation192_spill] sm:$0xff] %v11504_v2 }
 0x1dc   :  { %993 = vperm.xlu1 %9865, %v216_v39   ;;  %v856_v7 = vpop.permute.xlu1 %855  ;;  %v11497_v39 = vperm.slane %v3258_v33, %v10226_v63 }
 0x1dd   :  { %v3654_v25 = vrot.slane %v856_v7, 4  ;;  %v3657_v8 = vsel %vm1962_vm0, %v856_v7, %v3656_v0  ;;  %v100_v0 = vrot.slane %v11466_v3, 2 }
 0x1de   :  { %19955 = vst [vmem:[#allocation190_spill] sm:$0xff] %v11497_v39  ;;  %v11500_v49 = vperm.slane %v3657_v8, %v10152_v4  ;;  %v3300_v33 = vrot.slane %v11497_v39, 4 }
 0x1df   :  { %v3655_v18 = vsel %vm1962_vm0, %v3654_v25, %v844_v23  ;;  %v219_v13 = vperm.slane %v100_v0, 0  ;;  %v3392_v0 = vrot.slane %v11390_v29, 4 }
 0x1e0   :  { %19956 = vst [vmem:[#allocation191_spill] sm:$0xff] %v11500_v49  ;;  %v11507_v61 = vperm.slane %v3655_v18, %v10152_v4  ;;  %v19366_v59 = vrot.slane %v11500_v49, 4  ;;  %v11523_v18 = vsel %vm1962_vm0, %v11504_v2, %v3300_v33 }
 0x1e1   :  { %19959 = vst [vmem:[#allocation194_spill] sm:$0xff] %v11523_v18 }
 0x1e2   :  { %19958 = vst [vmem:[#allocation193_spill] sm:$0xff] %v11507_v61  ;;  %9868 = vset.pattern.permute.xlu2 %v10038_v1  ;;  %v19369_v7 = vrot.slane %v11507_v61, 4  ;;  %v11518_v23 = vsel %vm1962_vm0, %v11500_v49, %v19366_v59  ;;  %v3676_v59 = vperm.slane %v11378_v46, %v10226_v63  ;;  %v3402_v49 = vrot.slane %v10342_v26, 4 }
 0x1e4   :  { %1005 = vperm.xlu1 %9865, %v217_v5   ;;  %v910_v25 = vpop.permute.xlu2 %909  ;;  %v3690_v8 = vsel %vm1962_vm0, %v11507_v61, %v19369_v7  ;;  %v3727_v5 = vsel %vm1962_vm0, %v3726_v37, %v11530_v14 }
 0x1e5   :  { %v3698_v48 = vperm.slane %v3690_v8, %v10226_v63  ;;  %v11540_v38 = vperm.slane %v3727_v5, %v10152_v4  ;;  %v3476_v22 = vrot.slane %v910_v25, 4 }
 0x1e7   :  { %v3714_v55 = vrot.slane %v3698_v48, 4 }
 0x1e9   :  { %v11537_v33 = vsel %vm1962_vm0, %v3714_v55, %v3676_v59  ;;  %v19381_v55 = vrot.slane %v11540_v38, 4 }
 0x1ea   :  { %1029 = vperm.xlu2 %9868, %v219_v13   ;;  %19961 = vst [vmem:[#allocation196_spill] sm:$0xff] %v11537_v33 }
 0x1ec   :  { %9867 = vset.pattern.permute.xlu1 %v10052_v9  ;;  %v922_v8 = vpop.permute.xlu2 %921  ;;  %v874_v7 = vpop.permute.xlu1 %873 }
 0x1ed   :  { %v3474_v27 = vrot.slane %v922_v8, 4  ;;  %v3390_v18 = vrot.slane %v874_v7, 4  ;;  %v3393_v37 = vsel %vm1962_vm0, %v874_v7, %v3392_v0 }
 0x1ee   :  { %v11546_v46 = vperm.slane %v3393_v37, %v10152_v4 }
 0x1ef   :  { %v3475_v32 = vsel %vm1962_vm0, %v3474_v27, %v910_v25  ;;  %v3391_v5 = vsel %vm1962_vm0, %v3390_v18, %v11390_v29  ;;  %v11568_v27 = vsel %vm1962_vm0, %v11540_v38, %v19381_v55 }
 0x1f0   :  { %19962 = vst [vmem:[#allocation197_spill] sm:$0xff] %v11546_v46  ;;  %v3397_v43 = vperm.slane %v3391_v5, %v10152_v4  ;;  %v19378_v14 = vrot.slane %v11546_v46, 4  ;;  %v11557_v7 = vperm.slane %v3475_v32, %v10152_v4 }
 0x1f2   :  { %1041 = vperm.xlu2 %9868, %v10710_v40   ;;  %v3414_v0 = vrot.slane %v3397_v43, 4  ;;  %v3427_v29 = vsel %vm1962_vm0, %v11546_v46, %v19378_v14  ;;  %v3477_v40 = vsel %vm1962_vm0, %v922_v8, %v3476_v22  ;;  %v19384_v37 = vrot.slane %v11557_v7, 4 }
 0x1f3   :  { %v11581_v39 = vperm.slane %v3477_v40, %v10152_v4 }
 0x1f4   :  { %1023 = vperm.xlu1 %9867, %v10113_v42   ;;  %v886_v25 = vpop.permute.xlu1 %885  ;;  %v3416_v42 = vsel %vm1962_vm0, %v3397_v43, %v3414_v0  ;;  %v11592_v8 = vsel %vm1962_vm0, %v11557_v7, %v19384_v37  ;;  %v3415_v40 = vsel %vm1962_vm0, %v3414_v0, %v3397_v43  ;;  %v3435_v37 = vperm.slane %v3427_v29, %v10226_v63 }
 0x1f5   :  { %v3403_v32 = vsel %vm1962_vm0, %v3402_v49, %v886_v25  ;;  %v3404_v18 = vrot.slane %v886_v25, 4  ;;  %19964 = vst [vmem:[#allocation199_spill] sm:$0xff] %v11581_v39  ;;  %v11584_v22 = vperm.slane %v3416_v42, %v10226_v63  ;;  %v102_v49 = vrot.slane %v11466_v3, 4 }
 0x1f6   :  { %v3409_v5 = vperm.slane %v3403_v32, %v10152_v4  ;;  %v19388_v56 = vrot.slane %v11581_v39, 4  ;;  %v11615_v0 = vperm.slane %v3415_v40, %v10226_v63  ;;  %v103_v40 = vrot.slane %v11466_v3, 5 }
 0x1f7   :  { %v3405_v14 = vsel %vm1962_vm0, %v10342_v26, %v3404_v18  ;;  %19965 = vst [vmem:[#allocation200_spill] sm:$0xff] %v11584_v22  ;;  %v3716_v26 = vrot.slane %v3676_v59, 4 }
 0x1f8   :  { %v11578_v51 = vperm.slane %v3405_v14, %v10152_v4  ;;  %v3436_v55 = vrot.slane %v3409_v5, 4 }
 0x1f9   :  { %v11606_v59 = vsel %vm1962_vm0, %v3698_v48, %v3716_v26 }
 0x1fa   :  { %19963 = vst [vmem:[#allocation198_spill] sm:$0xff] %v11578_v51  ;;  %9870 = vset.pattern.permute.xlu2 %v10052_v9  ;;  %v3438_v14 = vsel %vm1962_vm0, %v3409_v5, %v3436_v55  ;;  %v19387_v25 = vrot.slane %v11578_v51, 4  ;;  %v3437_v32 = vsel %vm1962_vm0, %v3436_v55, %v3409_v5  ;;  %v221_v55 = vperm.slane %v102_v49, 0 }
 0x1fb   :  { %v11599_v42 = vperm.slane %v3437_v32, %v10226_v63  ;;  %v11602_v2 = vperm.slane %v3438_v14, %v10226_v63  ;;  %19967 = vst [vmem:[#allocation202_spill] sm:$0xff] %v11606_v59  ;;  %v3472_v14 = vrot.slane %v3435_v37, 4  ;;  %v11631_v49 = vsel %vm1962_vm0, %v11581_v39, %v19388_v56 }
 0x1fc   :  { %1035 = vperm.xlu1 %9867, %v219_v13   ;;  %v940_v18 = vpop.permute.xlu2 %939  ;;  %v3464_v13 = vrot.slane %v11584_v22, 4  ;;  %v3449_v43 = vsel %vm1962_vm0, %v11578_v51, %v19387_v25 }
 0x1fd   :  { %19966 = vst [vmem:[#allocation201_spill] sm:$0xff] %v11602_v2  ;;  %v3458_v5 = vrot.slane %v11599_v42, 4  ;;  %v3457_v26 = vperm.slane %v3449_v43, %v10226_v63  ;;  %v3824_v32 = vrot.slane %v940_v18, 4 }
 0x1fe   :  { %v11620_v29 = vsel %vm1962_vm0, %v11602_v2, %v3464_v13 }
 0x1ff   :  { %19968 = vst [vmem:[#allocation203_spill] sm:$0xff] %v11620_v29  ;;  %v11624_v48 = vsel %vm1962_vm0, %v3458_v5, %v11615_v0  ;;  %v3470_v25 = vrot.slane %v3457_v26, 4  ;;  %v11635_v13 = vsel %vm1962_vm0, %v3457_v26, %v3472_v14  ;;  %v3740_v5 = vrot.slane %v11479_v62, 4 }
 0x200   :  { %19969 = vst [vmem:[#allocation204_spill] sm:$0xff] %v11624_v48  ;;  %v222_v26 = vperm.slane %v103_v40, 0 }
 0x201   :  { %19970 = vst [vmem:[#allocation205_spill] sm:$0xff] %v11635_v13  ;;  %v11640_v48 = vsel %vm1962_vm0, %v3470_v25, %v3435_v37  ;;  %v19973_v37 = vrot.slane %v11540_v38, 4 }
 0x202   :  { %1059 = vperm.xlu2 %9870, %v221_v55   ;;  %19971 = vst [vmem:[#allocation206_spill] sm:$0xff] %v11640_v48 }
 0x203   :  { %v3751_v25 = vsel %vm1962_vm0, %v19973_v37, %v11540_v38 }
 0x204   :  { %9869 = vset.pattern.permute.xlu1 %v10038_v1  ;;  %v952_v43 = vpop.permute.xlu2 %951  ;;  %v904_v59 = vpop.permute.xlu1 %903  ;;  %v11674_v38 = vperm.slane %v3751_v25, %v10226_v63 }
 0x205   :  { %v3822_v19 = vrot.slane %v952_v43, 4  ;;  %v3825_v56 = vsel %vm1962_vm0, %v952_v43, %v3824_v32  ;;  %v3738_v12 = vrot.slane %v904_v59, 4  ;;  %v3741_v33 = vsel %vm1962_vm0, %v904_v59, %v3740_v5  ;;  %v11661_v59 = vpop.permute.xlu0 %927 }
 0x206   :  { %v11645_v20 = vperm.slane %v3825_v56, %v10152_v4  ;;  %v11648_v14 = vperm.slane %v3741_v33, %v10152_v4  ;;  %19976 = vst [vmem:[#allocation210_spill] sm:$0xff] %v11674_v38  ;;  %v3760_v5 = vperm.slane %v11568_v27, %v10226_v63 }
 0x207   :  { %v3823_v61 = vsel %vm1962_vm0, %v3822_v19, %v940_v18  ;;  %v3739_v32 = vsel %vm1962_vm0, %v3738_v12, %v11479_v62  ;;  %v3810_v19 = vrot.slane %v11661_v59, 4 }
 0x208   :  { %19972 = vst [vmem:[#allocation207_spill] sm:$0xff] %v11648_v14  ;;  %v11658_v43 = vperm.slane %v3823_v61, %v10152_v4  ;;  %v19393_v56 = vrot.slane %v11645_v20, 4  ;;  %v3745_v33 = vperm.slane %v3739_v32, %v10152_v4  ;;  %v19394_v40 = vrot.slane %v11648_v14, 4 }
 0x20a   :  { %19974 = vst [vmem:[#allocation208_spill] sm:$0xff] %v11658_v43  ;;  %v19395_v18 = vrot.slane %v11658_v43, 4  ;;  %v11671_v12 = vsel %vm1962_vm0, %v11645_v20, %v19393_v56  ;;  %1071 = vperm.xlu2 %9870, %v222_v26   ;;  %v3772_v62 = vrot.slane %v3745_v33, 4  ;;  %v11680_v61 = vsel %vm1962_vm0, %v11648_v14, %v19394_v40 }
 0x20b   :  { %19975 = vst [vmem:[#allocation209_spill] sm:$0xff] %v11671_v12  ;;  %v3796_v40 = vrot.slane %v11674_v38, 4  ;;  %v3800_v14 = vrot.slane %v3760_v5, 4 }
 0x20c   :  { %19977 = vst [vmem:[#allocation211_spill] sm:$0xff] %v11680_v61  ;;  %1053 = vperm.xlu1 %9869, %v221_v55   ;;  %v3858_v37 = vsel %vm1962_vm0, %v11658_v43, %v19395_v18  ;;  %v3773_v25 = vsel %vm1962_vm0, %v3772_v62, %v3745_v33  ;;  %v3774_v56 = vsel %vm1962_vm0, %v3745_v33, %v3772_v62 }
 0x20d   :  { %v11699_v27 = vperm.slane %v3773_v25, %v10226_v63  ;;  %v3782_v61 = vperm.slane %v3774_v56, %v10226_v63  ;;  %v3866_v18 = vperm.slane %v3858_v37, %v10226_v63 }
 0x20e   :  { %v11688_v32 = vpop.permute.xlu1 %915 }
 0x20f   :  { %v3811_v12 = vsel %vm1962_vm0, %v3810_v19, %v11688_v32  ;;  %19979 = vst [vmem:[#allocation213_spill] sm:$0xff] %v11699_v27  ;;  %v11706_v33 = vsel %vm1962_vm0, %v11699_v27, %v3796_v40  ;;  %v105_v19 = vrot.slane %v11466_v3, 7  ;;  %v11711_v62 = vsel %vm1962_vm0, %v3782_v61, %v3800_v14 }
 0x210   :  { %v11696_v55 = vperm.slane %v3811_v12, %v10152_v4  ;;  %19980 = vst [vmem:[#allocation214_spill] sm:$0xff] %v11706_v33  ;;  %v3798_v12 = vrot.slane %v3782_v61, 4  ;;  %v3882_v37 = vrot.slane %v3866_v18, 4 }
 0x211   :  { %19981 = vst [vmem:[#allocation215_spill] sm:$0xff] %v11711_v62  ;;  %v224_v33 = vperm.slane %v105_v19, 0  ;;  %v19986_v19 = vperm.slane %v10121_v47, 0 }
 0x212   :  { %19978 = vst [vmem:[#allocation212_spill] sm:$0xff] %v11696_v55  ;;  %v19402_v43 = vrot.slane %v11696_v55, 4  ;;  %9872 = vset.pattern.permute.xlu2 %v10038_v1  ;;  %v11718_v25 = vsel %vm1962_vm0, %v3798_v12, %v3760_v5  ;;  %v19985_v5 = vld [vmem:[#allocation36_spill] sm:$0xff] }
 0x213   :  { %19982 = vst [vmem:[#allocation216_spill] sm:$0xff] %v11718_v25 }
 0x214   :  { %1065 = vperm.xlu1 %9869, %v222_v26   ;;  %v3836_v56 = vsel %vm1962_vm0, %v11696_v55, %v19402_v43  ;;  %v970_v27 = vpop.permute.xlu2 %969  ;;  %v3644_v43 = vrot.slane %v11218_v36, 4  ;;  %v3519_v55 = vperm.slane %v11631_v49, %v10226_v63 }
 0x215   :  { %v3844_v40 = vperm.slane %v3836_v56, %v10226_v63  ;;  %v3558_v61 = vrot.slane %v970_v27, 4 }
 0x217   :  { %v11722_v38 = vsel %vm1962_vm0, %v3882_v37, %v3844_v40  ;;  %v3884_v3 = vrot.slane %v3844_v40, 4  ;;  %v3559_v12 = vsel %vm1962_vm0, %v3558_v61, %v19985_v5  ;;  %v19987_v37 = vld [vmem:[#allocation8_spill] sm:$0xff]  ;;  %v3645_v40 = vsel %vm1962_vm0, %v11271_v21, %v3644_v43 }
 0x218   :  { %19983 = vst [vmem:[#allocation217_spill] sm:$0xff] %v11722_v38  ;;  %v11744_v47 = vperm.slane %v3645_v40, %v10152_v4  ;;  %v3508_v43 = vperm.slane %v11592_v8, %v10226_v63  ;;  %v19990_v40 = vrot.slane %v11557_v7, 4 }
 0x219   :  { %v11725_v14 = vsel %vm1962_vm0, %v3866_v18, %v3884_v3  ;;  %v3560_v18 = vrot.slane %v19985_v5, 4 }
 0x21a   :  { %19984 = vst [vmem:[#allocation218_spill] sm:$0xff] %v11725_v14  ;;  %1089 = vperm.xlu2 %9872, %v224_v33   ;;  %v11740_v14 = vperm.slane %v3559_v12, %v10152_v4 }
 0x21b   :  { %19988 = vst [vmem:[#allocation36_spill] sm:$0xff] %v11744_v47  ;;  %v3561_v62 = vsel %vm1962_vm0, %v970_v27, %v3560_v18 }
 0x21c   :  { %9871 = vset.pattern.permute.xlu1 %v10052_v9  ;;  %v11733_v56 = vpop.permute.xlu2 %981  ;;  %v19406_v21 = vrot.slane %v11740_v14, 4  ;;  %v11770_v18 = vperm.slane %v3561_v62, %v10152_v4 }
 0x21e   :  { %v934_v26 = vpop.permute.xlu1 %933  ;;  %v19408_v50 = vrot.slane %v11770_v18, 4 }
 0x21f   :  { %v3488_v3 = vrot.slane %v934_v26, 4 }
 0x222   :  { %1101 = vperm.xlu2 %9872, %v19986_v19  }
 0x224   :  { %1083 = vperm.xlu1 %9871, %v19987_v37   ;;  %v988_v37 = vpop.permute.xlu0 %987 }
 0x225   :  { %v3908_v12 = vrot.slane %v988_v37, 4 }
 0x226   :  { %v946_v36 = vpop.permute.xlu1 %945 }
 0x227   :  { %v3486_v38 = vrot.slane %v946_v36, 4  ;;  %v3489_v61 = vsel %vm1962_vm0, %v946_v36, %v3488_v3  ;;  %v3499_v36 = vsel %vm1962_vm0, %v19990_v40, %v11557_v7  ;;  %v3548_v40 = vrot.slane %v3508_v43, 4 }
 0x228   :  { %v11747_v19 = vperm.slane %v3489_v61, %v10152_v4  ;;  %v11773_v7 = vperm.slane %v3499_v36, %v10226_v63 }
 0x229   :  { %v3487_v5 = vsel %vm1962_vm0, %v3486_v38, %v934_v26  ;;  %v11761_v38 = vld [vmem:[#allocation2 + $0x38] sm:$0xff]  ;;  %v11779_v26 = vsel %vm1962_vm0, %v11740_v14, %v19406_v21 }
 0x22a   :  { %19989 = vst [vmem:[#allocation8_spill] sm:$0xff] %v11747_v19  ;;  %v3493_v25 = vperm.slane %v3487_v5, %v10152_v4  ;;  %v19405_v3 = vrot.slane %v11747_v19, 4  ;;  %9874 = vset.pattern.permute.xlu2 %v10052_v9  ;;  %v106_v27 = vrot.slane %v11761_v38, 1 }
 0x22c   :  { %v3533_v8 = vsel %vm1962_vm0, %v11747_v19, %v19405_v3  ;;  %1095 = vperm.xlu1 %9871, %v224_v33   ;;  %v3520_v61 = vrot.slane %v3493_v25, 4  ;;  %v1000_v5 = vpop.permute.xlu2 %999  ;;  %v3812_v3 = vrot.slane %v11688_v32, 4  ;;  %v226_v48 = vperm.slane %v106_v27, 0 }
 0x22d   :  { %v3906_v62 = vrot.slane %v1000_v5, 4  ;;  %v3909_v33 = vsel %vm1962_vm0, %v1000_v5, %v3908_v12  ;;  %v3541_v34 = vperm.slane %v3533_v8, %v10226_v63 }
 0x22e   :  { %v3521_v13 = vsel %vm1962_vm0, %v3520_v61, %v3493_v25  ;;  %v11787_v36 = vperm.slane %v3909_v33, %v10152_v4  ;;  %v3522_v21 = vsel %vm1962_vm0, %v3493_v25, %v3520_v61  ;;  %v3556_v33 = vrot.slane %v3519_v55, 4 }
 0x22f   :  { %v11790_v45 = vperm.slane %v3521_v13, %v10226_v63  ;;  %v3907_v49 = vsel %vm1962_vm0, %v3906_v62, %v988_v37  ;;  %v3530_v32 = vperm.slane %v3522_v21, %v10226_v63  ;;  %v3813_v13 = vsel %vm1962_vm0, %v11661_v59, %v3812_v3 }
 0x230   :  { %19991 = vst [vmem:[#allocation219_spill] sm:$0xff] %v11787_v36  ;;  %v11798_v12 = vperm.slane %v3907_v49, %v10152_v4  ;;  %v19407_v27 = vrot.slane %v11787_v36, 4  ;;  %v19994_v37 = vrot.slane %v11744_v47, 4  ;;  %v107_v59 = vrot.slane %v11761_v38, 2 }
 0x231   :  { %v3542_v5 = vrot.slane %v11790_v45, 4  ;;  %v3546_v25 = vrot.slane %v3530_v32, 4  ;;  %v11805_v61 = vsel %vm1962_vm0, %v3530_v32, %v3548_v40  ;;  %v3554_v49 = vrot.slane %v3541_v34, 4 }
 0x232   :  { %19992 = vst [vmem:[#allocation220_spill] sm:$0xff] %v11798_v12  ;;  %v3679_v21 = vsel %vm1962_vm0, %v11744_v47, %v19994_v37  ;;  %1119 = vperm.xlu2 %9874, %v226_v48   ;;  %v11816_v62 = vsel %vm1962_vm0, %v11787_v36, %v19407_v27  ;;  %v11831_v32 = vsel %vm1962_vm0, %v11770_v18, %v19408_v50  ;;  %v227_v50 = vperm.slane %v107_v59, 0 }
 0x233   :  { %19993 = vst [vmem:[#allocation221_spill] sm:$0xff] %v11805_v61  ;;  %v11821_v3 = vsel %vm1962_vm0, %v3542_v5, %v11773_v7  ;;  %v11825_v40 = vsel %vm1962_vm0, %v3546_v25, %v3508_v43  ;;  %v11834_v37 = vsel %vm1962_vm0, %v3541_v34, %v3556_v33  ;;  %v3687_v27 = vperm.slane %v3679_v21, %v10226_v63 }
 0x234   :  { %19995 = vst [vmem:[#allocation222_spill] sm:$0xff] %v11821_v3  ;;  %9873 = vset.pattern.permute.xlu1 %v10038_v1  ;;  %v11838_v5 = vperm.slane %v3813_v13, %v10152_v4  ;;  %v11843_v43 = vsel %vm1962_vm0, %v3554_v49, %v3519_v55  ;;  %v20000_v25 = vrot.slane %v11798_v12, 4  ;;  %v3709_v34 = vperm.slane %v11518_v23, %v10226_v63  ;;  %v11852_v13 = vpop.permute.xlu2 %1011 }
 0x235   :  { %19996 = vst [vmem:[#allocation223_spill] sm:$0xff] %v11825_v40  ;;  %v3724_v33 = vrot.slane %v3687_v27, 4 }
 0x236   :  { %19997 = vst [vmem:[#allocation224_spill] sm:$0xff] %v11834_v37  ;;  %v11840_v8 = vpop.permute.xlu1 %963  ;;  %v3942_v3 = vsel %vm1962_vm0, %v11798_v12, %v20000_v25  ;;  %v19415_v21 = vrot.slane %v11838_v5, 4  ;;  %v3722_v36 = vrot.slane %v3709_v34, 4 }
 0x237   :  { %19998 = vst [vmem:[#allocation225_spill] sm:$0xff] %v11838_v5  ;;  %v11855_v47 = vsel %vm1962_vm0, %v3709_v34, %v3724_v33  ;;  %v11870_v12 = vperm.slane %v3942_v3, %v10226_v63  ;;  %v109_v33 = vrot.slane %v11761_v38, 4 }
 0x238   :  { %19999 = vst [vmem:[#allocation226_spill] sm:$0xff] %v11843_v43  ;;  %v11858_v55 = vsel %vm1962_vm0, %v3722_v36, %v3687_v27  ;;  %v3846_v23 = vsel %vm1962_vm0, %v19415_v21, %v11838_v5  ;;  %v20004_v36 = vrot.slane %v11645_v20, 4  ;;  %v20011_v43 = vrot.slane %v11770_v18, 4 }
 0x239   :  { %20001 = vst [vmem:[#allocation227_spill] sm:$0xff] %v11855_v47  ;;  %v3966_v21 = vrot.slane %v11870_v12, 4 }
 0x23a   :  { %1131 = vperm.xlu2 %9874, %v227_v50   ;;  %20002 = vst [vmem:[#allocation228_spill] sm:$0xff] %v11858_v55  ;;  %v3868_v27 = vsel %vm1962_vm0, %v20004_v36, %v11645_v20 }
 0x23c   :  { %1113 = vperm.xlu1 %9873, %v226_v48   ;;  %v11873_v48 = vperm.slane %v3846_v23, %v10226_v63  ;;  %v11887_v23 = vperm.slane %v3868_v27, %v10226_v63 }
 0x23e   :  { %v11860_v49 = vpop.permute.xlu1 %975  ;;  %20003 = vst [vmem:[#allocation229_spill] sm:$0xff] %v11873_v48  ;;  %v3888_v47 = vrot.slane %v11873_v48, 4 }
 0x23f   :  { %v3894_v59 = vrot.slane %v11860_v49, 4  ;;  %20006 = vst [vmem:[#allocation231_spill] sm:$0xff] %v11887_v23 }
 0x241   :  { %v3895_v25 = vsel %vm1962_vm0, %v3894_v59, %v11840_v8 }
 0x242   :  { %v11880_v34 = vperm.slane %v3895_v25, %v10152_v4  ;;  %9876 = vset.pattern.permute.xlu2 %v10038_v1  ;;  %v11894_v25 = vperm.slane %v109_v33, 0 }
 0x244   :  { %20005 = vst [vmem:[#allocation230_spill] sm:$0xff] %v11880_v34  ;;  %1125 = vperm.xlu1 %9873, %v227_v50   ;;  %v19416_v59 = vrot.slane %v11880_v34, 4  ;;  %v1030_v3 = vpop.permute.xlu2 %1029  ;;  %v11901_v50 = vsel %vm1962_vm0, %v11887_v23, %v3888_v47  ;;  %v20009_v47 = vrot.slane %v11740_v14, 4 }
 0x245   :  { %20007 = vst [vmem:[#allocation232_spill] sm:$0xff] %v11901_v50  ;;  %v3992_v55 = vrot.slane %v1030_v3, 4 }
 0x246   :  { %v3920_v20 = vsel %vm1962_vm0, %v11880_v34, %v19416_v59  ;;  %v3572_v59 = vrot.slane %v11733_v56, 4  ;;  %v3583_v50 = vsel %vm1962_vm0, %v20009_v47, %v11740_v14 }
 0x247   :  { %v11897_v36 = vperm.slane %v3920_v20, %v10226_v63 }
 0x249   :  { %v11905_v27 = vsel %vm1962_vm0, %v3966_v21, %v11897_v36 }
 0x24a   :  { %20008 = vst [vmem:[#allocation233_spill] sm:$0xff] %v11905_v27  ;;  %1149 = vperm.xlu2 %9876, %v11894_v25  }
 0x24c   :  { %9875 = vset.pattern.permute.xlu1 %v10052_v9  ;;  %v1042_v33 = vpop.permute.xlu2 %1041 }
 0x24d   :  { %v3990_v48 = vrot.slane %v1042_v33, 4  ;;  %v3993_v20 = vsel %vm1962_vm0, %v1042_v33, %v3992_v55  ;;  %v3594_v55 = vsel %vm1962_vm0, %v20011_v43, %v11770_v18 }
 0x24e   :  { %v994_v5 = vpop.permute.xlu1 %993  ;;  %v11917_v27 = vperm.slane %v3993_v20, %v10152_v4 }
 0x24f   :  { %v3570_v23 = vrot.slane %v994_v5, 4  ;;  %v3573_v21 = vsel %vm1962_vm0, %v994_v5, %v3572_v59  ;;  %v3991_v37 = vsel %vm1962_vm0, %v3990_v48, %v1030_v3  ;;  %v3588_v5 = vperm.slane %v3583_v50, %v10226_v63  ;;  %v20012_v3 = vld [vmem:[#allocation39_spill] sm:$0xff] }
 0x250   :  { %20010 = vst [vmem:[#allocation234_spill] sm:$0xff] %v11917_v27  ;;  %v3581_v34 = vperm.slane %v3573_v21, %v10152_v4  ;;  %v3997_v14 = vperm.slane %v3991_v37, %v10152_v4  ;;  %v19427_v47 = vrot.slane %v11917_v27, 4  ;;  %v3592_v48 = vperm.slane %v11779_v26, %v10226_v63 }
 0x251   :  { %v3571_v33 = vsel %vm1962_vm0, %v3570_v23, %v11733_v56  ;;  %v3978_v21 = vrot.slane %v20012_v3, 4  ;;  %v20013_v23 = vld [vmem:[#allocation9_spill] sm:$0xff]  ;;  %v3628_v26 = vrot.slane %v3588_v5, 4 }
 0x252   :  { %v3577_v59 = vperm.slane %v3571_v33, %v10152_v4  ;;  %v3615_v20 = vrot.slane %v3581_v34, 4  ;;  %v4037_v18 = vsel %vm1962_vm0, %v11917_v27, %v19427_v47  ;;  %1161 = vperm.xlu2 %9876, %v10786_v28   ;;  %v4024_v56 = vrot.slane %v3997_v14, 4 }
 0x253   :  { %v11943_v33 = vperm.slane %v3594_v55, %v10226_v63  ;;  %v3632_v28 = vrot.slane %v3592_v48, 4 }
 0x254   :  { %v3616_v37 = vsel %vm1962_vm0, %v3615_v20, %v3581_v34  ;;  %v3617_v43 = vsel %vm1962_vm0, %v3581_v34, %v3615_v20  ;;  %1143 = vperm.xlu1 %9875, %v20013_v23   ;;  %v3604_v50 = vrot.slane %v3577_v59, 4  ;;  %v4025_v44 = vsel %vm1962_vm0, %v4024_v56, %v3997_v14 }
 0x255   :  { %20014 = vst [vmem:[#allocation39_spill] sm:$0xff] %v11943_v33  ;;  %v11948_v47 = vperm.slane %v4025_v44, %v10226_v63  ;;  %v11951_v54 = vperm.slane %v3616_v37, %v10226_v63  ;;  %v3636_v51 = vrot.slane %v11943_v33, 4  ;;  %v3603_v44 = vperm.slane %v11831_v32, %v10226_v63 }
 0x256   :  { %v1006_v39 = vpop.permute.xlu1 %1005  ;;  %v3605_v19 = vsel %vm1962_vm0, %v3604_v50, %v3577_v59  ;;  %v3606_v55 = vsel %vm1962_vm0, %v3577_v59, %v3604_v50 }
 0x257   :  { %20015 = vst [vmem:[#allocation9_spill] sm:$0xff] %v11951_v54  ;;  %v3979_v34 = vsel %vm1962_vm0, %v3978_v21, %v1006_v39  ;;  %v3980_v20 = vrot.slane %v1006_v39, 4  ;;  %v3610_v23 = vperm.slane %v3605_v19, %v10226_v63  ;;  %v3614_v46 = vperm.slane %v3606_v55, %v10226_v63 }
 0x258   :  { %v3985_v27 = vperm.slane %v3979_v34, %v10152_v4  ;;  %v111_v39 = vrot.slane %v11761_v38, 6  ;;  %v3640_v55 = vrot.slane %v3603_v44, 4 }
 0x259   :  { %v3981_v37 = vsel %vm1962_vm0, %v20012_v3, %v3980_v20  ;;  %v3629_v29 = vsel %vm1962_vm0, %v3610_v23, %v3628_v26  ;;  %v3626_v21 = vrot.slane %v3610_v23, 4  ;;  %v3630_v50 = vrot.slane %v3614_v46, 4 }
 0x25a   :  { %v11966_v19 = vperm.slane %v3981_v37, %v10152_v4  ;;  %v4002_v59 = vrot.slane %v3985_v27, 4  ;;  %7392 = vrot.lane.b32.xlu0 %v3629_v29, %s10007_s0  ;;  %v11970_v34 = vsel %vm1962_vm0, %v3614_v46, %v3632_v28  ;;  %9878 = vset.pattern.permute.xlu2 %v10052_v9  ;;  %v4026_v3 = vsel %vm1962_vm0, %v3997_v14, %v4024_v56 }
 0x25b   :  { %20017 = vst [vmem:[#allocation236_spill] sm:$0xff] %v11970_v34  ;;  %v11974_v32 = vsel %vm1962_vm0, %v3626_v21, %v3588_v5  ;;  %v4046_v26 = vrot.slane %v11948_v47, 4  ;;  %v11980_v20 = vsel %vm1962_vm0, %v11951_v54, %v3636_v51  ;;  %v11986_v29 = vsel %vm1962_vm0, %v3630_v50, %v3592_v48 }
 0x25c   :  { %20016 = vst [vmem:[#allocation235_spill] sm:$0xff] %v11966_v19  ;;  %v4003_v23 = vsel %vm1962_vm0, %v4002_v59, %v3985_v27  ;;  %1155 = vperm.xlu1 %9875, %v11894_v25   ;;  %v4004_v46 = vsel %vm1962_vm0, %v3985_v27, %v4002_v59  ;;  %v19436_v5 = vrot.slane %v11966_v19, 4  ;;  %v3625_v51 = vperm.slane %v3617_v43, %v10226_v63 }
 0x25d   :  { %20018 = vst [vmem:[#allocation237_spill] sm:$0xff] %v11974_v32  ;;  %v11990_v28 = vperm.slane %v4003_v23, %v10226_v63  ;;  %v11993_v14 = vperm.slane %v4004_v46, %v10226_v63  ;;  %v4045_v56 = vperm.slane %v4037_v18, %v10226_v63  ;;  %v3968_v27 = vrot.slane %v11897_v36, 4  ;;  %v12014_v23 = vpop.permute.xlu2 %1059 }
 0x25e   :  { %20019 = vst [vmem:[#allocation238_spill] sm:$0xff] %v11980_v20  ;;  %v4015_v25 = vsel %vm1962_vm0, %v11966_v19, %v19436_v5  ;;  %v231_v48 = vperm.slane %v111_v39, 0  ;;  %v12003_v37 = vperm.slane %v4026_v3, %v10226_v63  ;;  %v3638_v59 = vrot.slane %v3625_v51, 4 }
 0x25f   :  { %20020 = vst [vmem:[#allocation239_spill] sm:$0xff] %v11986_v29  ;;  %v12007_v21 = vsel %vm1962_vm0, %v4046_v26, %v11990_v28  ;;  %v4052_v43 = vrot.slane %v11993_v14, 4  ;;  %v12011_v18 = vsel %vm1962_vm0, %v3625_v51, %v3640_v55  ;;  %v4023_v50 = vperm.slane %v4015_v25, %v10226_v63 }
 0x260   :  { %20021 = vst [vmem:[#allocation240_spill] sm:$0xff] %v11993_v14  ;;  %v4058_v39 = vrot.slane %v4045_v56, 4  ;;  %v12022_v3 = vsel %vm1962_vm0, %v11870_v12, %v3968_v27  ;;  %v12025_v26 = vsel %vm1962_vm0, %v3638_v59, %v3603_v44  ;;  %v112_v51 = vrot.slane %v11761_v38, 7  ;;  %v12040_v59 = vpop.permute.xlu0 %1047 }
 0x261   :  { %20022 = vst [vmem:[#allocation241_spill] sm:$0xff] %v12003_v37  ;;  %v12018_v36 = vsel %vm1962_vm0, %v12003_v37, %v4052_v43  ;;  %v4060_v46 = vrot.slane %v4023_v50, 4  ;;  %v4076_v32 = vrot.slane %v10434_v17, 4 }
 0x262   :  { %20023 = vst [vmem:[#allocation242_spill] sm:$0xff] %v12007_v21  ;;  %1179 = vperm.xlu2 %9878, %v231_v48   ;;  %v12029_v55 = vsel %vm1962_vm0, %v4058_v39, %v4023_v50  ;;  %v232_v27 = vperm.slane %v112_v51, 0  ;;  %v4326_v50 = vrot.slane %v12040_v59, 4 }
 0x263   :  { %20024 = vst [vmem:[#allocation243_spill] sm:$0xff] %v12011_v18  ;;  %v12033_v25 = vsel %vm1962_vm0, %v4045_v56, %v4060_v46 }
 0x264   :  { %20025 = vst [vmem:[#allocation244_spill] sm:$0xff] %v12018_v36  ;;  %9877 = vset.pattern.permute.xlu1 %v10038_v1 }
 0x265   :  { %20026 = vst [vmem:[#allocation245_spill] sm:$0xff] %v12022_v3  ;;  %v12044_v39 = vpop.permute.xlu2 %1071 }
 0x266   :  { %20027 = vst [vmem:[#allocation246_spill] sm:$0xff] %v12025_v26  ;;  %v12035_v43 = vpop.permute.xlu1 %1023 }
 0x267   :  { %20028 = vst [vmem:[#allocation247_spill] sm:$0xff] %v12029_v55  ;;  %v4314_v12 = vrot.slane %v12035_v43, 4 }
 0x268   :  { %20029 = vst [vmem:[#allocation248_spill] sm:$0xff] %v12033_v25  ;;  %v12059_v25 = vld [vmem:[#allocation2 + $0x40] sm:$0xff] }
 0x269   :  { %v4315_v44 = vsel %vm1962_vm0, %v4314_v12, %v11852_v13  ;;  %v113_v55 = vrot.slane %v12059_v25, 1 }
 0x26a   :  { %v4321_v38 = vperm.slane %v4315_v44, %v10152_v4  ;;  %1191 = vperm.xlu2 %9878, %v232_v27  }
 0x26b   :  { %v234_v36 = vperm.slane %v113_v55, 0 }
 0x26c   :  { %1173 = vperm.xlu1 %9877, %v231_v48   ;;  %v4338_v56 = vrot.slane %v4321_v38, 4 }
 0x26e   :  { %v12046_v46 = vpop.permute.xlu1 %1035  ;;  %v4339_v5 = vsel %vm1962_vm0, %v4338_v56, %v4321_v38  ;;  %v4340_v51 = vsel %vm1962_vm0, %v4321_v38, %v4338_v56 }
 0x26f   :  { %v4327_v12 = vsel %vm1962_vm0, %v4326_v50, %v12046_v46  ;;  %v12054_v44 = vperm.slane %v4339_v5, %v10226_v63  ;;  %v4348_v48 = vperm.slane %v4340_v51, %v10226_v63  ;;  %v4398_v51 = vrot.slane %v12044_v39, 4 }
 0x270   :  { %v4333_v21 = vperm.slane %v4327_v12, %v10152_v4 }
 0x271   :  { %20030 = vst [vmem:[#allocation249_spill] sm:$0xff] %v12054_v44  ;;  %v4384_v12 = vrot.slane %v12054_v44, 4  ;;  %v4388_v19 = vrot.slane %v4348_v48, 4  ;;  %v4399_v55 = vsel %vm1962_vm0, %v4398_v51, %v12014_v23 }
 0x272   :  { %v4360_v3 = vrot.slane %v4333_v21, 4  ;;  %9880 = vset.pattern.permute.xlu2 %v10038_v1 }
 0x274   :  { %v4361_v38 = vsel %vm1962_vm0, %v4360_v3, %v4333_v21  ;;  %v4362_v50 = vsel %vm1962_vm0, %v4333_v21, %v4360_v3  ;;  %1185 = vperm.xlu1 %9877, %v232_v27   ;;  %v1090_v56 = vpop.permute.xlu2 %1089 }
 0x275   :  { %v12065_v5 = vperm.slane %v4361_v38, %v10226_v63  ;;  %v4370_v18 = vperm.slane %v4362_v50, %v10226_v63  ;;  %v4074_v26 = vrot.slane %v1090_v56, 4  ;;  %v4077_v20 = vsel %vm1962_vm0, %v1090_v56, %v4076_v32 }
 0x276   :  { %v12072_v33 = vperm.slane %v4077_v20, %v10152_v4 }
 0x277   :  { %20031 = vst [vmem:[#allocation250_spill] sm:$0xff] %v12065_v5  ;;  %v12076_v21 = vsel %vm1962_vm0, %v12065_v5, %v4384_v12  ;;  %v4075_v3 = vsel %vm1962_vm0, %v4074_v26, %v10434_v17  ;;  %v4386_v27 = vrot.slane %v4370_v18, 4  ;;  %v12081_v38 = vsel %vm1962_vm0, %v4370_v18, %v4388_v19 }
 0x278   :  { %20032 = vst [vmem:[#allocation251_spill] sm:$0xff] %v12072_v33  ;;  %v4081_v50 = vperm.slane %v4075_v3, %v10152_v4  ;;  %v19440_v32 = vrot.slane %v12072_v33, 4  ;;  %v12096_v19 = vperm.slane %v4399_v55, %v10152_v4 }
 0x279   :  { %20033 = vst [vmem:[#allocation252_spill] sm:$0xff] %v12076_v21  ;;  %v12088_v20 = vsel %vm1962_vm0, %v4386_v27, %v4348_v48  ;;  %v20037_v48 = vperm.slane %v10136_v53, 0 }
 0x27a   :  { %20034 = vst [vmem:[#allocation253_spill] sm:$0xff] %v12081_v38  ;;  %1209 = vperm.xlu2 %9880, %v234_v36   ;;  %v4121_v17 = vsel %vm1962_vm0, %v12072_v33, %v19440_v32  ;;  %v4108_v26 = vrot.slane %v4081_v50, 4  ;;  %v19441_v12 = vrot.slane %v12096_v19, 4 }
 0x27b   :  { %20035 = vst [vmem:[#allocation254_spill] sm:$0xff] %v12088_v20 }
 0x27c   :  { %9879 = vset.pattern.permute.xlu1 %v10052_v9  ;;  %20036 = vst [vmem:[#allocation255_spill] sm:$0xff] %v12096_v19  ;;  %v4110_v18 = vsel %vm1962_vm0, %v4081_v50, %v4108_v26  ;;  %v12107_v3 = vsel %vm1962_vm0, %v12096_v19, %v19441_v12  ;;  %v4109_v55 = vsel %vm1962_vm0, %v4108_v26, %v4081_v50  ;;  %v3896_v50 = vrot.slane %v11840_v8, 4 }
 0x27d   :  { %v4118_v19 = vperm.slane %v4110_v18, %v10226_v63  ;;  %v4316_v26 = vrot.slane %v11852_v13, 4 }
 0x27e   :  { %v1054_v56 = vpop.permute.xlu1 %1053  ;;  %v3897_v18 = vsel %vm1962_vm0, %v11860_v49, %v3896_v50 }
 0x27f   :  { %v4064_v51 = vrot.slane %v1054_v56, 4  ;;  %v4317_v8 = vsel %vm1962_vm0, %v12035_v43, %v4316_v26  ;;  %v12145_v49 = vperm.slane %v3897_v18, %v10152_v4  ;;  %v4328_v18 = vrot.slane %v12046_v46, 4 }
 0x280   :  { %v12148_v43 = vperm.slane %v4317_v8, %v10152_v4  ;;  %v116_v8 = vrot.slane %v12059_v25, 4  ;;  %v3961_v46 = vperm.slane %v11816_v62, %v10226_v63 }
 0x281   :  { %20039 = vst [vmem:[#allocation257_spill] sm:$0xff] %v12145_v49 }
 0x282   :  { %1221 = vperm.xlu2 %9880, %v10818_v58   ;;  %v4129_v58 = vperm.slane %v4121_v17, %v10226_v63  ;;  %v12126_v17 = vpop.permute.xlu2 %1101  ;;  %20040 = vst [vmem:[#allocation258_spill] sm:$0xff] %v12148_v43 }
 0x284   :  { %1203 = vperm.xlu1 %9879, %v20037_v48   ;;  %v12117_v48 = vperm.slane %v4109_v55, %v10226_v63 }
 0x286   :  { %v1066_v27 = vpop.permute.xlu1 %1065  ;;  %v4130_v13 = vrot.slane %v12117_v48, 4 }
 0x287   :  { %v4062_v32 = vrot.slane %v1066_v27, 4  ;;  %v4065_v38 = vsel %vm1962_vm0, %v1066_v27, %v4064_v51  ;;  %v4142_v51 = vrot.slane %v4129_v58, 4 }
 0x288   :  { %v12112_v20 = vperm.slane %v4065_v38, %v10152_v4  ;;  %v115_v38 = vrot.slane %v12059_v25, 3 }
 0x289   :  { %v4063_v53 = vsel %vm1962_vm0, %v4062_v32, %v1054_v56 }
 0x28a   :  { %20038 = vst [vmem:[#allocation256_spill] sm:$0xff] %v12112_v20  ;;  %v4069_v21 = vperm.slane %v4063_v53, %v10152_v4  ;;  %v19446_v12 = vrot.slane %v12112_v20, 4  ;;  %9882 = vset.pattern.permute.xlu2 %v10052_v9  ;;  %v4134_v53 = vrot.slane %v4118_v19, 4  ;;  %v236_v44 = vperm.slane %v115_v38, 0 }
 0x28c   :  { %v4086_v32 = vrot.slane %v4069_v21, 4  ;;  %1215 = vperm.xlu1 %9879, %v234_v36   ;;  %v4099_v56 = vsel %vm1962_vm0, %v12112_v20, %v19446_v12 }
 0x28d   :  { %v4107_v27 = vperm.slane %v4099_v56, %v10226_v63 }
 0x28e   :  { %v4087_v55 = vsel %vm1962_vm0, %v4086_v32, %v4069_v21  ;;  %v4088_v36 = vsel %vm1962_vm0, %v4069_v21, %v4086_v32 }
 0x28f   :  { %v12141_v5 = vperm.slane %v4087_v55, %v10226_v63  ;;  %v4096_v12 = vperm.slane %v4088_v36, %v10226_v63  ;;  %v12151_v50 = vsel %vm1962_vm0, %v4142_v51, %v4107_v27  ;;  %v4144_v26 = vrot.slane %v4107_v27, 4  ;;  %v12171_v55 = vpop.permute.xlu2 %1119 }
 0x290   :  { %20041 = vst [vmem:[#allocation259_spill] sm:$0xff] %v12151_v50  ;;  %v19448_v51 = vrot.slane %v12145_v49, 4  ;;  %v19447_v27 = vrot.slane %v12148_v43, 4  ;;  %v237_v36 = vperm.slane %v116_v8, 0 }
 0x291   :  { %v12155_v21 = vsel %vm1962_vm0, %v4130_v13, %v12141_v5  ;;  %v12158_v38 = vsel %vm1962_vm0, %v4134_v53, %v4096_v12  ;;  %v4136_v32 = vrot.slane %v4096_v12, 4  ;;  %v12161_v56 = vsel %vm1962_vm0, %v4129_v58, %v4144_v26 }
 0x292   :  { %20042 = vst [vmem:[#allocation260_spill] sm:$0xff] %v12155_v21  ;;  %1239 = vperm.xlu2 %9882, %v236_v44   ;;  %v4329_v58 = vsel %vm1962_vm0, %v12040_v59, %v4328_v18  ;;  %v12181_v53 = vsel %vm1962_vm0, %v12148_v43, %v19447_v27 }
 0x293   :  { %20043 = vst [vmem:[#allocation261_spill] sm:$0xff] %v12158_v38  ;;  %v12169_v13 = vsel %vm1962_vm0, %v4118_v19, %v4136_v32  ;;  %v3931_v19 = vsel %vm1962_vm0, %v12145_v49, %v19448_v51  ;;  %v3974_v32 = vrot.slane %v3961_v46, 4  ;;  %v12189_v59 = vperm.slane %v4329_v58, %v10152_v4  ;;  %v20056_v49 = vld [vmem:[#allocation57_spill] sm:$0xff] }
 0x294   :  { %20044 = vst [vmem:[#allocation262_spill] sm:$0xff] %v12161_v56  ;;  %9881 = vset.pattern.permute.xlu1 %v10038_v1  ;;  %v3939_v26 = vperm.slane %v3931_v19, %v10226_v63 }
 0x295   :  { %20045 = vst [vmem:[#allocation263_spill] sm:$0xff] %v12169_v13 }
 0x296   :  { %v1084_v12 = vpop.permute.xlu1 %1083  ;;  %20046 = vst [vmem:[#allocation264_spill] sm:$0xff] %v12181_v53  ;;  %v12192_v62 = vsel %vm1962_vm0, %v3974_v32, %v3939_v26  ;;  %v3976_v18 = vrot.slane %v3939_v26, 4  ;;  %v19451_v53 = vrot.slane %v12189_v59, 4 }
 0x297   :  { %20047 = vst [vmem:[#allocation265_spill] sm:$0xff] %v12189_v59  ;;  %v4412_v8 = vrot.slane %v1084_v12, 4  ;;  %v12199_v43 = vpop.permute.xlu2 %1131 }
 0x298   :  { %20048 = vst [vmem:[#allocation266_spill] sm:$0xff] %v12192_v62  ;;  %v12195_v27 = vsel %vm1962_vm0, %v3961_v46, %v3976_v18  ;;  %v12213_v46 = vsel %vm1962_vm0, %v12189_v59, %v19451_v53 }
 0x299   :  { %20049 = vst [vmem:[#allocation267_spill] sm:$0xff] %v12195_v27  ;;  %v12232_v27 = vpop.permute.xlu0 %1107 }
 0x29a   :  { %1251 = vperm.xlu2 %9882, %v237_v36   ;;  %20051 = vst [vmem:[#allocation269_spill] sm:$0xff] %v12213_v46 }
 0x29c   :  { %1233 = vperm.xlu1 %9881, %v236_v44  }
 0x29e   :  { %v1096_v21 = vpop.permute.xlu1 %1095 }
 0x29f   :  { %v4410_v51 = vrot.slane %v1096_v21, 4  ;;  %v4413_v19 = vsel %vm1962_vm0, %v1096_v21, %v4412_v8  ;;  %v118_v21 = vrot.slane %v12059_v25, 6  ;;  %v4482_v8 = vrot.slane %v12171_v55, 4 }
 0x2a0   :  { %v12202_v58 = vperm.slane %v4413_v19, %v10152_v4 }
 0x2a1   :  { %v4411_v32 = vsel %vm1962_vm0, %v4410_v51, %v1084_v12  ;;  %v4432_v12 = vperm.slane %v12107_v3, %v10226_v63  ;;  %v239_v25 = vperm.slane %v118_v21, 0  ;;  %v4148_v21 = vrot.slane %v12126_v17, 4 }
 0x2a2   :  { %v12206_v26 = vperm.slane %v4411_v32, %v10152_v4  ;;  %v19452_v44 = vrot.slane %v12202_v58, 4  ;;  %9884 = vset.pattern.permute.xlu2 %v10038_v1 }
 0x2a3   :  { %v4472_v53 = vrot.slane %v4432_v12, 4 }
 0x2a4   :  { %20050 = vst [vmem:[#allocation268_spill] sm:$0xff] %v12206_v26  ;;  %v19453_v18 = vrot.slane %v12206_v26, 4  ;;  %v12222_v51 = vsel %vm1962_vm0, %v12202_v58, %v19452_v44  ;;  %1245 = vperm.xlu1 %9881, %v237_v36   ;;  %v12234_v62 = vpop.permute.xlu2 %1149  ;;  %v4483_v36 = vsel %vm1962_vm0, %v4482_v8, %v12232_v27 }
 0x2a5   :  { %20052 = vst [vmem:[#allocation270_spill] sm:$0xff] %v12222_v51 }
 0x2a6   :  { %v4446_v19 = vsel %vm1962_vm0, %v12206_v26, %v19453_v18 }
 0x2a7   :  { %v4454_v32 = vperm.slane %v4446_v19, %v10226_v63  ;;  %v12247_v19 = vperm.slane %v4483_v36, %v10152_v4  ;;  %v20057_v36 = vld [vmem:[#allocation105_spill] sm:$0xff] }
 0x2a9   :  { %v4470_v44 = vrot.slane %v4454_v32, 4  ;;  %v12239_v3 = vsel %vm1962_vm0, %v4454_v32, %v4472_v53  ;;  %20055 = vst [vmem:[#allocation273_spill] sm:$0xff] %v12247_v19  ;;  %v19465_v32 = vrot.slane %v12247_v19, 4 }
 0x2aa   :  { %20053 = vst [vmem:[#allocation271_spill] sm:$0xff] %v12239_v3  ;;  %1269 = vperm.xlu2 %9884, %v239_v25   ;;  %v4158_v3 = vrot.slane %v20056_v49, 4 }
 0x2ab   :  { %v12242_v51 = vsel %vm1962_vm0, %v4470_v44, %v4432_v12 }
 0x2ac   :  { %20054 = vst [vmem:[#allocation272_spill] sm:$0xff] %v12242_v51  ;;  %9883 = vset.pattern.permute.xlu1 %v10052_v9  ;;  %v4232_v51 = vrot.slane %v12234_v62, 4  ;;  %v12258_v26 = vpop.permute.xlu2 %1161 }
 0x2ae   :  { %v1114_v18 = vpop.permute.xlu1 %1113 }
 0x2af   :  { %v4146_v46 = vrot.slane %v1114_v18, 4  ;;  %v4149_v59 = vsel %vm1962_vm0, %v1114_v18, %v4148_v21  ;;  %v20058_v18 = vld [vmem:[#allocation10_spill] sm:$0xff] }
 0x2b0   :  { %v4157_v8 = vperm.slane %v4149_v59, %v10152_v4 }
 0x2b1   :  { %v4147_v53 = vsel %vm1962_vm0, %v4146_v46, %v12126_v17  ;;  %v12266_v17 = vsel %vm1962_vm0, %v12247_v19, %v19465_v32 }
 0x2b2   :  { %v4153_v44 = vperm.slane %v4147_v53, %v10152_v4  ;;  %v4181_v12 = vrot.slane %v4157_v8, 4  ;;  %1281 = vperm.xlu2 %9884, %v20057_v36   ;;  %v4400_v36 = vrot.slane %v12014_v23, 4 }
 0x2b4   :  { %v4170_v56 = vrot.slane %v4153_v44, 4  ;;  %1263 = vperm.xlu1 %9883, %v20058_v18   ;;  %v4183_v59 = vsel %vm1962_vm0, %v4157_v8, %v4181_v12  ;;  %v4233_v18 = vsel %vm1962_vm0, %v12258_v26, %v4232_v51  ;;  %v4182_v54 = vsel %vm1962_vm0, %v4181_v12, %v4157_v8 }
 0x2b5   :  { %v4401_v51 = vsel %vm1962_vm0, %v12044_v39, %v4400_v36  ;;  %v12296_v36 = vld [vmem:[#allocation2 + $0x48] sm:$0xff] }
 0x2b6   :  { %v1126_v46 = vpop.permute.xlu1 %1125  ;;  %v4171_v21 = vsel %vm1962_vm0, %v4170_v56, %v4153_v44  ;;  %v4172_v53 = vsel %vm1962_vm0, %v4153_v44, %v4170_v56  ;;  %v12312_v52 = vperm.slane %v4401_v51, %v10152_v4 }
 0x2b7   :  { %v4159_v50 = vsel %vm1962_vm0, %v4158_v3, %v1126_v46  ;;  %v4160_v20 = vrot.slane %v1126_v46, 4  ;;  %v4176_v19 = vperm.slane %v4171_v21, %v10226_v63  ;;  %v4180_v24 = vperm.slane %v4172_v53, %v10226_v63 }
 0x2b8   :  { %v4165_v33 = vperm.slane %v4159_v50, %v10152_v4  ;;  %v12282_v3 = vperm.slane %v4233_v18, %v10152_v4  ;;  %v12288_v50 = vperm.slane %v4182_v54, %v10226_v63  ;;  %v241_v54 = vperm.slane %v12296_v36, 0  ;;  %20063 = vst [vmem:[#allocation275_spill] sm:$0xff] %v12312_v52 }
 0x2b9   :  { %v4161_v32 = vsel %vm1962_vm0, %v20056_v49, %v4160_v20  ;;  %v4216_v12 = vrot.slane %v4176_v19, 4  ;;  %v4220_v39 = vrot.slane %v4180_v24, 4 }
 0x2ba   :  { %v4169_v56 = vperm.slane %v4161_v32, %v10152_v4  ;;  %v4192_v23 = vrot.slane %v4165_v33, 4  ;;  %20059 = vst [vmem:[#allocation57_spill] sm:$0xff] %v12282_v3  ;;  %9886 = vset.pattern.permute.xlu2 %v10052_v9  ;;  %v4191_v32 = vperm.slane %v4183_v59, %v10226_v63  ;;  %v4224_v53 = vrot.slane %v12288_v50, 4 }
 0x2bb   :  { %20060 = vst [vmem:[#allocation105_spill] sm:$0xff] %v12288_v50 }
 0x2bc   :  { %v4194_v20 = vsel %vm1962_vm0, %v4165_v33, %v4192_v23  ;;  %v4203_v49 = vrot.slane %v4169_v56, 4  ;;  %1275 = vperm.xlu1 %9883, %v239_v25   ;;  %v4193_v8 = vsel %vm1962_vm0, %v4192_v23, %v4165_v33  ;;  %v1180_v46 = vpop.permute.xlu2 %1179  ;;  %v4228_v34 = vrot.slane %v4191_v32, 4 }
 0x2bd   :  { %v4198_v44 = vperm.slane %v4193_v8, %v10226_v63  ;;  %v4202_v21 = vperm.slane %v4194_v20, %v10226_v63 }
 0x2be   :  { %v4204_v18 = vsel %vm1962_vm0, %v4203_v49, %v4169_v56  ;;  %v4205_v25 = vsel %vm1962_vm0, %v4169_v56, %v4203_v49 }
 0x2bf   :  { %v4217_v33 = vsel %vm1962_vm0, %v4198_v44, %v4216_v12  ;;  %v4214_v59 = vrot.slane %v4198_v44, 4  ;;  %v4218_v23 = vrot.slane %v4202_v21, 4  ;;  %v12303_v8 = vsel %vm1962_vm0, %v4202_v21, %v4220_v39 }
 0x2c0   :  { %20061 = vst [vmem:[#allocation10_spill] sm:$0xff] %v12303_v8  ;;  %7398 = vrot.lane.b32.xlu0 %v4217_v33, %s10007_s0  ;;  %v12307_v20 = vperm.slane %v4204_v18, %v10226_v63  ;;  %v4213_v16 = vperm.slane %v4205_v25, %v10226_v63  ;;  %v4580_v44 = vrot.slane %v1180_v46, 4  ;;  %v120_v18 = vrot.slane %v12296_v36, 1 }
 0x2c1   :  { %v12315_v56 = vsel %vm1962_vm0, %v4214_v59, %v4176_v19  ;;  %v12318_v49 = vsel %vm1962_vm0, %v4218_v23, %v4180_v24  ;;  %v20069_v24 = vrot.slane %v12282_v3, 4 }
 0x2c2   :  { %20062 = vst [vmem:[#allocation274_spill] sm:$0xff] %v12307_v20  ;;  %v12322_v12 = vsel %vm1962_vm0, %v12307_v20, %v4224_v53  ;;  %v4226_v21 = vrot.slane %v4213_v16, 4  ;;  %v12325_v39 = vsel %vm1962_vm0, %v4213_v16, %v4228_v34  ;;  %1299 = vperm.xlu2 %9886, %v241_v54   ;;  %v4496_v53 = vrot.slane %v12199_v43, 4 }
 0x2c3   :  { %20064 = vst [vmem:[#allocation276_spill] sm:$0xff] %v12315_v56  ;;  %v12336_v51 = vsel %vm1962_vm0, %v12282_v3, %v20069_v24 }
 0x2c4   :  { %20065 = vst [vmem:[#allocation277_spill] sm:$0xff] %v12318_v49  ;;  %9885 = vset.pattern.permute.xlu1 %v10038_v1  ;;  %v12330_v19 = vsel %vm1962_vm0, %v4226_v21, %v4191_v32  ;;  %v1192_v25 = vpop.permute.xlu2 %1191  ;;  %v242_v21 = vperm.slane %v120_v18, 0 }
 0x2c5   :  { %20066 = vst [vmem:[#allocation278_spill] sm:$0xff] %v12322_v12  ;;  %v4578_v33 = vrot.slane %v1192_v25, 4  ;;  %v4581_v59 = vsel %vm1962_vm0, %v1192_v25, %v4580_v44  ;;  %v12353_v44 = vpop.permute.xlu0 %1167 }
 0x2c6   :  { %20067 = vst [vmem:[#allocation279_spill] sm:$0xff] %v12325_v39  ;;  %v1144_v34 = vpop.permute.xlu1 %1143  ;;  %v12343_v32 = vperm.slane %v4581_v59, %v10152_v4 }
 0x2c7   :  { %20068 = vst [vmem:[#allocation280_spill] sm:$0xff] %v12330_v19  ;;  %v4494_v23 = vrot.slane %v1144_v34, 4  ;;  %v4497_v56 = vsel %vm1962_vm0, %v1144_v34, %v4496_v53  ;;  %v4579_v24 = vsel %vm1962_vm0, %v4578_v33, %v1180_v46  ;;  %v4566_v46 = vrot.slane %v12353_v44, 4 }
 0x2c8   :  { %20070 = vst [vmem:[#allocation281_spill] sm:$0xff] %v12343_v32  ;;  %v12346_v39 = vperm.slane %v4497_v56, %v10152_v4  ;;  %v4585_v16 = vperm.slane %v4579_v24, %v10152_v4  ;;  %v19470_v12 = vrot.slane %v12343_v32, 4  ;;  %v20073_v56 = vrot.slane %v12312_v52, 4 }
 0x2c9   :  { %v4495_v19 = vsel %vm1962_vm0, %v4494_v23, %v12199_v43 }
 0x2ca   :  { %20071 = vst [vmem:[#allocation282_spill] sm:$0xff] %v12346_v39  ;;  %v12356_v53 = vperm.slane %v4495_v19, %v10152_v4  ;;  %v19473_v25 = vrot.slane %v12346_v39, 4  ;;  %v4434_v18 = vsel %vm1962_vm0, %v20073_v56, %v12312_v52  ;;  %v4612_v34 = vrot.slane %v4585_v16, 4  ;;  %1311 = vperm.xlu2 %9886, %v242_v21  }
 0x2cb   :  { %v12368_v43 = vsel %vm1962_vm0, %v12343_v32, %v19470_v12  ;;  %v20075_v19 = vrot.slane %v12202_v58, 4  ;;  %v12383_v56 = vperm.slane %v4434_v18, %v10226_v63 }
 0x2cc   :  { %20072 = vst [vmem:[#allocation283_spill] sm:$0xff] %v12356_v53  ;;  %v19480_v59 = vrot.slane %v12356_v53, 4  ;;  %v12379_v23 = vsel %vm1962_vm0, %v12346_v39, %v19473_v25  ;;  %1293 = vperm.xlu1 %9885, %v241_v54   ;;  %v4614_v24 = vsel %vm1962_vm0, %v4585_v16, %v4612_v34 }
 0x2cd   :  { %20074 = vst [vmem:[#allocation284_spill] sm:$0xff] %v12368_v43  ;;  %v4456_v33 = vsel %vm1962_vm0, %v20075_v19, %v12202_v58  ;;  %v4622_v18 = vperm.slane %v4614_v24, %v10226_v63  ;;  %v4516_v43 = vperm.slane %v12266_v17, %v10226_v63  ;;  %v4476_v39 = vrot.slane %v12383_v56, 4 }
 0x2ce   :  { %20076 = vst [vmem:[#allocation285_spill] sm:$0xff] %v12383_v56  ;;  %v12385_v12 = vpop.permute.xlu1 %1155  ;;  %v4530_v58 = vsel %vm1962_vm0, %v12356_v53, %v19480_v59  ;;  %v12395_v25 = vperm.slane %v4456_v33, %v10226_v63  ;;  %v4613_v17 = vsel %vm1962_vm0, %v4612_v34, %v4585_v16 }
 0x2cf   :  { %v4567_v19 = vsel %vm1962_vm0, %v4566_v46, %v12385_v12  ;;  %v4538_v52 = vperm.slane %v4530_v58, %v10226_v63  ;;  %v122_v46 = vrot.slane %v12296_v36, 3  ;;  %v4638_v59 = vrot.slane %v4622_v18, 4 }
 0x2d0   :  { %20077 = vst [vmem:[#allocation286_spill] sm:$0xff] %v12395_v25  ;;  %v4573_v54 = vperm.slane %v4567_v19, %v10152_v4  ;;  %v12409_v33 = vsel %vm1962_vm0, %v12395_v25, %v4476_v39  ;;  %v12420_v50 = vperm.slane %v4613_v17, %v10226_v63  ;;  %v4556_v17 = vrot.slane %v4516_v43, 4 }
 0x2d1   :  { %v4554_v32 = vrot.slane %v4538_v52, 4  ;;  %20079 = vst [vmem:[#allocation288_spill] sm:$0xff] %v12409_v33 }
 0x2d2   :  { %v4590_v3 = vrot.slane %v4573_v54, 4  ;;  %9888 = vset.pattern.permute.xlu2 %v10038_v1  ;;  %20081 = vst [vmem:[#allocation290_spill] sm:$0xff] %v12420_v50 }
 0x2d3   :  { %v12405_v58 = vsel %vm1962_vm0, %v4554_v32, %v4516_v43  ;;  %v4230_v32 = vrot.slane %v12258_v26, 4 }
 0x2d4   :  { %20078 = vst [vmem:[#allocation287_spill] sm:$0xff] %v12405_v58  ;;  %1305 = vperm.xlu1 %9885, %v242_v21   ;;  %v4591_v24 = vsel %vm1962_vm0, %v4590_v3, %v4573_v54  ;;  %v4592_v19 = vsel %vm1962_vm0, %v4573_v54, %v4590_v3  ;;  %v244_v58 = vperm.slane %v122_v46, 0  ;;  %v1210_v34 = vpop.permute.xlu2 %1209 }
 0x2d5   :  { %v12415_v56 = vperm.slane %v4591_v24, %v10226_v63  ;;  %v4600_v53 = vperm.slane %v4592_v19, %v10226_v63  ;;  %v4231_v26 = vsel %vm1962_vm0, %v4230_v32, %v12234_v62  ;;  %v20088_v62 = vld [vmem:[#allocation12_spill] sm:$0xff] }
 0x2d6   :  { %v4237_v46 = vperm.slane %v4231_v26, %v10152_v4 }
 0x2d7   :  { %20080 = vst [vmem:[#allocation289_spill] sm:$0xff] %v12415_v56  ;;  %v4636_v39 = vrot.slane %v12415_v56, 4  ;;  %v12424_v21 = vsel %vm1962_vm0, %v4638_v59, %v4600_v53  ;;  %v4640_v16 = vrot.slane %v4600_v53, 4  ;;  %v4650_v59 = vrot.slane %v1210_v34, 4 }
 0x2d8   :  { %20082 = vst [vmem:[#allocation291_spill] sm:$0xff] %v12424_v21  ;;  %v12438_v53 = vsel %vm1962_vm0, %v4538_v52, %v4556_v17  ;;  %v4254_v19 = vrot.slane %v4237_v46, 4 }
 0x2d9   :  { %v12428_v3 = vsel %vm1962_vm0, %v12420_v50, %v4636_v39  ;;  %v12431_v54 = vsel %vm1962_vm0, %v4622_v18, %v4640_v16  ;;  %20085 = vst [vmem:[#allocation294_spill] sm:$0xff] %v12438_v53  ;;  %v20086_v39 = vld [vmem:[#allocation63_spill] sm:$0xff]  ;;  %v20087_v18 = vld [vmem:[#allocation108_spill] sm:$0xff] }
 0x2da   :  { %20083 = vst [vmem:[#allocation292_spill] sm:$0xff] %v12428_v3  ;;  %1329 = vperm.xlu2 %9888, %v244_v58   ;;  %v4651_v33 = vsel %vm1962_vm0, %v4650_v59, %v20086_v39  ;;  %v4652_v32 = vrot.slane %v20086_v39, 4  ;;  %v4256_v52 = vsel %vm1962_vm0, %v4237_v46, %v4254_v19 }
 0x2db   :  { %20084 = vst [vmem:[#allocation293_spill] sm:$0xff] %v12431_v54  ;;  %v12448_v26 = vperm.slane %v4651_v33, %v10152_v4  ;;  %v12459_v21 = vperm.slane %v4256_v52, %v10226_v63 }
 0x2dc   :  { %9887 = vset.pattern.permute.xlu1 %v10052_v9  ;;  %v12443_v16 = vpop.permute.xlu2 %1221 }
 0x2dd   :  { %v19491_v39 = vrot.slane %v12448_v26, 4  ;;  %20090 = vst [vmem:[#allocation108_spill] sm:$0xff] %v12459_v21  ;;  %v4304_v52 = vrot.slane %v12459_v21, 4 }
 0x2de   :  { %v1174_v24 = vpop.permute.xlu1 %1173 }
 0x2df   :  { %v4244_v25 = vrot.slane %v1174_v24, 4 }
 0x2e2   :  { %1341 = vperm.xlu2 %9888, %v20087_v18   ;;  %v1228_v18 = vpop.permute.xlu0 %1227 }
 0x2e3   :  { %v5000_v33 = vrot.slane %v1228_v18, 4 }
 0x2e4   :  { %1323 = vperm.xlu1 %9887, %v20088_v62   ;;  %v4653_v62 = vsel %vm1962_vm0, %v1210_v34, %v4652_v32 }
 0x2e5   :  { %v12470_v34 = vperm.slane %v4653_v62, %v10152_v4 }
 0x2e6   :  { %v1186_v43 = vpop.permute.xlu1 %1185 }
 0x2e7   :  { %v4242_v17 = vrot.slane %v1186_v43, 4  ;;  %v4245_v53 = vsel %vm1962_vm0, %v1186_v43, %v4244_v25  ;;  %v124_v25 = vrot.slane %v12296_v36, 5  ;;  %20091 = vst [vmem:[#allocation12_spill] sm:$0xff] %v12470_v34  ;;  %v4255_v43 = vsel %vm1962_vm0, %v4254_v19, %v4237_v46 }
 0x2e8   :  { %v12453_v59 = vperm.slane %v4245_v53, %v10152_v4 }
 0x2e9   :  { %v4243_v54 = vsel %vm1962_vm0, %v4242_v17, %v1174_v24  ;;  %v246_v62 = vperm.slane %v124_v25, 0  ;;  %v12502_v25 = vperm.slane %v4255_v43, %v10226_v63 }
 0x2ea   :  { %20089 = vst [vmem:[#allocation63_spill] sm:$0xff] %v12453_v59  ;;  %v4249_v3 = vperm.slane %v4243_v54, %v10152_v4  ;;  %v19488_v56 = vrot.slane %v12453_v59, 4  ;;  %9890 = vset.pattern.permute.xlu2 %v10052_v9  ;;  %v12477_v54 = vsel %vm1962_vm0, %v12448_v26, %v19491_v39  ;;  %v19494_v39 = vrot.slane %v12470_v34, 4 }
 0x2ec   :  { %v4289_v24 = vsel %vm1962_vm0, %v12453_v59, %v19488_v56  ;;  %1335 = vperm.xlu1 %9887, %v244_v58   ;;  %v4276_v53 = vrot.slane %v4249_v3, 4  ;;  %v1240_v32 = vpop.permute.xlu2 %1239  ;;  %v4275_v58 = vperm.slane %v12336_v51, %v10226_v63 }
 0x2ed   :  { %v4998_v17 = vrot.slane %v1240_v32, 4  ;;  %v5001_v50 = vsel %vm1962_vm0, %v1240_v32, %v5000_v33  ;;  %v4297_v32 = vperm.slane %v4289_v24, %v10226_v63  ;;  %v125_v24 = vrot.slane %v12296_v36, 6 }
 0x2ee   :  { %v4277_v56 = vsel %vm1962_vm0, %v4276_v53, %v4249_v3  ;;  %v12485_v59 = vperm.slane %v5001_v50, %v10152_v4  ;;  %v4278_v19 = vsel %vm1962_vm0, %v4249_v3, %v4276_v53  ;;  %v4568_v53 = vrot.slane %v12385_v12, 4 }
 0x2ef   :  { %v12488_v46 = vperm.slane %v4277_v56, %v10226_v63  ;;  %v4999_v20 = vsel %vm1962_vm0, %v4998_v17, %v1228_v18  ;;  %v12494_v33 = vperm.slane %v4278_v19, %v10226_v63  ;;  %v4312_v18 = vrot.slane %v4275_v58, 4 }
 0x2f0   :  { %v12498_v51 = vperm.slane %v4999_v20, %v10152_v4  ;;  %v19493_v50 = vrot.slane %v12485_v59, 4  ;;  %v4687_v12 = vsel %vm1962_vm0, %v12470_v34, %v19494_v39 }
 0x2f1   :  { %20092 = vst [vmem:[#allocation295_spill] sm:$0xff] %v12494_v33  ;;  %v4298_v56 = vrot.slane %v12488_v46, 4  ;;  %v12507_v3 = vsel %vm1962_vm0, %v12494_v33, %v4304_v52  ;;  %v4310_v52 = vrot.slane %v4297_v32, 4  ;;  %v12528_v19 = vsel %vm1962_vm0, %v4297_v32, %v4312_v18 }
 0x2f2   :  { %20093 = vst [vmem:[#allocation296_spill] sm:$0xff] %v12498_v51  ;;  %1359 = vperm.xlu2 %9890, %v246_v62   ;;  %v12514_v20 = vsel %vm1962_vm0, %v12485_v59, %v19493_v50  ;;  %v19497_v17 = vrot.slane %v12498_v51, 4 }
 0x2f3   :  { %20094 = vst [vmem:[#allocation297_spill] sm:$0xff] %v12507_v3  ;;  %v12519_v43 = vsel %vm1962_vm0, %v4298_v56, %v12502_v25  ;;  %v12533_v36 = vsel %vm1962_vm0, %v4310_v52, %v4275_v58  ;;  %v4569_v56 = vsel %vm1962_vm0, %v12353_v44, %v4568_v53 }
 0x2f4   :  { %20095 = vst [vmem:[#allocation298_spill] sm:$0xff] %v12519_v43  ;;  %9889 = vset.pattern.permute.xlu1 %v10038_v1  ;;  %v247_v43 = vperm.slane %v125_v24, 0  ;;  %v5034_v39 = vsel %vm1962_vm0, %v12498_v51, %v19497_v17  ;;  %v12542_v34 = vperm.slane %v4569_v56, %v10152_v4  ;;  %v12544_v32 = vpop.permute.xlu2 %1251 }
 0x2f5   :  { %20096 = vst [vmem:[#allocation299_spill] sm:$0xff] %v12528_v19  ;;  %v12553_v53 = vperm.slane %v5034_v39, %v10226_v63 }
 0x2f6   :  { %v12530_v50 = vpop.permute.xlu1 %1203  ;;  %20097 = vst [vmem:[#allocation300_spill] sm:$0xff] %v12533_v36  ;;  %v19500_v58 = vrot.slane %v12542_v34, 4 }
 0x2f7   :  { %20098 = vst [vmem:[#allocation301_spill] sm:$0xff] %v12542_v34 }
 0x2fa   :  { %1371 = vperm.xlu2 %9890, %v247_v43  }
 0x2fc   :  { %1353 = vperm.xlu1 %9889, %v246_v62   ;;  %v12562_v62 = vsel %vm1962_vm0, %v12542_v34, %v19500_v58 }
 0x2fd   :  { %20100 = vst [vmem:[#allocation303_spill] sm:$0xff] %v12562_v62  ;;  %v4484_v62 = vrot.slane %v12232_v27, 4 }
 0x2fe   :  { %v12546_v18 = vpop.permute.xlu1 %1215 }
 0x2ff   :  { %v4986_v52 = vrot.slane %v12546_v18, 4  ;;  %v4485_v19 = vsel %vm1962_vm0, %v12171_v55, %v4484_v62 }
 0x300   :  { %v12596_v49 = vperm.slane %v4485_v19, %v10152_v4  ;;  %v20105_v19 = vld [vmem:[#allocation64_spill] sm:$0xff] }
 0x301   :  { %v4987_v44 = vsel %vm1962_vm0, %v4986_v52, %v12530_v50  ;;  %v5058_v52 = vrot.slane %v12553_v53, 4 }
 0x302   :  { %v12556_v24 = vperm.slane %v4987_v44, %v10152_v4  ;;  %9892 = vset.pattern.permute.xlu2 %v10038_v1  ;;  %v12571_v44 = vld [vmem:[#allocation2 + $0x50] sm:$0xff]  ;;  %20103 = vst [vmem:[#allocation306_spill] sm:$0xff] %v12596_v49 }
 0x303   :  { %v19506_v51 = vperm.slane %v12571_v44, 0 }
 0x304   :  { %20099 = vst [vmem:[#allocation302_spill] sm:$0xff] %v12556_v24  ;;  %1365 = vperm.xlu1 %9889, %v247_v43   ;;  %v19503_v56 = vrot.slane %v12556_v24, 4  ;;  %v1270_v17 = vpop.permute.xlu2 %1269 }
 0x305   :  { %v4748_v34 = vrot.slane %v1270_v17, 4 }
 0x306   :  { %v5012_v39 = vsel %vm1962_vm0, %v12556_v24, %v19503_v56  ;;  %v4664_v56 = vrot.slane %v12443_v16, 4 }
 0x307   :  { %v12575_v58 = vperm.slane %v5012_v39, %v10226_v63 }
 0x309   :  { %v12579_v43 = vsel %vm1962_vm0, %v5058_v52, %v12575_v58 }
 0x30a   :  { %20101 = vst [vmem:[#allocation304_spill] sm:$0xff] %v12579_v43  ;;  %1389 = vperm.xlu2 %9892, %v19506_v51  }
 0x30c   :  { %9891 = vset.pattern.permute.xlu1 %v10052_v9  ;;  %v1282_v24 = vpop.permute.xlu2 %1281 }
 0x30d   :  { %v4746_v36 = vrot.slane %v1282_v24, 4  ;;  %v4749_v3 = vsel %vm1962_vm0, %v1282_v24, %v4748_v34 }
 0x30e   :  { %v1234_v39 = vpop.permute.xlu1 %1233  ;;  %v4757_v27 = vperm.slane %v4749_v3, %v10152_v4  ;;  %v20104_v3 = vrot.slane %v12448_v26, 4 }
 0x30f   :  { %v4662_v52 = vrot.slane %v1234_v39, 4  ;;  %v4665_v43 = vsel %vm1962_vm0, %v1234_v39, %v4664_v56  ;;  %v4747_v51 = vsel %vm1962_vm0, %v4746_v36, %v1270_v17  ;;  %v4684_v17 = vperm.slane %v12477_v54, %v10226_v63 }
 0x310   :  { %v12592_v8 = vperm.slane %v4665_v43, %v10152_v4  ;;  %v4753_v62 = vperm.slane %v4747_v51, %v10152_v4  ;;  %v4791_v13 = vrot.slane %v4757_v27, 4  ;;  %v4675_v56 = vsel %vm1962_vm0, %v20104_v3, %v12448_v26 }
 0x311   :  { %v4663_v55 = vsel %vm1962_vm0, %v4662_v52, %v12443_v16  ;;  %v4734_v36 = vrot.slane %v20105_v19, 4  ;;  %v20106_v16 = vld [vmem:[#allocation111_spill] sm:$0xff]  ;;  %v4695_v26 = vperm.slane %v4687_v12, %v10226_v63  ;;  %v12621_v29 = vperm.slane %v4675_v56, %v10226_v63 }
 0x312   :  { %20102 = vst [vmem:[#allocation305_spill] sm:$0xff] %v12592_v8  ;;  %v4669_v34 = vperm.slane %v4663_v55, %v10152_v4  ;;  %v19507_v24 = vrot.slane %v12592_v8, 4  ;;  %v4793_v43 = vsel %vm1962_vm0, %v4757_v27, %v4791_v13  ;;  %1401 = vperm.xlu2 %9892, %v20106_v16   ;;  %v4780_v51 = vrot.slane %v4753_v62, 4  ;;  %v20107_v52 = vld [vmem:[#allocation15_spill] sm:$0xff] }
 0x313   :  { %v4988_v56 = vrot.slane %v12530_v50, 4 }
 0x314   :  { %v4709_v39 = vsel %vm1962_vm0, %v12592_v8, %v19507_v24  ;;  %1383 = vperm.xlu1 %9891, %v20107_v52   ;;  %v4696_v55 = vrot.slane %v4669_v34, 4  ;;  %v4781_v54 = vsel %vm1962_vm0, %v4780_v51, %v4753_v62  ;;  %v4782_v16 = vsel %vm1962_vm0, %v4753_v62, %v4780_v51 }
 0x315   :  { %v4786_v30 = vperm.slane %v4781_v54, %v10226_v63  ;;  %v4724_v52 = vrot.slane %v4684_v17, 4  ;;  %v4790_v51 = vperm.slane %v4782_v16, %v10226_v63  ;;  %v4732_v54 = vrot.slane %v4695_v26, 4 }
 0x316   :  { %v1246_v61 = vpop.permute.xlu1 %1245  ;;  %v4697_v41 = vsel %vm1962_vm0, %v4696_v55, %v4669_v34  ;;  %v4698_v24 = vsel %vm1962_vm0, %v4669_v34, %v4696_v55  ;;  %v128_v34 = vrot.slane %v12571_v44, 2 }
 0x317   :  { %v4735_v8 = vsel %vm1962_vm0, %v4734_v36, %v1246_v61  ;;  %v4736_v12 = vrot.slane %v1246_v61, 4  ;;  %v12629_v3 = vperm.slane %v4697_v41, %v10226_v63  ;;  %v4706_v38 = vperm.slane %v4698_v24, %v10226_v63 }
 0x318   :  { %v4741_v62 = vperm.slane %v4735_v8, %v10152_v4  ;;  %v4989_v41 = vsel %vm1962_vm0, %v12546_v18, %v4988_v56  ;;  %v4802_v8 = vrot.slane %v4786_v30, 4  ;;  %v20111_v18 = vperm.slane %v12571_v44, 0 }
 0x319   :  { %v4737_v40 = vsel %vm1962_vm0, %v20105_v19, %v4736_v12  ;;  %v4718_v36 = vrot.slane %v12629_v3, 4  ;;  %v4722_v61 = vrot.slane %v4706_v38, 4  ;;  %v12643_v50 = vsel %vm1962_vm0, %v4706_v38, %v4724_v52 }
 0x31a   :  { %v4745_v24 = vperm.slane %v4737_v40, %v10152_v4  ;;  %v4758_v55 = vrot.slane %v4741_v62, 4  ;;  %20108 = vst [vmem:[#allocation64_spill] sm:$0xff] %v12643_v50  ;;  %9894 = vset.pattern.permute.xlu2 %v10052_v9  ;;  %v4806_v12 = vrot.slane %v4790_v51, 4  ;;  %v4717_v52 = vperm.slane %v4709_v39, %v10226_v63 }
 0x31b   :  { %v12648_v19 = vsel %vm1962_vm0, %v4718_v36, %v12621_v29  ;;  %v12651_v16 = vsel %vm1962_vm0, %v4722_v61, %v4684_v17  ;;  %v251_v50 = vperm.slane %v128_v34, 0  ;;  %v4792_v17 = vsel %vm1962_vm0, %v4791_v13, %v4757_v27 }
 0x31c   :  { %20109 = vst [vmem:[#allocation111_spill] sm:$0xff] %v12648_v19  ;;  %v4759_v35 = vsel %vm1962_vm0, %v4758_v55, %v4741_v62  ;;  %1395 = vperm.xlu1 %9891, %v20111_v18   ;;  %v4760_v40 = vsel %vm1962_vm0, %v4741_v62, %v4758_v55  ;;  %v4769_v38 = vrot.slane %v4745_v24, 4  ;;  %v4801_v19 = vperm.slane %v4793_v43, %v10226_v63 }
 0x31d   :  { %20110 = vst [vmem:[#allocation15_spill] sm:$0xff] %v12651_v16  ;;  %v4764_v56 = vperm.slane %v4759_v35, %v10226_v63  ;;  %v4768_v36 = vperm.slane %v4760_v40, %v10226_v63  ;;  %v4730_v16 = vrot.slane %v4717_v52, 4  ;;  %v5060_v40 = vrot.slane %v12575_v58, 4 }
 0x31e   :  { %v4770_v61 = vsel %vm1962_vm0, %v4769_v38, %v4745_v24  ;;  %v4771_v21 = vsel %vm1962_vm0, %v4745_v24, %v4769_v38  ;;  %v4814_v27 = vrot.slane %v4801_v19, 4  ;;  %v12678_v24 = vpop.permute.xlu2 %1299  ;;  %v20122_v58 = vrot.slane %v12596_v49, 4 }
 0x31f   :  { %v4804_v18 = vrot.slane %v4764_v56, 4  ;;  %v12665_v62 = vsel %vm1962_vm0, %v4802_v8, %v4764_v56  ;;  %v12668_v39 = vsel %vm1962_vm0, %v4806_v12, %v4768_v36  ;;  %v4808_v35 = vrot.slane %v4768_v36, 4  ;;  %20116 = vst [vmem:[#allocation311_spill] sm:$0xff] %v12678_v24 }
 0x320   :  { %20112 = vst [vmem:[#allocation307_spill] sm:$0xff] %v12665_v62  ;;  %v12671_v34 = vperm.slane %v4770_v61, %v10226_v63  ;;  %v12674_v43 = vsel %vm1962_vm0, %v4730_v16, %v4695_v26  ;;  %v4779_v13 = vperm.slane %v4771_v21, %v10226_v63  ;;  %v12684_v12 = vsel %vm1962_vm0, %v4717_v52, %v4732_v54 }
 0x321   :  { %20113 = vst [vmem:[#allocation308_spill] sm:$0xff] %v12668_v39  ;;  %v4805_v55 = vsel %vm1962_vm0, %v4786_v30, %v4804_v18  ;;  %v12681_v8 = vsel %vm1962_vm0, %v4790_v51, %v4808_v35  ;;  %v12689_v26 = vperm.slane %v4792_v17, %v10226_v63  ;;  %v129_v51 = vrot.slane %v12571_v44, 3 }
 0x322   :  { %20114 = vst [vmem:[#allocation309_spill] sm:$0xff] %v12671_v34  ;;  %7404 = vrot.lane.b32.xlu0 %v4805_v55, %s10007_s0  ;;  %v4812_v21 = vrot.slane %v12671_v34, 4  ;;  %v12693_v16 = vsel %vm1962_vm0, %v4814_v27, %v4779_v13  ;;  %v4816_v30 = vrot.slane %v4779_v13, 4  ;;  %1419 = vperm.xlu2 %9894, %v251_v50   ;;  %v12698_v54 = vsel %vm1962_vm0, %v12553_v53, %v5060_v40 }
 0x323   :  { %20115 = vst [vmem:[#allocation310_spill] sm:$0xff] %v12674_v43  ;;  %v4519_v38 = vsel %vm1962_vm0, %v12596_v49, %v20122_v58  ;;  %v12705_v52 = vperm.slane %v4989_v41, %v10152_v4  ;;  %v4549_v17 = vperm.slane %v12379_v23, %v10226_v63  ;;  %v252_v35 = vperm.slane %v129_v51, 0 }
 0x324   :  { %20117 = vst [vmem:[#allocation312_spill] sm:$0xff] %v12681_v8  ;;  %9893 = vset.pattern.permute.xlu1 %v10038_v1  ;;  %v12710_v56 = vsel %vm1962_vm0, %v12689_v26, %v4812_v21  ;;  %v12713_v36 = vsel %vm1962_vm0, %v4801_v19, %v4816_v30  ;;  %v4527_v53 = vperm.slane %v4519_v38, %v10226_v63  ;;  %v12730_v21 = vpop.permute.xlu0 %1287 }
 0x325   :  { %20118 = vst [vmem:[#allocation313_spill] sm:$0xff] %v12684_v12  ;;  %v4562_v13 = vrot.slane %v4549_v17, 4  ;;  %v19511_v27 = vrot.slane %v12705_v52, 4  ;;  %v5082_v30 = vrot.slane %v12730_v21, 4 }
 0x326   :  { %20119 = vst [vmem:[#allocation314_spill] sm:$0xff] %v12689_v26  ;;  %v12718_v61 = vpop.permute.xlu1 %1263  ;;  %v4564_v18 = vrot.slane %v4527_v53, 4  ;;  %v12736_v51 = vpop.permute.xlu2 %1311 }
 0x327   :  { %20120 = vst [vmem:[#allocation315_spill] sm:$0xff] %v12693_v16  ;;  %v5070_v41 = vrot.slane %v12718_v61, 4  ;;  %v12728_v40 = vsel %vm1962_vm0, %v4562_v13, %v4527_v53  ;;  %v5022_v38 = vsel %vm1962_vm0, %v19511_v27, %v12705_v52  ;;  %v20132_v27 = vld [vmem:[#allocation66_spill] sm:$0xff]  ;;  %v5154_v49 = vrot.slane %v12736_v51, 4 }
 0x328   :  { %20121 = vst [vmem:[#allocation316_spill] sm:$0xff] %v12698_v54  ;;  %v12723_v55 = vsel %vm1962_vm0, %v4549_v17, %v4564_v18 }
 0x329   :  { %20123 = vst [vmem:[#allocation317_spill] sm:$0xff] %v12710_v56  ;;  %v5071_v19 = vsel %vm1962_vm0, %v5070_v41, %v12544_v32  ;;  %v12752_v41 = vperm.slane %v5022_v38, %v10226_v63 }
 0x32a   :  { %20124 = vst [vmem:[#allocation318_spill] sm:$0xff] %v12713_v36  ;;  %v12733_v23 = vperm.slane %v5071_v19, %v10152_v4  ;;  %1431 = vperm.xlu2 %9894, %v252_v35  }
 0x32b   :  { %20125 = vst [vmem:[#allocation319_spill] sm:$0xff] %v12723_v55  ;;  %v4832_v55 = vrot.slane %v20132_v27, 4  ;;  %v5064_v38 = vrot.slane %v12752_v41, 4 }
 0x32c   :  { %20126 = vst [vmem:[#allocation320_spill] sm:$0xff] %v12728_v40  ;;  %1413 = vperm.xlu1 %9893, %v251_v50   ;;  %v19512_v58 = vrot.slane %v12733_v23, 4  ;;  %v20130_v50 = vrot.slane %v12485_v59, 4 }
 0x32d   :  { %20127 = vst [vmem:[#allocation321_spill] sm:$0xff] %v12733_v23 }
 0x32e   :  { %20128 = vst [vmem:[#allocation322_spill] sm:$0xff] %v12736_v51  ;;  %v12743_v53 = vpop.permute.xlu1 %1275  ;;  %v5096_v17 = vsel %vm1962_vm0, %v12733_v23, %v19512_v58  ;;  %v5044_v13 = vsel %vm1962_vm0, %v20130_v50, %v12485_v59  ;;  %v131_v58 = vrot.slane %v12571_v44, 5  ;;  %v20138_v51 = vld [vmem:[#allocation16_spill] sm:$0xff] }
 0x32f   :  { %v5083_v18 = vsel %vm1962_vm0, %v5082_v30, %v12743_v53  ;;  %20129 = vst [vmem:[#allocation323_spill] sm:$0xff] %v12752_v41  ;;  %v12766_v30 = vperm.slane %v5044_v13, %v10226_v63  ;;  %v5104_v12 = vperm.slane %v5096_v17, %v10226_v63 }
 0x330   :  { %v12759_v19 = vperm.slane %v5083_v18, %v10152_v4  ;;  %v254_v54 = vperm.slane %v131_v58, 0 }
 0x331   :  { %20133 = vst [vmem:[#allocation66_spill] sm:$0xff] %v12766_v30  ;;  %v12776_v62 = vsel %vm1962_vm0, %v12766_v30, %v5064_v38  ;;  %v5144_v30 = vrot.slane %v5104_v12, 4 }
 0x332   :  { %20131 = vst [vmem:[#allocation324_spill] sm:$0xff] %v12759_v19  ;;  %v19518_v40 = vrot.slane %v12759_v19, 4  ;;  %9896 = vset.pattern.permute.xlu2 %v10038_v1 }
 0x333   :  { %20134 = vst [vmem:[#allocation325_spill] sm:$0xff] %v12776_v62 }
 0x334   :  { %v5118_v59 = vsel %vm1962_vm0, %v12759_v19, %v19518_v40  ;;  %1425 = vperm.xlu1 %9893, %v252_v35   ;;  %v1330_v18 = vpop.permute.xlu2 %1329 }
 0x335   :  { %v5126_v50 = vperm.slane %v5118_v59, %v10226_v63  ;;  %v4833_v13 = vsel %vm1962_vm0, %v1330_v18, %v4832_v55  ;;  %v4830_v23 = vrot.slane %v1330_v18, 4  ;;  %v5155_v59 = vsel %vm1962_vm0, %v5154_v49, %v12678_v24 }
 0x336   :  { %v12781_v41 = vperm.slane %v4833_v13, %v10152_v4  ;;  %v12798_v17 = vperm.slane %v5155_v59, %v10152_v4  ;;  %v20137_v13 = vld [vmem:[#allocation116_spill] sm:$0xff] }
 0x337   :  { %v5142_v40 = vrot.slane %v5126_v50, 4  ;;  %v4831_v58 = vsel %vm1962_vm0, %v4830_v23, %v20132_v27  ;;  %v12813_v19 = vsel %vm1962_vm0, %v5126_v50, %v5144_v30 }
 0x338   :  { %20135 = vst [vmem:[#allocation326_spill] sm:$0xff] %v12781_v41  ;;  %v19521_v35 = vrot.slane %v12781_v41, 4  ;;  %v4837_v49 = vperm.slane %v4831_v58, %v10152_v4 }
 0x339   :  { %v12788_v38 = vsel %vm1962_vm0, %v5142_v40, %v5104_v12  ;;  %v5178_v40 = vrot.slane %v12798_v17, 4  ;;  %20139 = vst [vmem:[#allocation116_spill] sm:$0xff] %v12813_v19 }
 0x33a   :  { %20136 = vst [vmem:[#allocation327_spill] sm:$0xff] %v12788_v38  ;;  %1449 = vperm.xlu2 %9896, %v254_v54   ;;  %v4877_v55 = vsel %vm1962_vm0, %v12781_v41, %v19521_v35  ;;  %v4864_v62 = vrot.slane %v4837_v49, 4 }
 0x33b   :  { %v12806_v35 = vsel %vm1962_vm0, %v12798_v17, %v5178_v40 }
 0x33c   :  { %9895 = vset.pattern.permute.xlu1 %v10052_v9  ;;  %v12809_v38 = vpop.permute.xlu2 %1341  ;;  %v4865_v58 = vsel %vm1962_vm0, %v4864_v62, %v4837_v49 }
 0x33e   :  { %v1294_v18 = vpop.permute.xlu1 %1293 }
 0x33f   :  { %v4820_v24 = vrot.slane %v1294_v18, 4 }
 0x342   :  { %1461 = vperm.xlu2 %9896, %v20137_v13  }
 0x344   :  { %1443 = vperm.xlu1 %9895, %v20138_v51   ;;  %v4885_v51 = vperm.slane %v4877_v55, %v10226_v63 }
 0x346   :  { %v1306_v27 = vpop.permute.xlu1 %1305  ;;  %v4898_v55 = vrot.slane %v4885_v51, 4 }
 0x347   :  { %v4818_v23 = vrot.slane %v1306_v27, 4  ;;  %v4821_v59 = vsel %vm1962_vm0, %v1306_v27, %v4820_v24  ;;  %v12823_v24 = vperm.slane %v4865_v58, %v10226_v63  ;;  %v133_v27 = vrot.slane %v12571_v44, 7 }
 0x348   :  { %v12816_v13 = vperm.slane %v4821_v59, %v10152_v4 }
 0x349   :  { %v4819_v36 = vsel %vm1962_vm0, %v4818_v23, %v1294_v18  ;;  %20141 = vst [vmem:[#allocation328_spill] sm:$0xff] %v12823_v24  ;;  %v4886_v59 = vrot.slane %v12823_v24, 4  ;;  %v256_v58 = vperm.slane %v133_v27, 0 }
 0x34a   :  { %20140 = vst [vmem:[#allocation16_spill] sm:$0xff] %v12816_v13  ;;  %v4825_v12 = vperm.slane %v4819_v36, %v10152_v4  ;;  %v19525_v16 = vrot.slane %v12816_v13, 4  ;;  %9898 = vset.pattern.permute.xlu2 %v10052_v9 }
 0x34c   :  { %v4842_v30 = vrot.slane %v4825_v12, 4  ;;  %1455 = vperm.xlu1 %9895, %v254_v54   ;;  %v4855_v50 = vsel %vm1962_vm0, %v12816_v13, %v19525_v16  ;;  %v4866_v54 = vsel %vm1962_vm0, %v4837_v49, %v4864_v62 }
 0x34d   :  { %v4863_v18 = vperm.slane %v4855_v50, %v10226_v63  ;;  %v12845_v50 = vpop.permute.xlu2 %1359  ;;  %v12848_v43 = vperm.slane %v4866_v54, %v10226_v63 }
 0x34e   :  { %v4843_v36 = vsel %vm1962_vm0, %v4842_v30, %v4825_v12  ;;  %v4844_v23 = vsel %vm1962_vm0, %v4825_v12, %v4842_v30 }
 0x34f   :  { %v12836_v19 = vperm.slane %v4843_v36, %v10226_v63  ;;  %v12839_v44 = vperm.slane %v4844_v23, %v10226_v63  ;;  %v12843_v16 = vsel %vm1962_vm0, %v4898_v55, %v4863_v18  ;;  %v4900_v56 = vrot.slane %v4863_v18, 4  ;;  %20145 = vst [vmem:[#allocation332_spill] sm:$0xff] %v12848_v43  ;;  %v12863_v55 = vld [vmem:[#allocation2 + $0x58] sm:$0xff] }
 0x350   :  { %20144 = vst [vmem:[#allocation331_spill] sm:$0xff] %v12843_v16  ;;  %v257_v18 = vperm.slane %v12863_v55, 0  ;;  %v5053_v36 = vperm.slane %v12514_v20, %v10226_v63  ;;  %v20149_v23 = vrot.slane %v12705_v52, 4 }
 0x351   :  { %20142 = vst [vmem:[#allocation329_spill] sm:$0xff] %v12836_v19  ;;  %v12852_v12 = vsel %vm1962_vm0, %v4886_v59, %v12836_v19  ;;  %v4892_v27 = vrot.slane %v12839_v44, 4  ;;  %v12856_v30 = vsel %vm1962_vm0, %v4885_v51, %v4900_v56 }
 0x352   :  { %20143 = vst [vmem:[#allocation330_spill] sm:$0xff] %v12839_v44  ;;  %1479 = vperm.xlu2 %9898, %v256_v58   ;;  %v5023_v56 = vsel %vm1962_vm0, %v12705_v52, %v20149_v23  ;;  %v5066_v59 = vrot.slane %v5053_v36, 4  ;;  %v5179_v23 = vsel %vm1962_vm0, %v5178_v40, %v12798_v17  ;;  %v5188_v17 = vperm.slane %v12806_v35, %v10226_v63 }
 0x353   :  { %20146 = vst [vmem:[#allocation333_spill] sm:$0xff] %v12852_v12  ;;  %v12861_v62 = vsel %vm1962_vm0, %v12848_v43, %v4892_v27  ;;  %v5031_v51 = vperm.slane %v5023_v56, %v10226_v63  ;;  %v5238_v35 = vrot.slane %v12845_v50, 4 }
 0x354   :  { %20147 = vst [vmem:[#allocation334_spill] sm:$0xff] %v12856_v30  ;;  %9897 = vset.pattern.permute.xlu1 %v10038_v1 }
 0x355   :  { %20148 = vst [vmem:[#allocation335_spill] sm:$0xff] %v12861_v62  ;;  %v12873_v54 = vpop.permute.xlu2 %1371  ;;  %v12876_v27 = vsel %vm1962_vm0, %v5066_v59, %v5031_v51  ;;  %v5068_v12 = vrot.slane %v5031_v51, 4 }
 0x356   :  { %v1324_v49 = vpop.permute.xlu1 %1323  ;;  %20150 = vst [vmem:[#allocation336_spill] sm:$0xff] %v12876_v27 }
 0x357   :  { %v5168_v30 = vrot.slane %v1324_v49, 4  ;;  %v12879_v16 = vsel %vm1962_vm0, %v5053_v36, %v5068_v12  ;;  %v135_v12 = vrot.slane %v12863_v55, 2  ;;  %v12893_v36 = vperm.slane %v5179_v23, %v10226_v63 }
 0x358   :  { %20151 = vst [vmem:[#allocation337_spill] sm:$0xff] %v12879_v16  ;;  %v5228_v16 = vrot.slane %v5188_v17, 4 }
 0x359   :  { %20153 = vst [vmem:[#allocation339_spill] sm:$0xff] %v12893_v36  ;;  %v259_v51 = vperm.slane %v135_v12, 0  ;;  %v5224_v23 = vrot.slane %v12893_v36, 4  ;;  %v12922_v12 = vpop.permute.xlu0 %1347 }
 0x35a   :  { %1491 = vperm.xlu2 %9898, %v257_v18  }
 0x35c   :  { %1473 = vperm.xlu1 %9897, %v256_v58  }
 0x35e   :  { %v1336_v20 = vpop.permute.xlu1 %1335 }
 0x35f   :  { %v5166_v13 = vrot.slane %v1336_v20, 4  ;;  %v5169_v41 = vsel %vm1962_vm0, %v1336_v20, %v5168_v30 }
 0x360   :  { %v12883_v52 = vperm.slane %v5169_v41, %v10152_v4 }
 0x361   :  { %v5167_v56 = vsel %vm1962_vm0, %v5166_v13, %v1324_v49 }
 0x362   :  { %20152 = vst [vmem:[#allocation338_spill] sm:$0xff] %v12883_v52  ;;  %v5173_v59 = vperm.slane %v5167_v56, %v10152_v4  ;;  %v19530_v58 = vrot.slane %v12883_v52, 4  ;;  %9900 = vset.pattern.permute.xlu2 %v10038_v1 }
 0x364   :  { %v5200_v30 = vrot.slane %v5173_v59, 4  ;;  %v12899_v41 = vsel %vm1962_vm0, %v12883_v52, %v19530_v58  ;;  %1485 = vperm.xlu1 %9897, %v257_v18   ;;  %v1390_v40 = vpop.permute.xlu2 %1389 }
 0x365   :  { %20154 = vst [vmem:[#allocation340_spill] sm:$0xff] %v12899_v41 }
 0x366   :  { %v5201_v13 = vsel %vm1962_vm0, %v5200_v30, %v5173_v59  ;;  %v5202_v49 = vsel %vm1962_vm0, %v5173_v59, %v5200_v30  ;;  %v4904_v30 = vrot.slane %v12809_v38, 4 }
 0x367   :  { %v12906_v20 = vperm.slane %v5201_v13, %v10226_v63  ;;  %v5210_v56 = vperm.slane %v5202_v49, %v10226_v63  ;;  %v5239_v49 = vsel %vm1962_vm0, %v5238_v35, %v12922_v12 }
 0x369   :  { %20155 = vst [vmem:[#allocation341_spill] sm:$0xff] %v12906_v20  ;;  %v12912_v18 = vsel %vm1962_vm0, %v12906_v20, %v5224_v23  ;;  %v5226_v58 = vrot.slane %v5210_v56, 4  ;;  %v12916_v27 = vsel %vm1962_vm0, %v5210_v56, %v5228_v16  ;;  %v20162_v20 = vld [vmem:[#allocation126_spill] sm:$0xff] }
 0x36a   :  { %20156 = vst [vmem:[#allocation342_spill] sm:$0xff] %v12912_v18  ;;  %1509 = vperm.xlu2 %9900, %v259_v51   ;;  %v20161_v18 = vld [vmem:[#allocation67_spill] sm:$0xff] }
 0x36b   :  { %20157 = vst [vmem:[#allocation343_spill] sm:$0xff] %v12916_v27  ;;  %v12919_v59 = vsel %vm1962_vm0, %v5226_v58, %v5188_v17  ;;  %v12933_v17 = vperm.slane %v5239_v49, %v10152_v4  ;;  %v4914_v36 = vrot.slane %v20161_v18, 4 }
 0x36c   :  { %20158 = vst [vmem:[#allocation344_spill] sm:$0xff] %v12919_v59  ;;  %9899 = vset.pattern.permute.xlu1 %v10052_v9  ;;  %v1402_v13 = vpop.permute.xlu2 %1401 }
 0x36d   :  { %v5322_v41 = vrot.slane %v1402_v13, 4  ;;  %20160 = vst [vmem:[#allocation346_spill] sm:$0xff] %v12933_v17 }
 0x36e   :  { %v1354_v23 = vpop.permute.xlu1 %1353 }
 0x36f   :  { %v4902_v52 = vrot.slane %v1354_v23, 4  ;;  %v4905_v16 = vsel %vm1962_vm0, %v1354_v23, %v4904_v30  ;;  %v5323_v58 = vsel %vm1962_vm0, %v5322_v41, %v1390_v40  ;;  %v20163_v41 = vld [vmem:[#allocation18_spill] sm:$0xff] }
 0x370   :  { %v12929_v56 = vperm.slane %v4905_v16, %v10152_v4  ;;  %v12942_v30 = vperm.slane %v5323_v58, %v10152_v4  ;;  %v5324_v16 = vrot.slane %v1390_v40, 4  ;;  %v137_v58 = vrot.slane %v12863_v55, 4 }
 0x371   :  { %v4903_v27 = vsel %vm1962_vm0, %v4902_v52, %v12809_v38 }
 0x372   :  { %20159 = vst [vmem:[#allocation345_spill] sm:$0xff] %v12929_v56  ;;  %v4909_v59 = vperm.slane %v4903_v27, %v10152_v4  ;;  %v19537_v35 = vrot.slane %v12929_v56, 4  ;;  %1521 = vperm.xlu2 %9900, %v20162_v20   ;;  %v19538_v27 = vrot.slane %v12933_v17, 4  ;;  %v5325_v40 = vsel %vm1962_vm0, %v1402_v13, %v5324_v16 }
 0x373   :  { %v261_v39 = vperm.slane %v137_v58, 0 }
 0x374   :  { %v4926_v23 = vrot.slane %v4909_v59, 4  ;;  %1503 = vperm.xlu1 %9899, %v20163_v41   ;;  %v4939_v38 = vsel %vm1962_vm0, %v12929_v56, %v19537_v35  ;;  %v12962_v35 = vsel %vm1962_vm0, %v12933_v17, %v19538_v27 }
 0x375   :  { %v4947_v16 = vperm.slane %v4939_v38, %v10226_v63 }
 0x376   :  { %v1366_v52 = vpop.permute.xlu1 %1365  ;;  %v4928_v49 = vsel %vm1962_vm0, %v4909_v59, %v4926_v23 }
 0x377   :  { %v4915_v62 = vsel %vm1962_vm0, %v4914_v36, %v1366_v52  ;;  %v4916_v20 = vrot.slane %v1366_v52, 4  ;;  %v4936_v26 = vperm.slane %v4928_v49, %v10226_v63 }
 0x378   :  { %v4921_v34 = vperm.slane %v4915_v62, %v10152_v4  ;;  %v12969_v62 = vperm.slane %v5325_v40, %v10152_v4 }
 0x379   :  { %v4917_v41 = vsel %vm1962_vm0, %v20161_v18, %v4916_v20  ;;  %v20165_v18 = vrot.slane %v12942_v30, 4  ;;  %v4976_v8 = vrot.slane %v4936_v26, 4 }
 0x37a   :  { %v12965_v36 = vperm.slane %v4917_v41, %v10152_v4  ;;  %v4948_v52 = vrot.slane %v4921_v34, 4  ;;  %9902 = vset.pattern.permute.xlu2 %v10052_v9  ;;  %v4927_v41 = vsel %vm1962_vm0, %v4926_v23, %v4909_v59 }
 0x37b   :  { %v12976_v13 = vsel %vm1962_vm0, %v12942_v30, %v20165_v18  ;;  %v5084_v18 = vrot.slane %v12743_v53, 4  ;;  %v4984_v53 = vrot.slane %v4947_v16, 4 }
 0x37c   :  { %20164 = vst [vmem:[#allocation67_spill] sm:$0xff] %v12965_v36  ;;  %v4950_v49 = vsel %vm1962_vm0, %v4921_v34, %v4948_v52  ;;  %v19543_v20 = vrot.slane %v12965_v36, 4  ;;  %1515 = vperm.xlu1 %9899, %v259_v51   ;;  %v4949_v40 = vsel %vm1962_vm0, %v4948_v52, %v4921_v34  ;;  %v1420_v27 = vpop.permute.xlu2 %1419  ;;  %v12993_v51 = vperm.slane %v4927_v41, %v10226_v63 }
 0x37d   :  { %v12984_v17 = vperm.slane %v4949_v40, %v10226_v63  ;;  %v4958_v56 = vperm.slane %v4950_v49, %v10226_v63  ;;  %v19546_v52 = vrot.slane %v12969_v62, 4  ;;  %v5085_v41 = vsel %vm1962_vm0, %v12730_v21, %v5084_v18 }
 0x37e   :  { %v4961_v38 = vsel %vm1962_vm0, %v12965_v36, %v19543_v20  ;;  %v5672_v20 = vrot.slane %v1420_v27, 4  ;;  %v13025_v21 = vperm.slane %v5085_v41, %v10152_v4  ;;  %v5252_v18 = vrot.slane %v12873_v54, 4 }
 0x37f   :  { %v4970_v34 = vrot.slane %v12984_v17, 4  ;;  %v4974_v59 = vrot.slane %v4958_v56, 4  ;;  %v12997_v23 = vsel %vm1962_vm0, %v4958_v56, %v4976_v8  ;;  %v4969_v49 = vperm.slane %v4961_v38, %v10226_v63 }
 0x380   :  { %20166 = vst [vmem:[#allocation126_spill] sm:$0xff] %v12997_v23  ;;  %v138_v56 = vrot.slane %v12863_v55, 5 }
 0x381   :  { %v13003_v58 = vsel %vm1962_vm0, %v4970_v34, %v12993_v51  ;;  %v13006_v40 = vsel %vm1962_vm0, %v4974_v59, %v4936_v26  ;;  %v4982_v36 = vrot.slane %v4969_v49, 4  ;;  %v13011_v8 = vsel %vm1962_vm0, %v4969_v49, %v4984_v53  ;;  %20171 = vst [vmem:[#allocation350_spill] sm:$0xff] %v13025_v21 }
 0x382   :  { %20167 = vst [vmem:[#allocation18_spill] sm:$0xff] %v13003_v58  ;;  %1539 = vperm.xlu2 %9902, %v261_v39   ;;  %v13022_v26 = vsel %vm1962_vm0, %v12969_v62, %v19546_v52  ;;  %v5072_v59 = vrot.slane %v12544_v32, 4  ;;  %v262_v52 = vperm.slane %v138_v56, 0  ;;  %v19550_v32 = vrot.slane %v13025_v21, 4 }
 0x383   :  { %20168 = vst [vmem:[#allocation347_spill] sm:$0xff] %v13006_v40  ;;  %v13016_v38 = vsel %vm1962_vm0, %v4982_v36, %v4947_v16 }
 0x384   :  { %20169 = vst [vmem:[#allocation348_spill] sm:$0xff] %v13011_v8  ;;  %9901 = vset.pattern.permute.xlu1 %v10038_v1  ;;  %v1432_v34 = vpop.permute.xlu2 %1431  ;;  %v5073_v41 = vsel %vm1962_vm0, %v12718_v61, %v5072_v59 }
 0x385   :  { %20170 = vst [vmem:[#allocation349_spill] sm:$0xff] %v13016_v38  ;;  %v5670_v53 = vrot.slane %v1432_v34, 4  ;;  %v5673_v58 = vsel %vm1962_vm0, %v1432_v34, %v5672_v20 }
 0x386   :  { %v1384_v49 = vpop.permute.xlu1 %1383  ;;  %v13032_v8 = vperm.slane %v5673_v58, %v10152_v4 }
 0x387   :  { %v5250_v36 = vrot.slane %v1384_v49, 4  ;;  %v5253_v16 = vsel %vm1962_vm0, %v1384_v49, %v5252_v18  ;;  %v5671_v23 = vsel %vm1962_vm0, %v5670_v53, %v1420_v27  ;;  %v13047_v18 = vpop.permute.xlu0 %1407  ;;  %v13055_v27 = vperm.slane %v5073_v41, %v10152_v4 }
 0x388   :  { %20172 = vst [vmem:[#allocation351_spill] sm:$0xff] %v13032_v8  ;;  %v13037_v38 = vperm.slane %v5253_v16, %v10152_v4  ;;  %v13044_v34 = vperm.slane %v5671_v23, %v10152_v4  ;;  %v19547_v58 = vrot.slane %v13032_v8, 4  ;;  %v5658_v59 = vrot.slane %v13047_v18, 4 }
 0x389   :  { %v5251_v20 = vsel %vm1962_vm0, %v5250_v36, %v12873_v54  ;;  %20175 = vst [vmem:[#allocation354_spill] sm:$0xff] %v13055_v27  ;;  %v5129_v16 = vsel %vm1962_vm0, %v13025_v21, %v19550_v32 }
 0x38a   :  { %20173 = vst [vmem:[#allocation352_spill] sm:$0xff] %v13044_v34  ;;  %v13050_v56 = vperm.slane %v5251_v20, %v10152_v4  ;;  %v19548_v61 = vrot.slane %v13037_v38, 4  ;;  %v19549_v49 = vrot.slane %v13044_v34, 4  ;;  %v13062_v54 = vsel %vm1962_vm0, %v13032_v8, %v19547_v58  ;;  %1551 = vperm.xlu2 %9902, %v262_v52  }
 0x38b   :  { %v19560_v58 = vrot.slane %v13055_v27, 4  ;;  %v13094_v32 = vperm.slane %v5129_v16, %v10226_v63 }
 0x38c   :  { %20174 = vst [vmem:[#allocation353_spill] sm:$0xff] %v13050_v56  ;;  %v19553_v23 = vrot.slane %v13050_v56, 4  ;;  %v13069_v53 = vsel %vm1962_vm0, %v13037_v38, %v19548_v61  ;;  %1533 = vperm.xlu1 %9901, %v261_v39   ;;  %v5706_v36 = vsel %vm1962_vm0, %v13044_v34, %v19549_v49 }
 0x38d   :  { %20176 = vst [vmem:[#allocation355_spill] sm:$0xff] %v13069_v53  ;;  %v5714_v53 = vperm.slane %v5706_v36, %v10226_v63 }
 0x38e   :  { %v13079_v41 = vpop.permute.xlu1 %1395  ;;  %v5286_v20 = vsel %vm1962_vm0, %v13050_v56, %v19553_v23  ;;  %v5272_v23 = vperm.slane %v12962_v35, %v10226_v63  ;;  %v5150_v35 = vrot.slane %v13094_v32, 4 }
 0x38f   :  { %v5659_v39 = vsel %vm1962_vm0, %v5658_v59, %v13079_v41  ;;  %v5294_v61 = vperm.slane %v5286_v20, %v10226_v63  ;;  %v140_v59 = vrot.slane %v12863_v55, 7  ;;  %v5107_v20 = vsel %vm1962_vm0, %v13055_v27, %v19560_v58  ;;  %v1468_v43 = vpop.permute.xlu0 %1467 }
 0x390   :  { %v13090_v49 = vperm.slane %v5659_v39, %v10152_v4  ;;  %v5730_v16 = vrot.slane %v5714_v53, 4  ;;  %v13115_v55 = vperm.slane %v5107_v20, %v10226_v63  ;;  %v5240_v27 = vrot.slane %v12922_v12, 4  ;;  %v20186_v12 = vld [vmem:[#allocation70_spill] sm:$0xff] }
 0x391   :  { %v5310_v21 = vrot.slane %v5294_v61, 4  ;;  %v264_v56 = vperm.slane %v140_v59, 0 }
 0x392   :  { %20177 = vst [vmem:[#allocation356_spill] sm:$0xff] %v13090_v49  ;;  %v19561_v8 = vrot.slane %v13090_v49, 4  ;;  %9904 = vset.pattern.permute.xlu2 %v10038_v1  ;;  %v5241_v59 = vsel %vm1962_vm0, %v12845_v50, %v5240_v27 }
 0x393   :  { %v13110_v39 = vsel %vm1962_vm0, %v5310_v21, %v5272_v23  ;;  %v13148_v27 = vperm.slane %v5241_v59, %v10152_v4 }
 0x394   :  { %1545 = vperm.xlu1 %9901, %v262_v52   ;;  %v5684_v36 = vsel %vm1962_vm0, %v13090_v49, %v19561_v8  ;;  %20178 = vst [vmem:[#allocation357_spill] sm:$0xff] %v13110_v39  ;;  %v13122_v52 = vsel %vm1962_vm0, %v5150_v35, %v13115_v55  ;;  %v13124_v8 = vpop.permute.xlu2 %1449  ;;  %v20185_v49 = vld [vmem:[#allocation20_spill] sm:$0xff] }
 0x395   :  { %v5692_v34 = vperm.slane %v5684_v36, %v10226_v63  ;;  %20180 = vst [vmem:[#allocation359_spill] sm:$0xff] %v13122_v52  ;;  %v5312_v36 = vrot.slane %v5272_v23, 4  ;;  %v20184_v52 = vrot.slane %v12942_v30, 4  ;;  %v5408_v23 = vrot.slane %v20186_v12, 4 }
 0x397   :  { %v13118_v58 = vsel %vm1962_vm0, %v5730_v16, %v5692_v34  ;;  %v13129_v20 = vsel %vm1962_vm0, %v5294_v61, %v5312_v36  ;;  %v20182_v16 = vld [vmem:[#allocation130_spill] sm:$0xff]  ;;  %v20187_v61 = vrot.slane %v12969_v62, 4  ;;  %v5409_v59 = vsel %vm1962_vm0, %v13124_v8, %v5408_v23 }
 0x398   :  { %20179 = vst [vmem:[#allocation358_spill] sm:$0xff] %v13118_v58  ;;  %v20183_v39 = vperm.slane %v20182_v16, 0  ;;  %v5347_v58 = vsel %vm1962_vm0, %v20184_v52, %v12942_v30  ;;  %v5356_v30 = vperm.slane %v12976_v13, %v10226_v63 }
 0x399   :  { %20181 = vst [vmem:[#allocation360_spill] sm:$0xff] %v13129_v20  ;;  %v5358_v50 = vsel %vm1962_vm0, %v20187_v61, %v12969_v62  ;;  %v5352_v36 = vperm.slane %v5347_v58, %v10226_v63  ;;  %v5367_v58 = vperm.slane %v13022_v26, %v10226_v63  ;;  %v5756_v61 = vrot.slane %v1468_v43, 4 }
 0x39a   :  { %1569 = vperm.xlu2 %9904, %v264_v56   ;;  %20188 = vst [vmem:[#allocation130_spill] sm:$0xff] %v13148_v27  ;;  %v13156_v44 = vperm.slane %v5358_v50, %v10226_v63  ;;  %v5396_v23 = vrot.slane %v5356_v30, 4 }
 0x39b   :  { %v5392_v50 = vrot.slane %v5352_v36, 4  ;;  %v5404_v14 = vrot.slane %v5367_v58, 4 }
 0x39c   :  { %9903 = vset.pattern.permute.xlu1 %v10052_v9  ;;  %v13135_v35 = vpop.permute.xlu2 %1461  ;;  %20189 = vst [vmem:[#allocation20_spill] sm:$0xff] %v13156_v44 }
 0x39e   :  { %v1414_v21 = vpop.permute.xlu1 %1413 }
 0x39f   :  { %v5336_v40 = vrot.slane %v1414_v21, 4 }
 0x3a2   :  { %1581 = vperm.xlu2 %9904, %v20183_v39  }
 0x3a4   :  { %1563 = vperm.xlu1 %9903, %v20185_v49   ;;  %v5732_v49 = vrot.slane %v5692_v34, 4 }
 0x3a6   :  { %v1426_v39 = vpop.permute.xlu1 %1425 }
 0x3a7   :  { %v5334_v16 = vrot.slane %v1426_v39, 4  ;;  %v5337_v20 = vsel %vm1962_vm0, %v1426_v39, %v5336_v40  ;;  %v13164_v40 = vsel %vm1962_vm0, %v5714_v53, %v5732_v49  ;;  %v13169_v39 = vld [vmem:[#allocation2 + $0x60] sm:$0xff]  ;;  %v13175_v53 = vperm.slane %v5409_v59, %v10152_v4 }
 0x3a8   :  { %v5345_v52 = vperm.slane %v5337_v20, %v10152_v4  ;;  %20190 = vst [vmem:[#allocation70_spill] sm:$0xff] %v13164_v40  ;;  %v5400_v40 = vrot.slane %v13156_v44, 4 }
 0x3a9   :  { %v5335_v62 = vsel %vm1962_vm0, %v5334_v16, %v1414_v21  ;;  %v141_v21 = vrot.slane %v13169_v39, 1  ;;  %20191 = vst [vmem:[#allocation361_spill] sm:$0xff] %v13175_v53  ;;  %v19577_v44 = vrot.slane %v13175_v53, 4 }
 0x3aa   :  { %v5341_v13 = vperm.slane %v5335_v62, %v10152_v4  ;;  %v5379_v34 = vrot.slane %v5345_v52, 4  ;;  %9906 = vset.pattern.permute.xlu2 %v10052_v9 }
 0x3ac   :  { %v5380_v16 = vsel %vm1962_vm0, %v5379_v34, %v5345_v52  ;;  %v5381_v26 = vsel %vm1962_vm0, %v5345_v52, %v5379_v34  ;;  %1575 = vperm.xlu1 %9903, %v264_v56   ;;  %v5368_v49 = vrot.slane %v5341_v13, 4  ;;  %v1480_v62 = vpop.permute.xlu2 %1479  ;;  %v266_v56 = vperm.slane %v141_v21, 0 }
 0x3ad   :  { %v13178_v20 = vperm.slane %v5380_v16, %v10226_v63  ;;  %v5389_v33 = vperm.slane %v5381_v26, %v10226_v63  ;;  %v5754_v22 = vrot.slane %v1480_v62, 4  ;;  %v5757_v2 = vsel %vm1962_vm0, %v1480_v62, %v5756_v61 }
 0x3ae   :  { %v5369_v37 = vsel %vm1962_vm0, %v5368_v49, %v5341_v13  ;;  %v5370_v52 = vsel %vm1962_vm0, %v5341_v13, %v5368_v49  ;;  %v13187_v34 = vperm.slane %v5757_v2, %v10152_v4  ;;  %v142_v62 = vrot.slane %v13169_v39, 2 }
 0x3af   :  { %20192 = vst [vmem:[#allocation362_spill] sm:$0xff] %v13178_v20  ;;  %v5374_v59 = vperm.slane %v5369_v37, %v10226_v63  ;;  %v5378_v16 = vperm.slane %v5370_v52, %v10226_v63  ;;  %v5755_v26 = vsel %vm1962_vm0, %v5754_v22, %v1468_v43  ;;  %v13194_v24 = vsel %vm1962_vm0, %v13178_v20, %v5400_v40 }
 0x3b0   :  { %20193 = vst [vmem:[#allocation363_spill] sm:$0xff] %v13187_v34  ;;  %v5402_v19 = vrot.slane %v5389_v33, 4  ;;  %v5761_v13 = vperm.slane %v5755_v26, %v10152_v4  ;;  %v19576_v37 = vrot.slane %v13187_v34, 4  ;;  %v20197_v43 = vrot.slane %v13148_v27, 4 }
 0x3b1   :  { %20194 = vst [vmem:[#allocation364_spill] sm:$0xff] %v13194_v24  ;;  %v5393_v61 = vsel %vm1962_vm0, %v5374_v59, %v5392_v50  ;;  %v5390_v21 = vrot.slane %v5374_v59, 4  ;;  %v5394_v2 = vrot.slane %v5378_v16, 4  ;;  %v13201_v49 = vsel %vm1962_vm0, %v5378_v16, %v5396_v23 }
 0x3b2   :  { %7410 = vrot.lane.b32.xlu0 %v5393_v61, %s10007_s0  ;;  %20195 = vst [vmem:[#allocation365_spill] sm:$0xff] %v13201_v49  ;;  %v13204_v22 = vsel %vm1962_vm0, %v5402_v19, %v5367_v58  ;;  %v5274_v40 = vsel %vm1962_vm0, %v20197_v43, %v13148_v27  ;;  %1599 = vperm.xlu2 %9906, %v266_v56   ;;  %v20200_v19 = vrot.slane %v13037_v38, 4 }
 0x3b3   :  { %20196 = vst [vmem:[#allocation366_spill] sm:$0xff] %v13204_v22  ;;  %v13214_v50 = vsel %vm1962_vm0, %v13187_v34, %v19576_v37  ;;  %v13218_v23 = vsel %vm1962_vm0, %v5390_v21, %v5352_v36  ;;  %v13226_v52 = vsel %vm1962_vm0, %v5394_v2, %v5356_v30  ;;  %v13229_v59 = vsel %vm1962_vm0, %v5389_v33, %v5404_v14 }
 0x3b4   :  { %20198 = vst [vmem:[#allocation367_spill] sm:$0xff] %v13214_v50  ;;  %v5296_v58 = vsel %vm1962_vm0, %v20200_v19, %v13037_v38  ;;  %9905 = vset.pattern.permute.xlu1 %v10038_v1  ;;  %v13235_v16 = vsel %vm1962_vm0, %v13175_v53, %v19577_v44  ;;  %v5788_v36 = vrot.slane %v5761_v13, 4  ;;  %v13238_v26 = vperm.slane %v5274_v40, %v10226_v63  ;;  %v13247_v33 = vpop.permute.xlu2 %1491 }
 0x3b5   :  { %20199 = vst [vmem:[#allocation368_spill] sm:$0xff] %v13218_v23  ;;  %v267_v38 = vperm.slane %v142_v62, 0  ;;  %v13243_v21 = vperm.slane %v5296_v58, %v10226_v63  ;;  %v5406_v62 = vrot.slane %v13124_v8, 4  ;;  %v144_v44 = vrot.slane %v13169_v39, 4 }
 0x3b6   :  { %20201 = vst [vmem:[#allocation369_spill] sm:$0xff] %v13226_v52  ;;  %v13240_v61 = vpop.permute.xlu1 %1443  ;;  %v5790_v30 = vsel %vm1962_vm0, %v5761_v13, %v5788_v36  ;;  %v5316_v14 = vrot.slane %v13238_v26, 4  ;;  %v5789_v50 = vsel %vm1962_vm0, %v5788_v36, %v5761_v13 }
 0x3b7   :  { %20202 = vst [vmem:[#allocation370_spill] sm:$0xff] %v13229_v59  ;;  %v5798_v58 = vperm.slane %v5790_v30, %v10226_v63  ;;  %v5152_v30 = vrot.slane %v13115_v55, 4  ;;  %v13281_v34 = vperm.slane %v5789_v50, %v10226_v63 }
 0x3b8   :  { %20203 = vst [vmem:[#allocation371_spill] sm:$0xff] %v13238_v26  ;;  %v13251_v2 = vsel %vm1962_vm0, %v13243_v21, %v5316_v14 }
 0x3b9   :  { %20204 = vst [vmem:[#allocation372_spill] sm:$0xff] %v13243_v21 }
 0x3ba   :  { %1611 = vperm.xlu2 %9906, %v267_v38   ;;  %20205 = vst [vmem:[#allocation373_spill] sm:$0xff] %v13251_v2  ;;  %v5814_v2 = vrot.slane %v5798_v58, 4 }
 0x3bb   :  { %20208 = vst [vmem:[#allocation376_spill] sm:$0xff] %v13281_v34 }
 0x3bc   :  { %1593 = vperm.xlu1 %9905, %v266_v56   ;;  %v5407_v56 = vsel %vm1962_vm0, %v5406_v62, %v20186_v12  ;;  %v13277_v12 = vsel %vm1962_vm0, %v13094_v32, %v5152_v30 }
 0x3bd   :  { %20207 = vst [vmem:[#allocation375_spill] sm:$0xff] %v13277_v12  ;;  %v5413_v62 = vperm.slane %v5407_v56, %v10152_v4 }
 0x3be   :  { %v13253_v43 = vpop.permute.xlu1 %1455 }
 0x3bf   :  { %v5742_v40 = vrot.slane %v13253_v43, 4  ;;  %v5430_v50 = vrot.slane %v5413_v62, 4 }
 0x3c1   :  { %v5743_v19 = vsel %vm1962_vm0, %v5742_v40, %v13240_v61 }
 0x3c2   :  { %v5749_v37 = vperm.slane %v5743_v19, %v10152_v4  ;;  %9908 = vset.pattern.permute.xlu2 %v10038_v1  ;;  %v13269_v19 = vperm.slane %v144_v44, 0 }
 0x3c4   :  { %1605 = vperm.xlu1 %9905, %v267_v38   ;;  %v5766_v14 = vrot.slane %v5749_v37, 4  ;;  %v1510_v27 = vpop.permute.xlu2 %1509 }
 0x3c5   :  { %v5504_v44 = vrot.slane %v1510_v27, 4 }
 0x3c6   :  { %v5767_v8 = vsel %vm1962_vm0, %v5766_v14, %v5749_v37  ;;  %v5768_v40 = vsel %vm1962_vm0, %v5749_v37, %v5766_v14  ;;  %v5420_v14 = vrot.slane %v13135_v35, 4 }
 0x3c7   :  { %v13272_v23 = vperm.slane %v5767_v8, %v10226_v63  ;;  %v5776_v38 = vperm.slane %v5768_v40, %v10226_v63 }
 0x3c9   :  { %20206 = vst [vmem:[#allocation374_spill] sm:$0xff] %v13272_v23  ;;  %v5812_v13 = vrot.slane %v13272_v23, 4  ;;  %v13285_v55 = vsel %vm1962_vm0, %v5814_v2, %v5776_v38  ;;  %v5816_v37 = vrot.slane %v5776_v38, 4 }
 0x3ca   :  { %20209 = vst [vmem:[#allocation377_spill] sm:$0xff] %v13285_v55  ;;  %1629 = vperm.xlu2 %9908, %v13269_v19  }
 0x3cb   :  { %v13290_v36 = vsel %vm1962_vm0, %v13281_v34, %v5812_v13  ;;  %v13294_v32 = vsel %vm1962_vm0, %v5798_v58, %v5816_v37 }
 0x3cc   :  { %20210 = vst [vmem:[#allocation378_spill] sm:$0xff] %v13290_v36  ;;  %9907 = vset.pattern.permute.xlu1 %v10052_v9  ;;  %v1522_v56 = vpop.permute.xlu2 %1521 }
 0x3cd   :  { %20211 = vst [vmem:[#allocation379_spill] sm:$0xff] %v13294_v32  ;;  %v5502_v2 = vrot.slane %v1522_v56, 4  ;;  %v5505_v40 = vsel %vm1962_vm0, %v1522_v56, %v5504_v44  ;;  %v5432_v44 = vsel %vm1962_vm0, %v5413_v62, %v5430_v50 }
 0x3ce   :  { %v1474_v8 = vpop.permute.xlu1 %1473  ;;  %v13300_v12 = vperm.slane %v5505_v40, %v10152_v4  ;;  %v20214_v40 = vld [vmem:[#allocation136_spill] sm:$0xff] }
 0x3cf   :  { %v5418_v30 = vrot.slane %v1474_v8, 4  ;;  %v5421_v38 = vsel %vm1962_vm0, %v1474_v8, %v5420_v14  ;;  %v5503_v58 = vsel %vm1962_vm0, %v5502_v2, %v1510_v27  ;;  %v20215_v2 = vld [vmem:[#allocation25_spill] sm:$0xff] }
 0x3d0   :  { %20212 = vst [vmem:[#allocation380_spill] sm:$0xff] %v13300_v12  ;;  %v13303_v13 = vperm.slane %v5421_v38, %v10152_v4  ;;  %v5509_v26 = vperm.slane %v5503_v58, %v10152_v4  ;;  %v19584_v21 = vrot.slane %v13300_v12, 4  ;;  %v13324_v38 = vperm.slane %v5432_v44, %v10226_v63  ;;  %v20217_v58 = vld [vmem:[#allocation78_spill] sm:$0xff] }
 0x3d1   :  { %v5419_v37 = vsel %vm1962_vm0, %v5418_v30, %v13135_v35 }
 0x3d2   :  { %20213 = vst [vmem:[#allocation381_spill] sm:$0xff] %v13303_v13  ;;  %v5425_v56 = vperm.slane %v5419_v37, %v10152_v4  ;;  %v19585_v14 = vrot.slane %v13303_v13, 4  ;;  %v5549_v8 = vsel %vm1962_vm0, %v13300_v12, %v19584_v21  ;;  %1641 = vperm.xlu2 %9908, %v20214_v40   ;;  %v5536_v27 = vrot.slane %v5509_v26, 4 }
 0x3d3   :  { %20216 = vst [vmem:[#allocation136_spill] sm:$0xff] %v13324_v38  ;;  %v5490_v37 = vrot.slane %v20217_v58, 4  ;;  %v5431_v21 = vsel %vm1962_vm0, %v5430_v50, %v5413_v62  ;;  %v5480_v50 = vrot.slane %v13324_v38, 4 }
 0x3d4   :  { %v5465_v35 = vsel %vm1962_vm0, %v13303_v13, %v19585_v14  ;;  %1623 = vperm.xlu1 %9907, %v20215_v2   ;;  %v5452_v30 = vrot.slane %v5425_v56, 4  ;;  %v5537_v32 = vsel %vm1962_vm0, %v5536_v27, %v5509_v26  ;;  %v5538_v40 = vsel %vm1962_vm0, %v5509_v26, %v5536_v27 }
 0x3d5   :  { %v13331_v36 = vperm.slane %v5537_v32, %v10226_v63  ;;  %v5546_v23 = vperm.slane %v5538_v40, %v10226_v63  ;;  %v5660_v26 = vrot.slane %v13079_v41, 4  ;;  %v13349_v27 = vperm.slane %v5431_v21, %v10226_v63 }
 0x3d6   :  { %v1486_v55 = vpop.permute.xlu1 %1485  ;;  %v5453_v14 = vsel %vm1962_vm0, %v5452_v30, %v5425_v56  ;;  %v5454_v2 = vsel %vm1962_vm0, %v5425_v56, %v5452_v30 }
 0x3d7   :  { %20218 = vst [vmem:[#allocation25_spill] sm:$0xff] %v13331_v36  ;;  %v5491_v44 = vsel %vm1962_vm0, %v5490_v37, %v1486_v55  ;;  %v5492_v34 = vrot.slane %v1486_v55, 4  ;;  %v13338_v59 = vperm.slane %v5453_v14, %v10226_v63  ;;  %v13341_v62 = vperm.slane %v5454_v2, %v10226_v63 }
 0x3d8   :  { %v5497_v32 = vperm.slane %v5491_v44, %v10152_v4  ;;  %20221 = vst [vmem:[#allocation383_spill] sm:$0xff] %v13349_v27  ;;  %v5557_v55 = vperm.slane %v5549_v8, %v10226_v63  ;;  %v5451_v14 = vperm.slane %v13235_v16, %v10226_v63  ;;  %v5558_v21 = vrot.slane %v13331_v36, 4 }
 0x3d9   :  { %20219 = vst [vmem:[#allocation78_spill] sm:$0xff] %v13338_v59  ;;  %v5493_v56 = vsel %vm1962_vm0, %v20217_v58, %v5492_v34  ;;  %v5474_v41 = vrot.slane %v13338_v59, 4  ;;  %v13360_v40 = vsel %vm1962_vm0, %v13341_v62, %v5480_v50  ;;  %v146_v34 = vrot.slane %v13169_v39, 6 }
 0x3da   :  { %20220 = vst [vmem:[#allocation382_spill] sm:$0xff] %v13341_v62  ;;  %v13355_v30 = vperm.slane %v5493_v56, %v10152_v4  ;;  %v5514_v37 = vrot.slane %v5497_v32, 4  ;;  %9910 = vset.pattern.permute.xlu2 %v10052_v9  ;;  %v5562_v8 = vrot.slane %v5546_v23, 4  ;;  %v5661_v50 = vsel %vm1962_vm0, %v13047_v18, %v5660_v26 }
 0x3db   :  { %20223 = vst [vmem:[#allocation385_spill] sm:$0xff] %v13360_v40  ;;  %v13370_v2 = vsel %vm1962_vm0, %v5474_v41, %v13349_v27  ;;  %v5488_v41 = vrot.slane %v5451_v14, 4 }
 0x3dc   :  { %20222 = vst [vmem:[#allocation384_spill] sm:$0xff] %v13355_v30  ;;  %v5515_v58 = vsel %vm1962_vm0, %v5514_v37, %v5497_v32  ;;  %1635 = vperm.xlu1 %9907, %v13269_v19   ;;  %v5516_v16 = vsel %vm1962_vm0, %v5497_v32, %v5514_v37  ;;  %v19590_v44 = vrot.slane %v13355_v30, 4  ;;  %v5570_v32 = vrot.slane %v5557_v55, 4 }
 0x3dd   :  { %20224 = vst [vmem:[#allocation386_spill] sm:$0xff] %v13370_v2  ;;  %v13376_v56 = vperm.slane %v5515_v58, %v10226_v63  ;;  %v5524_v22 = vperm.slane %v5516_v16, %v10226_v63  ;;  %v5473_v37 = vperm.slane %v5465_v35, %v10226_v63  ;;  %v271_v2 = vperm.slane %v146_v34, 0 }
 0x3de   :  { %v5527_v19 = vsel %vm1962_vm0, %v13355_v30, %v19590_v44  ;;  %v13395_v44 = vpop.permute.xlu2 %1539  ;;  %v13401_v34 = vperm.slane %v5661_v50, %v10152_v4 }
 0x3df   :  { %v13386_v24 = vsel %vm1962_vm0, %v5558_v21, %v13376_v56  ;;  %v13389_v18 = vsel %vm1962_vm0, %v5562_v8, %v5524_v22  ;;  %v5564_v26 = vrot.slane %v5524_v22, 4  ;;  %v5535_v58 = vperm.slane %v5527_v19, %v10226_v63 }
 0x3e0   :  { %20225 = vst [vmem:[#allocation387_spill] sm:$0xff] %v13386_v24  ;;  %v5486_v16 = vrot.slane %v5473_v37, 4  ;;  %v13393_v12 = vsel %vm1962_vm0, %v5473_v37, %v5488_v41  ;;  %v147_v22 = vrot.slane %v13169_v39, 7  ;;  %v5744_v37 = vrot.slane %v13240_v61, 4  ;;  %v13427_v61 = vpop.permute.xlu0 %1527 }
 0x3e1   :  { %20226 = vst [vmem:[#allocation388_spill] sm:$0xff] %v13389_v18  ;;  %v13398_v35 = vsel %vm1962_vm0, %v5546_v23, %v5564_v26  ;;  %v13404_v21 = vsel %vm1962_vm0, %v5570_v32, %v5535_v58  ;;  %v5572_v19 = vrot.slane %v5535_v58, 4  ;;  %v19591_v50 = vrot.slane %v13401_v34, 4 }
 0x3e2   :  { %20227 = vst [vmem:[#allocation389_spill] sm:$0xff] %v13393_v12  ;;  %v13407_v8 = vsel %vm1962_vm0, %v5486_v16, %v5451_v14  ;;  %1659 = vperm.xlu2 %9910, %v271_v2   ;;  %v5745_v32 = vsel %vm1962_vm0, %v13253_v43, %v5744_v37  ;;  %v272_v26 = vperm.slane %v147_v22, 0  ;;  %v13425_v58 = vperm.slane %v13062_v54, %v10226_v63 }
 0x3e3   :  { %20228 = vst [vmem:[#allocation390_spill] sm:$0xff] %v13398_v35  ;;  %v13413_v23 = vsel %vm1962_vm0, %v5557_v55, %v5572_v19  ;;  %v13430_v55 = vperm.slane %v5745_v32, %v10152_v4  ;;  %v5695_v43 = vsel %vm1962_vm0, %v13401_v34, %v19591_v50  ;;  %v5838_v22 = vrot.slane %v13427_v61, 4 }
 0x3e4   :  { %20229 = vst [vmem:[#allocation391_spill] sm:$0xff] %v13401_v34  ;;  %9909 = vset.pattern.permute.xlu1 %v10038_v1  ;;  %v13443_v54 = vperm.slane %v5695_v43, %v10226_v63  ;;  %v5738_v37 = vrot.slane %v13425_v58, 4 }
 0x3e5   :  { %20230 = vst [vmem:[#allocation392_spill] sm:$0xff] %v13404_v21 }
 0x3e6   :  { %20231 = vst [vmem:[#allocation393_spill] sm:$0xff] %v13407_v8  ;;  %v13415_v41 = vpop.permute.xlu1 %1503  ;;  %v13440_v19 = vpop.permute.xlu2 %1551 }
 0x3e7   :  { %20232 = vst [vmem:[#allocation394_spill] sm:$0xff] %v13413_v23  ;;  %v5826_v14 = vrot.slane %v13415_v41, 4  ;;  %v13472_v23 = vld [vmem:[#allocation2 + $0x68] sm:$0xff] }
 0x3e8   :  { %20233 = vst [vmem:[#allocation395_spill] sm:$0xff] %v13430_v55 }
 0x3e9   :  { %v5827_v39 = vsel %vm1962_vm0, %v5826_v14, %v13247_v33  ;;  %v13449_v14 = vsel %vm1962_vm0, %v5738_v37, %v13443_v54 }
 0x3ea   :  { %v13433_v16 = vperm.slane %v5827_v39, %v10152_v4  ;;  %1671 = vperm.xlu2 %9910, %v272_v26   ;;  %20235 = vst [vmem:[#allocation397_spill] sm:$0xff] %v13449_v14  ;;  %v19597_v39 = vrot.slane %v13430_v55, 4  ;;  %v5910_v14 = vrot.slane %v13440_v19, 4 }
 0x3ec   :  { %20234 = vst [vmem:[#allocation396_spill] sm:$0xff] %v13433_v16  ;;  %1653 = vperm.xlu1 %9909, %v271_v2   ;;  %v19594_v32 = vrot.slane %v13433_v16, 4  ;;  %v13468_v37 = vsel %vm1962_vm0, %v13430_v55, %v19597_v39  ;;  %v5911_v8 = vsel %vm1962_vm0, %v5910_v14, %v13395_v44 }
 0x3ed   :  { %20237 = vst [vmem:[#allocation399_spill] sm:$0xff] %v13468_v37 }
 0x3ee   :  { %v13452_v50 = vpop.permute.xlu1 %1515  ;;  %v5852_v24 = vsel %vm1962_vm0, %v13433_v16, %v19594_v32  ;;  %v148_v32 = vrot.slane %v13472_v23, 1 }
 0x3ef   :  { %v5839_v43 = vsel %vm1962_vm0, %v5838_v22, %v13452_v50  ;;  %v20238_v22 = vld [vmem:[#allocation79_spill] sm:$0xff]  ;;  %v5860_v13 = vperm.slane %v5852_v24, %v10226_v63 }
 0x3f0   :  { %v13461_v2 = vperm.slane %v5839_v43, %v10152_v4  ;;  %v5588_v16 = vrot.slane %v20238_v22, 4  ;;  %v274_v30 = vperm.slane %v148_v32, 0 }
 0x3f2   :  { %20236 = vst [vmem:[#allocation398_spill] sm:$0xff] %v13461_v2  ;;  %v19606_v34 = vrot.slane %v13461_v2, 4  ;;  %9912 = vset.pattern.permute.xlu2 %v10038_v1 }
 0x3f4   :  { %v5874_v43 = vsel %vm1962_vm0, %v13461_v2, %v19606_v34  ;;  %1665 = vperm.xlu1 %9909, %v272_v26   ;;  %v1570_v12 = vpop.permute.xlu2 %1569 }
 0x3f5   :  { %v5882_v39 = vperm.slane %v5874_v43, %v10226_v63  ;;  %v5586_v37 = vrot.slane %v1570_v12, 4  ;;  %v5589_v55 = vsel %vm1962_vm0, %v1570_v12, %v5588_v16  ;;  %v13490_v43 = vperm.slane %v5911_v8, %v10152_v4 }
 0x3f6   :  { %v5597_v21 = vperm.slane %v5589_v55, %v10152_v4 }
 0x3f7   :  { %v5587_v53 = vsel %vm1962_vm0, %v5586_v37, %v20238_v22  ;;  %v5898_v40 = vrot.slane %v5882_v39, 4  ;;  %20239 = vst [vmem:[#allocation79_spill] sm:$0xff] %v13490_v43  ;;  %v19610_v24 = vrot.slane %v13490_v43, 4  ;;  %v5900_v22 = vrot.slane %v5860_v13, 4 }
 0x3f8   :  { %v5593_v26 = vperm.slane %v5587_v53, %v10152_v4  ;;  %v5631_v34 = vrot.slane %v5597_v21, 4 }
 0x3f9   :  { %v13493_v12 = vsel %vm1962_vm0, %v5898_v40, %v5860_v13  ;;  %v13503_v53 = vsel %vm1962_vm0, %v13490_v43, %v19610_v24  ;;  %v20241_v40 = vld [vmem:[#allocation30_spill] sm:$0xff]  ;;  %v13512_v35 = vsel %vm1962_vm0, %v5882_v39, %v5900_v22  ;;  %v150_v13 = vrot.slane %v13472_v23, 3 }
 0x3fa   :  { %20240 = vst [vmem:[#allocation400_spill] sm:$0xff] %v13493_v12  ;;  %v5633_v16 = vsel %vm1962_vm0, %v5597_v21, %v5631_v34  ;;  %1689 = vperm.xlu2 %9912, %v274_v30   ;;  %v5620_v55 = vrot.slane %v5593_v26, 4  ;;  %v20242_v8 = vperm.slane %v20241_v40, 0 }
 0x3fb   :  { %20243 = vst [vmem:[#allocation30_spill] sm:$0xff] %v13512_v35  ;;  %v5641_v43 = vperm.slane %v5633_v16, %v10226_v63  ;;  %v276_v16 = vperm.slane %v150_v13, 0 }
 0x3fc   :  { %9911 = vset.pattern.permute.xlu1 %v10052_v9  ;;  %v5622_v32 = vsel %vm1962_vm0, %v5593_v26, %v5620_v55  ;;  %v13509_v49 = vpop.permute.xlu2 %1581  ;;  %v5621_v24 = vsel %vm1962_vm0, %v5620_v55, %v5593_v26 }
 0x3fd   :  { %v5626_v39 = vperm.slane %v5621_v24, %v10226_v63  ;;  %v5654_v22 = vrot.slane %v5641_v43, 4 }
 0x3fe   :  { %v1534_v14 = vpop.permute.xlu1 %1533 }
 0x3ff   :  { %v5576_v37 = vrot.slane %v1534_v14, 4 }
 0x402   :  { %1701 = vperm.xlu2 %9912, %v11116_v57  }
 0x404   :  { %1683 = vperm.xlu1 %9911, %v20242_v8  }
 0x406   :  { %v1546_v12 = vpop.permute.xlu1 %1545 }
 0x407   :  { %v5574_v2 = vrot.slane %v1546_v12, 4  ;;  %v5577_v20 = vsel %vm1962_vm0, %v1546_v12, %v5576_v37  ;;  %v5632_v12 = vsel %vm1962_vm0, %v5631_v34, %v5597_v21 }
 0x408   :  { %v5585_v52 = vperm.slane %v5577_v20, %v10152_v4  ;;  %v5630_v20 = vperm.slane %v5622_v32, %v10226_v63 }
 0x409   :  { %v5575_v57 = vsel %vm1962_vm0, %v5574_v2, %v1534_v14 }
 0x40a   :  { %v5581_v40 = vperm.slane %v5575_v57, %v10152_v4  ;;  %v5609_v8 = vrot.slane %v5585_v52, 4  ;;  %9914 = vset.pattern.permute.xlu2 %v10052_v9  ;;  %v13535_v57 = vperm.slane %v5632_v12, %v10226_v63 }
 0x40c   :  { %v5598_v37 = vrot.slane %v5581_v40, 4  ;;  %1695 = vperm.xlu1 %9911, %v274_v30   ;;  %v5610_v26 = vsel %vm1962_vm0, %v5609_v8, %v5585_v52  ;;  %v5611_v2 = vsel %vm1962_vm0, %v5585_v52, %v5609_v8  ;;  %v5642_v30 = vrot.slane %v5626_v39, 4  ;;  %20245 = vst [vmem:[#allocation402_spill] sm:$0xff] %v13535_v57  ;;  %v13543_v35 = vpop.permute.xlu2 %1599 }
 0x40d   :  { %v13527_v55 = vperm.slane %v5610_v26, %v10226_v63  ;;  %v5619_v14 = vperm.slane %v5611_v2, %v10226_v63  ;;  %v5646_v52 = vrot.slane %v5630_v20, 4  ;;  %v5828_v2 = vrot.slane %v13247_v33, 4 }
 0x40e   :  { %v5599_v34 = vsel %vm1962_vm0, %v5598_v37, %v5581_v40  ;;  %v5600_v21 = vsel %vm1962_vm0, %v5581_v40, %v5598_v37  ;;  %v5840_v40 = vrot.slane %v13452_v50, 4 }
 0x40f   :  { %20244 = vst [vmem:[#allocation401_spill] sm:$0xff] %v13527_v55  ;;  %v5604_v24 = vperm.slane %v5599_v34, %v10226_v63  ;;  %v5608_v32 = vperm.slane %v5600_v21, %v10226_v63  ;;  %v5652_v8 = vrot.slane %v13527_v55, 4  ;;  %v13539_v26 = vsel %vm1962_vm0, %v5654_v22, %v5619_v14 }
 0x410   :  { %20246 = vst [vmem:[#allocation403_spill] sm:$0xff] %v13539_v26  ;;  %v5656_v13 = vrot.slane %v5619_v14, 4  ;;  %v5829_v33 = vsel %vm1962_vm0, %v13415_v41, %v5828_v2  ;;  %v151_v22 = vrot.slane %v13472_v23, 4 }
 0x411   :  { %v5644_v37 = vrot.slane %v5604_v24, 4  ;;  %v13546_v34 = vsel %vm1962_vm0, %v5642_v30, %v5604_v24  ;;  %v13549_v12 = vsel %vm1962_vm0, %v5646_v52, %v5608_v32  ;;  %v5648_v21 = vrot.slane %v5608_v32, 4 }
 0x412   :  { %20247 = vst [vmem:[#allocation404_spill] sm:$0xff] %v13546_v34  ;;  %v13553_v55 = vsel %vm1962_vm0, %v13535_v57, %v5652_v8  ;;  %v13556_v14 = vsel %vm1962_vm0, %v5641_v43, %v5656_v13  ;;  %1719 = vperm.xlu2 %9914, %v276_v16   ;;  %v5841_v30 = vsel %vm1962_vm0, %v13427_v61, %v5840_v40  ;;  %v277_v41 = vperm.slane %v151_v22, 0 }
 0x413   :  { %20248 = vst [vmem:[#allocation405_spill] sm:$0xff] %v13549_v12  ;;  %v5645_v50 = vsel %vm1962_vm0, %v5626_v39, %v5644_v37  ;;  %v13565_v24 = vsel %vm1962_vm0, %v5630_v20, %v5648_v21  ;;  %v13570_v43 = vperm.slane %v5829_v33, %v10152_v4  ;;  %v13573_v52 = vperm.slane %v5841_v30, %v10152_v4 }
 0x414   :  { %20249 = vst [vmem:[#allocation406_spill] sm:$0xff] %v13553_v55  ;;  %9913 = vset.pattern.permute.xlu1 %v10038_v1  ;;  %7416 = vrot.lane.b32.xlu0 %v5645_v50, %s10007_s0  ;;  %v13576_v8 = vpop.permute.xlu2 %1611 }
 0x415   :  { %20250 = vst [vmem:[#allocation407_spill] sm:$0xff] %v13556_v14  ;;  %v19614_v39 = vrot.slane %v13570_v43, 4  ;;  %v19615_v13 = vrot.slane %v13573_v52, 4 }
 0x416   :  { %20251 = vst [vmem:[#allocation408_spill] sm:$0xff] %v13565_v24  ;;  %v1564_v32 = vpop.permute.xlu1 %1563 }
 0x417   :  { %20252 = vst [vmem:[#allocation409_spill] sm:$0xff] %v13570_v43  ;;  %v5924_v20 = vrot.slane %v1564_v32, 4  ;;  %v5862_v61 = vsel %vm1962_vm0, %v19614_v39, %v13570_v43  ;;  %v5884_v33 = vsel %vm1962_vm0, %v19615_v13, %v13573_v52  ;;  %v5740_v13 = vrot.slane %v13443_v54, 4  ;;  %v13634_v54 = vpop.permute.xlu0 %1587 }
 0x418   :  { %20253 = vst [vmem:[#allocation410_spill] sm:$0xff] %v13573_v52  ;;  %v13593_v50 = vperm.slane %v5862_v61, %v10226_v63  ;;  %v6330_v52 = vrot.slane %v13543_v35, 4 }
 0x419   :  { %v13626_v43 = vsel %vm1962_vm0, %v13425_v58, %v5740_v13 }
 0x41a   :  { %1731 = vperm.xlu2 %9914, %v277_v41   ;;  %20255 = vst [vmem:[#allocation412_spill] sm:$0xff] %v13593_v50 }
 0x41b   :  { %20259 = vst [vmem:[#allocation416_spill] sm:$0xff] %v13626_v43 }
 0x41c   :  { %1713 = vperm.xlu1 %9913, %v276_v16  }
 0x41e   :  { %v1576_v2 = vpop.permute.xlu1 %1575 }
 0x41f   :  { %v5922_v40 = vrot.slane %v1576_v2, 4  ;;  %v5925_v37 = vsel %vm1962_vm0, %v1576_v2, %v5924_v20  ;;  %v153_v20 = vrot.slane %v13472_v23, 6  ;;  %v13602_v2 = vperm.slane %v5884_v33, %v10226_v63 }
 0x420   :  { %v13585_v21 = vperm.slane %v5925_v37, %v10152_v4 }
 0x421   :  { %v5923_v16 = vsel %vm1962_vm0, %v5922_v40, %v1564_v32  ;;  %20257 = vst [vmem:[#allocation414_spill] sm:$0xff] %v13602_v2  ;;  %v5904_v40 = vrot.slane %v13593_v50, 4 }
 0x422   :  { %20254 = vst [vmem:[#allocation411_spill] sm:$0xff] %v13585_v21  ;;  %v13596_v22 = vperm.slane %v5923_v16, %v10152_v4  ;;  %v19616_v30 = vrot.slane %v13585_v21, 4  ;;  %9916 = vset.pattern.permute.xlu2 %v10038_v1  ;;  %v279_v16 = vperm.slane %v153_v20, 0 }
 0x423   :  { %v13619_v39 = vsel %vm1962_vm0, %v13602_v2, %v5904_v40  ;;  %v5996_v40 = vrot.slane %v13509_v49, 4 }
 0x424   :  { %20256 = vst [vmem:[#allocation413_spill] sm:$0xff] %v13596_v22  ;;  %v19621_v37 = vrot.slane %v13596_v22, 4  ;;  %v13609_v32 = vsel %vm1962_vm0, %v13585_v21, %v19616_v30  ;;  %1725 = vperm.xlu1 %9913, %v277_v41   ;;  %v1630_v61 = vpop.permute.xlu2 %1629  ;;  %v5944_v41 = vperm.slane %v13503_v53, %v10226_v63 }
 0x425   :  { %20258 = vst [vmem:[#allocation415_spill] sm:$0xff] %v13619_v39  ;;  %v6331_v39 = vsel %vm1962_vm0, %v6330_v52, %v13634_v54 }
 0x426   :  { %v5958_v23 = vsel %vm1962_vm0, %v13596_v22, %v19621_v37  ;;  %v13646_v21 = vperm.slane %v6331_v39, %v10152_v4  ;;  %v20263_v39 = vld [vmem:[#allocation83_spill] sm:$0xff] }
 0x427   :  { %v5966_v33 = vperm.slane %v5958_v23, %v10226_v63 }
 0x429   :  { %v5982_v30 = vrot.slane %v5966_v33, 4 }
 0x42a   :  { %1749 = vperm.xlu2 %9916, %v279_v16  }
 0x42b   :  { %v13630_v20 = vsel %vm1962_vm0, %v5982_v30, %v5944_v41 }
 0x42c   :  { %20260 = vst [vmem:[#allocation417_spill] sm:$0xff] %v13630_v20  ;;  %9915 = vset.pattern.permute.xlu1 %v10052_v9  ;;  %v1642_v23 = vpop.permute.xlu2 %1641  ;;  %v6080_v20 = vrot.slane %v1630_v61, 4 }
 0x42d   :  { %v6078_v53 = vrot.slane %v1642_v23, 4 }
 0x42e   :  { %v1594_v37 = vpop.permute.xlu1 %1593 }
 0x42f   :  { %v5994_v58 = vrot.slane %v1594_v37, 4  ;;  %v5997_v13 = vsel %vm1962_vm0, %v1594_v37, %v5996_v40  ;;  %v6079_v30 = vsel %vm1962_vm0, %v6078_v53, %v1630_v61  ;;  %v20262_v40 = vld [vmem:[#allocation33_spill] sm:$0xff]  ;;  %v6006_v53 = vrot.slane %v20263_v39, 4 }
 0x430   :  { %v13640_v43 = vperm.slane %v5997_v13, %v10152_v4  ;;  %v13652_v52 = vperm.slane %v6079_v30, %v10152_v4  ;;  %v6354_v61 = vrot.slane %v13646_v21, 4 }
 0x431   :  { %v5995_v34 = vsel %vm1962_vm0, %v5994_v58, %v13509_v49 }
 0x432   :  { %20261 = vst [vmem:[#allocation418_spill] sm:$0xff] %v13640_v43  ;;  %v6001_v50 = vperm.slane %v5995_v34, %v10152_v4  ;;  %v19628_v2 = vrot.slane %v13640_v43, 4  ;;  %1761 = vperm.xlu2 %9916, %v11159_v15   ;;  %v6081_v34 = vsel %vm1962_vm0, %v1642_v23, %v6080_v20  ;;  %v19629_v30 = vrot.slane %v13652_v52, 4 }
 0x433   :  { %v13672_v20 = vperm.slane %v6081_v34, %v10152_v4 }
 0x434   :  { %v6018_v37 = vrot.slane %v6001_v50, 4  ;;  %1743 = vperm.xlu1 %9915, %v20262_v40   ;;  %v6031_v49 = vsel %vm1962_vm0, %v13640_v43, %v19628_v2  ;;  %v5984_v2 = vrot.slane %v5944_v41, 4  ;;  %v6356_v41 = vsel %vm1962_vm0, %v13646_v21, %v6354_v61 }
 0x435   :  { %20265 = vst [vmem:[#allocation83_spill] sm:$0xff] %v13672_v20  ;;  %v6039_v43 = vperm.slane %v6031_v49, %v10226_v63 }
 0x436   :  { %v1606_v58 = vpop.permute.xlu1 %1605  ;;  %v6020_v22 = vsel %vm1962_vm0, %v6001_v50, %v6018_v37 }
 0x437   :  { %v6007_v15 = vsel %vm1962_vm0, %v6006_v53, %v1606_v58  ;;  %v6008_v13 = vrot.slane %v1606_v58, 4  ;;  %v13675_v23 = vperm.slane %v6020_v22, %v10226_v63  ;;  %v13682_v53 = vsel %vm1962_vm0, %v13652_v52, %v19629_v30 }
 0x438   :  { %v6013_v40 = vperm.slane %v6007_v15, %v10152_v4  ;;  %v6019_v22 = vsel %vm1962_vm0, %v6018_v37, %v6001_v50 }
 0x439   :  { %v6009_v14 = vsel %vm1962_vm0, %v20263_v39, %v6008_v13  ;;  %20266 = vst [vmem:[#allocation419_spill] sm:$0xff] %v13675_v23  ;;  %v13710_v37 = vperm.slane %v6019_v22, %v10226_v63 }
 0x43a   :  { %v13669_v26 = vperm.slane %v6009_v14, %v10152_v4  ;;  %v6040_v55 = vrot.slane %v6013_v40, 4  ;;  %9918 = vset.pattern.permute.xlu2 %v10052_v9  ;;  %v13687_v14 = vsel %vm1962_vm0, %v5966_v33, %v5984_v2  ;;  %v6068_v33 = vrot.slane %v13675_v23, 4 }
 0x43b   :  { %20267 = vst [vmem:[#allocation420_spill] sm:$0xff] %v13687_v14  ;;  %v20273_v14 = vrot.slane %v13672_v20, 4 }
 0x43c   :  { %20264 = vst [vmem:[#allocation33_spill] sm:$0xff] %v13669_v26  ;;  %v6042_v39 = vsel %vm1962_vm0, %v6013_v40, %v6040_v55  ;;  %v19632_v58 = vrot.slane %v13669_v26, 4  ;;  %1755 = vperm.xlu1 %9915, %v279_v16   ;;  %v6041_v34 = vsel %vm1962_vm0, %v6040_v55, %v6013_v40  ;;  %v1660_v15 = vpop.permute.xlu2 %1659  ;;  %v13706_v16 = vld [vmem:[#allocation2 + $0x70] sm:$0xff] }
 0x43d   :  { %v13694_v13 = vperm.slane %v6041_v34, %v10226_v63  ;;  %v13697_v30 = vperm.slane %v6042_v39, %v10226_v63  ;;  %v281_v55 = vperm.slane %v13706_v16, 0  ;;  %20270 = vst [vmem:[#allocation423_spill] sm:$0xff] %v13710_v37  ;;  %v6428_v2 = vrot.slane %v1660_v15, 4 }
 0x43e   :  { %v6053_v50 = vsel %vm1962_vm0, %v13669_v26, %v19632_v58  ;;  %v6076_v58 = vrot.slane %v6039_v43, 4  ;;  %v13726_v22 = vsel %vm1962_vm0, %v13672_v20, %v20273_v14  ;;  %v155_v26 = vrot.slane %v13706_v16, 1 }
 0x43f   :  { %20268 = vst [vmem:[#allocation421_spill] sm:$0xff] %v13694_v13  ;;  %v6062_v40 = vrot.slane %v13694_v13, 4  ;;  %v13715_v49 = vsel %vm1962_vm0, %v13697_v30, %v6068_v33  ;;  %v6061_v39 = vperm.slane %v6053_v50, %v10226_v63  ;;  %v6344_v50 = vrot.slane %v13576_v8, 4 }
 0x440   :  { %20269 = vst [vmem:[#allocation422_spill] sm:$0xff] %v13697_v30 }
 0x441   :  { %20271 = vst [vmem:[#allocation424_spill] sm:$0xff] %v13715_v49  ;;  %v13720_v34 = vsel %vm1962_vm0, %v6062_v40, %v13710_v37  ;;  %v6074_v57 = vrot.slane %v6061_v39, 4  ;;  %v13730_v33 = vsel %vm1962_vm0, %v6061_v39, %v6076_v58  ;;  %v282_v58 = vperm.slane %v155_v26, 0 }
 0x442   :  { %20272 = vst [vmem:[#allocation425_spill] sm:$0xff] %v13720_v34  ;;  %1779 = vperm.xlu2 %9918, %v281_v55  }
 0x443   :  { %20274 = vst [vmem:[#allocation426_spill] sm:$0xff] %v13730_v33  ;;  %v13735_v34 = vsel %vm1962_vm0, %v6074_v57, %v6039_v43  ;;  %v6355_v57 = vsel %vm1962_vm0, %v6354_v61, %v13646_v21 }
 0x444   :  { %9917 = vset.pattern.permute.xlu1 %v10038_v1  ;;  %v1672_v40 = vpop.permute.xlu2 %1671  ;;  %20275 = vst [vmem:[#allocation427_spill] sm:$0xff] %v13735_v34  ;;  %v13767_v21 = vperm.slane %v6355_v57, %v10226_v63 }
 0x445   :  { %v6426_v24 = vrot.slane %v1672_v40, 4  ;;  %v6429_v14 = vsel %vm1962_vm0, %v1672_v40, %v6428_v2 }
 0x446   :  { %v1624_v49 = vpop.permute.xlu1 %1623  ;;  %v13740_v18 = vperm.slane %v6429_v14, %v10152_v4  ;;  %20278 = vst [vmem:[#allocation430_spill] sm:$0xff] %v13767_v21 }
 0x447   :  { %v6342_v20 = vrot.slane %v1624_v49, 4  ;;  %v6345_v12 = vsel %vm1962_vm0, %v1624_v49, %v6344_v50  ;;  %v6427_v33 = vsel %vm1962_vm0, %v6426_v24, %v1660_v15  ;;  %v13754_v50 = vpop.permute.xlu0 %1647  ;;  %v6364_v15 = vperm.slane %v6356_v41, %v10226_v63 }
 0x448   :  { %v13743_v39 = vperm.slane %v6345_v12, %v10152_v4  ;;  %v13751_v2 = vperm.slane %v6427_v33, %v10152_v4  ;;  %v19638_v49 = vrot.slane %v13740_v18, 4  ;;  %v6414_v40 = vrot.slane %v13754_v50, 4 }
 0x449   :  { %v6343_v43 = vsel %vm1962_vm0, %v6342_v20, %v13576_v8 }
 0x44a   :  { %20276 = vst [vmem:[#allocation428_spill] sm:$0xff] %v13743_v39  ;;  %v6349_v26 = vperm.slane %v6343_v43, %v10152_v4  ;;  %v19639_v12 = vrot.slane %v13743_v39, 4  ;;  %v19642_v24 = vrot.slane %v13751_v2, 4  ;;  %v13764_v8 = vsel %vm1962_vm0, %v13740_v18, %v19638_v49  ;;  %1791 = vperm.xlu2 %9918, %v282_v58  }
 0x44b   :  { %20277 = vst [vmem:[#allocation429_spill] sm:$0xff] %v13751_v2 }
 0x44c   :  { %v6376_v61 = vrot.slane %v6349_v26, 4  ;;  %v13773_v20 = vsel %vm1962_vm0, %v13743_v39, %v19639_v12  ;;  %1773 = vperm.xlu1 %9917, %v281_v55   ;;  %v6462_v33 = vsel %vm1962_vm0, %v13751_v2, %v19642_v24  ;;  %v6400_v55 = vrot.slane %v13767_v21, 4 }
 0x44d   :  { %v6404_v24 = vrot.slane %v6364_v15, 4  ;;  %v6470_v2 = vperm.slane %v6462_v33, %v10226_v63 }
 0x44e   :  { %v13780_v14 = vpop.permute.xlu1 %1635  ;;  %v6377_v57 = vsel %vm1962_vm0, %v6376_v61, %v6349_v26  ;;  %v6378_v43 = vsel %vm1962_vm0, %v6349_v26, %v6376_v61 }
 0x44f   :  { %v6415_v49 = vsel %vm1962_vm0, %v6414_v40, %v13780_v14  ;;  %v13787_v12 = vperm.slane %v6377_v57, %v10226_v63  ;;  %v6386_v41 = vperm.slane %v6378_v43, %v10226_v63  ;;  %v157_v57 = vrot.slane %v13706_v16, 3  ;;  %v20284_v43 = vld [vmem:[#allocation88_spill] sm:$0xff] }
 0x450   :  { %v13792_v39 = vperm.slane %v6415_v49, %v10152_v4  ;;  %v6164_v21 = vrot.slane %v20284_v43, 4 }
 0x451   :  { %20279 = vst [vmem:[#allocation431_spill] sm:$0xff] %v13787_v12  ;;  %v13797_v34 = vsel %vm1962_vm0, %v13787_v12, %v6400_v55  ;;  %v6402_v26 = vrot.slane %v6386_v41, 4  ;;  %v13801_v61 = vsel %vm1962_vm0, %v6386_v41, %v6404_v24  ;;  %v6486_v55 = vrot.slane %v6470_v2, 4 }
 0x452   :  { %20280 = vst [vmem:[#allocation432_spill] sm:$0xff] %v13792_v39  ;;  %v19647_v40 = vrot.slane %v13792_v39, 4  ;;  %9920 = vset.pattern.permute.xlu2 %v10038_v1 }
 0x453   :  { %20281 = vst [vmem:[#allocation433_spill] sm:$0xff] %v13797_v34  ;;  %v13806_v49 = vsel %vm1962_vm0, %v6402_v26, %v6364_v15  ;;  %v284_v15 = vperm.slane %v157_v57, 0 }
 0x454   :  { %20282 = vst [vmem:[#allocation434_spill] sm:$0xff] %v13801_v61  ;;  %1785 = vperm.xlu1 %9917, %v282_v58   ;;  %v6440_v33 = vsel %vm1962_vm0, %v13792_v39, %v19647_v40  ;;  %v1690_v34 = vpop.permute.xlu2 %1689 }
 0x455   :  { %20283 = vst [vmem:[#allocation435_spill] sm:$0xff] %v13806_v49  ;;  %v6448_v24 = vperm.slane %v6440_v33, %v10226_v63  ;;  %v6162_v41 = vrot.slane %v1690_v34, 4  ;;  %v6165_v61 = vsel %vm1962_vm0, %v1690_v34, %v6164_v21 }
 0x456   :  { %v13816_v12 = vperm.slane %v6165_v61, %v10152_v4 }
 0x457   :  { %v6163_v26 = vsel %vm1962_vm0, %v6162_v41, %v20284_v43  ;;  %v13821_v58 = vsel %vm1962_vm0, %v6486_v55, %v6448_v24  ;;  %v20286_v43 = vld [vmem:[#allocation35_spill] sm:$0xff]  ;;  %v5912_v41 = vrot.slane %v13395_v44, 4  ;;  %v6488_v39 = vrot.slane %v6448_v24, 4 }
 0x458   :  { %20285 = vst [vmem:[#allocation88_spill] sm:$0xff] %v13821_v58  ;;  %v13824_v49 = vperm.slane %v6163_v26, %v10152_v4  ;;  %v19648_v40 = vrot.slane %v13816_v12, 4 }
 0x459   :  { %v13854_v38 = vsel %vm1962_vm0, %v6470_v2, %v6488_v39  ;;  %v5913_v44 = vsel %vm1962_vm0, %v13440_v19, %v5912_v41  ;;  %v6112_v2 = vperm.slane %v13682_v53, %v10226_v63 }
 0x45a   :  { %v19652_v33 = vrot.slane %v13824_v49, 4  ;;  %1809 = vperm.xlu2 %9920, %v284_v15   ;;  %v13832_v34 = vsel %vm1962_vm0, %v13816_v12, %v19648_v40  ;;  %20288 = vst [vmem:[#allocation436_spill] sm:$0xff] %v13854_v38  ;;  %v13869_v19 = vperm.slane %v5913_v44, %v10152_v4 }
 0x45c   :  { %9919 = vset.pattern.permute.xlu1 %v10052_v9  ;;  %v13839_v21 = vsel %vm1962_vm0, %v13824_v49, %v19652_v33  ;;  %v13842_v57 = vpop.permute.xlu2 %1701  ;;  %v1708_v33 = vpop.permute.xlu0 %1707  ;;  %20289 = vst [vmem:[#allocation437_spill] sm:$0xff] %v13869_v19 }
 0x45e   :  { %v1654_v61 = vpop.permute.xlu1 %1653 }
 0x45f   :  { %v6092_v55 = vrot.slane %v1654_v61, 4 }
 0x462   :  { %1821 = vperm.xlu2 %9920, %v11214_v11   ;;  %v6123_v11 = vperm.slane %v13726_v22, %v10226_v63 }
 0x464   :  { %1803 = vperm.xlu1 %9919, %v20286_v43   ;;  %v6512_v43 = vrot.slane %v1708_v33, 4  ;;  %v6160_v41 = vrot.slane %v6123_v11, 4 }
 0x466   :  { %v1666_v26 = vpop.permute.xlu1 %1665 }
 0x467   :  { %v6090_v40 = vrot.slane %v1666_v26, 4  ;;  %v6093_v58 = vsel %vm1962_vm0, %v1666_v26, %v6092_v55 }
 0x468   :  { %v13848_v23 = vperm.slane %v6093_v58, %v10152_v4  ;;  %v159_v58 = vrot.slane %v13706_v16, 5 }
 0x469   :  { %v6091_v30 = vsel %vm1962_vm0, %v6090_v40, %v1654_v61  ;;  %v20290_v40 = vrot.slane %v13652_v52, 4 }
 0x46a   :  { %20287 = vst [vmem:[#allocation35_spill] sm:$0xff] %v13848_v23  ;;  %v6097_v62 = vperm.slane %v6091_v30, %v10152_v4  ;;  %v19656_v24 = vrot.slane %v13848_v23, 4  ;;  %9922 = vset.pattern.permute.xlu2 %v10052_v9  ;;  %v286_v53 = vperm.slane %v159_v58, 0 }
 0x46b   :  { %v6103_v61 = vsel %vm1962_vm0, %v20290_v40, %v13652_v52 }
 0x46c   :  { %v6137_v22 = vsel %vm1962_vm0, %v13848_v23, %v19656_v24  ;;  %1815 = vperm.xlu1 %9919, %v284_v15   ;;  %v6124_v39 = vrot.slane %v6097_v62, 4  ;;  %v1720_v30 = vpop.permute.xlu2 %1719 }
 0x46d   :  { %v6145_v55 = vperm.slane %v6137_v22, %v10226_v63  ;;  %v6510_v26 = vrot.slane %v1720_v30, 4  ;;  %v6513_v24 = vsel %vm1962_vm0, %v1720_v30, %v6512_v43  ;;  %v6152_v22 = vrot.slane %v6112_v2, 4 }
 0x46e   :  { %v6125_v15 = vsel %vm1962_vm0, %v6124_v39, %v6097_v62  ;;  %v6126_v38 = vsel %vm1962_vm0, %v6097_v62, %v6124_v39  ;;  %v13880_v44 = vperm.slane %v6513_v24, %v10152_v4  ;;  %v13895_v24 = vperm.slane %v6103_v61, %v10226_v63 }
 0x46f   :  { %v13883_v23 = vperm.slane %v6125_v15, %v10226_v63  ;;  %v6134_v13 = vperm.slane %v6126_v38, %v10226_v63  ;;  %v6511_v52 = vsel %vm1962_vm0, %v6510_v26, %v1708_v33  ;;  %v6158_v40 = vrot.slane %v6145_v55, 4 }
 0x470   :  { %20291 = vst [vmem:[#allocation438_spill] sm:$0xff] %v13880_v44  ;;  %v13888_v37 = vsel %vm1962_vm0, %v6145_v55, %v6160_v41  ;;  %v13891_v43 = vperm.slane %v6511_v52, %v10152_v4  ;;  %v19661_v62 = vrot.slane %v13880_v44, 4  ;;  %v160_v61 = vrot.slane %v13706_v16, 6 }
 0x471   :  { %20292 = vst [vmem:[#allocation439_spill] sm:$0xff] %v13883_v23  ;;  %v6146_v58 = vrot.slane %v13883_v23, 4  ;;  %v6150_v39 = vrot.slane %v6134_v13, 4  ;;  %v13899_v38 = vsel %vm1962_vm0, %v6134_v13, %v6152_v22  ;;  %v13902_v33 = vsel %vm1962_vm0, %v6158_v40, %v6123_v11 }
 0x472   :  { %20293 = vst [vmem:[#allocation440_spill] sm:$0xff] %v13888_v37  ;;  %1839 = vperm.xlu2 %9922, %v286_v53   ;;  %v19663_v30 = vrot.slane %v13891_v43, 4  ;;  %v13909_v55 = vsel %vm1962_vm0, %v13880_v44, %v19661_v62  ;;  %v19662_v13 = vrot.slane %v13869_v19, 4  ;;  %v287_v52 = vperm.slane %v160_v61, 0 }
 0x473   :  { %20294 = vst [vmem:[#allocation441_spill] sm:$0xff] %v13891_v43  ;;  %v13914_v41 = vsel %vm1962_vm0, %v6146_v58, %v13895_v24  ;;  %v13919_v11 = vsel %vm1962_vm0, %v6150_v39, %v6112_v2  ;;  %v13933_v22 = vperm.slane %v13609_v32, %v10226_v63 }
 0x474   :  { %20295 = vst [vmem:[#allocation442_spill] sm:$0xff] %v13895_v24  ;;  %9921 = vset.pattern.permute.xlu1 %v10038_v1  ;;  %v6546_v15 = vsel %vm1962_vm0, %v13891_v43, %v19663_v30  ;;  %v5947_v16 = vsel %vm1962_vm0, %v13869_v19, %v19662_v13  ;;  %v13935_v2 = vpop.permute.xlu2 %1731 }
 0x475   :  { %20296 = vst [vmem:[#allocation443_spill] sm:$0xff] %v13899_v38  ;;  %v13938_v40 = vperm.slane %v5947_v16, %v10226_v63  ;;  %v5990_v58 = vrot.slane %v13933_v22, 4  ;;  %v13951_v13 = vperm.slane %v6546_v15, %v10226_v63  ;;  %v13964_v15 = vld [vmem:[#allocation2 + $0x78] sm:$0xff]  ;;  %v6416_v38 = vrot.slane %v13780_v14, 4  ;;  %v20308_v14 = vld [vmem:[#allocation90_spill] sm:$0xff] }
 0x476   :  { %20297 = vst [vmem:[#allocation444_spill] sm:$0xff] %v13902_v33  ;;  %v13921_v26 = vpop.permute.xlu1 %1683  ;;  %v20306_v33 = vrot.slane %v13824_v49, 4 }
 0x477   :  { %20298 = vst [vmem:[#allocation445_spill] sm:$0xff] %v13914_v41  ;;  %v13943_v39 = vsel %vm1962_vm0, %v5990_v58, %v13938_v40  ;;  %v6570_v30 = vrot.slane %v13951_v13, 4 }
 0x478   :  { %20299 = vst [vmem:[#allocation446_spill] sm:$0xff] %v13919_v11 }
 0x479   :  { %20300 = vst [vmem:[#allocation447_spill] sm:$0xff] %v13943_v39 }
 0x47a   :  { %1851 = vperm.xlu2 %9922, %v287_v52  }
 0x47c   :  { %1833 = vperm.xlu1 %9921, %v286_v53  }
 0x47e   :  { %v13945_v61 = vpop.permute.xlu1 %1695 }
 0x47f   :  { %v6498_v62 = vrot.slane %v13945_v61, 4 }
 0x481   :  { %v6499_v32 = vsel %vm1962_vm0, %v6498_v62, %v13921_v26  ;;  %v6332_v62 = vrot.slane %v13634_v54, 4  ;;  %v6176_v54 = vrot.slane %v13842_v57, 4 }
 0x482   :  { %v13954_v16 = vperm.slane %v6499_v32, %v10152_v4  ;;  %9924 = vset.pattern.permute.xlu2 %v10038_v1  ;;  %v19673_v32 = vperm.slane %v13964_v15, 0 }
 0x483   :  { %v6333_v19 = vsel %vm1962_vm0, %v13543_v35, %v6332_v62 }
 0x484   :  { %20301 = vst [vmem:[#allocation448_spill] sm:$0xff] %v13954_v16  ;;  %1845 = vperm.xlu1 %9921, %v287_v52   ;;  %v19668_v53 = vrot.slane %v13954_v16, 4  ;;  %v1750_v58 = vpop.permute.xlu2 %1749 }
 0x485   :  { %v6260_v44 = vrot.slane %v1750_v58, 4 }
 0x486   :  { %v6524_v39 = vsel %vm1962_vm0, %v13954_v16, %v19668_v53  ;;  %v13981_v16 = vperm.slane %v6333_v19, %v10152_v4  ;;  %v6187_v19 = vsel %vm1962_vm0, %v20306_v33, %v13824_v49  ;;  %v6246_v33 = vrot.slane %v20308_v14, 4 }
 0x487   :  { %v13968_v41 = vperm.slane %v6524_v39, %v10226_v63  ;;  %v6192_v49 = vperm.slane %v6187_v19, %v10226_v63  ;;  %v6196_v19 = vperm.slane %v13839_v21, %v10226_v63 }
 0x488   :  { %20303 = vst [vmem:[#allocation450_spill] sm:$0xff] %v13981_v16 }
 0x489   :  { %v13972_v52 = vsel %vm1962_vm0, %v6570_v30, %v13968_v41 }
 0x48a   :  { %20302 = vst [vmem:[#allocation449_spill] sm:$0xff] %v13972_v52  ;;  %1869 = vperm.xlu2 %9924, %v19673_v32   ;;  %v20304_v52 = vrot.slane %v13816_v12, 4 }
 0x48c   :  { %9923 = vset.pattern.permute.xlu1 %v10052_v9  ;;  %v1762_v53 = vpop.permute.xlu2 %1761  ;;  %v6198_v35 = vsel %vm1962_vm0, %v20304_v52, %v13816_v12 }
 0x48d   :  { %v6258_v43 = vrot.slane %v1762_v53, 4  ;;  %v6261_v30 = vsel %vm1962_vm0, %v1762_v53, %v6260_v44 }
 0x48e   :  { %v1714_v39 = vpop.permute.xlu1 %1713  ;;  %v13990_v37 = vperm.slane %v6261_v30, %v10152_v4 }
 0x48f   :  { %v6174_v62 = vrot.slane %v1714_v39, 4  ;;  %v6177_v32 = vsel %vm1962_vm0, %v1714_v39, %v6176_v54  ;;  %v6259_v53 = vsel %vm1962_vm0, %v6258_v43, %v1750_v58  ;;  %v14004_v39 = vperm.slane %v6198_v35, %v10226_v63  ;;  %v20309_v35 = vld [vmem:[#allocation38_spill] sm:$0xff] }
 0x490   :  { %20305 = vst [vmem:[#allocation451_spill] sm:$0xff] %v13990_v37  ;;  %v6185_v44 = vperm.slane %v6177_v32, %v10152_v4  ;;  %v6265_v52 = vperm.slane %v6259_v53, %v10152_v4  ;;  %v19674_v54 = vrot.slane %v13990_v37, 4  ;;  %v6207_v53 = vperm.slane %v13832_v34, %v10226_v63 }
 0x491   :  { %v6175_v12 = vsel %vm1962_vm0, %v6174_v62, %v13842_v57  ;;  %20307 = vst [vmem:[#allocation452_spill] sm:$0xff] %v14004_v39 }
 0x492   :  { %v6181_v30 = vperm.slane %v6175_v12, %v10152_v4  ;;  %v6219_v11 = vrot.slane %v6185_v44, 4  ;;  %v6305_v57 = vsel %vm1962_vm0, %v13990_v37, %v19674_v54  ;;  %1881 = vperm.xlu2 %9924, %v11257_v60   ;;  %v6292_v43 = vrot.slane %v6265_v52, 4 }
 0x493   :  { %v6417_v12 = vsel %vm1962_vm0, %v13754_v50, %v6416_v38  ;;  %v6240_v60 = vrot.slane %v14004_v39, 4  ;;  %v6244_v24 = vrot.slane %v6207_v53, 4 }
 0x494   :  { %v6221_v58 = vsel %vm1962_vm0, %v6185_v44, %v6219_v11  ;;  %1863 = vperm.xlu1 %9923, %v20309_v35   ;;  %v6208_v62 = vrot.slane %v6181_v30, 4  ;;  %v6220_v32 = vsel %vm1962_vm0, %v6219_v11, %v6185_v44  ;;  %v6293_v54 = vsel %vm1962_vm0, %v6292_v43, %v6265_v52 }
 0x495   :  { %v6232_v35 = vrot.slane %v6192_v49, 4  ;;  %v14028_v23 = vperm.slane %v6293_v54, %v10226_v63  ;;  %v6236_v44 = vrot.slane %v6196_v19, 4  ;;  %v14036_v39 = vperm.slane %v6220_v32, %v10226_v63 }
 0x496   :  { %v1726_v37 = vpop.permute.xlu1 %1725  ;;  %v6209_v59 = vsel %vm1962_vm0, %v6208_v62, %v6181_v30  ;;  %v6210_v21 = vsel %vm1962_vm0, %v6181_v30, %v6208_v62  ;;  %v163_v32 = vrot.slane %v13964_v15, 2 }
 0x497   :  { %v6247_v34 = vsel %vm1962_vm0, %v6246_v33, %v1726_v37  ;;  %v6248_v27 = vrot.slane %v1726_v37, 4  ;;  %v6214_v50 = vperm.slane %v6209_v59, %v10226_v63  ;;  %v6218_v38 = vperm.slane %v6210_v21, %v10226_v63 }
 0x498   :  { %v6253_v11 = vperm.slane %v6247_v34, %v10152_v4  ;;  %v6229_v33 = vperm.slane %v6221_v58, %v10226_v63  ;;  %v6314_v58 = vrot.slane %v14028_v23, 4  ;;  %v20312_v34 = vperm.slane %v13964_v15, 0 }
 0x499   :  { %v6249_v54 = vsel %vm1962_vm0, %v20308_v14, %v6248_v27  ;;  %v6233_v36 = vsel %vm1962_vm0, %v6214_v50, %v6232_v35  ;;  %v6230_v30 = vrot.slane %v6214_v50, 4  ;;  %v6234_v62 = vrot.slane %v6218_v38, 4 }
 0x49a   :  { %v14043_v37 = vperm.slane %v6249_v54, %v10152_v4  ;;  %v6270_v59 = vrot.slane %v6253_v11, 4  ;;  %7422 = vrot.lane.b32.xlu0 %v6233_v36, %s10007_s0  ;;  %v14047_v21 = vsel %vm1962_vm0, %v6218_v38, %v6236_v44  ;;  %9926 = vset.pattern.permute.xlu2 %v10052_v9  ;;  %v6294_v14 = vsel %vm1962_vm0, %v6265_v52, %v6292_v43 }
 0x49b   :  { %v14052_v27 = vsel %vm1962_vm0, %v6230_v30, %v6192_v49  ;;  %v14061_v50 = vsel %vm1962_vm0, %v6234_v62, %v6196_v19  ;;  %v14072_v52 = vsel %vm1962_vm0, %v14036_v39, %v6240_v60  ;;  %v6242_v43 = vrot.slane %v6229_v33, 4 }
 0x49c   :  { %20310 = vst [vmem:[#allocation90_spill] sm:$0xff] %v14043_v37  ;;  %v6271_v35 = vsel %vm1962_vm0, %v6270_v59, %v6253_v11  ;;  %1875 = vperm.xlu1 %9923, %v20312_v34   ;;  %v6272_v36 = vsel %vm1962_vm0, %v6253_v11, %v6270_v59  ;;  %v19683_v38 = vrot.slane %v14043_v37, 4  ;;  %v6425_v54 = vperm.slane %v6417_v12, %v10152_v4 }
 0x49d   :  { %20311 = vst [vmem:[#allocation38_spill] sm:$0xff] %v14052_v27  ;;  %v14065_v44 = vperm.slane %v6271_v35, %v10226_v63  ;;  %v14068_v49 = vperm.slane %v6272_v36, %v10226_v63  ;;  %v14076_v11 = vsel %vm1962_vm0, %v6229_v33, %v6244_v24  ;;  %v291_v30 = vperm.slane %v163_v32, 0  ;;  %v14095_v35 = vpop.permute.xlu2 %1779 }
 0x49e   :  { %20313 = vst [vmem:[#allocation453_spill] sm:$0xff] %v14072_v52  ;;  %v6283_v19 = vsel %vm1962_vm0, %v14043_v37, %v19683_v38  ;;  %v14083_v59 = vperm.slane %v6294_v14, %v10226_v63  ;;  %v14091_v12 = vsel %vm1962_vm0, %v6242_v43, %v6207_v53  ;;  %v6313_v33 = vperm.slane %v6305_v57, %v10226_v63 }
 0x49f   :  { %20314 = vst [vmem:[#allocation454_spill] sm:$0xff] %v14076_v11  ;;  %v14087_v62 = vsel %vm1962_vm0, %v6314_v58, %v14065_v44  ;;  %v6320_v60 = vrot.slane %v14068_v49, 4  ;;  %v6291_v24 = vperm.slane %v6283_v19, %v10226_v63  ;;  %v20318_v14 = vrot.slane %v13981_v16, 4 }
 0x4a0   :  { %20315 = vst [vmem:[#allocation455_spill] sm:$0xff] %v14087_v62  ;;  %v14107_v34 = vperm.slane %v13773_v20, %v10226_v63  ;;  %v6326_v53 = vrot.slane %v6313_v33, 4  ;;  %v6449_v43 = vrot.slane %v6425_v54, 4  ;;  %v164_v57 = vrot.slane %v13964_v15, 3 }
 0x4a1   :  { %20316 = vst [vmem:[#allocation456_spill] sm:$0xff] %v14091_v12  ;;  %v14099_v32 = vsel %vm1962_vm0, %v14083_v59, %v6320_v60  ;;  %v6367_v58 = vsel %vm1962_vm0, %v13981_v16, %v20318_v14  ;;  %v6328_v36 = vrot.slane %v6291_v24, 4  ;;  %v6572_v19 = vrot.slane %v13968_v41, 4 }
 0x4a2   :  { %20317 = vst [vmem:[#allocation457_spill] sm:$0xff] %v14099_v32  ;;  %1899 = vperm.xlu2 %9926, %v291_v30   ;;  %v14112_v60 = vperm.slane %v6367_v58, %v10226_v63  ;;  %v6410_v38 = vrot.slane %v14107_v34, 4  ;;  %v14117_v14 = vsel %vm1962_vm0, %v6326_v53, %v6291_v24  ;;  %v6450_v16 = vsel %vm1962_vm0, %v6449_v43, %v6425_v54 }
 0x4a3   :  { %20319 = vst [vmem:[#allocation458_spill] sm:$0xff] %v14117_v14  ;;  %v14120_v20 = vsel %vm1962_vm0, %v6313_v33, %v6328_v36  ;;  %v14124_v27 = vsel %vm1962_vm0, %v13951_v13, %v6572_v19  ;;  %v292_v11 = vperm.slane %v164_v57, 0  ;;  %v14137_v33 = vperm.slane %v6450_v16, %v10226_v63  ;;  %v14150_v16 = vpop.permute.xlu0 %1767 }
 0x4a4   :  { %9925 = vset.pattern.permute.xlu1 %v10038_v1  ;;  %20320 = vst [vmem:[#allocation459_spill] sm:$0xff] %v14120_v20  ;;  %v14128_v41 = vsel %vm1962_vm0, %v6410_v38, %v14112_v60  ;;  %v6481_v13 = vperm.slane %v13764_v8, %v10226_v63  ;;  %v6451_v38 = vsel %vm1962_vm0, %v6425_v54, %v6449_v43  ;;  %v20324_v36 = vrot.slane %v13740_v18, 4 }
 0x4a5   :  { %20321 = vst [vmem:[#allocation460_spill] sm:$0xff] %v14124_v27  ;;  %v14147_v57 = vpop.permute.xlu2 %1791  ;;  %v6594_v8 = vrot.slane %v14150_v16, 4 }
 0x4a6   :  { %20322 = vst [vmem:[#allocation461_spill] sm:$0xff] %v14128_v41  ;;  %v14130_v58 = vpop.permute.xlu1 %1743  ;;  %v6472_v19 = vsel %vm1962_vm0, %v20324_v36, %v13740_v18  ;;  %v6494_v41 = vrot.slane %v6481_v13, 4 }
 0x4a7   :  { %v6582_v62 = vrot.slane %v14130_v58, 4  ;;  %20323 = vst [vmem:[#allocation462_spill] sm:$0xff] %v14137_v33 }
 0x4a9   :  { %v6583_v24 = vsel %vm1962_vm0, %v6582_v62, %v13935_v2  ;;  %v6459_v62 = vperm.slane %v6451_v38, %v10226_v63  ;;  %v14162_v38 = vperm.slane %v6472_v19, %v10226_v63  ;;  %v20330_v19 = vld [vmem:[#allocation95_spill] sm:$0xff] }
 0x4aa   :  { %v6589_v53 = vperm.slane %v6583_v24, %v10152_v4  ;;  %1911 = vperm.xlu2 %9926, %v292_v11   ;;  %v6492_v24 = vrot.slane %v14137_v33, 4 }
 0x4ab   :  { %v14155_v54 = vsel %vm1962_vm0, %v6494_v41, %v6459_v62  ;;  %v6496_v43 = vrot.slane %v6459_v62, 4  ;;  %20326 = vst [vmem:[#allocation464_spill] sm:$0xff] %v14162_v38  ;;  %v166_v62 = vrot.slane %v13964_v15, 5 }
 0x4ac   :  { %1893 = vperm.xlu1 %9925, %v291_v30   ;;  %v6606_v27 = vrot.slane %v6589_v53, 4  ;;  %20325 = vst [vmem:[#allocation463_spill] sm:$0xff] %v14155_v54  ;;  %v14169_v33 = vsel %vm1962_vm0, %v14162_v38, %v6492_v24 }
 0x4ad   :  { %20327 = vst [vmem:[#allocation465_spill] sm:$0xff] %v14169_v33  ;;  %v14172_v41 = vsel %vm1962_vm0, %v6481_v13, %v6496_v43  ;;  %v5992_v13 = vrot.slane %v13938_v40, 4 }
 0x4ae   :  { %v14157_v20 = vpop.permute.xlu1 %1755  ;;  %v6607_v18 = vsel %vm1962_vm0, %v6606_v27, %v6589_v53  ;;  %v6608_v36 = vsel %vm1962_vm0, %v6589_v53, %v6606_v27  ;;  %20328 = vst [vmem:[#allocation466_spill] sm:$0xff] %v14172_v41  ;;  %v294_v41 = vperm.slane %v166_v62, 0 }
 0x4af   :  { %v6595_v30 = vsel %vm1962_vm0, %v6594_v8, %v14157_v20  ;;  %v14176_v54 = vperm.slane %v6607_v18, %v10226_v63  ;;  %v6616_v53 = vperm.slane %v6608_v36, %v10226_v63  ;;  %v6680_v8 = vrot.slane %v20330_v19, 4 }
 0x4b0   :  { %v6601_v14 = vperm.slane %v6595_v30, %v10152_v4  ;;  %v14192_v37 = vsel %vm1962_vm0, %v13933_v22, %v5992_v13 }
 0x4b1   :  { %20329 = vst [vmem:[#allocation467_spill] sm:$0xff] %v14176_v54  ;;  %v6652_v18 = vrot.slane %v14176_v54, 4  ;;  %v6656_v52 = vrot.slane %v6616_v53, 4 }
 0x4b2   :  { %v6628_v27 = vrot.slane %v6601_v14, 4  ;;  %9929 = vset.pattern.permute.xlu2 %v10038_v1  ;;  %20332 = vst [vmem:[#allocation468_spill] sm:$0xff] %v14192_v37  ;;  %v6500_v37 = vrot.slane %v13921_v26, 4  ;;  %v168_v26 = vrot.slane %v13964_v15, 7 }
 0x4b4   :  { %v6629_v30 = vsel %vm1962_vm0, %v6628_v27, %v6601_v14  ;;  %v6630_v24 = vsel %vm1962_vm0, %v6601_v14, %v6628_v27  ;;  %1905 = vperm.xlu1 %9925, %v292_v11   ;;  %v1810_v43 = vpop.permute.xlu2 %1809  ;;  %v7002_v11 = vrot.slane %v14147_v57, 4 }
 0x4b5   :  { %v14185_v33 = vperm.slane %v6629_v30, %v10226_v63  ;;  %v6638_v36 = vperm.slane %v6630_v24, %v10226_v63  ;;  %v6678_v38 = vrot.slane %v1810_v43, 4  ;;  %v6681_v12 = vsel %vm1962_vm0, %v1810_v43, %v6680_v8 }
 0x4b6   :  { %v14196_v40 = vperm.slane %v6681_v12, %v10152_v4  ;;  %v7003_v12 = vsel %vm1962_vm0, %v7002_v11, %v14095_v35 }
 0x4b7   :  { %20331 = vst [vmem:[#allocation95_spill] sm:$0xff] %v14185_v33  ;;  %v14200_v14 = vsel %vm1962_vm0, %v14185_v33, %v6652_v18  ;;  %v6654_v62 = vrot.slane %v6638_v36, 4  ;;  %v6679_v27 = vsel %vm1962_vm0, %v6678_v38, %v20330_v19  ;;  %v14205_v8 = vsel %vm1962_vm0, %v6638_v36, %v6656_v52  ;;  %v20338_v36 = vld [vmem:[#allocation42_spill] sm:$0xff] }
 0x4b8   :  { %20333 = vst [vmem:[#allocation469_spill] sm:$0xff] %v14196_v40  ;;  %v6685_v30 = vperm.slane %v6679_v27, %v10152_v4  ;;  %v19690_v22 = vrot.slane %v14196_v40, 4  ;;  %v14221_v19 = vperm.slane %v7003_v12, %v10152_v4 }
 0x4b9   :  { %20334 = vst [vmem:[#allocation470_spill] sm:$0xff] %v14200_v14  ;;  %v14210_v24 = vsel %vm1962_vm0, %v6654_v62, %v6616_v53 }
 0x4ba   :  { %20335 = vst [vmem:[#allocation471_spill] sm:$0xff] %v14205_v8  ;;  %v6725_v13 = vsel %vm1962_vm0, %v14196_v40, %v19690_v22  ;;  %1929 = vperm.xlu2 %9929, %v294_v41   ;;  %v6712_v38 = vrot.slane %v6685_v30, 4  ;;  %v19691_v53 = vrot.slane %v14221_v19, 4  ;;  %v6584_v40 = vrot.slane %v13935_v2, 4 }
 0x4bb   :  { %20336 = vst [vmem:[#allocation472_spill] sm:$0xff] %v14210_v24  ;;  %v6501_v24 = vsel %vm1962_vm0, %v13945_v61, %v6500_v37 }
 0x4bc   :  { %9928 = vset.pattern.permute.xlu1 %v10052_v9  ;;  %v6714_v52 = vsel %vm1962_vm0, %v6685_v30, %v6712_v38  ;;  %20337 = vst [vmem:[#allocation473_spill] sm:$0xff] %v14221_v19  ;;  %v14225_v18 = vpop.permute.xlu2 %1821  ;;  %v14232_v27 = vsel %vm1962_vm0, %v14221_v19, %v19691_v53  ;;  %v6733_v19 = vperm.slane %v6725_v13, %v10226_v63 }
 0x4bd   :  { %v14257_v37 = vperm.slane %v6501_v24, %v10152_v4 }
 0x4be   :  { %v1774_v43 = vpop.permute.xlu1 %1773 }
 0x4bf   :  { %v6668_v11 = vrot.slane %v1774_v43, 4  ;;  %20340 = vst [vmem:[#allocation474_spill] sm:$0xff] %v14257_v37 }
 0x4c2   :  { %1941 = vperm.xlu2 %9929, %v11302_v10   ;;  %v6713_v10 = vsel %vm1962_vm0, %v6712_v38, %v6685_v30  ;;  %v6722_v30 = vperm.slane %v6714_v52, %v10226_v63  ;;  %v6746_v38 = vrot.slane %v6733_v19, 4  ;;  %v14265_v52 = vpop.permute.xlu0 %1827 }
 0x4c4   :  { %1923 = vperm.xlu1 %9928, %v20338_v36  }
 0x4c6   :  { %v1786_v62 = vpop.permute.xlu1 %1785 }
 0x4c7   :  { %v6666_v22 = vrot.slane %v1786_v62, 4  ;;  %v6669_v12 = vsel %vm1962_vm0, %v1786_v62, %v6668_v11  ;;  %v14249_v11 = vperm.slane %v6713_v10, %v10226_v63 }
 0x4c8   :  { %v14237_v8 = vperm.slane %v6669_v12, %v10152_v4 }
 0x4c9   :  { %v6667_v36 = vsel %vm1962_vm0, %v6666_v22, %v1774_v43  ;;  %v296_v43 = vperm.slane %v168_v26, 0  ;;  %v6734_v24 = vrot.slane %v14249_v11, 4 }
 0x4ca   :  { %20339 = vst [vmem:[#allocation42_spill] sm:$0xff] %v14237_v8  ;;  %v6673_v14 = vperm.slane %v6667_v36, %v10152_v4  ;;  %v19694_v53 = vrot.slane %v14237_v8, 4  ;;  %9931 = vset.pattern.permute.xlu2 %v10052_v9 }
 0x4cc   :  { %v6690_v62 = vrot.slane %v6673_v14, 4  ;;  %1935 = vperm.xlu1 %9928, %v294_v41   ;;  %v6703_v61 = vsel %vm1962_vm0, %v14237_v8, %v19694_v53  ;;  %v14259_v22 = vpop.permute.xlu2 %1839 }
 0x4cd   :  { %v6711_v9 = vperm.slane %v6703_v61, %v10226_v63  ;;  %v7086_v15 = vrot.slane %v14259_v22, 4  ;;  %v6738_v61 = vrot.slane %v6722_v30, 4 }
 0x4ce   :  { %v6691_v13 = vsel %vm1962_vm0, %v6690_v62, %v6673_v14  ;;  %v6692_v41 = vsel %vm1962_vm0, %v6673_v14, %v6690_v62 }
 0x4cf   :  { %v14268_v12 = vperm.slane %v6691_v13, %v10226_v63  ;;  %v6700_v10 = vperm.slane %v6692_v41, %v10226_v63  ;;  %v7087_v36 = vsel %vm1962_vm0, %v7086_v15, %v14265_v52  ;;  %v14275_v53 = vsel %vm1962_vm0, %v6746_v38, %v6711_v9 }
 0x4d0   :  { %20341 = vst [vmem:[#allocation475_spill] sm:$0xff] %v14275_v53  ;;  %v6748_v54 = vrot.slane %v6711_v9, 4  ;;  %v14278_v14 = vperm.slane %v7087_v36, %v10152_v4  ;;  %v19699_v38 = vrot.slane %v14257_v37, 4 }
 0x4d1   :  { %v14282_v26 = vsel %vm1962_vm0, %v6734_v24, %v14268_v12  ;;  %v14285_v62 = vsel %vm1962_vm0, %v6738_v61, %v6700_v10  ;;  %v6740_v13 = vrot.slane %v6700_v10, 4 }
 0x4d2   :  { %20342 = vst [vmem:[#allocation476_spill] sm:$0xff] %v14278_v14  ;;  %v14288_v41 = vsel %vm1962_vm0, %v6733_v19, %v6748_v54  ;;  %1959 = vperm.xlu2 %9931, %v296_v43   ;;  %v19696_v15 = vrot.slane %v14278_v14, 4  ;;  %v14304_v54 = vperm.slane %v13909_v55, %v10226_v63  ;;  %v20345_v19 = vld [vmem:[#allocation40_spill] sm:$0xff] }
 0x4d3   :  { %20343 = vst [vmem:[#allocation477_spill] sm:$0xff] %v14282_v26  ;;  %v14294_v9 = vsel %vm1962_vm0, %v6722_v30, %v6740_v13  ;;  %v2116_v36 = vrot.slane %v20345_v19, 4  ;;  %v20346_v13 = vld [vmem:[#allocation41_spill] sm:$0xff]  ;;  %v6412_v19 = vrot.slane %v14112_v60, 4 }
 0x4d4   :  { %20344 = vst [vmem:[#allocation478_spill] sm:$0xff] %v14288_v41  ;;  %9930 = vset.pattern.permute.xlu1 %v10038_v1  ;;  %v14300_v24 = vsel %vm1962_vm0, %v14278_v14, %v19696_v15  ;;  %v6535_v1 = vsel %vm1962_vm0, %v14257_v37, %v19699_v38  ;;  %v6578_v61 = vrot.slane %v14304_v54, 4  ;;  %v14328_v41 = vpop.permute.xlu2 %1851 }
 0x4d5   :  { %v14312_v30 = vperm.slane %v6535_v1, %v10226_v63  ;;  %v2117_v15 = vsel %vm1962_vm0, %v20346_v13, %v2116_v36  ;;  %v14325_v1 = vsel %vm1962_vm0, %v14107_v34, %v6412_v19  ;;  %v20349_v36 = vld [vmem:[#allocation93_spill] sm:$0xff]  ;;  %v20350_v13 = vld [vmem:[#allocation26_spill] sm:$0xff]  ;;  %v20352_v19 = vld [vmem:[#allocation92_spill] sm:$0xff] }
 0x4d6   :  { %v1804_v10 = vpop.permute.xlu1 %1803  ;;  %20348 = vst [vmem:[#allocation41_spill] sm:$0xff] %v14325_v1  ;;  %v2032_v60 = vrot.slane %v20350_v13, 4 }
 0x4d7   :  { %v14320_v55 = vsel %vm1962_vm0, %v6578_v61, %v14312_v30  ;;  %v7016_v26 = vrot.slane %v1804_v10, 4  ;;  %v2704_v61 = vrot.slane %v20349_v36, 4  ;;  %v20354_v36 = vld [vmem:[#allocation71_spill] sm:$0xff] }
 0x4d8   :  { %20347 = vst [vmem:[#allocation40_spill] sm:$0xff] %v14320_v55 }
 0x4d9   :  { %v2705_v1 = vsel %vm1962_vm0, %v20352_v19, %v2704_v61  ;;  %v2284_v61 = vrot.slane %v20354_v36, 4 }
 0x4da   :  { %7372 = vrot.lane.b32.xlu2 %v2117_v15, %s10007_s0 }
 0x4dc   :  { %1953 = vperm.xlu1 %9930, %v296_v43  }
 0x4de   :  { %v1816_v14 = vpop.permute.xlu1 %1815 }
 0x4df   :  { %v7014_v38 = vrot.slane %v1816_v14, 4  ;;  %v7017_v37 = vsel %vm1962_vm0, %v1816_v14, %v7016_v26  ;;  %v20353_v14 = vld [vmem:[#allocation23_spill] sm:$0xff] }
 0x4e0   :  { %v14331_v15 = vperm.slane %v7017_v37, %v10152_v4  ;;  %v2033_v37 = vsel %vm1962_vm0, %v20353_v14, %v2032_v60  ;;  %v7036_v60 = vperm.slane %v14232_v27, %v10226_v63 }
 0x4e1   :  { %v7015_v43 = vsel %vm1962_vm0, %v7014_v38, %v1804_v10  ;;  %v2956_v10 = vrot.slane %v11193_v6, 4  ;;  %v20355_v6 = vld [vmem:[#allocation69_spill] sm:$0xff] }
 0x4e2   :  { %v14337_v55 = vperm.slane %v7015_v43, %v10152_v4  ;;  %v19703_v34 = vrot.slane %v14331_v15, 4  ;;  %7378 = vrot.lane.b32.xlu2 %v2705_v1, %s10007_s0 }
 0x4e3   :  { %v2957_v14 = vsel %vm1962_vm0, %v11155_v31, %v2956_v10  ;;  %v3544_v31 = vrot.slane %v11773_v7, 4  ;;  %v4132_v7 = vrot.slane %v12141_v5, 4 }
 0x4e4   :  { %20351 = vst [vmem:[#allocation93_spill] sm:$0xff] %v14337_v55  ;;  %v19702_v26 = vrot.slane %v14337_v55, 4  ;;  %v14350_v38 = vsel %vm1962_vm0, %v14331_v15, %v19703_v34  ;;  %7370 = vrot.lane.b32.xlu1 %v2033_v37, %s10007_s0  ;;  %v14360_v13 = vpop.permute.xlu2 %1869  ;;  %v2285_v37 = vsel %vm1962_vm0, %v20355_v6, %v2284_v61 }
 0x4e6   :  { %v7050_v1 = vsel %vm1962_vm0, %v14337_v55, %v19702_v26 }
 0x4e7   :  { %v7058_v43 = vperm.slane %v7050_v1, %v10226_v63  ;;  %v6752_v1 = vrot.slane %v14225_v18, 4 }
 0x4e9   :  { %v7074_v19 = vrot.slane %v7058_v43, 4 }
 0x4ea   :  { %7384 = vrot.lane.b32.xlu2 %v2957_v14, %s10007_s0  ;;  %v20357_v14 = vld [vmem:[#allocation144_spill] sm:$0xff] }
 0x4eb   :  { %v14370_v26 = vsel %vm1962_vm0, %v7074_v19, %v7036_v60  ;;  %v2872_v61 = vrot.slane %v20357_v14, 4  ;;  %v20359_v14 = vld [vmem:[#allocation103_spill] sm:$0xff] }
 0x4ec   :  { %20356 = vst [vmem:[#allocation26_spill] sm:$0xff] %v14370_v26  ;;  %7376 = vrot.lane.b32.xlu1 %v2285_v37, %s10007_s0  ;;  %v3545_v37 = vsel %vm1962_vm0, %v11790_v45, %v3544_v31  ;;  %v6836_v26 = vrot.slane %v14360_v13, 4  ;;  %v6762_v45 = vrot.slane %v20359_v14, 4 }
 0x4ee   :  { %v1834_v36 = vpop.permute.xlu1 %1833 }
 0x4ef   :  { %v6750_v34 = vrot.slane %v1834_v36, 4  ;;  %v6753_v27 = vsel %vm1962_vm0, %v1834_v36, %v6752_v1  ;;  %v20358_v1 = vld [vmem:[#allocation145_spill] sm:$0xff] }
 0x4f0   :  { %v6761_v55 = vperm.slane %v6753_v27, %v10152_v4  ;;  %v2873_v36 = vsel %vm1962_vm0, %v20358_v1, %v2872_v61  ;;  %v14387_v27 = vpop.permute.xlu2 %1881  ;;  %v20360_v61 = vld [vmem:[#allocation24_spill] sm:$0xff] }
 0x4f1   :  { %v6751_v10 = vsel %vm1962_vm0, %v6750_v34, %v14225_v18  ;;  %v3460_v34 = vrot.slane %v11615_v0, 4  ;;  %v2034_v1 = vrot.slane %v20360_v61, 4  ;;  %v6837_v0 = vsel %vm1962_vm0, %v14387_v27, %v6836_v26 }
 0x4f2   :  { %v6757_v19 = vperm.slane %v6751_v10, %v10152_v4  ;;  %v6785_v6 = vrot.slane %v6761_v55, 4  ;;  %7390 = vrot.lane.b32.xlu2 %v3545_v37, %s10007_s0  ;;  %v6596_v61 = vrot.slane %v14157_v20, 4  ;;  %v4720_v20 = vrot.slane %v12621_v29, 4 }
 0x4f3   :  { %v3461_v37 = vsel %vm1962_vm0, %v11599_v42, %v3460_v34  ;;  %v7076_v34 = vrot.slane %v7036_v60, 4 }
 0x4f4   :  { %v6774_v18 = vrot.slane %v6757_v19, 4  ;;  %7382 = vrot.lane.b32.xlu1 %v2873_v36, %s10007_s0  ;;  %v6787_v10 = vsel %vm1962_vm0, %v6761_v55, %v6785_v6  ;;  %v4133_v36 = vsel %vm1962_vm0, %v12117_v48, %v4132_v7  ;;  %v6786_v42 = vsel %vm1962_vm0, %v6785_v6, %v6761_v55 }
 0x4f5   :  { %v14414_v48 = vperm.slane %v6837_v0, %v10152_v4  ;;  %v14417_v2 = vsel %vm1962_vm0, %v7058_v43, %v7076_v34  ;;  %v6585_v55 = vsel %vm1962_vm0, %v14130_v58, %v6584_v40  ;;  %v6795_v6 = vperm.slane %v6787_v10, %v10226_v63 }
 0x4f6   :  { %v1846_v31 = vpop.permute.xlu1 %1845  ;;  %v6775_v33 = vsel %vm1962_vm0, %v6774_v18, %v6757_v19  ;;  %v6776_v53 = vsel %vm1962_vm0, %v6757_v19, %v6774_v18  ;;  %20361 = vst [vmem:[#allocation92_spill] sm:$0xff] %v14417_v2 }
 0x4f7   :  { %v6763_v5 = vsel %vm1962_vm0, %v6762_v45, %v1846_v31  ;;  %v6764_v8 = vrot.slane %v1846_v31, 4  ;;  %v6780_v18 = vperm.slane %v6775_v33, %v10226_v63  ;;  %v6784_v45 = vperm.slane %v6776_v53, %v10226_v63 }
 0x4f8   :  { %v6769_v32 = vperm.slane %v6763_v5, %v10152_v4  ;;  %v4048_v33 = vrot.slane %v11990_v28, 4  ;;  %v6597_v28 = vsel %vm1962_vm0, %v14150_v16, %v6596_v61  ;;  %v19716_v5 = vrot.slane %v14414_v48, 4 }
 0x4f9   :  { %v6765_v19 = vsel %vm1962_vm0, %v20359_v14, %v6764_v8  ;;  %v14425_v8 = vperm.slane %v6786_v42, %v10226_v63  ;;  %v6820_v40 = vrot.slane %v6780_v18, 4  ;;  %v6824_v14 = vrot.slane %v6784_v45, 4 }
 0x4fa   :  { %v6773_v26 = vperm.slane %v6765_v19, %v10152_v4  ;;  %v6796_v31 = vrot.slane %v6769_v32, 4  ;;  %7396 = vrot.lane.b32.xlu2 %v4133_v36, %s10007_s0  ;;  %v6832_v19 = vrot.slane %v6795_v6, 4 }
 0x4fb   :  { %v6828_v16 = vrot.slane %v14425_v8, 4 }
 0x4fc   :  { %v6798_v53 = vsel %vm1962_vm0, %v6769_v32, %v6796_v31  ;;  %v6807_v60 = vrot.slane %v6773_v26, 4  ;;  %7388 = vrot.lane.b32.xlu1 %v3461_v37, %s10007_s0  ;;  %v6797_v43 = vsel %vm1962_vm0, %v6796_v31, %v6769_v32  ;;  %v1900_v7 = vpop.permute.xlu2 %1899  ;;  %v14449_v31 = vperm.slane %v6597_v28, %v10152_v4 }
 0x4fd   :  { %v6802_v58 = vperm.slane %v6797_v43, %v10226_v63  ;;  %v6806_v29 = vperm.slane %v6798_v53, %v10226_v63  ;;  %v7184_v43 = vrot.slane %v1900_v7, 4 }
 0x4fe   :  { %v6808_v0 = vsel %vm1962_vm0, %v6807_v60, %v6773_v26  ;;  %v6809_v37 = vsel %vm1962_vm0, %v6773_v26, %v6807_v60  ;;  %20362 = vst [vmem:[#allocation23_spill] sm:$0xff] %v14449_v31  ;;  %v4721_v26 = vsel %vm1962_vm0, %v12629_v3, %v4720_v20  ;;  %v4049_v3 = vsel %vm1962_vm0, %v11948_v47, %v4048_v33 }
 0x4ff   :  { %v6821_v32 = vsel %vm1962_vm0, %v6802_v58, %v6820_v40  ;;  %v6818_v36 = vrot.slane %v6802_v58, 4  ;;  %v6822_v10 = vrot.slane %v6806_v29, 4  ;;  %v14440_v42 = vsel %vm1962_vm0, %v6806_v29, %v6824_v14 }
 0x500   :  { %7428 = vrot.lane.b32.xlu0 %v6821_v32, %s10007_s0  ;;  %v14444_v34 = vperm.slane %v6808_v0, %v10226_v63  ;;  %v6817_v61 = vperm.slane %v6809_v37, %v10226_v63  ;;  %v14467_v14 = vperm.slane %v6585_v55, %v10152_v4  ;;  %v7100_v20 = vrot.slane %v14328_v41, 4  ;;  %v20365_v55 = vld [vmem:[#allocation21_spill] sm:$0xff] }
 0x501   :  { %v14454_v53 = vsel %vm1962_vm0, %v6818_v36, %v6780_v18  ;;  %v14457_v60 = vsel %vm1962_vm0, %v6822_v10, %v6784_v45  ;;  %v14480_v45 = vsel %vm1962_vm0, %v14414_v48, %v19716_v5  ;;  %v2035_v28 = vsel %vm1962_vm0, %v2034_v1, %v20365_v55  ;;  %v20373_v5 = vld [vmem:[#allocation146_spill] sm:$0xff] }
 0x502   :  { %20363 = vst [vmem:[#allocation71_spill] sm:$0xff] %v14454_v53  ;;  %v14461_v58 = vsel %vm1962_vm0, %v14444_v34, %v6828_v16  ;;  %v6830_v40 = vrot.slane %v6817_v61, 4  ;;  %v14464_v29 = vsel %vm1962_vm0, %v6817_v61, %v6832_v19  ;;  %7402 = vrot.lane.b32.xlu2 %v4721_v26, %s10007_s0  ;;  %v19713_v37 = vrot.slane %v14449_v31, 4  ;;  %v20374_v53 = vld [vmem:[#allocation328_spill] sm:$0xff] }
 0x503   :  { %20364 = vst [vmem:[#allocation69_spill] sm:$0xff] %v14467_v14  ;;  %v19712_v36 = vrot.slane %v14467_v14, 4  ;;  %v4972_v26 = vrot.slane %v12993_v51, 4 }
 0x504   :  { %7394 = vrot.lane.b32.xlu1 %v4049_v3, %s10007_s0  ;;  %v14474_v18 = vsel %vm1962_vm0, %v6830_v40, %v6795_v6  ;;  %v1912_v0 = vpop.permute.xlu2 %1911  ;;  %v4300_v6 = vrot.slane %v12502_v25, 4 }
 0x505   :  { %v7182_v33 = vrot.slane %v1912_v0, 4  ;;  %v7185_v32 = vsel %vm1962_vm0, %v1912_v0, %v7184_v43  ;;  %v20368_v43 = vld [vmem:[#allocation75_spill] sm:$0xff]  ;;  %v4973_v51 = vsel %vm1962_vm0, %v12984_v17, %v4972_v26 }
 0x506   :  { %v1864_v47 = vpop.permute.xlu1 %1863  ;;  %v14491_v61 = vperm.slane %v7185_v32, %v10152_v4  ;;  %v2286_v25 = vrot.slane %v20368_v43, 4  ;;  %v4301_v55 = vsel %vm1962_vm0, %v12488_v46, %v4300_v6  ;;  %v6619_v46 = vsel %vm1962_vm0, %v14467_v14, %v19712_v36  ;;  %v20369_v43 = vld [vmem:[#allocation72_spill] sm:$0xff]  ;;  %v20370_v36 = vld [vmem:[#allocation329_spill] sm:$0xff] }
 0x507   :  { %v7098_v10 = vrot.slane %v1864_v47, 4  ;;  %v7101_v16 = vsel %vm1962_vm0, %v1864_v47, %v7100_v20  ;;  %v7183_v1 = vsel %vm1962_vm0, %v7182_v33, %v1900_v7  ;;  %v14530_v33 = vpop.permute.xlu0 %1887 }
 0x508   :  { %20366 = vst [vmem:[#allocation144_spill] sm:$0xff] %v14491_v61  ;;  %v14494_v19 = vperm.slane %v7101_v16, %v10152_v4  ;;  %7498 = vrot.lane.b32.xlu0 %v2035_v28, %s10008_s13  ;;  %v7189_v3 = vperm.slane %v7183_v1, %v10152_v4  ;;  %v19711_v20 = vrot.slane %v14491_v61, 4 }
 0x509   :  { %v7099_v40 = vsel %vm1962_vm0, %v7098_v10, %v14328_v41  ;;  %v6641_v41 = vsel %vm1962_vm0, %v14449_v31, %v19713_v37  ;;  %v7170_v10 = vrot.slane %v14530_v33, 4  ;;  %v4888_v37 = vrot.slane %v20370_v36, 4 }
 0x50a   :  { %20367 = vst [vmem:[#allocation145_spill] sm:$0xff] %v14494_v19  ;;  %v14507_v0 = vperm.slane %v7099_v40, %v10152_v4  ;;  %v19714_v28 = vrot.slane %v14494_v19, 4  ;;  %v7216_v7 = vrot.slane %v7189_v3, 4  ;;  %v14520_v47 = vsel %vm1962_vm0, %v14491_v61, %v19711_v20  ;;  %7408 = vrot.lane.b32.xlu2 %v4973_v51, %s10007_s0 }
 0x50b   :  { %v14528_v17 = vperm.slane %v6641_v41, %v10226_v63  ;;  %v2287_v40 = vsel %vm1962_vm0, %v2286_v25, %v20369_v43  ;;  %v5560_v51 = vrot.slane %v13376_v56, 4 }
 0x50c   :  { %v19715_v32 = vrot.slane %v14507_v0, 4  ;;  %v14537_v6 = vsel %vm1962_vm0, %v14494_v19, %v19714_v28  ;;  %7400 = vrot.lane.b32.xlu1 %v4301_v55, %s10007_s0  ;;  %v7218_v16 = vsel %vm1962_vm0, %v7189_v3, %v7216_v7  ;;  %v14553_v55 = vperm.slane %v6619_v46, %v10226_v63  ;;  %v20392_v19 = vld [vmem:[#allocation108_spill] sm:$0xff] }
 0x50d   :  { %v6662_v1 = vrot.slane %v14528_v17, 4  ;;  %v7226_v25 = vperm.slane %v7218_v16, %v10226_v63  ;;  %v14570_v46 = vperm.slane %v14300_v24, %v10226_v63  ;;  %v2874_v16 = vrot.slane %v20373_v5, 4  ;;  %v20375_v24 = vld [vmem:[#allocation104_spill] sm:$0xff] }
 0x50e   :  { %v14543_v26 = vpop.permute.xlu1 %1875  ;;  %v7134_v41 = vsel %vm1962_vm0, %v14507_v0, %v19715_v32  ;;  %v20372_v32 = vld [vmem:[#allocation25_spill] sm:$0xff] }
 0x50f   :  { %v7171_v20 = vsel %vm1962_vm0, %v7170_v10, %v14543_v26  ;;  %v14559_v28 = vperm.slane %v7134_v41, %v10226_v63  ;;  %v14566_v43 = vsel %vm1962_vm0, %v6662_v1, %v14553_v55  ;;  %v5561_v41 = vsel %vm1962_vm0, %v20372_v32, %v5560_v51 }
 0x510   :  { %v7177_v56 = vperm.slane %v7171_v20, %v10152_v4  ;;  %7504 = vrot.lane.b32.xlu0 %v2287_v40, %s10008_s13  ;;  %20371 = vst [vmem:[#allocation103_spill] sm:$0xff] %v14566_v43  ;;  %v4889_v20 = vsel %vm1962_vm0, %v20374_v53, %v4888_v37  ;;  %v7242_v40 = vrot.slane %v7226_v25, 4  ;;  %v6920_v43 = vrot.slane %v20375_v24, 4 }
 0x511   :  { %v7158_v10 = vrot.slane %v14559_v28, 4  ;;  %v7217_v32 = vsel %vm1962_vm0, %v7216_v7, %v7189_v3 }
 0x512   :  { %v7194_v36 = vrot.slane %v7177_v56, 4  ;;  %7414 = vrot.lane.b32.xlu2 %v5561_v41, %s10007_s0  ;;  %v20376_v41 = vld [vmem:[#allocation143_spill] sm:$0xff]  ;;  %v14603_v3 = vperm.slane %v7217_v32, %v10226_v63 }
 0x513   :  { %v14581_v1 = vsel %vm1962_vm0, %v7158_v10, %v14570_v46  ;;  %v2875_v14 = vsel %vm1962_vm0, %v2874_v16, %v20376_v41  ;;  %v20380_v41 = vld [vmem:[#allocation439_spill] sm:$0xff] }
 0x514   :  { %7406 = vrot.lane.b32.xlu1 %v4889_v20, %s10007_s0  ;;  %v7195_v61 = vsel %vm1962_vm0, %v7194_v36, %v7177_v56  ;;  %v7196_v5 = vsel %vm1962_vm0, %v7177_v56, %v7194_v36  ;;  %v14588_v51 = vpop.permute.xlu2 %1929  ;;  %v6580_v20 = vrot.slane %v14312_v30, 4  ;;  %v20377_v56 = vld [vmem:[#allocation442_spill] sm:$0xff] }
 0x515   :  { %v14591_v53 = vperm.slane %v7195_v61, %v10226_v63  ;;  %v7204_v37 = vperm.slane %v7196_v5, %v10226_v63  ;;  %v6921_v10 = vsel %vm1962_vm0, %v14588_v51, %v6920_v43  ;;  %v6148_v43 = vrot.slane %v20377_v56, 4  ;;  %v20379_v5 = vld [vmem:[#allocation383_spill] sm:$0xff] }
 0x516   :  { %v14600_v31 = vperm.slane %v6921_v10, %v10152_v4  ;;  %v14613_v16 = vsel %vm1962_vm0, %v14304_v54, %v6580_v20  ;;  %v5476_v10 = vrot.slane %v20379_v5, 4  ;;  %v20382_v20 = vld [vmem:[#allocation201_spill] sm:$0xff] }
 0x517   :  { %v7240_v7 = vrot.slane %v14591_v53, 4  ;;  %v14607_v61 = vsel %vm1962_vm0, %v7242_v40, %v7204_v37  ;;  %v7244_v36 = vrot.slane %v7204_v37, 4  ;;  %20378 = vst [vmem:[#allocation24_spill] sm:$0xff] %v14613_v16  ;;  %v6834_v40 = vrot.slane %v14387_v27, 4  ;;  %v20381_v37 = vld [vmem:[#allocation78_spill] sm:$0xff]  ;;  %v1948_v27 = vpop.permute.xlu0 %1947  ;;  %v20386_v16 = vld [vmem:[#allocation421_spill] sm:$0xff] }
 0x518   :  { %7510 = vrot.lane.b32.xlu0 %v2875_v14, %s10008_s13  ;;  %v6149_v14 = vsel %vm1962_vm0, %v20380_v41, %v6148_v43  ;;  %v5477_v54 = vsel %vm1962_vm0, %v20381_v37, %v5476_v10  ;;  %v3462_v30 = vrot.slane %v20382_v20, 4  ;;  %v20383_v5 = vrot.slane %v14600_v31, 4  ;;  %v20384_v10 = vld [vmem:[#allocation200_spill] sm:$0xff]  ;;  %v20385_v37 = vld [vmem:[#allocation423_spill] sm:$0xff] }
 0x519   :  { %v14619_v32 = vsel %vm1962_vm0, %v14603_v3, %v7240_v7  ;;  %v14625_v56 = vsel %vm1962_vm0, %v7226_v25, %v7244_v36  ;;  %v6835_v25 = vsel %vm1962_vm0, %v6834_v40, %v14360_v13  ;;  %v6736_v36 = vrot.slane %v14268_v12, 4  ;;  %v20387_v40 = vld [vmem:[#allocation241_spill] sm:$0xff] }
 0x51a   :  { %7420 = vrot.lane.b32.xlu2 %v6149_v14, %s10007_s0  ;;  %v14635_v7 = vsel %vm1962_vm0, %v14600_v31, %v20383_v5  ;;  %v3463_v41 = vsel %vm1962_vm0, %v3462_v30, %v20384_v10  ;;  %v6841_v14 = vperm.slane %v6835_v25, %v10152_v4  ;;  %v6064_v20 = vrot.slane %v20385_v37, 4 }
 0x51b   :  { %v7004_v5 = vrot.slane %v14095_v35, 4  ;;  %v4050_v30 = vrot.slane %v20387_v40, 4 }
 0x51c   :  { %7412 = vrot.lane.b32.xlu1 %v5477_v54, %s10007_s0  ;;  %v6737_v54 = vsel %vm1962_vm0, %v14249_v11, %v6736_v36  ;;  %v6065_v13 = vsel %vm1962_vm0, %v20386_v16, %v6064_v20  ;;  %v14652_v12 = vpop.permute.xlu2 %1941  ;;  %v6858_v10 = vrot.slane %v6841_v14, 4  ;;  %v20388_v36 = vld [vmem:[#allocation240_spill] sm:$0xff]  ;;  %v6316_v20 = vrot.slane %v14065_v44, 4 }
 0x51d   :  { %v4051_v16 = vsel %vm1962_vm0, %v4050_v30, %v20388_v36  ;;  %v6879_v30 = vperm.slane %v14480_v45, %v10226_v63 }
 0x51e   :  { %v1894_v43 = vpop.permute.xlu1 %1893 }
 0x51f   :  { %v6848_v25 = vrot.slane %v1894_v43, 4 }
 0x520   :  { %7516 = vrot.lane.b32.xlu0 %v3463_v41, %s10008_s13  ;;  %v7005_v41 = vsel %vm1962_vm0, %v14147_v57, %v7004_v5 }
 0x521   :  { %v7013_v57 = vperm.slane %v7005_v41, %v10152_v4  ;;  %v20391_v41 = vld [vmem:[#allocation295_spill] sm:$0xff] }
 0x522   :  { %7426 = vrot.lane.b32.xlu2 %v6737_v54, %s10007_s0  ;;  %v14662_v54 = vpop.permute.xlu0 %7374 }
 0x523   :  { %20389 = vst [vmem:[#allocation21_spill] sm:$0xff] %v14662_v54 }
 0x524   :  { %7418 = vrot.lane.b32.xlu1 %v6065_v13, %s10007_s0  ;;  %v7160_v13 = vrot.slane %v14570_v46, 4  ;;  %v6317_v46 = vsel %vm1962_vm0, %v14028_v23, %v6316_v20  ;;  %v6916_v20 = vrot.slane %v6879_v30, 4 }
 0x526   :  { %v1906_v35 = vpop.permute.xlu1 %1905  ;;  %v14679_v36 = vsel %vm1962_vm0, %v14559_v28, %v7160_v13 }
 0x527   :  { %v6846_v37 = vrot.slane %v1906_v35, 4  ;;  %v6849_v11 = vsel %vm1962_vm0, %v1906_v35, %v6848_v25  ;;  %v6860_v25 = vsel %vm1962_vm0, %v6841_v14, %v6858_v10  ;;  %20390 = vst [vmem:[#allocation75_spill] sm:$0xff] %v14679_v36 }
 0x528   :  { %v14665_v40 = vperm.slane %v6849_v11, %v10152_v4  ;;  %7522 = vrot.lane.b32.xlu0 %v4051_v16, %s10008_s13  ;;  %v6859_v11 = vsel %vm1962_vm0, %v6858_v10, %v6841_v14  ;;  %v14690_v14 = vperm.slane %v6860_v25, %v10226_v63  ;;  %v7037_v10 = vrot.slane %v7013_v57, 4 }
 0x529   :  { %v6847_v5 = vsel %vm1962_vm0, %v6846_v37, %v1894_v43  ;;  %v4302_v43 = vrot.slane %v20391_v41, 4  ;;  %v7268_v37 = vrot.slane %v1948_v27, 4  ;;  %v6864_v13 = vperm.slane %v6859_v11, %v10226_v63 }
 0x52a   :  { %v6853_v44 = vperm.slane %v6847_v5, %v10152_v4  ;;  %v19723_v35 = vrot.slane %v14665_v40, 4 }
 0x52b   :  { %v4303_v25 = vsel %vm1962_vm0, %v4302_v43, %v20392_v19  ;;  %v6904_v43 = vrot.slane %v6864_v13, 4 }
 0x52c   :  { %v6893_v45 = vsel %vm1962_vm0, %v14665_v40, %v19723_v35  ;;  %7424 = vrot.lane.b32.xlu1 %v6317_v46, %s10007_s0  ;;  %v6880_v16 = vrot.slane %v6853_v44, 4  ;;  %v1960_v28 = vpop.permute.xlu2 %1959 }
 0x52d   :  { %v6901_v23 = vperm.slane %v6893_v45, %v10226_v63  ;;  %v7266_v5 = vrot.slane %v1960_v28, 4  ;;  %v7269_v41 = vsel %vm1962_vm0, %v1960_v28, %v7268_v37  ;;  %v6908_v37 = vrot.slane %v14690_v14, 4 }
 0x52e   :  { %v6881_v54 = vsel %vm1962_vm0, %v6880_v16, %v6853_v44  ;;  %v6882_v35 = vsel %vm1962_vm0, %v6853_v44, %v6880_v16  ;;  %v14698_v46 = vperm.slane %v7269_v41, %v10152_v4 }
 0x52f   :  { %v6886_v36 = vperm.slane %v6881_v54, %v10226_v63  ;;  %v14704_v11 = vperm.slane %v6882_v35, %v10226_v63  ;;  %v7267_v45 = vsel %vm1962_vm0, %v7266_v5, %v1948_v27  ;;  %v6914_v28 = vrot.slane %v6901_v23, 4  ;;  %v14717_v35 = vpop.permute.xlu0 %7380 }
 0x530   :  { %7528 = vrot.lane.b32.xlu0 %v4303_v25, %s10008_s13  ;;  %v14710_v44 = vsel %vm1962_vm0, %v6901_v23, %v6916_v20  ;;  %v14713_v16 = vperm.slane %v7267_v45, %v10152_v4  ;;  %v19726_v19 = vrot.slane %v14698_v46, 4  ;;  %v7038_v54 = vsel %vm1962_vm0, %v7037_v10, %v7013_v57  ;;  %20393 = vst [vmem:[#allocation72_spill] sm:$0xff] %v14717_v35  ;;  %v20394_v35 = vld [vmem:[#allocation332_spill] sm:$0xff] }
 0x531   :  { %v6902_v41 = vrot.slane %v6886_v36, 4  ;;  %v14721_v27 = vsel %vm1962_vm0, %v14704_v11, %v6908_v37  ;;  %v14724_v5 = vsel %vm1962_vm0, %v6914_v28, %v6879_v30  ;;  %v7039_v23 = vsel %vm1962_vm0, %v7013_v57, %v7037_v10 }
 0x532   :  { %v19727_v20 = vrot.slane %v14713_v16, 4  ;;  %v14732_v25 = vsel %vm1962_vm0, %v14698_v46, %v19726_v19  ;;  %v6905_v45 = vsel %vm1962_vm0, %v6886_v36, %v6904_v43  ;;  %v4890_v2 = vrot.slane %v20394_v35, 4  ;;  %v20398_v35 = vld [vmem:[#allocation330_spill] sm:$0xff] }
 0x533   :  { %v20395_v37 = vrot.slane %v14331_v15, 4  ;;  %v14742_v57 = vsel %vm1962_vm0, %v6902_v41, %v6864_v13  ;;  %v14749_v28 = vperm.slane %v7038_v54, %v10226_v63  ;;  %v7047_v36 = vperm.slane %v7039_v23, %v10226_v63  ;;  %v20400_v19 = vld [vmem:[#allocation382_spill] sm:$0xff] }
 0x534   :  { %7430 = vrot.lane.b32.xlu1 %v6905_v45, %s10007_s0  ;;  %20396 = vst [vmem:[#allocation329_spill] sm:$0xff] %v14742_v57  ;;  %v7302_v10 = vsel %vm1962_vm0, %v14713_v16, %v19727_v20  ;;  %v7069_v41 = vperm.slane %v14350_v38, %v10226_v63  ;;  %v5478_v23 = vrot.slane %v20400_v19, 4  ;;  %v20405_v57 = vld [vmem:[#allocation136_spill] sm:$0xff] }
 0x535   :  { %v7060_v30 = vsel %vm1962_vm0, %v20395_v37, %v14331_v15  ;;  %20397 = vst [vmem:[#allocation25_spill] sm:$0xff] %v14749_v28  ;;  %v4891_v15 = vsel %vm1962_vm0, %v4890_v2, %v20398_v35  ;;  %v7080_v13 = vrot.slane %v14749_v28, 4  ;;  %v7084_v37 = vrot.slane %v7047_v36, 4  ;;  %v20403_v35 = vld [vmem:[#allocation46_spill] sm:$0xff] }
 0x536   :  { %v14752_v43 = vpop.permute.xlu1 %1923  ;;  %v14757_v45 = vperm.slane %v7060_v30, %v10226_v63  ;;  %v7082_v2 = vrot.slane %v7069_v41, 4  ;;  %v5479_v19 = vsel %vm1962_vm0, %v5478_v23, %v20405_v57  ;;  %v6664_v23 = vrot.slane %v14553_v55, 4 }
 0x537   :  { %v14763_v54 = vpop.permute.xlu0 %7386  ;;  %v14771_v30 = vsel %vm1962_vm0, %v7069_v41, %v7084_v37  ;;  %v6318_v55 = vrot.slane %v14083_v59, 4 }
 0x538   :  { %7534 = vrot.lane.b32.xlu0 %v4891_v15, %s10008_s13  ;;  %20399 = vst [vmem:[#allocation146_spill] sm:$0xff] %v14763_v54  ;;  %v14768_v20 = vsel %vm1962_vm0, %v14757_v45, %v7080_v13  ;;  %v14776_v15 = vsel %vm1962_vm0, %v7082_v2, %v7047_v36  ;;  %v6918_v13 = vrot.slane %v14588_v51, 4  ;;  %v20407_v36 = vld [vmem:[#allocation422_spill] sm:$0xff] }
 0x539   :  { %20401 = vst [vmem:[#allocation328_spill] sm:$0xff] %v14768_v20  ;;  %v6066_v2 = vrot.slane %v20407_v36, 4 }
 0x53a   :  { %20402 = vst [vmem:[#allocation104_spill] sm:$0xff] %v14771_v30  ;;  %v7310_v30 = vperm.slane %v7302_v10, %v10226_v63  ;;  %v6919_v51 = vsel %vm1962_vm0, %v6918_v13, %v20375_v24  ;;  %v14813_v24 = vsel %vm1962_vm0, %v14528_v17, %v6664_v23  ;;  %v6319_v17 = vsel %vm1962_vm0, %v6318_v55, %v14068_v49 }
 0x53b   :  { %20404 = vst [vmem:[#allocation143_spill] sm:$0xff] %v14776_v15  ;;  %v20408_v15 = vld [vmem:[#allocation97_spill] sm:$0xff]  ;;  %v7088_v55 = vrot.slane %v14265_v52, 4 }
 0x53c   :  { %7500 = vrot.lane.b32.xlu1 %v20403_v35, %s10008_s13  ;;  %v7326_v36 = vrot.slane %v7310_v30, 4  ;;  %20410 = vst [vmem:[#allocation383_spill] sm:$0xff] %v14813_v24  ;;  %v14840_v24 = vpop.permute.xlu2 %7372 }
 0x53d   :  { %20414 = vst [vmem:[#allocation201_spill] sm:$0xff] %v14840_v24 }
 0x53e   :  { %v14778_v38 = vpop.permute.xlu1 %1935 }
 0x53f   :  { %v7254_v54 = vrot.slane %v14778_v38, 4  ;;  %v14787_v37 = vpop.permute.xlu0 %7392 }
 0x540   :  { %7540 = vrot.lane.b32.xlu0 %v5479_v19, %s10008_s13  ;;  %20406 = vst [vmem:[#allocation442_spill] sm:$0xff] %v14787_v37  ;;  %v20409_v19 = vld [vmem:[#allocation419_spill] sm:$0xff] }
 0x541   :  { %v7255_v41 = vsel %vm1962_vm0, %v7254_v54, %v14752_v43 }
 0x542   :  { %v14790_v35 = vperm.slane %v7255_v41, %v10152_v4  ;;  %v6067_v41 = vsel %vm1962_vm0, %v6066_v2, %v20409_v19 }
 0x544   :  { %7506 = vrot.lane.b32.xlu1 %v20408_v15, %s10008_s13  ;;  %v19728_v57 = vrot.slane %v14790_v35, 4  ;;  %v14808_v15 = vperm.slane %v6919_v51, %v10152_v4  ;;  %v6932_v51 = vrot.slane %v14652_v12, 4 }
 0x546   :  { %v7280_v54 = vsel %vm1962_vm0, %v14790_v35, %v19728_v57  ;;  %v19729_v2 = vrot.slane %v14808_v15, 4 }
 0x547   :  { %v7288_v10 = vperm.slane %v7280_v54, %v10226_v63  ;;  %v14818_v57 = vpop.permute.xlu0 %7398  ;;  %v20412_v54 = vld [vmem:[#allocation151_spill] sm:$0xff] }
 0x548   :  { %7546 = vrot.lane.b32.xlu0 %v6067_v41, %s10008_s13  ;;  %20411 = vst [vmem:[#allocation439_spill] sm:$0xff] %v14818_v57  ;;  %v6943_v59 = vsel %vm1962_vm0, %v19729_v2, %v14808_v15  ;;  %v7089_v2 = vsel %vm1962_vm0, %v14259_v22, %v7088_v55 }
 0x549   :  { %v14816_v13 = vsel %vm1962_vm0, %v7326_v36, %v7288_v10  ;;  %v14871_v24 = vperm.slane %v7089_v2, %v10152_v4  ;;  %v7172_v2 = vrot.slane %v14543_v26, 4  ;;  %v20423_v26 = vld [vmem:[#allocation44_spill] sm:$0xff] }
 0x54b   :  { %20417 = vst [vmem:[#allocation423_spill] sm:$0xff] %v14871_v24 }
 0x54c   :  { %7512 = vrot.lane.b32.xlu1 %v20412_v54, %s10008_s13 }
 0x54e   :  { %v1954_v19 = vpop.permute.xlu1 %1953 }
 0x54f   :  { %v6930_v41 = vrot.slane %v1954_v19, 4  ;;  %v6933_v20 = vsel %vm1962_vm0, %v1954_v19, %v6932_v51  ;;  %v14838_v54 = vpop.permute.xlu0 %7404  ;;  %v6906_v19 = vrot.slane %v14704_v11, 4 }
 0x550   :  { %v14829_v23 = vperm.slane %v6933_v20, %v10152_v4  ;;  %7552 = vrot.lane.b32.xlu0 %v6319_v17, %s10008_s13  ;;  %20413 = vst [vmem:[#allocation78_spill] sm:$0xff] %v14838_v54  ;;  %v6963_v20 = vperm.slane %v14635_v7, %v10226_v63  ;;  %v6948_v17 = vperm.slane %v6943_v59, %v10226_v63 }
 0x551   :  { %v6931_v36 = vsel %vm1962_vm0, %v6930_v41, %v14652_v12  ;;  %v20415_v41 = vld [vmem:[#allocation223_spill] sm:$0xff] }
 0x552   :  { %v14843_v51 = vperm.slane %v6931_v36, %v10152_v4  ;;  %v19730_v49 = vrot.slane %v14829_v23, 4  ;;  %v7000_v59 = vrot.slane %v6963_v20, 4  ;;  %v6988_v37 = vrot.slane %v6948_v17, 4 }
 0x554   :  { %v6977_v12 = vsel %vm1962_vm0, %v14829_v23, %v19730_v49  ;;  %7518 = vrot.lane.b32.xlu1 %v20415_v41, %s10008_s13  ;;  %v19731_v36 = vrot.slane %v14843_v51, 4  ;;  %v6907_v49 = vsel %vm1962_vm0, %v6906_v19, %v14690_v14  ;;  %v7328_v19 = vrot.slane %v7288_v10, 4 }
 0x555   :  { %v6985_v7 = vperm.slane %v6977_v12, %v10226_v63  ;;  %v7173_v10 = vsel %vm1962_vm0, %v14530_v33, %v7172_v2  ;;  %v20426_v33 = vld [vmem:[#allocation47_spill] sm:$0xff] }
 0x556   :  { %v14861_v52 = vpop.permute.xlu1 %7370  ;;  %v6965_v11 = vsel %vm1962_vm0, %v19731_v36, %v14843_v51 }
 0x557   :  { %20416 = vst [vmem:[#allocation200_spill] sm:$0xff] %v14861_v52  ;;  %v6970_v41 = vperm.slane %v6965_v11, %v10226_v63  ;;  %v6998_v22 = vrot.slane %v6985_v7, 4  ;;  %v14875_v55 = vsel %vm1962_vm0, %v6985_v7, %v7000_v59  ;;  %v14878_v36 = vpop.permute.xlu0 %7410  ;;  %v14889_v7 = vpop.permute.xlu2 %7378  ;;  %v14894_v59 = vsel %vm1962_vm0, %v7310_v30, %v7328_v19  ;;  %v20427_v19 = vld [vmem:[#allocation15_spill] sm:$0xff] }
 0x558   :  { %7558 = vrot.lane.b32.xlu0 %v6907_v49, %s10008_s13  ;;  %20418 = vst [vmem:[#allocation421_spill] sm:$0xff] %v14878_v36  ;;  %v19732_v49 = vrot.slane %v14871_v24, 4  ;;  %v20549_v36 = vld [vmem:[#allocation424_spill] sm:$0xff] }
 0x559   :  { %v6989_v12 = vsel %vm1962_vm0, %v6970_v41, %v6988_v37  ;;  %v6986_v52 = vrot.slane %v6970_v41, 4  ;;  %v14882_v14 = vsel %vm1962_vm0, %v6998_v22, %v6963_v20  ;;  %20420 = vst [vmem:[#allocation240_spill] sm:$0xff] %v14889_v7  ;;  %v20421_v37 = vld [vmem:[#allocation261_spill] sm:$0xff]  ;;  %v20470_v7 = vld [vmem:[#allocation119_spill] sm:$0xff] }
 0x55a   :  { %7432 = vrot.lane.b32.xlu2 %v6989_v12, %s10007_s0  ;;  %v7123_v20 = vsel %vm1962_vm0, %v14871_v24, %v19732_v49 }
 0x55b   :  { %v14886_v11 = vsel %vm1962_vm0, %v6986_v52, %v6948_v17  ;;  %v14908_v17 = vperm.slane %v14537_v6, %v10226_v63  ;;  %v14913_v52 = vperm.slane %v7173_v10, %v10152_v4  ;;  %v14918_v22 = vperm.slane %v7123_v20, %v10226_v63 }
 0x55c   :  { %20419 = vst [vmem:[#allocation241_spill] sm:$0xff] %v14886_v11  ;;  %7524 = vrot.lane.b32.xlu1 %v20421_v37, %s10008_s13  ;;  %v14936_v20 = vperm.slane %v14520_v47, %v10226_v63  ;;  %v20446_v11 = vld [vmem:[#allocation239_spill] sm:$0xff] }
 0x55d   :  { %20425 = vst [vmem:[#allocation332_spill] sm:$0xff] %v14913_v52  ;;  %v7166_v12 = vrot.slane %v14908_v17, 4  ;;  %v19733_v10 = vrot.slane %v14913_v52, 4 }
 0x55e   :  { %v14896_v41 = vpop.permute.xlu1 %7376 }
 0x55f   :  { %20422 = vst [vmem:[#allocation295_spill] sm:$0xff] %v14896_v41  ;;  %v14910_v30 = vpop.permute.xlu0 %7416  ;;  %v14925_v6 = vsel %vm1962_vm0, %v7166_v12, %v14918_v22  ;;  %v14927_v2 = vpop.permute.xlu2 %7384  ;;  %v7207_v12 = vsel %vm1962_vm0, %v14913_v52, %v19733_v10  ;;  %v20438_v41 = vld [vmem:[#allocation155_spill] sm:$0xff]  ;;  %v20441_v52 = vld [vmem:[#allocation388_spill] sm:$0xff] }
 0x560   :  { %7628 = vrot.lane.b32.xlu0 %v20423_v26, %s10009_s14  ;;  %20424 = vst [vmem:[#allocation108_spill] sm:$0xff] %v14910_v30  ;;  %v20431_v26 = vld [vmem:[#allocation94_spill] sm:$0xff]  ;;  %v14947_v49 = vperm.slane %v7207_v12, %v10226_v63  ;;  %v20440_v12 = vld [vmem:[#allocation180_spill] sm:$0xff] }
 0x561   :  { %20428 = vst [vmem:[#allocation330_spill] sm:$0xff] %v14925_v6  ;;  %v7250_v6 = vrot.slane %v14936_v20, 4 }
 0x562   :  { %7502 = vrot.lane.b32.xlu2 %v20426_v33, %s10008_s13  ;;  %20429 = vst [vmem:[#allocation382_spill] sm:$0xff] %v14927_v2 }
 0x563   :  { %v14954_v47 = vsel %vm1962_vm0, %v7250_v6, %v14947_v49  ;;  %v20443_v6 = vld [vmem:[#allocation221_spill] sm:$0xff] }
 0x564   :  { %7530 = vrot.lane.b32.xlu1 %v20427_v19, %s10008_s13  ;;  %v20433_v19 = vld [vmem:[#allocation122_spill] sm:$0xff]  ;;  %20435 = vst [vmem:[#allocation422_spill] sm:$0xff] %v14954_v47 }
 0x566   :  { %v14929_v37 = vpop.permute.xlu1 %7382 }
 0x567   :  { %20430 = vst [vmem:[#allocation46_spill] sm:$0xff] %v14929_v37  ;;  %v14938_v33 = vpop.permute.xlu0 %7422 }
 0x568   :  { %7634 = vrot.lane.b32.xlu0 %v20431_v26, %s10009_s14  ;;  %20432 = vst [vmem:[#allocation136_spill] sm:$0xff] %v14938_v33  ;;  %v20434_v26 = vld [vmem:[#allocation347_spill] sm:$0xff] }
 0x56a   :  { %7508 = vrot.lane.b32.xlu2 %v20433_v19, %s10008_s13  ;;  %v14958_v19 = vpop.permute.xlu2 %7390 }
 0x56b   :  { %20437 = vst [vmem:[#allocation419_spill] sm:$0xff] %v14958_v19 }
 0x56c   :  { %7536 = vrot.lane.b32.xlu1 %v20434_v26, %s10008_s13 }
 0x56e   :  { %v14956_v37 = vpop.permute.xlu1 %7388 }
 0x56f   :  { %20436 = vst [vmem:[#allocation97_spill] sm:$0xff] %v14956_v37 }
 0x570   :  { %7640 = vrot.lane.b32.xlu0 %v20438_v41, %s10009_s14  ;;  %v20447_v41 = vld [vmem:[#allocation446_spill] sm:$0xff] }
 0x572   :  { %v14962_v10 = vpop.permute.xlu0 %7428  ;;  %7514 = vrot.lane.b32.xlu2 %v20440_v12, %s10008_s13  ;;  %v14972_v47 = vpop.permute.xlu2 %7396  ;;  %v20448_v12 = vld [vmem:[#allocation263_spill] sm:$0xff] }
 0x573   :  { %20439 = vst [vmem:[#allocation151_spill] sm:$0xff] %v14962_v10 }
 0x574   :  { %7542 = vrot.lane.b32.xlu1 %v20441_v52, %s10008_s13  ;;  %20444 = vst [vmem:[#allocation261_spill] sm:$0xff] %v14972_v47  ;;  %v20449_v52 = vrot.slane %v14843_v51, 4 }
 0x576   :  { %v14968_v26 = vpop.permute.xlu1 %7394 }
 0x577   :  { %20442 = vst [vmem:[#allocation223_spill] sm:$0xff] %v14968_v26 }
 0x578   :  { %7646 = vrot.lane.b32.xlu0 %v20443_v6, %s10009_s14  ;;  %v6966_v6 = vsel %vm1962_vm0, %v14843_v51, %v20449_v52  ;;  %v20454_v52 = vld [vmem:[#allocation64_spill] sm:$0xff] }
 0x57a   :  { %v14974_v37 = vpop.permute.xlu0 %7498  ;;  %7520 = vrot.lane.b32.xlu2 %v20446_v11, %s10008_s13  ;;  %v6974_v11 = vperm.slane %v6966_v6, %v10226_v63  ;;  %v14993_v33 = vpop.permute.xlu2 %7402  ;;  %v20456_v6 = vld [vmem:[#allocation308_spill] sm:$0xff] }
 0x57b   :  { %20445 = vst [vmem:[#allocation44_spill] sm:$0xff] %v14974_v37  ;;  %v20451_v37 = vld [vmem:[#allocation277_spill] sm:$0xff] }
 0x57c   :  { %7548 = vrot.lane.b32.xlu1 %v20447_v41, %s10008_s13  ;;  %20452 = vst [vmem:[#allocation15_spill] sm:$0xff] %v14993_v33  ;;  %v6990_v51 = vrot.slane %v6974_v11, 4 }
 0x57e   :  { %v14980_v10 = vpop.permute.xlu1 %7400 }
 0x580   :  { %7652 = vrot.lane.b32.xlu0 %v20448_v12, %s10009_s14  ;;  %v20453_v12 = vrot.slane %v14808_v15, 4 }
 0x582   :  { %v14988_v26 = vpop.permute.xlu0 %7504  ;;  %7526 = vrot.lane.b32.xlu2 %v20451_v37, %s10008_s13  ;;  %v6944_v30 = vsel %vm1962_vm0, %v14808_v15, %v20453_v12  ;;  %v15015_v12 = vpop.permute.xlu2 %7408 }
 0x583   :  { %20450 = vst [vmem:[#allocation47_spill] sm:$0xff] %v14988_v26  ;;  %v6952_v37 = vperm.slane %v6944_v30, %v10226_v63 }
 0x584   :  { %7554 = vrot.lane.b32.xlu1 %v14285_v62, %s10008_s13  ;;  %v7256_v62 = vrot.slane %v14752_v43, 4  ;;  %20457 = vst [vmem:[#allocation122_spill] sm:$0xff] %v15015_v12  ;;  %v20462_v43 = vld [vmem:[#allocation369_spill] sm:$0xff] }
 0x585   :  { %v6991_v19 = vsel %vm1962_vm0, %v6990_v51, %v6952_v37  ;;  %v20463_v51 = vld [vmem:[#allocation50_spill] sm:$0xff] }
 0x586   :  { %v14997_v41 = vpop.permute.xlu1 %7406  ;;  %v7257_v15 = vsel %vm1962_vm0, %v14778_v38, %v7256_v62  ;;  %v7321_v38 = vperm.slane %v14732_v25, %v10226_v63 }
 0x587   :  { %v15020_v30 = vperm.slane %v7257_v15, %v10152_v4 }
 0x588   :  { %7658 = vrot.lane.b32.xlu0 %v20454_v52, %s10009_s14  ;;  %v20460_v52 = vld [vmem:[#allocation126_spill] sm:$0xff] }
 0x589   :  { %20459 = vst [vmem:[#allocation155_spill] sm:$0xff] %v15020_v30 }
 0x58a   :  { %v15006_v26 = vpop.permute.xlu0 %7510  ;;  %7532 = vrot.lane.b32.xlu2 %v20456_v6, %s10008_s13  ;;  %v15035_v15 = vpop.permute.xlu2 %7414 }
 0x58b   :  { %20455 = vst [vmem:[#allocation94_spill] sm:$0xff] %v15006_v26  ;;  %v20466_v26 = vld [vmem:[#allocation390_spill] sm:$0xff] }
 0x58c   :  { %7560 = vrot.lane.b32.xlu1 %v6991_v19, %s10008_s13  ;;  %v19736_v19 = vrot.slane %v15020_v30, 4  ;;  %20465 = vst [vmem:[#allocation221_spill] sm:$0xff] %v15035_v15 }
 0x58e   :  { %v15017_v2 = vpop.permute.xlu1 %7412 }
 0x58f   :  { %20458 = vst [vmem:[#allocation347_spill] sm:$0xff] %v15017_v2 }
 0x590   :  { %7664 = vrot.lane.b32.xlu0 %v20460_v52, %s10009_s14  ;;  %v7291_v52 = vsel %vm1962_vm0, %v15020_v30, %v19736_v19 }
 0x592   :  { %v15024_v6 = vpop.permute.xlu0 %7516  ;;  %7538 = vrot.lane.b32.xlu2 %v20462_v43, %s10008_s13  ;;  %v7299_v43 = vperm.slane %v7291_v52, %v10226_v63 }
 0x593   :  { %20461 = vst [vmem:[#allocation180_spill] sm:$0xff] %v15024_v6  ;;  %v7334_v6 = vrot.slane %v7321_v38, 4 }
 0x594   :  { %7630 = vrot.lane.b32.xlu1 %v20463_v51, %s10009_s14  ;;  %v20468_v51 = vld [vmem:[#allocation405_spill] sm:$0xff]  ;;  %v7336_v15 = vrot.slane %v7299_v43, 4 }
 0x595   :  { %v15049_v25 = vsel %vm1962_vm0, %v7334_v6, %v7299_v43  ;;  %v15065_v6 = vpop.permute.xlu2 %7420 }
 0x596   :  { %v15033_v62 = vpop.permute.xlu1 %7418  ;;  %20469 = vst [vmem:[#allocation446_spill] sm:$0xff] %v15049_v25  ;;  %v15055_v33 = vsel %vm1962_vm0, %v7321_v38, %v7336_v15 }
 0x597   :  { %20464 = vst [vmem:[#allocation388_spill] sm:$0xff] %v15033_v62 }
 0x598   :  { %7670 = vrot.lane.b32.xlu0 %v20466_v26, %s10009_s14  ;;  %v7168_v26 = vrot.slane %v14918_v22, 4  ;;  %20471 = vst [vmem:[#allocation263_spill] sm:$0xff] %v15055_v33 }
 0x599   :  { %20475 = vst [vmem:[#allocation308_spill] sm:$0xff] %v15065_v6 }
 0x59a   :  { %v15044_v12 = vpop.permute.xlu0 %7522  ;;  %7544 = vrot.lane.b32.xlu2 %v20468_v51, %s10008_s13  ;;  %v15061_v52 = vsel %vm1962_vm0, %v14908_v17, %v7168_v26  ;;  %v20474_v51 = vld [vmem:[#allocation443_spill] sm:$0xff]  ;;  %v7252_v17 = vrot.slane %v14947_v49, 4  ;;  %v20480_v26 = vld [vmem:[#allocation236_spill] sm:$0xff] }
 0x59b   :  { %20467 = vst [vmem:[#allocation239_spill] sm:$0xff] %v15044_v12  ;;  %v20495_v12 = vld [vmem:[#allocation114_spill] sm:$0xff] }
 0x59c   :  { %7636 = vrot.lane.b32.xlu1 %v20470_v7, %s10009_s14  ;;  %20473 = vst [vmem:[#allocation64_spill] sm:$0xff] %v15061_v52  ;;  %v20476_v7 = vld [vmem:[#allocation183_spill] sm:$0xff]  ;;  %v15084_v15 = vsel %vm1962_vm0, %v14936_v20, %v7252_v17  ;;  %v20485_v17 = vld [vmem:[#allocation10_spill] sm:$0xff] }
 0x59d   :  { %20478 = vst [vmem:[#allocation369_spill] sm:$0xff] %v15084_v15  ;;  %v20484_v52 = vld [vmem:[#allocation51_spill] sm:$0xff] }
 0x59e   :  { %v15057_v19 = vpop.permute.xlu1 %7424  ;;  %v2206_v20 = vrot.slane %v20484_v52, 4  ;;  %v20492_v52 = vld [vmem:[#allocation312_spill] sm:$0xff] }
 0x59f   :  { %20472 = vst [vmem:[#allocation277_spill] sm:$0xff] %v15057_v19 }
 0x5a0   :  { %7676 = vrot.lane.b32.xlu0 %v20474_v51, %s10009_s14  ;;  %v6992_v51 = vrot.slane %v6952_v37, 4  ;;  %v20488_v37 = vld [vmem:[#allocation48_spill] sm:$0xff] }
 0x5a1   :  { %v2207_v33 = vsel %vm1962_vm0, %v2206_v20, %v20488_v37  ;;  %v20497_v20 = vld [vmem:[#allocation148_spill] sm:$0xff] }
 0x5a2   :  { %v15067_v43 = vpop.permute.xlu0 %7528  ;;  %7550 = vrot.lane.b32.xlu2 %v14061_v50, %s10008_s13  ;;  %v15086_v50 = vpop.permute.xlu2 %7426  ;;  %v20498_v37 = vld [vmem:[#allocation176_spill] sm:$0xff] }
 0x5a3   :  { %20479 = vst [vmem:[#allocation50_spill] sm:$0xff] %v15086_v50  ;;  %v20502_v50 = vld [vmem:[#allocation174_spill] sm:$0xff] }
 0x5a4   :  { %7642 = vrot.lane.b32.xlu1 %v20476_v7, %s10009_s14 }
 0x5a6   :  { %v15073_v22 = vpop.permute.xlu1 %7430 }
 0x5a7   :  { %20477 = vst [vmem:[#allocation126_spill] sm:$0xff] %v15073_v22 }
 0x5a8   :  { %7682 = vrot.lane.b32.xlu0 %v14294_v9, %s10009_s14  ;;  %v6993_v9 = vsel %vm1962_vm0, %v6974_v11, %v6992_v51  ;;  %v20490_v51 = vld [vmem:[#allocation77_spill] sm:$0xff] }
 0x5aa   :  { %v15078_v38 = vpop.permute.xlu0 %7534  ;;  %7556 = vrot.lane.b32.xlu2 %v14457_v60, %s10008_s13  ;;  %v20483_v60 = vld [vmem:[#allocation27_spill] sm:$0xff] }
 0x5ac   :  { %7648 = vrot.lane.b32.xlu1 %v20480_v26, %s10009_s14 }
 0x5ae   :  { %v15090_v7 = vpop.permute.xlu1 %7500 }
 0x5af   :  { %20481 = vst [vmem:[#allocation390_spill] sm:$0xff] %v15090_v7 }
 0x5b0   :  { %7688 = vrot.lane.b32.xlu0 %v6993_v9, %s10009_s14  ;;  %v20491_v9 = vld [vmem:[#allocation117_spill] sm:$0xff] }
 0x5b2   :  { %v15094_v49 = vpop.permute.xlu0 %7540  ;;  %7626 = vrot.lane.b32.xlu2 %v20483_v60, %s10009_s14  ;;  %v2794_v60 = vrot.slane %v20491_v9, 4  ;;  %v20499_v9 = vld [vmem:[#allocation365_spill] sm:$0xff] }
 0x5b3   :  { %20482 = vst [vmem:[#allocation405_spill] sm:$0xff] %v15094_v49 }
 0x5b4   :  { %7654 = vrot.lane.b32.xlu1 %v20485_v17, %s10009_s14  ;;  %v15101_v15 = vpop.permute.xlu2 %7432 }
 0x5b5   :  { %20486 = vst [vmem:[#allocation119_spill] sm:$0xff] %v15101_v15  ;;  %v2795_v15 = vsel %vm1962_vm0, %v2794_v60, %v20495_v12  ;;  %v20505_v60 = vld [vmem:[#allocation9_spill] sm:$0xff] }
 0x5b6   :  { %v15103_v26 = vpop.permute.xlu1 %7506 }
 0x5b7   :  { %20487 = vst [vmem:[#allocation443_spill] sm:$0xff] %v15103_v26 }
 0x5b8   :  { %7758 = vrot.lane.b32.xlu0 %v2207_v33, %s10004_s12 }
 0x5ba   :  { %v15108_v11 = vpop.permute.xlu0 %7546  ;;  %7632 = vrot.lane.b32.xlu2 %v20490_v51, %s10009_s14  ;;  %v3382_v51 = vrot.slane %v20498_v37, 4  ;;  %v20506_v37 = vld [vmem:[#allocation408_spill] sm:$0xff] }
 0x5bb   :  { %20489 = vst [vmem:[#allocation183_spill] sm:$0xff] %v15108_v11 }
 0x5bc   :  { %7660 = vrot.lane.b32.xlu1 %v20492_v52, %s10009_s14  ;;  %v15115_v17 = vpop.permute.xlu2 %7502  ;;  %v3383_v6 = vsel %vm1962_vm0, %v3382_v51, %v20502_v50  ;;  %v20511_v50 = vld [vmem:[#allocation244_spill] sm:$0xff]  ;;  %v20512_v51 = vld [vmem:[#allocation274_spill] sm:$0xff] }
 0x5bd   :  { %20493 = vst [vmem:[#allocation236_spill] sm:$0xff] %v15115_v17 }
 0x5be   :  { %v15117_v25 = vpop.permute.xlu1 %7512 }
 0x5bf   :  { %20494 = vst [vmem:[#allocation27_spill] sm:$0xff] %v15117_v25 }
 0x5c0   :  { %7764 = vrot.lane.b32.xlu0 %v2795_v15, %s10004_s12  ;;  %v20504_v15 = vld [vmem:[#allocation203_spill] sm:$0xff] }
 0x5c2   :  { %v15122_v33 = vpop.permute.xlu0 %7552  ;;  %7638 = vrot.lane.b32.xlu2 %v20497_v20, %s10009_s14  ;;  %v3634_v20 = vrot.slane %v20505_v60, 4 }
 0x5c3   :  { %20496 = vst [vmem:[#allocation51_spill] sm:$0xff] %v15122_v33 }
 0x5c4   :  { %7666 = vrot.lane.b32.xlu1 %v20499_v9, %s10009_s14  ;;  %v15129_v52 = vpop.permute.xlu2 %7508 }
 0x5c5   :  { %20500 = vst [vmem:[#allocation10_spill] sm:$0xff] %v15129_v52 }
 0x5c6   :  { %v15131_v17 = vpop.permute.xlu1 %7518 }
 0x5c7   :  { %20501 = vst [vmem:[#allocation48_spill] sm:$0xff] %v15131_v17  ;;  %v20509_v17 = vld [vmem:[#allocation39_spill] sm:$0xff] }
 0x5c8   :  { %7770 = vrot.lane.b32.xlu0 %v3383_v6, %s10004_s12  ;;  %v3635_v25 = vsel %vm1962_vm0, %v3634_v20, %v20509_v17  ;;  %v20516_v17 = vld [vmem:[#allocation19_spill] sm:$0xff] }
 0x5ca   :  { %v15136_v12 = vpop.permute.xlu0 %7558  ;;  %7644 = vrot.lane.b32.xlu2 %v20504_v15, %s10009_s14  ;;  %v4222_v15 = vrot.slane %v20512_v51, 4  ;;  %v20519_v51 = vld [vmem:[#allocation297_spill] sm:$0xff] }
 0x5cb   :  { %20503 = vst [vmem:[#allocation77_spill] sm:$0xff] %v15136_v12 }
 0x5cc   :  { %7672 = vrot.lane.b32.xlu1 %v20506_v37, %s10009_s14  ;;  %v15143_v9 = vpop.permute.xlu2 %7514 }
 0x5cd   :  { %20507 = vst [vmem:[#allocation117_spill] sm:$0xff] %v15143_v9  ;;  %v20515_v9 = vld [vmem:[#allocation105_spill] sm:$0xff] }
 0x5ce   :  { %v15145_v52 = vpop.permute.xlu1 %7524  ;;  %v4223_v26 = vsel %vm1962_vm0, %v4222_v15, %v20515_v9 }
 0x5cf   :  { %20508 = vst [vmem:[#allocation312_spill] sm:$0xff] %v15145_v52 }
 0x5d0   :  { %7776 = vrot.lane.b32.xlu0 %v3635_v25, %s10004_s12  ;;  %v20517_v25 = vrot.slane %v20516_v17, 4 }
 0x5d2   :  { %v15150_v6 = vpop.permute.xlu0 %7628  ;;  %7650 = vrot.lane.b32.xlu2 %v20511_v50, %s10009_s14  ;;  %v2020_v20 = vsel %vm1962_vm0, %v20517_v25, %v20516_v17  ;;  %v20523_v17 = vld [vmem:[#allocation13_spill] sm:$0xff] }
 0x5d3   :  { %20510 = vst [vmem:[#allocation114_spill] sm:$0xff] %v15150_v6 }
 0x5d4   :  { %7678 = vrot.lane.b32.xlu1 %v14047_v21, %s10009_s14  ;;  %v15157_v60 = vpop.permute.xlu2 %7520  ;;  %v20520_v21 = vld [vmem:[#allocation314_spill] sm:$0xff] }
 0x5d5   :  { %20513 = vst [vmem:[#allocation148_spill] sm:$0xff] %v15157_v60  ;;  %v4810_v24 = vrot.slane %v20520_v21, 4  ;;  %v15174_v60 = vperm.slane %v2020_v20, %v10226_v63 }
 0x5d6   :  { %v15159_v37 = vpop.permute.xlu1 %7530 }
 0x5d7   :  { %20514 = vst [vmem:[#allocation176_spill] sm:$0xff] %v15159_v37  ;;  %v2038_v21 = vrot.slane %v15174_v60, 4  ;;  %v20526_v37 = vld [vmem:[#allocation65_spill] sm:$0xff] }
 0x5d8   :  { %7782 = vrot.lane.b32.xlu0 %v4223_v26, %s10004_s12  ;;  %v20524_v26 = vrot.slane %v20523_v17, 4  ;;  %v20527_v20 = vrot.slane %v20526_v37, 4 }
 0x5da   :  { %v15168_v50 = vpop.permute.xlu0 %7634  ;;  %7656 = vrot.lane.b32.xlu2 %v20519_v51, %s10009_s14  ;;  %v1998_v25 = vsel %vm1962_vm0, %v20524_v26, %v20523_v17  ;;  %v2272_v6 = vsel %vm1962_vm0, %v20527_v20, %v20526_v37 }
 0x5db   :  { %20518 = vst [vmem:[#allocation365_spill] sm:$0xff] %v15168_v50  ;;  %v20525_v50 = vld [vmem:[#allocation309_spill] sm:$0xff]  ;;  %v15205_v26 = vperm.slane %v2272_v6, %v10226_v63 }
 0x5dc   :  { %7684 = vrot.lane.b32.xlu1 %v14440_v42, %s10009_s14  ;;  %v15178_v9 = vpop.permute.xlu2 %7526  ;;  %v4811_v51 = vsel %vm1962_vm0, %v4810_v24, %v20525_v50  ;;  %v15195_v42 = vperm.slane %v1998_v25, %v10226_v63  ;;  %v20530_v50 = vld [vmem:[#allocation362_spill] sm:$0xff] }
 0x5dd   :  { %20521 = vst [vmem:[#allocation174_spill] sm:$0xff] %v15178_v9  ;;  %v20529_v9 = vld [vmem:[#allocation335_spill] sm:$0xff]  ;;  %v5398_v17 = vrot.slane %v20530_v50, 4  ;;  %v2290_v6 = vrot.slane %v15205_v26, 4  ;;  %v20536_v50 = vld [vmem:[#allocation141_spill] sm:$0xff] }
 0x5de   :  { %v15180_v15 = vpop.permute.xlu1 %7536  ;;  %v2039_v24 = vsel %vm1962_vm0, %v2038_v21, %v15195_v42 }
 0x5df   :  { %20522 = vst [vmem:[#allocation203_spill] sm:$0xff] %v15180_v15 }
 0x5e0   :  { %7788 = vrot.lane.b32.xlu0 %v4811_v51, %s10004_s12  ;;  %v20532_v51 = vld [vmem:[#allocation68_spill] sm:$0xff] }
 0x5e1   :  { %v20533_v25 = vrot.slane %v20532_v51, 4 }
 0x5e2   :  { %v15197_v15 = vpop.permute.xlu0 %7640  ;;  %7662 = vrot.lane.b32.xlu2 %v20529_v9, %s10009_s14  ;;  %v20535_v9 = vld [vmem:[#allocation20_spill] sm:$0xff] }
 0x5e3   :  { %20528 = vst [vmem:[#allocation9_spill] sm:$0xff] %v15197_v15  ;;  %v2250_v20 = vsel %vm1962_vm0, %v20533_v25, %v20532_v51  ;;  %v5399_v7 = vsel %vm1962_vm0, %v5398_v17, %v20535_v9  ;;  %v20539_v51 = vld [vmem:[#allocation385_spill] sm:$0xff]  ;;  %v20541_v9 = vld [vmem:[#allocation402_spill] sm:$0xff] }
 0x5e4   :  { %7754 = vrot.lane.b32.xlu1 %v2039_v24, %s10004_s12  ;;  %v15208_v37 = vpop.permute.xlu2 %7532  ;;  %v15219_v21 = vperm.slane %v2250_v20, %v10226_v63  ;;  %v20537_v24 = vrot.slane %v20536_v50, 4 }
 0x5e5   :  { %20531 = vst [vmem:[#allocation408_spill] sm:$0xff] %v15208_v37 }
 0x5e6   :  { %v15214_v15 = vpop.permute.xlu1 %7542  ;;  %v2860_v37 = vsel %vm1962_vm0, %v20537_v24, %v20536_v50  ;;  %v2291_v17 = vsel %vm1962_vm0, %v2290_v6, %v15219_v21 }
 0x5e7   :  { %20534 = vst [vmem:[#allocation39_spill] sm:$0xff] %v15214_v15  ;;  %v15234_v25 = vperm.slane %v2860_v37, %v10226_v63  ;;  %v5650_v15 = vrot.slane %v20541_v9, 4  ;;  %v20546_v37 = vld [vmem:[#allocation198_spill] sm:$0xff] }
 0x5e8   :  { %7794 = vrot.lane.b32.xlu0 %v5399_v7, %s10004_s12  ;;  %v20543_v7 = vld [vmem:[#allocation113_spill] sm:$0xff] }
 0x5e9   :  { %v20544_v24 = vrot.slane %v20543_v7, 4  ;;  %v2878_v6 = vrot.slane %v15234_v25, 4 }
 0x5ea   :  { %v15227_v52 = vpop.permute.xlu0 %7646  ;;  %7668 = vrot.lane.b32.xlu2 %v20539_v51, %s10009_s14  ;;  %v20545_v51 = vld [vmem:[#allocation401_spill] sm:$0xff] }
 0x5eb   :  { %20538 = vst [vmem:[#allocation244_spill] sm:$0xff] %v15227_v52  ;;  %v2838_v52 = vsel %vm1962_vm0, %v20544_v24, %v20543_v7  ;;  %v5651_v47 = vsel %vm1962_vm0, %v5650_v15, %v20545_v51  ;;  %v6238_v7 = vrot.slane %v14036_v39, 4  ;;  %v20555_v39 = vld [vmem:[#allocation234_spill] sm:$0xff] }
 0x5ec   :  { %7760 = vrot.lane.b32.xlu1 %v2291_v17, %s10004_s12  ;;  %v15237_v20 = vpop.permute.xlu2 %7538  ;;  %v20547_v17 = vrot.slane %v20546_v37, 4  ;;  %v15255_v9 = vperm.slane %v2838_v52, %v10226_v63  ;;  %v20552_v52 = vld [vmem:[#allocation197_spill] sm:$0xff] }
 0x5ed   :  { %20540 = vst [vmem:[#allocation274_spill] sm:$0xff] %v15237_v20 }
 0x5ee   :  { %v15240_v50 = vpop.permute.xlu1 %7548  ;;  %v3448_v20 = vsel %vm1962_vm0, %v20547_v17, %v20546_v37  ;;  %v2879_v15 = vsel %vm1962_vm0, %v2878_v6, %v15255_v9  ;;  %v20553_v37 = vrot.slane %v20552_v52, 4 }
 0x5ef   :  { %20542 = vst [vmem:[#allocation105_spill] sm:$0xff] %v15240_v50 }
 0x5f0   :  { %7800 = vrot.lane.b32.xlu0 %v5651_v47, %s10004_s12  ;;  %v15265_v47 = vperm.slane %v3448_v20, %v10226_v63  ;;  %v3426_v17 = vsel %vm1962_vm0, %v20553_v37, %v20552_v52  ;;  %v20556_v20 = vrot.slane %v20555_v39, 4  ;;  %v6826_v52 = vrot.slane %v14444_v34, 4 }
 0x5f2   :  { %v15257_v50 = vpop.permute.xlu0 %7652  ;;  %7674 = vrot.lane.b32.xlu2 %v20549_v36, %s10009_s14  ;;  %v20554_v36 = vld [vmem:[#allocation452_spill] sm:$0xff]  ;;  %v3466_v6 = vrot.slane %v15265_v47, 4  ;;  %v4036_v12 = vsel %vm1962_vm0, %v20556_v20, %v20555_v39  ;;  %v20562_v20 = vld [vmem:[#allocation37_spill] sm:$0xff]  ;;  %v6827_v34 = vsel %vm1962_vm0, %v6826_v52, %v14425_v8 }
 0x5f3   :  { %20548 = vst [vmem:[#allocation19_spill] sm:$0xff] %v15257_v50  ;;  %v6239_v50 = vsel %vm1962_vm0, %v6238_v7, %v20554_v36  ;;  %v15295_v37 = vperm.slane %v4036_v12, %v10226_v63 }
 0x5f4   :  { %7766 = vrot.lane.b32.xlu1 %v2879_v15, %s10004_s12  ;;  %v15268_v24 = vpop.permute.xlu2 %7544  ;;  %v15285_v15 = vperm.slane %v3426_v17, %v10226_v63 }
 0x5f5   :  { %20550 = vst [vmem:[#allocation297_spill] sm:$0xff] %v15268_v24  ;;  %v20558_v24 = vld [vmem:[#allocation457_spill] sm:$0xff] }
 0x5f6   :  { %v15270_v51 = vpop.permute.xlu1 %7554  ;;  %v3467_v7 = vsel %vm1962_vm0, %v3466_v6, %v15285_v15 }
 0x5f7   :  { %20551 = vst [vmem:[#allocation314_spill] sm:$0xff] %v15270_v51 }
 0x5f8   :  { %7806 = vrot.lane.b32.xlu0 %v6239_v50, %s10004_s12  ;;  %v20560_v50 = vld [vmem:[#allocation235_spill] sm:$0xff] }
 0x5f9   :  { %v20561_v17 = vrot.slane %v20560_v50, 4 }
 0x5fa   :  { %v15287_v51 = vpop.permute.xlu0 %7658  ;;  %7680 = vrot.lane.b32.xlu2 %v20558_v24, %s10009_s14  ;;  %v20563_v24 = vrot.slane %v20562_v20, 4 }
 0x5fb   :  { %20557 = vst [vmem:[#allocation13_spill] sm:$0xff] %v15287_v51  ;;  %v4014_v39 = vsel %vm1962_vm0, %v20561_v17, %v20560_v50 }
 0x5fc   :  { %7772 = vrot.lane.b32.xlu1 %v3467_v7, %s10004_s12  ;;  %v15298_v36 = vpop.permute.xlu2 %7550  ;;  %v2104_v51 = vsel %vm1962_vm0, %v20563_v24, %v20562_v20  ;;  %v15313_v12 = vperm.slane %v4014_v39, %v10226_v63  ;;  %v4054_v7 = vrot.slane %v15295_v37, 4  ;;  %v2040_v24 = vrot.slane %v15195_v42, 4 }
 0x5fd   :  { %20559 = vst [vmem:[#allocation309_spill] sm:$0xff] %v15298_v36  ;;  %v20565_v36 = vld [vmem:[#allocation63_spill] sm:$0xff]  ;;  %v15322_v17 = vperm.slane %v2104_v51, %v10226_v63 }
 0x5fe   :  { %v15308_v6 = vpop.permute.xlu1 %7560  ;;  %v20566_v54 = vrot.slane %v20565_v36, 4  ;;  %v4055_v8 = vsel %vm1962_vm0, %v4054_v7, %v15313_v12  ;;  %v2041_v22 = vsel %vm1962_vm0, %v15174_v60, %v2040_v24 }
 0x5ff   :  { %20564 = vst [vmem:[#allocation65_spill] sm:$0xff] %v15308_v6  ;;  %v20572_v6 = vld [vmem:[#allocation57_spill] sm:$0xff] }
 0x600   :  { %v4288_v50 = vsel %vm1962_vm0, %v20566_v54, %v20565_v36  ;;  %7812 = vrot.lane.b32.xlu0 %v6827_v34, %s10004_s12  ;;  %v20569_v54 = vld [vmem:[#allocation22_spill] sm:$0xff]  ;;  %v2122_v34 = vrot.slane %v15322_v17, 4  ;;  %v20573_v7 = vrot.slane %v20572_v6, 4 }
 0x601   :  { %v15331_v52 = vperm.slane %v4288_v50, %v10226_v63  ;;  %v20570_v36 = vrot.slane %v20569_v54, 4 }
 0x602   :  { %v15324_v20 = vpop.permute.xlu0 %7664  ;;  %7686 = vrot.lane.b32.xlu2 %v14721_v27, %s10009_s14  ;;  %v4266_v50 = vsel %vm1962_vm0, %v20573_v7, %v20572_v6  ;;  %v20580_v7 = vld [vmem:[#allocation89_spill] sm:$0xff] }
 0x603   :  { %20567 = vst [vmem:[#allocation335_spill] sm:$0xff] %v15324_v20  ;;  %v2082_v51 = vsel %vm1962_vm0, %v20570_v36, %v20569_v54  ;;  %v20574_v20 = vld [vmem:[#allocation91_spill] sm:$0xff]  ;;  %v4306_v42 = vrot.slane %v15331_v52, 4  ;;  %v20576_v36 = vld [vmem:[#allocation326_spill] sm:$0xff] }
 0x604   :  { %7778 = vrot.lane.b32.xlu1 %v4055_v8, %s10004_s12  ;;  %v15334_v39 = vpop.permute.xlu2 %7556  ;;  %v20575_v8 = vrot.slane %v20574_v20, 4  ;;  %v15355_v54 = vperm.slane %v2082_v51, %v10226_v63 }
 0x605   :  { %20568 = vst [vmem:[#allocation362_spill] sm:$0xff] %v15334_v39 }
 0x606   :  { %v15342_v27 = vpop.permute.xlu1 %7630  ;;  %v2692_v39 = vsel %vm1962_vm0, %v20575_v8, %v20574_v20  ;;  %v2123_v6 = vsel %vm1962_vm0, %v2122_v34, %v15355_v54  ;;  %v15366_v20 = vperm.slane %v4266_v50, %v10226_v63  ;;  %v20582_v8 = vld [vmem:[#allocation16_spill] sm:$0xff] }
 0x607   :  { %20571 = vst [vmem:[#allocation68_spill] sm:$0xff] %v15342_v27  ;;  %v20577_v27 = vrot.slane %v20576_v36, 4  ;;  %v15369_v60 = vperm.slane %v2692_v39, %v10226_v63  ;;  %v20581_v39 = vrot.slane %v20580_v7, 4 }
 0x608   :  { %7882 = vrot.lane.b32.xlu0 %v2041_v22, %s10010_s15  ;;  %v4307_v24 = vsel %vm1962_vm0, %v4306_v42, %v15366_v20 }
 0x609   :  { %v4876_v57 = vsel %vm1962_vm0, %v20577_v27, %v20576_v36  ;;  %v2292_v27 = vrot.slane %v15219_v21, 4  ;;  %v2670_v50 = vsel %vm1962_vm0, %v20581_v39, %v20580_v7  ;;  %v20583_v36 = vrot.slane %v20582_v8, 4  ;;  %v20584_v21 = vld [vmem:[#allocation140_spill] sm:$0xff] }
 0x60a   :  { %v15371_v51 = vpop.permute.xlu0 %7670  ;;  %7756 = vrot.lane.b32.xlu2 %v2123_v6, %s10004_s12  ;;  %v15378_v22 = vperm.slane %v4876_v57, %v10226_v63  ;;  %v2710_v42 = vrot.slane %v15369_v60, 4  ;;  %v20585_v57 = vrot.slane %v20584_v21, 4  ;;  %v15401_v33 = vperm.slane %v2670_v50, %v10226_v63  ;;  %v20590_v50 = vld [vmem:[#allocation147_spill] sm:$0xff] }
 0x60b   :  { %20578 = vst [vmem:[#allocation20_spill] sm:$0xff] %v15371_v51  ;;  %v4854_v6 = vsel %vm1962_vm0, %v20583_v36, %v20582_v8  ;;  %v20587_v8 = vld [vmem:[#allocation381_spill] sm:$0xff] }
 0x60c   :  { %7784 = vrot.lane.b32.xlu1 %v4307_v24, %s10004_s12  ;;  %v15381_v34 = vpop.permute.xlu2 %7626  ;;  %v2944_v51 = vsel %vm1962_vm0, %v20585_v57, %v20584_v21  ;;  %v15404_v7 = vperm.slane %v4854_v6, %v10226_v63  ;;  %v4894_v39 = vrot.slane %v15378_v22, 4  ;;  %v20588_v36 = vrot.slane %v20587_v8, 4 }
 0x60d   :  { %20579 = vst [vmem:[#allocation141_spill] sm:$0xff] %v15381_v34  ;;  %v2293_v34 = vsel %vm1962_vm0, %v15205_v26, %v2292_v27  ;;  %v2711_v21 = vsel %vm1962_vm0, %v2710_v42, %v15401_v33  ;;  %v15415_v26 = vperm.slane %v2944_v51, %v10226_v63  ;;  %v20591_v6 = vrot.slane %v20590_v50, 4 }
 0x60e   :  { %v15396_v24 = vpop.permute.xlu1 %7636  ;;  %v5464_v19 = vsel %vm1962_vm0, %v20588_v36, %v20587_v8  ;;  %v4895_v8 = vsel %vm1962_vm0, %v4894_v39, %v15404_v7  ;;  %v2880_v51 = vrot.slane %v15255_v9, 4 }
 0x60f   :  { %20586 = vst [vmem:[#allocation385_spill] sm:$0xff] %v15396_v24  ;;  %v2922_v57 = vsel %vm1962_vm0, %v20591_v6, %v20590_v50  ;;  %v20593_v24 = vld [vmem:[#allocation8_spill] sm:$0xff] }
 0x610   :  { %7888 = vrot.lane.b32.xlu0 %v2293_v34, %s10010_s15  ;;  %v15427_v34 = vperm.slane %v5464_v19, %v10226_v63  ;;  %v15434_v36 = vperm.slane %v2922_v57, %v10226_v63  ;;  %v20594_v50 = vrot.slane %v20593_v24, 4  ;;  %v20596_v19 = vld [vmem:[#allocation361_spill] sm:$0xff]  ;;  %v2881_v9 = vsel %vm1962_vm0, %v15234_v25, %v2880_v51 }
 0x612   :  { %v15417_v27 = vpop.permute.xlu0 %7676  ;;  %7762 = vrot.lane.b32.xlu2 %v2711_v21, %s10004_s12  ;;  %v2962_v21 = vrot.slane %v15415_v26, 4  ;;  %v3532_v6 = vsel %vm1962_vm0, %v20594_v50, %v20593_v24  ;;  %v5482_v57 = vrot.slane %v15427_v34, 4 }
 0x613   :  { %20589 = vst [vmem:[#allocation402_spill] sm:$0xff] %v15417_v27  ;;  %v20597_v27 = vrot.slane %v20596_v19, 4 }
 0x614   :  { %7790 = vrot.lane.b32.xlu1 %v4895_v8, %s10004_s12  ;;  %v15430_v42 = vpop.permute.xlu2 %7632  ;;  %v2963_v24 = vsel %vm1962_vm0, %v2962_v21, %v15434_v36 }
 0x615   :  { %20592 = vst [vmem:[#allocation113_spill] sm:$0xff] %v15430_v42  ;;  %v5442_v8 = vsel %vm1962_vm0, %v20597_v27, %v20596_v19  ;;  %v20598_v42 = vld [vmem:[#allocation33_spill] sm:$0xff]  ;;  %v15461_v27 = vperm.slane %v3532_v6, %v10226_v63 }
 0x616   :  { %v15441_v39 = vpop.permute.xlu1 %7642  ;;  %v20599_v11 = vrot.slane %v20598_v42, 4  ;;  %v15458_v50 = vperm.slane %v5442_v8, %v10226_v63  ;;  %v3468_v8 = vrot.slane %v15285_v15, 4 }
 0x617   :  { %20595 = vst [vmem:[#allocation401_spill] sm:$0xff] %v15441_v39 }
 0x618   :  { %7894 = vrot.lane.b32.xlu0 %v2881_v9, %s10010_s15  ;;  %v6052_v62 = vsel %vm1962_vm0, %v20599_v11, %v20598_v42  ;;  %v5483_v25 = vsel %vm1962_vm0, %v5482_v57, %v15458_v50  ;;  %v20602_v42 = vld [vmem:[#allocation199_spill] sm:$0xff]  ;;  %v3550_v9 = vrot.slane %v15461_v27, 4  ;;  %v3469_v49 = vsel %vm1962_vm0, %v15265_v47, %v3468_v8  ;;  %v20612_v8 = vld [vmem:[#allocation256_spill] sm:$0xff] }
 0x619   :  { %v15469_v51 = vperm.slane %v6052_v62, %v10226_v63  ;;  %v20603_v21 = vrot.slane %v20602_v42, 4 }
 0x61a   :  { %v15463_v19 = vpop.permute.xlu0 %7682  ;;  %7768 = vrot.lane.b32.xlu2 %v2963_v24, %s10004_s12  ;;  %v20604_v24 = vld [vmem:[#allocation251_spill] sm:$0xff] }
 0x61b   :  { %20600 = vst [vmem:[#allocation198_spill] sm:$0xff] %v15463_v19  ;;  %v3510_v6 = vsel %vm1962_vm0, %v20603_v21, %v20602_v42  ;;  %v20605_v39 = vrot.slane %v20604_v24, 4  ;;  %v20607_v19 = vld [vmem:[#allocation418_spill] sm:$0xff]  ;;  %v6070_v15 = vrot.slane %v15469_v51, 4  ;;  %v20609_v21 = vld [vmem:[#allocation451_spill] sm:$0xff] }
 0x61c   :  { %7796 = vrot.lane.b32.xlu1 %v5483_v25, %s10004_s12  ;;  %v15472_v11 = vpop.permute.xlu2 %7638  ;;  %v20608_v25 = vrot.slane %v20607_v19, 4  ;;  %v15493_v42 = vperm.slane %v3510_v6, %v10226_v63  ;;  %v20610_v2 = vrot.slane %v20609_v21, 4 }
 0x61d   :  { %20601 = vst [vmem:[#allocation424_spill] sm:$0xff] %v15472_v11  ;;  %v4120_v57 = vsel %vm1962_vm0, %v20605_v39, %v20604_v24 }
 0x61e   :  { %v15484_v62 = vpop.permute.xlu1 %7648  ;;  %v6030_v11 = vsel %vm1962_vm0, %v20608_v25, %v20607_v19  ;;  %v6304_v39 = vsel %vm1962_vm0, %v20610_v2, %v20609_v21  ;;  %v3551_v24 = vsel %vm1962_vm0, %v3550_v9, %v15493_v42  ;;  %v15507_v47 = vperm.slane %v4120_v57, %v10226_v63  ;;  %v20615_v21 = vld [vmem:[#allocation90_spill] sm:$0xff] }
 0x61f   :  { %20606 = vst [vmem:[#allocation197_spill] sm:$0xff] %v15484_v62  ;;  %v15504_v19 = vperm.slane %v6030_v11, %v10226_v63  ;;  %v20613_v25 = vrot.slane %v20612_v8, 4  ;;  %v4056_v9 = vrot.slane %v15313_v12, 4  ;;  %v15520_v11 = vperm.slane %v6304_v39, %v10226_v63 }
 0x620   :  { %7900 = vrot.lane.b32.xlu0 %v3469_v49, %s10010_s15 }
 0x621   :  { %v4098_v2 = vsel %vm1962_vm0, %v20613_v25, %v20612_v8  ;;  %v6071_v49 = vsel %vm1962_vm0, %v6070_v15, %v15504_v19  ;;  %v4138_v8 = vrot.slane %v15507_v47, 4  ;;  %v20617_v15 = vld [vmem:[#allocation305_spill] sm:$0xff] }
 0x622   :  { %v15509_v6 = vpop.permute.xlu0 %7688  ;;  %7774 = vrot.lane.b32.xlu2 %v3551_v24, %s10004_s12  ;;  %v20616_v24 = vrot.slane %v20615_v21, 4  ;;  %v20618_v12 = vrot.slane %v20617_v15, 4 }
 0x623   :  { %20611 = vst [vmem:[#allocation452_spill] sm:$0xff] %v15509_v6  ;;  %v15530_v6 = vperm.slane %v4098_v2, %v10226_v63  ;;  %v20620_v2 = vrot.slane %v14665_v40, 4 }
 0x624   :  { %7802 = vrot.lane.b32.xlu1 %v6071_v49, %s10004_s12  ;;  %v15523_v57 = vpop.permute.xlu2 %7644  ;;  %v6282_v62 = vsel %vm1962_vm0, %v20616_v24, %v20615_v21  ;;  %v4708_v39 = vsel %vm1962_vm0, %v20618_v12, %v20617_v15  ;;  %v4057_v49 = vsel %vm1962_vm0, %v15295_v37, %v4056_v9  ;;  %v6322_v21 = vrot.slane %v15520_v11, 4  ;;  %v20623_v9 = vld [vmem:[#allocation12_spill] sm:$0xff] }
 0x625   :  { %20614 = vst [vmem:[#allocation234_spill] sm:$0xff] %v15523_v57  ;;  %v15542_v57 = vperm.slane %v6282_v62, %v10226_v63  ;;  %v6892_v24 = vsel %vm1962_vm0, %v20620_v2, %v14665_v40  ;;  %v4139_v15 = vsel %vm1962_vm0, %v4138_v8, %v15530_v6  ;;  %v15553_v12 = vperm.slane %v4708_v39, %v10226_v63 }
 0x626   :  { %v15537_v25 = vpop.permute.xlu1 %7654  ;;  %v15561_v62 = vperm.slane %v6892_v24, %v10226_v63  ;;  %v20624_v8 = vrot.slane %v20623_v9, 4 }
 0x627   :  { %20619 = vst [vmem:[#allocation457_spill] sm:$0xff] %v15537_v25  ;;  %v6323_v37 = vsel %vm1962_vm0, %v6322_v21, %v15542_v57  ;;  %v4726_v2 = vrot.slane %v15553_v12, 4  ;;  %v20626_v21 = vrot.slane %v14414_v48, 4 }
 0x628   :  { %7906 = vrot.lane.b32.xlu0 %v4057_v49, %s10010_s15  ;;  %v4686_v39 = vsel %vm1962_vm0, %v20624_v8, %v20623_v9  ;;  %v4308_v49 = vrot.slane %v15366_v20, 4  ;;  %v6910_v20 = vrot.slane %v15561_v62, 4 }
 0x629   :  { %v6870_v24 = vsel %vm1962_vm0, %v20626_v21, %v14414_v48  ;;  %v15585_v9 = vperm.slane %v4686_v39, %v10226_v63  ;;  %v4896_v39 = vrot.slane %v15404_v7, 4 }
 0x62a   :  { %v15555_v25 = vpop.permute.xlu0 %7758  ;;  %7780 = vrot.lane.b32.xlu2 %v4139_v15, %s10004_s12  ;;  %v4309_v30 = vsel %vm1962_vm0, %v15331_v52, %v4308_v49  ;;  %v15592_v48 = vperm.slane %v6870_v24, %v10226_v63  ;;  %v20630_v49 = vld [vmem:[#allocation345_spill] sm:$0xff] }
 0x62b   :  { %20621 = vst [vmem:[#allocation235_spill] sm:$0xff] %v15555_v25  ;;  %v20627_v25 = vld [vmem:[#allocation67_spill] sm:$0xff]  ;;  %v4727_v8 = vsel %vm1962_vm0, %v4726_v2, %v15585_v9  ;;  %v20631_v2 = vrot.slane %v20630_v49, 4  ;;  %v4897_v7 = vsel %vm1962_vm0, %v15378_v22, %v4896_v39 }
 0x62c   :  { %7808 = vrot.lane.b32.xlu1 %v6323_v37, %s10004_s12  ;;  %v15564_v40 = vpop.permute.xlu2 %7650  ;;  %v20628_v37 = vrot.slane %v20627_v25, 4  ;;  %v6911_v52 = vsel %vm1962_vm0, %v6910_v20, %v15592_v48 }
 0x62d   :  { %20622 = vst [vmem:[#allocation37_spill] sm:$0xff] %v15564_v40  ;;  %v4938_v24 = vsel %vm1962_vm0, %v20631_v2, %v20630_v49  ;;  %v2124_v49 = vrot.slane %v15355_v54, 4  ;;  %v5484_v54 = vrot.slane %v15458_v50, 4 }
 0x62e   :  { %v15572_v15 = vpop.permute.xlu1 %7660  ;;  %v4960_v40 = vsel %vm1962_vm0, %v20628_v37, %v20627_v25  ;;  %v20632_v37 = vld [vmem:[#allocation380_spill] sm:$0xff]  ;;  %v15620_v20 = vperm.slane %v4938_v24, %v10226_v63 }
 0x62f   :  { %20625 = vst [vmem:[#allocation63_spill] sm:$0xff] %v15572_v15  ;;  %v15595_v21 = vperm.slane %v4960_v40, %v10226_v63  ;;  %v2125_v24 = vsel %vm1962_vm0, %v15322_v17, %v2124_v49  ;;  %v5485_v17 = vsel %vm1962_vm0, %v15427_v34, %v5484_v54  ;;  %v2712_v49 = vrot.slane %v15401_v33, 4  ;;  %v20642_v54 = vld [vmem:[#allocation83_spill] sm:$0xff] }
 0x630   :  { %7912 = vrot.lane.b32.xlu0 %v4309_v30, %s10010_s15  ;;  %v6072_v33 = vrot.slane %v15504_v19, 4 }
 0x631   :  { %v4978_v40 = vrot.slane %v15595_v21, 4 }
 0x632   :  { %v15597_v25 = vpop.permute.xlu0 %7764  ;;  %7786 = vrot.lane.b32.xlu2 %v4727_v8, %s10004_s12 }
 0x633   :  { %20629 = vst [vmem:[#allocation22_spill] sm:$0xff] %v15597_v25  ;;  %v20633_v25 = vrot.slane %v20632_v37, 4 }
 0x634   :  { %7814 = vrot.lane.b32.xlu1 %v6911_v52, %s10004_s12  ;;  %v15604_v30 = vpop.permute.xlu2 %7656  ;;  %v4979_v52 = vsel %vm1962_vm0, %v4978_v40, %v15620_v20 }
 0x635   :  { %v5548_v8 = vsel %vm1962_vm0, %v20633_v25, %v20632_v37  ;;  %v20636_v25 = vld [vmem:[#allocation384_spill] sm:$0xff] }
 0x636   :  { %v15615_v15 = vpop.permute.xlu1 %7666  ;;  %v15627_v2 = vperm.slane %v5548_v8, %v10226_v63  ;;  %v20637_v22 = vrot.slane %v20636_v25, 4 }
 0x637   :  { %20634 = vst [vmem:[#allocation57_spill] sm:$0xff] %v15615_v15  ;;  %v20733_v15 = vld [vmem:[#allocation247_spill] sm:$0xff] }
 0x638   :  { %7918 = vrot.lane.b32.xlu0 %v4897_v7, %s10010_s15  ;;  %v5526_v39 = vsel %vm1962_vm0, %v20637_v22, %v20636_v25  ;;  %v5566_v8 = vrot.slane %v15627_v2, 4  ;;  %v20638_v7 = vld [vmem:[#allocation35_spill] sm:$0xff] }
 0x639   :  { %v15643_v37 = vperm.slane %v5526_v39, %v10226_v63 }
 0x63a   :  { %v15629_v28 = vpop.permute.xlu0 %7770  ;;  %7792 = vrot.lane.b32.xlu2 %v4979_v52, %s10004_s12  ;;  %v20639_v52 = vrot.slane %v20638_v7, 4 }
 0x63b   :  { %20635 = vst [vmem:[#allocation91_spill] sm:$0xff] %v15629_v28  ;;  %v5567_v50 = vsel %vm1962_vm0, %v5566_v8, %v15643_v37 }
 0x63c   :  { %7884 = vrot.lane.b32.xlu1 %v2125_v24, %s10010_s15  ;;  %v15639_v40 = vpop.permute.xlu2 %7662  ;;  %v6136_v28 = vsel %vm1962_vm0, %v20639_v52, %v20638_v7  ;;  %v2713_v24 = vsel %vm1962_vm0, %v15369_v60, %v2712_v49  ;;  %v20643_v7 = vrot.slane %v20642_v54, 4  ;;  %v20645_v49 = vld [vmem:[#allocation469_spill] sm:$0xff] }
 0x63d   :  { %v15659_v22 = vperm.slane %v6136_v28, %v10226_v63 }
 0x63e   :  { %v15650_v25 = vpop.permute.xlu1 %7672  ;;  %v6114_v8 = vsel %vm1962_vm0, %v20643_v7, %v20642_v54 }
 0x63f   :  { %20640 = vst [vmem:[#allocation326_spill] sm:$0xff] %v15650_v25  ;;  %v6154_v28 = vrot.slane %v15659_v22, 4  ;;  %v15680_v60 = vperm.slane %v6114_v8, %v10226_v63  ;;  %v20723_v25 = vld [vmem:[#allocation366_spill] sm:$0xff] }
 0x640   :  { %7924 = vrot.lane.b32.xlu0 %v5485_v17, %s10010_s15  ;;  %v6073_v17 = vsel %vm1962_vm0, %v15469_v51, %v6072_v33  ;;  %v20648_v51 = vld [vmem:[#allocation42_spill] sm:$0xff]  ;;  %v6324_v33 = vrot.slane %v15542_v57, 4 }
 0x641   :  { %v6155_v19 = vsel %vm1962_vm0, %v6154_v28, %v15680_v60  ;;  %v20649_v7 = vrot.slane %v20648_v51, 4 }
 0x642   :  { %v15661_v39 = vpop.permute.xlu0 %7776  ;;  %7798 = vrot.lane.b32.xlu2 %v5567_v50, %s10004_s12  ;;  %v2964_v50 = vrot.slane %v15434_v36, 4 }
 0x643   :  { %20641 = vst [vmem:[#allocation89_spill] sm:$0xff] %v15661_v39  ;;  %v6702_v8 = vsel %vm1962_vm0, %v20649_v7, %v20648_v51 }
 0x644   :  { %7890 = vrot.lane.b32.xlu1 %v2713_v24, %s10010_s15  ;;  %v15667_v34 = vpop.permute.xlu2 %7668  ;;  %v20646_v24 = vrot.slane %v20645_v49, 4  ;;  %v2965_v36 = vsel %vm1962_vm0, %v15415_v26, %v2964_v50  ;;  %v6325_v26 = vsel %vm1962_vm0, %v15520_v11, %v6324_v33  ;;  %v3552_v50 = vrot.slane %v15493_v42, 4 }
 0x645   :  { %v6912_v42 = vrot.slane %v15592_v48, 4 }
 0x646   :  { %v15675_v52 = vpop.permute.xlu1 %7678  ;;  %v6724_v39 = vsel %vm1962_vm0, %v20646_v24, %v20645_v49  ;;  %v20651_v24 = vrot.slane %v14829_v23, 4 }
 0x647   :  { %20644 = vst [vmem:[#allocation16_spill] sm:$0xff] %v15675_v52  ;;  %v15701_v49 = vperm.slane %v6724_v39, %v10226_v63 }
 0x648   :  { %7930 = vrot.lane.b32.xlu0 %v6073_v17, %s10010_s15  ;;  %v15707_v17 = vperm.slane %v6702_v8, %v10226_v63 }
 0x649   :  { %v6742_v57 = vrot.slane %v15701_v49, 4 }
 0x64a   :  { %v15690_v54 = vpop.permute.xlu0 %7782  ;;  %7804 = vrot.lane.b32.xlu2 %v6155_v19, %s10004_s12  ;;  %v6976_v19 = vsel %vm1962_vm0, %v20651_v24, %v14829_v23  ;;  %v3553_v23 = vsel %vm1962_vm0, %v15461_v27, %v3552_v50 }
 0x64b   :  { %20647 = vst [vmem:[#allocation140_spill] sm:$0xff] %v15690_v54  ;;  %v6743_v39 = vsel %vm1962_vm0, %v6742_v57, %v15707_v17  ;;  %v15723_v7 = vperm.slane %v6976_v19, %v10226_v63  ;;  %v4140_v57 = vrot.slane %v15530_v6, 4  ;;  %v20660_v6 = vld [vmem:[#allocation53_spill] sm:$0xff] }
 0x64c   :  { %7896 = vrot.lane.b32.xlu1 %v2965_v36, %s10010_s15  ;;  %v15704_v28 = vpop.permute.xlu2 %7674  ;;  %v20655_v36 = vrot.slane %v14600_v31, 4 }
 0x64d   :  { %20650 = vst [vmem:[#allocation381_spill] sm:$0xff] %v15704_v28  ;;  %v6994_v24 = vrot.slane %v15723_v7, 4 }
 0x64e   :  { %v15713_v51 = vpop.permute.xlu1 %7684  ;;  %v6954_v33 = vsel %vm1962_vm0, %v20655_v36, %v14600_v31  ;;  %v4141_v31 = vsel %vm1962_vm0, %v15507_v47, %v4140_v57  ;;  %v4980_v57 = vrot.slane %v15620_v20, 4 }
 0x64f   :  { %20652 = vst [vmem:[#allocation147_spill] sm:$0xff] %v15713_v51  ;;  %v6959_v27 = vperm.slane %v6954_v33, %v10226_v63  ;;  %v20662_v33 = vld [vmem:[#allocation54_spill] sm:$0xff]  ;;  %v20711_v51 = vld [vmem:[#allocation280_spill] sm:$0xff] }
 0x650   :  { %7936 = vrot.lane.b32.xlu0 %v6325_v26, %s10010_s15  ;;  %v6913_v26 = vsel %vm1962_vm0, %v15561_v62, %v6912_v42 }
 0x652   :  { %v15725_v8 = vpop.permute.xlu0 %7788  ;;  %7810 = vrot.lane.b32.xlu2 %v6743_v39, %s10004_s12  ;;  %v6995_v39 = vsel %vm1962_vm0, %v6994_v24, %v6959_v27 }
 0x653   :  { %20653 = vst [vmem:[#allocation8_spill] sm:$0xff] %v15725_v8  ;;  %v20746_v8 = vld [vmem:[#allocation29_spill] sm:$0xff] }
 0x654   :  { %7902 = vrot.lane.b32.xlu1 %v3553_v23, %s10010_s15  ;;  %v15731_v11 = vpop.permute.xlu2 %7680  ;;  %v4728_v23 = vrot.slane %v15585_v9, 4 }
 0x655   :  { %20654 = vst [vmem:[#allocation361_spill] sm:$0xff] %v15731_v11 }
 0x656   :  { %v15739_v19 = vpop.permute.xlu1 %7754  ;;  %v4729_v47 = vsel %vm1962_vm0, %v15553_v12, %v4728_v23  ;;  %v5568_v23 = vrot.slane %v15643_v37, 4  ;;  %v6156_v37 = vrot.slane %v15680_v60, 4 }
 0x657   :  { %20656 = vst [vmem:[#allocation33_spill] sm:$0xff] %v15739_v19  ;;  %v20706_v19 = vld [vmem:[#allocation246_spill] sm:$0xff] }
 0x658   :  { %7942 = vrot.lane.b32.xlu0 %v6913_v26, %s10010_s15  ;;  %v20665_v26 = vld [vmem:[#allocation99_spill] sm:$0xff] }
 0x65a   :  { %v15747_v50 = vpop.permute.xlu0 %7794  ;;  %7816 = vrot.lane.b32.xlu2 %v6995_v39, %s10004_s12  ;;  %v20667_v39 = vld [vmem:[#allocation123_spill] sm:$0xff] }
 0x65b   :  { %20657 = vst [vmem:[#allocation199_spill] sm:$0xff] %v15747_v50  ;;  %v20729_v50 = vld [vmem:[#allocation403_spill] sm:$0xff] }
 0x65c   :  { %7908 = vrot.lane.b32.xlu1 %v4141_v31, %s10010_s15  ;;  %v15753_v48 = vpop.permute.xlu2 %7686  ;;  %v4981_v31 = vsel %vm1962_vm0, %v15595_v21, %v4980_v57 }
 0x65d   :  { %20658 = vst [vmem:[#allocation251_spill] sm:$0xff] %v15753_v48 }
 0x65e   :  { %v15755_v62 = vpop.permute.xlu1 %7760 }
 0x65f   :  { %20659 = vst [vmem:[#allocation418_spill] sm:$0xff] %v15755_v62  ;;  %v20700_v62 = vld [vmem:[#allocation453_spill] sm:$0xff] }
 0x660   :  { %8012 = vrot.lane.b32.xlu0 %v20660_v6, %s10011_s16 }
 0x662   :  { %v15760_v36 = vpop.permute.xlu0 %7800  ;;  %7886 = vrot.lane.b32.xlu2 %v20662_v33, %s10010_s15  ;;  %v20670_v33 = vld [vmem:[#allocation156_spill] sm:$0xff] }
 0x663   :  { %20661 = vst [vmem:[#allocation451_spill] sm:$0xff] %v15760_v36  ;;  %v20721_v36 = vld [vmem:[#allocation158_spill] sm:$0xff] }
 0x664   :  { %7914 = vrot.lane.b32.xlu1 %v4729_v47, %s10010_s15  ;;  %v15767_v42 = vpop.permute.xlu2 %7756  ;;  %v20672_v47 = vld [vmem:[#allocation181_spill] sm:$0xff] }
 0x665   :  { %20663 = vst [vmem:[#allocation256_spill] sm:$0xff] %v15767_v42  ;;  %v20840_v42 = vld [vmem:[#allocation440_spill] sm:$0xff] }
 0x666   :  { %v15769_v24 = vpop.permute.xlu1 %7766 }
 0x667   :  { %20664 = vst [vmem:[#allocation90_spill] sm:$0xff] %v15769_v24 }
 0x668   :  { %8018 = vrot.lane.b32.xlu0 %v20665_v26, %s10011_s16  ;;  %v5569_v26 = vsel %vm1962_vm0, %v15627_v2, %v5568_v23 }
 0x66a   :  { %v15774_v9 = vpop.permute.xlu0 %7806  ;;  %7892 = vrot.lane.b32.xlu2 %v20667_v39, %s10010_s15  ;;  %v20675_v39 = vld [vmem:[#allocation226_spill] sm:$0xff] }
 0x66b   :  { %20666 = vst [vmem:[#allocation305_spill] sm:$0xff] %v15774_v9 }
 0x66c   :  { %v15780_v12 = vpop.permute.xlu2 %7762  ;;  %7920 = vrot.lane.b32.xlu1 %v4981_v31, %s10010_s15 }
 0x66d   :  { %20668 = vst [vmem:[#allocation12_spill] sm:$0xff] %v15780_v12 }
 0x66e   :  { %v15783_v6 = vpop.permute.xlu1 %7772 }
 0x66f   :  { %20669 = vst [vmem:[#allocation67_spill] sm:$0xff] %v15783_v6 }
 0x670   :  { %8024 = vrot.lane.b32.xlu0 %v20670_v33, %s10011_s16  ;;  %v20677_v33 = vld [vmem:[#allocation238_spill] sm:$0xff] }
 0x672   :  { %v15788_v20 = vpop.permute.xlu0 %7812  ;;  %7898 = vrot.lane.b32.xlu2 %v20672_v47, %s10010_s15  ;;  %v6157_v47 = vsel %vm1962_vm0, %v15659_v22, %v6156_v37 }
 0x673   :  { %20671 = vst [vmem:[#allocation345_spill] sm:$0xff] %v15788_v20  ;;  %v20709_v20 = vld [vmem:[#allocation31_spill] sm:$0xff] }
 0x674   :  { %v15794_v21 = vpop.permute.xlu2 %7768  ;;  %7926 = vrot.lane.b32.xlu1 %v5569_v26, %s10010_s15  ;;  %v6744_v26 = vrot.slane %v15707_v17, 4  ;;  %v6996_v17 = vrot.slane %v6959_v27, 4  ;;  %v20689_v27 = vld [vmem:[#allocation364_spill] sm:$0xff] }
 0x675   :  { %20673 = vst [vmem:[#allocation380_spill] sm:$0xff] %v15794_v21  ;;  %v20750_v21 = vld [vmem:[#allocation393_spill] sm:$0xff] }
 0x676   :  { %v15797_v57 = vpop.permute.xlu1 %7778 }
 0x677   :  { %20674 = vst [vmem:[#allocation384_spill] sm:$0xff] %v15797_v57  ;;  %v20681_v57 = vld [vmem:[#allocation278_spill] sm:$0xff] }
 0x678   :  { %8030 = vrot.lane.b32.xlu0 %v20675_v39, %s10011_s16  ;;  %v20679_v39 = vld [vmem:[#allocation259_spill] sm:$0xff] }
 0x67a   :  { %v15802_v31 = vpop.permute.xlu0 %7882  ;;  %7904 = vrot.lane.b32.xlu2 %v20677_v33, %s10010_s15  ;;  %v6745_v33 = vsel %vm1962_vm0, %v15701_v49, %v6744_v26  ;;  %v20687_v26 = vld [vmem:[#allocation349_spill] sm:$0xff] }
 0x67b   :  { %20676 = vst [vmem:[#allocation35_spill] sm:$0xff] %v15802_v31  ;;  %v20704_v31 = vld [vmem:[#allocation475_spill] sm:$0xff] }
 0x67c   :  { %v15808_v2 = vpop.permute.xlu2 %7774  ;;  %7932 = vrot.lane.b32.xlu1 %v6157_v47, %s10010_s15  ;;  %v20683_v47 = vld [vmem:[#allocation310_spill] sm:$0xff] }
 0x67d   :  { %20678 = vst [vmem:[#allocation83_spill] sm:$0xff] %v15808_v2  ;;  %v20739_v2 = vld [vmem:[#allocation300_spill] sm:$0xff] }
 0x67e   :  { %v15811_v23 = vpop.permute.xlu1 %7784 }
 0x680   :  { %8036 = vrot.lane.b32.xlu0 %v20679_v39, %s10011_s16  ;;  %v20685_v39 = vld [vmem:[#allocation317_spill] sm:$0xff] }
 0x682   :  { %v15816_v60 = vpop.permute.xlu0 %7888  ;;  %7910 = vrot.lane.b32.xlu2 %v20681_v57, %s10010_s15  ;;  %v6997_v57 = vsel %vm1962_vm0, %v15723_v7, %v6996_v17  ;;  %v20693_v17 = vld [vmem:[#allocation392_spill] sm:$0xff] }
 0x683   :  { %20680 = vst [vmem:[#allocation469_spill] sm:$0xff] %v15816_v60  ;;  %v20699_v60 = vld [vmem:[#allocation444_spill] sm:$0xff] }
 0x684   :  { %v15822_v22 = vpop.permute.xlu2 %7780  ;;  %7938 = vrot.lane.b32.xlu1 %v6745_v33, %s10010_s15 }
 0x685   :  { %20682 = vst [vmem:[#allocation42_spill] sm:$0xff] %v15822_v22 }
 0x686   :  { %v15825_v37 = vpop.permute.xlu1 %7790 }
 0x688   :  { %8042 = vrot.lane.b32.xlu0 %v20683_v47, %s10011_s16 }
 0x68a   :  { %v15829_v6 = vpop.permute.xlu0 %7894  ;;  %7916 = vrot.lane.b32.xlu2 %v20685_v39, %s10010_s15  ;;  %v20691_v39 = vld [vmem:[#allocation56_spill] sm:$0xff] }
 0x68b   :  { %20684 = vst [vmem:[#allocation53_spill] sm:$0xff] %v15829_v6  ;;  %v20695_v6 = vld [vmem:[#allocation406_spill] sm:$0xff] }
 0x68c   :  { %v15835_v24 = vpop.permute.xlu2 %7786  ;;  %7944 = vrot.lane.b32.xlu1 %v6997_v57, %s10010_s15 }
 0x68d   :  { %20686 = vst [vmem:[#allocation54_spill] sm:$0xff] %v15835_v24 }
 0x68e   :  { %v15838_v49 = vpop.permute.xlu1 %7796 }
 0x690   :  { %8048 = vrot.lane.b32.xlu0 %v20687_v26, %s10011_s16 }
 0x692   :  { %v15842_v33 = vpop.permute.xlu0 %7900  ;;  %7922 = vrot.lane.b32.xlu2 %v20689_v27, %s10010_s15 }
 0x693   :  { %20688 = vst [vmem:[#allocation99_spill] sm:$0xff] %v15842_v33  ;;  %v20697_v33 = vld [vmem:[#allocation127_spill] sm:$0xff] }
 0x694   :  { %v15846_v47 = vpop.permute.xlu2 %7792  ;;  %8014 = vrot.lane.b32.xlu1 %v20691_v39, %s10011_s16 }
 0x695   :  { %20690 = vst [vmem:[#allocation123_spill] sm:$0xff] %v15846_v47 }
 0x696   :  { %v15850_v7 = vpop.permute.xlu1 %7802 }
 0x697   :  { %20692 = vst [vmem:[#allocation156_spill] sm:$0xff] %v15850_v7  ;;  %v20909_v7 = vld [vmem:[#allocation473_spill] sm:$0xff] }
 0x698   :  { %8054 = vrot.lane.b32.xlu0 %v20693_v17, %s10011_s16 }
 0x69a   :  { %v15854_v57 = vpop.permute.xlu0 %7906  ;;  %7928 = vrot.lane.b32.xlu2 %v20695_v6, %s10010_s15 }
 0x69b   :  { %20694 = vst [vmem:[#allocation181_spill] sm:$0xff] %v15854_v57  ;;  %v20702_v57 = vld [vmem:[#allocation177_spill] sm:$0xff] }
 0x69c   :  { %v15858_v26 = vpop.permute.xlu2 %7798  ;;  %8020 = vrot.lane.b32.xlu1 %v20697_v33, %s10011_s16 }
 0x69d   :  { %20696 = vst [vmem:[#allocation226_spill] sm:$0xff] %v15858_v26  ;;  %v20744_v26 = vld [vmem:[#allocation331_spill] sm:$0xff] }
 0x69e   :  { %v15862_v27 = vpop.permute.xlu1 %7808 }
 0x69f   :  { %20698 = vst [vmem:[#allocation238_spill] sm:$0xff] %v15862_v27  ;;  %v20888_v27 = vld [vmem:[#allocation220_spill] sm:$0xff] }
 0x6a0   :  { %8060 = vrot.lane.b32.xlu0 %v20699_v60, %s10011_s16 }
 0x6a2   :  { %v15866_v39 = vpop.permute.xlu0 %7912  ;;  %7934 = vrot.lane.b32.xlu2 %v20700_v62, %s10010_s15 }
 0x6a4   :  { %v15870_v17 = vpop.permute.xlu2 %7804  ;;  %8026 = vrot.lane.b32.xlu1 %v20702_v57, %s10011_s16 }
 0x6a5   :  { %20701 = vst [vmem:[#allocation259_spill] sm:$0xff] %v15870_v17  ;;  %v20727_v17 = vld [vmem:[#allocation206_spill] sm:$0xff] }
 0x6a6   :  { %v15874_v6 = vpop.permute.xlu1 %7814 }
 0x6a7   :  { %20703 = vst [vmem:[#allocation278_spill] sm:$0xff] %v15874_v6 }
 0x6a8   :  { %8066 = vrot.lane.b32.xlu0 %v20704_v31, %s10011_s16 }
 0x6aa   :  { %v15878_v33 = vpop.permute.xlu0 %7918  ;;  %7940 = vrot.lane.b32.xlu2 %v14461_v58, %s10010_s15 }
 0x6ac   :  { %v15882_v60 = vpop.permute.xlu2 %7810  ;;  %8032 = vrot.lane.b32.xlu1 %v20706_v19, %s10011_s16  ;;  %v20713_v19 = vld [vmem:[#allocation58_spill] sm:$0xff] }
 0x6ad   :  { %20705 = vst [vmem:[#allocation310_spill] sm:$0xff] %v15882_v60 }
 0x6ae   :  { %v15886_v62 = vpop.permute.xlu1 %7884 }
 0x6af   :  { %20707 = vst [vmem:[#allocation317_spill] sm:$0xff] %v15886_v62 }
 0x6b0   :  { %8072 = vrot.lane.b32.xlu0 %v14882_v14, %s10011_s16  ;;  %v20715_v14 = vld [vmem:[#allocation73_spill] sm:$0xff] }
 0x6b2   :  { %v15890_v57 = vpop.permute.xlu0 %7924  ;;  %8010 = vrot.lane.b32.xlu2 %v20709_v20, %s10011_s16  ;;  %v20717_v20 = vld [vmem:[#allocation315_spill] sm:$0xff] }
 0x6b3   :  { %20708 = vst [vmem:[#allocation349_spill] sm:$0xff] %v15890_v57 }
 0x6b4   :  { %v15894_v31 = vpop.permute.xlu2 %7816  ;;  %8038 = vrot.lane.b32.xlu1 %v20711_v51, %s10011_s16  ;;  %v20719_v51 = vld [vmem:[#allocation124_spill] sm:$0xff] }
 0x6b5   :  { %20710 = vst [vmem:[#allocation364_spill] sm:$0xff] %v15894_v31 }
 0x6b6   :  { %v15898_v58 = vpop.permute.xlu1 %7890 }
 0x6b7   :  { %20712 = vst [vmem:[#allocation56_spill] sm:$0xff] %v15898_v58 }
 0x6b8   :  { %8142 = vrot.lane.b32.xlu0 %v20713_v19, %s10012_s17 }
 0x6ba   :  { %v15902_v9 = vpop.permute.xlu0 %7930  ;;  %8016 = vrot.lane.b32.xlu2 %v20715_v14, %s10011_s16 }
 0x6bb   :  { %20714 = vst [vmem:[#allocation392_spill] sm:$0xff] %v15902_v9 }
 0x6bc   :  { %v15906_v52 = vpop.permute.xlu2 %7886  ;;  %8044 = vrot.lane.b32.xlu1 %v20717_v20, %s10011_s16 }
 0x6bd   :  { %20716 = vst [vmem:[#allocation406_spill] sm:$0xff] %v15906_v52  ;;  %v20725_v52 = vld [vmem:[#allocation184_spill] sm:$0xff] }
 0x6be   :  { %v15910_v31 = vpop.permute.xlu1 %7896 }
 0x6bf   :  { %20718 = vst [vmem:[#allocation127_spill] sm:$0xff] %v15910_v31  ;;  %v20748_v31 = vld [vmem:[#allocation370_spill] sm:$0xff] }
 0x6c0   :  { %8148 = vrot.lane.b32.xlu0 %v20719_v51, %s10012_s17 }
 0x6c2   :  { %v15914_v60 = vpop.permute.xlu0 %7936  ;;  %8022 = vrot.lane.b32.xlu2 %v20721_v36, %s10011_s16 }
 0x6c3   :  { %20720 = vst [vmem:[#allocation444_spill] sm:$0xff] %v15914_v60 }
 0x6c4   :  { %v15918_v19 = vpop.permute.xlu2 %7892  ;;  %8050 = vrot.lane.b32.xlu1 %v20723_v25, %s10011_s16 }
 0x6c5   :  { %20722 = vst [vmem:[#allocation453_spill] sm:$0xff] %v15918_v19  ;;  %v20731_v19 = vld [vmem:[#allocation243_spill] sm:$0xff] }
 0x6c6   :  { %v15922_v14 = vpop.permute.xlu1 %7902 }
 0x6c7   :  { %20724 = vst [vmem:[#allocation177_spill] sm:$0xff] %v15922_v14  ;;  %v20735_v14 = vld [vmem:[#allocation456_spill] sm:$0xff] }
 0x6c8   :  { %8154 = vrot.lane.b32.xlu0 %v20725_v52, %s10012_s17 }
 0x6ca   :  { %v15926_v20 = vpop.permute.xlu0 %7942  ;;  %8028 = vrot.lane.b32.xlu2 %v20727_v17, %s10011_s16 }
 0x6cb   :  { %20726 = vst [vmem:[#allocation475_spill] sm:$0xff] %v15926_v20 }
 0x6cc   :  { %v15930_v51 = vpop.permute.xlu2 %7898  ;;  %8056 = vrot.lane.b32.xlu1 %v20729_v50, %s10011_s16 }
 0x6cd   :  { %20728 = vst [vmem:[#allocation246_spill] sm:$0xff] %v15930_v51  ;;  %v20737_v51 = vld [vmem:[#allocation279_spill] sm:$0xff] }
 0x6ce   :  { %v15934_v36 = vpop.permute.xlu1 %7908 }
 0x6cf   :  { %20730 = vst [vmem:[#allocation31_spill] sm:$0xff] %v15934_v36 }
 0x6d0   :  { %8160 = vrot.lane.b32.xlu0 %v20731_v19, %s10012_s17 }
 0x6d2   :  { %v15938_v25 = vpop.permute.xlu0 %8012  ;;  %8034 = vrot.lane.b32.xlu2 %v20733_v15, %s10011_s16 }
 0x6d3   :  { %20732 = vst [vmem:[#allocation280_spill] sm:$0xff] %v15938_v25 }
 0x6d4   :  { %v15942_v52 = vpop.permute.xlu2 %7904  ;;  %8062 = vrot.lane.b32.xlu1 %v20735_v14, %s10011_s16 }
 0x6d5   :  { %20734 = vst [vmem:[#allocation58_spill] sm:$0xff] %v15942_v52  ;;  %v20742_v52 = vld [vmem:[#allocation318_spill] sm:$0xff] }
 0x6d6   :  { %v15946_v17 = vpop.permute.xlu1 %7914 }
 0x6d7   :  { %20736 = vst [vmem:[#allocation73_spill] sm:$0xff] %v15946_v17 }
 0x6d8   :  { %8166 = vrot.lane.b32.xlu0 %v20737_v51, %s10012_s17 }
 0x6da   :  { %v15950_v50 = vpop.permute.xlu0 %8018  ;;  %8040 = vrot.lane.b32.xlu2 %v20739_v2, %s10011_s16 }
 0x6db   :  { %20738 = vst [vmem:[#allocation315_spill] sm:$0xff] %v15950_v50 }
 0x6dc   :  { %v15954_v19 = vpop.permute.xlu2 %7910  ;;  %8068 = vrot.lane.b32.xlu1 %v14474_v18, %s10011_s16 }
 0x6dd   :  { %20740 = vst [vmem:[#allocation124_spill] sm:$0xff] %v15954_v19 }
 0x6de   :  { %v15958_v15 = vpop.permute.xlu1 %7920 }
 0x6df   :  { %20741 = vst [vmem:[#allocation158_spill] sm:$0xff] %v15958_v15  ;;  %v20764_v15 = vld [vmem:[#allocation205_spill] sm:$0xff] }
 0x6e0   :  { %8172 = vrot.lane.b32.xlu0 %v20742_v52, %s10012_s17 }
 0x6e2   :  { %v15962_v14 = vpop.permute.xlu0 %8024  ;;  %8046 = vrot.lane.b32.xlu2 %v20744_v26, %s10011_s16 }
 0x6e3   :  { %20743 = vst [vmem:[#allocation366_spill] sm:$0xff] %v15962_v14  ;;  %v20752_v14 = vld [vmem:[#allocation76_spill] sm:$0xff] }
 0x6e4   :  { %v15966_v51 = vpop.permute.xlu2 %7916  ;;  %8138 = vrot.lane.b32.xlu1 %v20746_v8, %s10012_s17 }
 0x6e5   :  { %20745 = vst [vmem:[#allocation184_spill] sm:$0xff] %v15966_v51  ;;  %v20754_v51 = vld [vmem:[#allocation407_spill] sm:$0xff] }
 0x6e6   :  { %v15970_v2 = vpop.permute.xlu1 %7926 }
 0x6e7   :  { %20747 = vst [vmem:[#allocation206_spill] sm:$0xff] %v15970_v2  ;;  %v20756_v2 = vld [vmem:[#allocation427_spill] sm:$0xff] }
 0x6e8   :  { %8178 = vrot.lane.b32.xlu0 %v20748_v31, %s10012_s17 }
 0x6ea   :  { %v15974_v18 = vpop.permute.xlu0 %8030  ;;  %8052 = vrot.lane.b32.xlu2 %v20750_v21, %s10011_s16 }
 0x6eb   :  { %20749 = vst [vmem:[#allocation403_spill] sm:$0xff] %v15974_v18  ;;  %v20758_v18 = vld [vmem:[#allocation157_spill] sm:$0xff] }
 0x6ec   :  { %v15978_v52 = vpop.permute.xlu2 %7922  ;;  %8144 = vrot.lane.b32.xlu1 %v20752_v14, %s10012_s17 }
 0x6ed   :  { %20751 = vst [vmem:[#allocation243_spill] sm:$0xff] %v15978_v52  ;;  %v20760_v52 = vld [vmem:[#allocation454_spill] sm:$0xff] }
 0x6ee   :  { %v15982_v26 = vpop.permute.xlu1 %7932 }
 0x6ef   :  { %20753 = vst [vmem:[#allocation247_spill] sm:$0xff] %v15982_v26  ;;  %v20762_v26 = vld [vmem:[#allocation458_spill] sm:$0xff] }
 0x6f0   :  { %8184 = vrot.lane.b32.xlu0 %v20754_v51, %s10012_s17 }
 0x6f2   :  { %v15986_v8 = vpop.permute.xlu0 %8036  ;;  %8058 = vrot.lane.b32.xlu2 %v20756_v2, %s10011_s16 }
 0x6f3   :  { %20755 = vst [vmem:[#allocation456_spill] sm:$0xff] %v15986_v8 }
 0x6f4   :  { %v15990_v31 = vpop.permute.xlu2 %7928  ;;  %8150 = vrot.lane.b32.xlu1 %v20758_v18, %s10012_s17 }
 0x6f5   :  { %20757 = vst [vmem:[#allocation279_spill] sm:$0xff] %v15990_v31  ;;  %v20766_v31 = vld [vmem:[#allocation17_spill] sm:$0xff] }
 0x6f6   :  { %v15994_v21 = vpop.permute.xlu1 %7938  ;;  %v20767_v18 = vrot.slane %v20766_v31, 4 }
 0x6f7   :  { %20759 = vst [vmem:[#allocation300_spill] sm:$0xff] %v15994_v21 }
 0x6f8   :  { %8190 = vrot.lane.b32.xlu0 %v20760_v52, %s10012_s17  ;;  %v2345_v21 = vsel %vm1962_vm0, %v20767_v18, %v20766_v31  ;;  %v20768_v52 = vld [vmem:[#allocation107_spill] sm:$0xff] }
 0x6f9   :  { %v20769_v47 = vrot.slane %v20768_v52, 4 }
 0x6fa   :  { %v15998_v14 = vpop.permute.xlu0 %8042  ;;  %8064 = vrot.lane.b32.xlu2 %v20762_v26, %s10011_s16 }
 0x6fb   :  { %20761 = vst [vmem:[#allocation318_spill] sm:$0xff] %v15998_v14  ;;  %v2323_v26 = vsel %vm1962_vm0, %v20769_v47, %v20768_v52  ;;  %v20776_v52 = vld [vmem:[#allocation84_spill] sm:$0xff] }
 0x6fc   :  { %v16002_v51 = vpop.permute.xlu2 %7934  ;;  %8156 = vrot.lane.b32.xlu1 %v20764_v15, %s10012_s17  ;;  %v16026_v15 = vperm.slane %v2323_v26, %v10226_v63  ;;  %v2618_v26 = vrot.slane %v20776_v52, 4 }
 0x6fd   :  { %20763 = vst [vmem:[#allocation331_spill] sm:$0xff] %v16002_v51  ;;  %v16019_v51 = vperm.slane %v2345_v21, %v10226_v63 }
 0x6fe   :  { %v16006_v2 = vpop.permute.xlu1 %7944 }
 0x6ff   :  { %20765 = vst [vmem:[#allocation29_spill] sm:$0xff] %v16006_v2  ;;  %v2366_v18 = vrot.slane %v16019_v51, 4 }
 0x700   :  { %8196 = vrot.lane.b32.xlu0 %v14464_v29, %s10012_s17  ;;  %v20772_v29 = vld [vmem:[#allocation248_spill] sm:$0xff] }
 0x701   :  { %v2367_v47 = vsel %vm1962_vm0, %v2366_v18, %v16026_v15 }
 0x702   :  { %v16021_v19 = vpop.permute.xlu0 %8048  ;;  %8070 = vrot.lane.b32.xlu2 %v14724_v5, %s10011_s16  ;;  %v20775_v5 = vld [vmem:[#allocation52_spill] sm:$0xff] }
 0x703   :  { %20770 = vst [vmem:[#allocation370_spill] sm:$0xff] %v16021_v19 }
 0x704   :  { %v16028_v31 = vpop.permute.xlu2 %7940  ;;  %8162 = vrot.lane.b32.xlu1 %v20772_v29, %s10012_s17  ;;  %v20778_v29 = vld [vmem:[#allocation299_spill] sm:$0xff] }
 0x705   :  { %20771 = vst [vmem:[#allocation393_spill] sm:$0xff] %v16028_v31 }
 0x706   :  { %v16033_v2 = vpop.permute.xlu1 %8014 }
 0x707   :  { %20773 = vst [vmem:[#allocation76_spill] sm:$0xff] %v16033_v2  ;;  %v20780_v2 = vld [vmem:[#allocation81_spill] sm:$0xff] }
 0x708   :  { %8266 = vrot.lane.b32.xlu0 %v2367_v47, %s10013_s18  ;;  %v2619_v18 = vsel %vm1962_vm0, %v2618_v26, %v20780_v2  ;;  %v20789_v26 = vld [vmem:[#allocation159_spill] sm:$0xff] }
 0x70a   :  { %v16038_v21 = vpop.permute.xlu0 %8054  ;;  %8140 = vrot.lane.b32.xlu2 %v20775_v5, %s10012_s17  ;;  %v20783_v5 = vld [vmem:[#allocation139_spill] sm:$0xff] }
 0x70b   :  { %20774 = vst [vmem:[#allocation407_spill] sm:$0xff] %v16038_v21  ;;  %v20782_v21 = vld [vmem:[#allocation98_spill] sm:$0xff]  ;;  %v3206_v54 = vrot.slane %v20783_v5, 4 }
 0x70c   :  { %v16043_v31 = vpop.permute.xlu2 %8010  ;;  %8168 = vrot.lane.b32.xlu1 %v20778_v29, %s10012_s17 }
 0x70d   :  { %20777 = vst [vmem:[#allocation427_spill] sm:$0xff] %v16043_v31  ;;  %v20785_v31 = vld [vmem:[#allocation334_spill] sm:$0xff] }
 0x70e   :  { %v16047_v19 = vpop.permute.xlu1 %8020 }
 0x70f   :  { %20779 = vst [vmem:[#allocation157_spill] sm:$0xff] %v16047_v19  ;;  %v20787_v19 = vld [vmem:[#allocation138_spill] sm:$0xff] }
 0x710   :  { %8272 = vrot.lane.b32.xlu0 %v2619_v18, %s10013_s18  ;;  %v3207_v50 = vsel %vm1962_vm0, %v3206_v54, %v20787_v19  ;;  %v20797_v19 = vld [vmem:[#allocation250_spill] sm:$0xff] }
 0x712   :  { %v16052_v47 = vpop.permute.xlu0 %8060  ;;  %8146 = vrot.lane.b32.xlu2 %v20782_v21, %s10012_s17  ;;  %v20790_v21 = vld [vmem:[#allocation213_spill] sm:$0xff] }
 0x713   :  { %20781 = vst [vmem:[#allocation454_spill] sm:$0xff] %v16052_v47  ;;  %v3794_v18 = vrot.slane %v20790_v21, 4 }
 0x714   :  { %v16057_v52 = vpop.permute.xlu2 %8016  ;;  %8174 = vrot.lane.b32.xlu1 %v20785_v31, %s10012_s17 }
 0x715   :  { %20784 = vst [vmem:[#allocation458_spill] sm:$0xff] %v16057_v52  ;;  %v20792_v52 = vld [vmem:[#allocation389_spill] sm:$0xff] }
 0x716   :  { %v16061_v29 = vpop.permute.xlu1 %8026 }
 0x717   :  { %20786 = vst [vmem:[#allocation205_spill] sm:$0xff] %v16061_v29  ;;  %v20794_v29 = vld [vmem:[#allocation210_spill] sm:$0xff] }
 0x718   :  { %8278 = vrot.lane.b32.xlu0 %v3207_v50, %s10013_s18  ;;  %v3795_v47 = vsel %vm1962_vm0, %v3794_v18, %v20794_v29  ;;  %v20796_v50 = vld [vmem:[#allocation224_spill] sm:$0xff]  ;;  %v20803_v29 = vld [vmem:[#allocation262_spill] sm:$0xff] }
 0x719   :  { %v20804_v18 = vld [vmem:[#allocation290_spill] sm:$0xff] }
 0x71a   :  { %v16066_v2 = vpop.permute.xlu0 %8066  ;;  %8152 = vrot.lane.b32.xlu2 %v20789_v26, %s10012_s17  ;;  %v4382_v26 = vrot.slane %v20797_v19, 4 }
 0x71b   :  { %20788 = vst [vmem:[#allocation17_spill] sm:$0xff] %v16066_v2 }
 0x71c   :  { %v16071_v5 = vpop.permute.xlu2 %8022  ;;  %8180 = vrot.lane.b32.xlu1 %v20792_v52, %s10012_s17 }
 0x71d   :  { %20791 = vst [vmem:[#allocation107_spill] sm:$0xff] %v16071_v5  ;;  %v20799_v5 = vld [vmem:[#allocation426_spill] sm:$0xff] }
 0x71e   :  { %v16075_v31 = vpop.permute.xlu1 %8032 }
 0x71f   :  { %20793 = vst [vmem:[#allocation248_spill] sm:$0xff] %v16075_v31  ;;  %v20801_v31 = vld [vmem:[#allocation249_spill] sm:$0xff] }
 0x720   :  { %8284 = vrot.lane.b32.xlu0 %v3795_v47, %s10013_s18  ;;  %v4383_v2 = vsel %vm1962_vm0, %v4382_v26, %v20801_v31  ;;  %v20809_v31 = vld [vmem:[#allocation110_spill] sm:$0xff] }
 0x722   :  { %v16080_v54 = vpop.permute.xlu0 %8072  ;;  %8158 = vrot.lane.b32.xlu2 %v20796_v50, %s10012_s17  ;;  %v4634_v50 = vrot.slane %v20804_v18, 4  ;;  %v20812_v18 = vld [vmem:[#allocation313_spill] sm:$0xff] }
 0x723   :  { %20795 = vst [vmem:[#allocation52_spill] sm:$0xff] %v16080_v54  ;;  %v20808_v54 = vld [vmem:[#allocation289_spill] sm:$0xff] }
 0x724   :  { %v16085_v21 = vpop.permute.xlu2 %8028  ;;  %8186 = vrot.lane.b32.xlu1 %v20799_v5, %s10012_s17 }
 0x725   :  { %20798 = vst [vmem:[#allocation84_spill] sm:$0xff] %v16085_v21  ;;  %v20806_v21 = vld [vmem:[#allocation459_spill] sm:$0xff] }
 0x726   :  { %v16089_v52 = vpop.permute.xlu1 %8038 }
 0x727   :  { %20800 = vst [vmem:[#allocation299_spill] sm:$0xff] %v16089_v52  ;;  %v4635_v52 = vsel %vm1962_vm0, %v4634_v50, %v20808_v54  ;;  %v20815_v50 = vld [vmem:[#allocation34_spill] sm:$0xff] }
 0x728   :  { %8290 = vrot.lane.b32.xlu0 %v4383_v2, %s10013_s18  ;;  %v20810_v2 = vrot.slane %v20809_v31, 4 }
 0x72a   :  { %v16094_v47 = vpop.permute.xlu0 %8142  ;;  %8164 = vrot.lane.b32.xlu2 %v20803_v29, %s10012_s17  ;;  %v2429_v26 = vsel %vm1962_vm0, %v20810_v2, %v20809_v31  ;;  %v20817_v2 = vld [vmem:[#allocation339_spill] sm:$0xff] }
 0x72b   :  { %20802 = vst [vmem:[#allocation81_spill] sm:$0xff] %v16094_v47 }
 0x72c   :  { %v16099_v19 = vpop.permute.xlu2 %8034  ;;  %8192 = vrot.lane.b32.xlu1 %v20806_v21, %s10012_s17  ;;  %v16118_v21 = vperm.slane %v2429_v26, %v10226_v63 }
 0x72d   :  { %20805 = vst [vmem:[#allocation98_spill] sm:$0xff] %v16099_v19  ;;  %v20813_v19 = vld [vmem:[#allocation341_spill] sm:$0xff] }
 0x72e   :  { %v16103_v5 = vpop.permute.xlu1 %8044  ;;  %v5222_v47 = vrot.slane %v20813_v19, 4  ;;  %v2450_v19 = vrot.slane %v16118_v21, 4 }
 0x72f   :  { %20807 = vst [vmem:[#allocation139_spill] sm:$0xff] %v16103_v5 }
 0x730   :  { %8296 = vrot.lane.b32.xlu0 %v4635_v52, %s10013_s18  ;;  %v20816_v52 = vrot.slane %v20815_v50, 4 }
 0x732   :  { %v16112_v29 = vpop.permute.xlu0 %8148  ;;  %8170 = vrot.lane.b32.xlu2 %v20812_v18, %s10012_s17  ;;  %v2407_v31 = vsel %vm1962_vm0, %v20816_v52, %v20815_v50  ;;  %v5223_v18 = vsel %vm1962_vm0, %v5222_v47, %v20817_v2  ;;  %v20822_v52 = vld [vmem:[#allocation376_spill] sm:$0xff] }
 0x733   :  { %20811 = vst [vmem:[#allocation334_spill] sm:$0xff] %v16112_v29  ;;  %v16135_v26 = vperm.slane %v2407_v31, %v10226_v63  ;;  %v5810_v2 = vrot.slane %v20822_v52, 4  ;;  %v20823_v31 = vld [vmem:[#allocation125_spill] sm:$0xff]  ;;  %v20827_v52 = vld [vmem:[#allocation164_spill] sm:$0xff] }
 0x734   :  { %v16120_v5 = vpop.permute.xlu2 %8040  ;;  %8198 = vrot.lane.b32.xlu1 %v14710_v44, %s10012_s17  ;;  %v20819_v44 = vld [vmem:[#allocation348_spill] sm:$0xff]  ;;  %v20828_v17 = vrot.slane %v20827_v52, 4 }
 0x735   :  { %v2451_v47 = vsel %vm1962_vm0, %v2450_v19, %v16135_v26 }
 0x736   :  { %v16124_v54 = vpop.permute.xlu1 %8050 }
 0x737   :  { %20814 = vst [vmem:[#allocation138_spill] sm:$0xff] %v16124_v54  ;;  %v20820_v54 = vld [vmem:[#allocation102_spill] sm:$0xff] }
 0x738   :  { %8302 = vrot.lane.b32.xlu0 %v5223_v18, %s10013_s18  ;;  %v20821_v58 = vrot.slane %v20820_v54, 4  ;;  %v20824_v18 = vrot.slane %v20823_v31, 4 }
 0x73a   :  { %v16137_v29 = vpop.permute.xlu0 %8154  ;;  %8176 = vrot.lane.b32.xlu2 %v20819_v44, %s10012_s17  ;;  %v3017_v50 = vsel %vm1962_vm0, %v20821_v58, %v20820_v54  ;;  %v20826_v58 = vld [vmem:[#allocation374_spill] sm:$0xff] }
 0x73b   :  { %20818 = vst [vmem:[#allocation159_spill] sm:$0xff] %v16137_v29  ;;  %v2995_v29 = vsel %vm1962_vm0, %v20824_v18, %v20823_v31  ;;  %v16156_v44 = vperm.slane %v3017_v50, %v10226_v63  ;;  %v5811_v54 = vsel %vm1962_vm0, %v5810_v2, %v20826_v58  ;;  %v20830_v50 = vld [vmem:[#allocation394_spill] sm:$0xff]  ;;  %v20831_v58 = vld [vmem:[#allocation431_spill] sm:$0xff] }
 0x73c   :  { %v16148_v12 = vpop.permute.xlu2 %8046  ;;  %8268 = vrot.lane.b32.xlu1 %v2451_v47, %s10013_s18  ;;  %v16163_v19 = vperm.slane %v2995_v29, %v10226_v63  ;;  %v3269_v47 = vsel %vm1962_vm0, %v20828_v17, %v20827_v52  ;;  %v6398_v29 = vrot.slane %v20831_v58, 4 }
 0x73d   :  { %v3038_v31 = vrot.slane %v16156_v44, 4 }
 0x73e   :  { %v16158_v14 = vpop.permute.xlu1 %8056 }
 0x73f   :  { %20825 = vst [vmem:[#allocation213_spill] sm:$0xff] %v16158_v14  ;;  %v3039_v2 = vsel %vm1962_vm0, %v3038_v31, %v16163_v19  ;;  %v16179_v14 = vperm.slane %v3269_v47, %v10226_v63  ;;  %v20837_v47 = vld [vmem:[#allocation208_spill] sm:$0xff] }
 0x740   :  { %8308 = vrot.lane.b32.xlu0 %v5811_v54, %s10013_s18  ;;  %v20834_v54 = vld [vmem:[#allocation161_spill] sm:$0xff]  ;;  %v20838_v58 = vrot.slane %v20837_v47, 4 }
 0x741   :  { %v20835_v52 = vrot.slane %v20834_v54, 4  ;;  %v3290_v31 = vrot.slane %v16179_v14, 4 }
 0x742   :  { %v16171_v18 = vpop.permute.xlu0 %8160  ;;  %8182 = vrot.lane.b32.xlu2 %v20830_v50, %s10012_s17  ;;  %v20836_v50 = vld [vmem:[#allocation430_spill] sm:$0xff]  ;;  %v3857_v62 = vsel %vm1962_vm0, %v20838_v58, %v20837_v47  ;;  %v20843_v47 = vld [vmem:[#allocation212_spill] sm:$0xff] }
 0x743   :  { %20829 = vst [vmem:[#allocation389_spill] sm:$0xff] %v16171_v18  ;;  %v3247_v18 = vsel %vm1962_vm0, %v20835_v52, %v20834_v54  ;;  %v6399_v25 = vsel %vm1962_vm0, %v6398_v29, %v20836_v50  ;;  %v20841_v54 = vld [vmem:[#allocation95_spill] sm:$0xff] }
 0x744   :  { %v16181_v24 = vpop.permute.xlu2 %8052  ;;  %8274 = vrot.lane.b32.xlu1 %v3039_v2, %s10013_s18  ;;  %v16199_v2 = vperm.slane %v3247_v18, %v10226_v63  ;;  %v6650_v52 = vrot.slane %v20841_v54, 4  ;;  %v20844_v18 = vrot.slane %v20843_v47, 4  ;;  %v20847_v54 = vld [vmem:[#allocation268_spill] sm:$0xff] }
 0x745   :  { %20832 = vst [vmem:[#allocation210_spill] sm:$0xff] %v16181_v24 }
 0x746   :  { %v16184_v17 = vpop.permute.xlu1 %8062  ;;  %v3291_v29 = vsel %vm1962_vm0, %v3290_v31, %v16199_v2  ;;  %v3835_v58 = vsel %vm1962_vm0, %v20844_v18, %v20843_v47  ;;  %v20850_v47 = vld [vmem:[#allocation478_spill] sm:$0xff]  ;;  %v7238_v18 = vrot.slane %v14603_v3, 4 }
 0x747   :  { %20833 = vst [vmem:[#allocation224_spill] sm:$0xff] %v16184_v17  ;;  %v16223_v31 = vperm.slane %v3835_v58, %v10226_v63 }
 0x748   :  { %8314 = vrot.lane.b32.xlu0 %v6399_v25, %s10013_s18  ;;  %v16209_v25 = vperm.slane %v3857_v62, %v10226_v63  ;;  %v7239_v3 = vsel %vm1962_vm0, %v7238_v18, %v14591_v53 }
 0x74a   :  { %v16201_v17 = vpop.permute.xlu0 %8166  ;;  %8188 = vrot.lane.b32.xlu2 %v20840_v42, %s10012_s17  ;;  %v20846_v42 = vld [vmem:[#allocation467_spill] sm:$0xff]  ;;  %v3878_v62 = vrot.slane %v16209_v25, 4 }
 0x74b   :  { %20839 = vst [vmem:[#allocation250_spill] sm:$0xff] %v16201_v17  ;;  %v6651_v8 = vsel %vm1962_vm0, %v6650_v52, %v20846_v42 }
 0x74c   :  { %v16211_v50 = vpop.permute.xlu2 %8058  ;;  %8280 = vrot.lane.b32.xlu1 %v3291_v29, %s10013_s18  ;;  %v20848_v29 = vrot.slane %v20847_v54, 4  ;;  %v3879_v52 = vsel %vm1962_vm0, %v3878_v62, %v16223_v31 }
 0x74d   :  { %20842 = vst [vmem:[#allocation426_spill] sm:$0xff] %v16211_v50 }
 0x74e   :  { %v16218_v17 = vpop.permute.xlu1 %8068  ;;  %v4445_v36 = vsel %vm1962_vm0, %v20848_v29, %v20847_v54  ;;  %v20853_v54 = vld [vmem:[#allocation255_spill] sm:$0xff] }
 0x74f   :  { %20845 = vst [vmem:[#allocation249_spill] sm:$0xff] %v16218_v17  ;;  %v16239_v58 = vperm.slane %v4445_v36, %v10226_v63  ;;  %v20854_v29 = vrot.slane %v20853_v54, 4 }
 0x750   :  { %8320 = vrot.lane.b32.xlu0 %v6651_v8, %s10013_s18 }
 0x751   :  { %v4423_v17 = vsel %vm1962_vm0, %v20854_v29, %v20853_v54  ;;  %v4466_v36 = vrot.slane %v16239_v58, 4 }
 0x752   :  { %v16231_v22 = vpop.permute.xlu0 %8172  ;;  %8194 = vrot.lane.b32.xlu2 %v20850_v47, %s10012_s17  ;;  %v20855_v47 = vld [vmem:[#allocation118_spill] sm:$0xff]  ;;  %v16263_v6 = vperm.slane %v4423_v17, %v10226_v63  ;;  %v20861_v17 = vld [vmem:[#allocation60_spill] sm:$0xff] }
 0x753   :  { %20849 = vst [vmem:[#allocation262_spill] sm:$0xff] %v16231_v22  ;;  %v20856_v22 = vrot.slane %v20855_v47, 4 }
 0x754   :  { %v16241_v42 = vpop.permute.xlu2 %8064  ;;  %8286 = vrot.lane.b32.xlu1 %v3879_v52, %s10013_s18  ;;  %v20857_v52 = vld [vmem:[#allocation296_spill] sm:$0xff]  ;;  %v4467_v53 = vsel %vm1962_vm0, %v4466_v36, %v16263_v6 }
 0x755   :  { %20851 = vst [vmem:[#allocation290_spill] sm:$0xff] %v16241_v42  ;;  %v2513_v62 = vsel %vm1962_vm0, %v20856_v22, %v20855_v47 }
 0x756   :  { %v16244_v8 = vpop.permute.xlu1 %8138  ;;  %v16266_v54 = vperm.slane %v2513_v62, %v10226_v63  ;;  %v20863_v62 = vld [vmem:[#allocation302_spill] sm:$0xff] }
 0x757   :  { %20852 = vst [vmem:[#allocation459_spill] sm:$0xff] %v16244_v8  ;;  %v20858_v8 = vrot.slane %v20857_v52, 4 }
 0x758   :  { %8326 = vrot.lane.b32.xlu0 %v7239_v3, %s10013_s18  ;;  %v20864_v3 = vrot.slane %v20863_v62, 4  ;;  %v2534_v36 = vrot.slane %v16266_v54, 4 }
 0x759   :  { %v5033_v20 = vsel %vm1962_vm0, %v20858_v8, %v20857_v52  ;;  %v20862_v8 = vrot.slane %v20861_v17, 4  ;;  %v2452_v52 = vrot.slane %v16135_v26, 4 }
 0x75a   :  { %v16268_v29 = vpop.permute.xlu0 %8178  ;;  %8200 = vrot.lane.b32.xlu2 %v14875_v55, %s10012_s17  ;;  %v16275_v22 = vperm.slane %v5033_v20, %v10226_v63  ;;  %v5011_v55 = vsel %vm1962_vm0, %v20864_v3, %v20863_v62  ;;  %v20868_v3 = vld [vmem:[#allocation353_spill] sm:$0xff] }
 0x75b   :  { %20859 = vst [vmem:[#allocation289_spill] sm:$0xff] %v16268_v29  ;;  %v2491_v47 = vsel %vm1962_vm0, %v20862_v8, %v20861_v17  ;;  %v2453_v29 = vsel %vm1962_vm0, %v16118_v21, %v2452_v52  ;;  %v20866_v8 = vld [vmem:[#allocation106_spill] sm:$0xff]  ;;  %v20871_v52 = vld [vmem:[#allocation131_spill] sm:$0xff] }
 0x75c   :  { %v16277_v18 = vpop.permute.xlu2 %8070  ;;  %8292 = vrot.lane.b32.xlu1 %v4467_v53, %s10013_s18  ;;  %v16295_v53 = vperm.slane %v2491_v47, %v10226_v63  ;;  %v5054_v17 = vrot.slane %v16275_v22, 4  ;;  %v20867_v26 = vrot.slane %v20866_v8, 4 }
 0x75d   :  { %20860 = vst [vmem:[#allocation110_spill] sm:$0xff] %v16277_v18  ;;  %v16298_v18 = vperm.slane %v5011_v55, %v10226_v63 }
 0x75e   :  { %v16290_v20 = vpop.permute.xlu1 %8144  ;;  %v3101_v62 = vsel %vm1962_vm0, %v20867_v26, %v20866_v8  ;;  %v2535_v47 = vsel %vm1962_vm0, %v2534_v36, %v16295_v53  ;;  %v3040_v26 = vrot.slane %v16163_v19, 4 }
 0x75f   :  { %20865 = vst [vmem:[#allocation313_spill] sm:$0xff] %v16290_v20  ;;  %v20869_v20 = vrot.slane %v20868_v3, 4  ;;  %v5055_v8 = vsel %vm1962_vm0, %v5054_v17, %v16298_v18  ;;  %v16323_v42 = vperm.slane %v3101_v62, %v10226_v63 }
 0x760   :  { %8396 = vrot.lane.b32.xlu0 %v2453_v29, %s10014_s19  ;;  %v20872_v29 = vrot.slane %v20871_v52, 4 }
 0x761   :  { %v5285_v21 = vsel %vm1962_vm0, %v20869_v20, %v20868_v3 }
 0x762   :  { %v16312_v55 = vpop.permute.xlu0 %8184  ;;  %8270 = vrot.lane.b32.xlu2 %v2535_v47, %s10013_s18  ;;  %v3079_v48 = vsel %vm1962_vm0, %v20872_v29, %v20871_v52  ;;  %v16326_v20 = vperm.slane %v5285_v21, %v10226_v63  ;;  %v20875_v52 = vld [vmem:[#allocation346_spill] sm:$0xff]  ;;  %v20877_v29 = vld [vmem:[#allocation193_spill] sm:$0xff] }
 0x763   :  { %20870 = vst [vmem:[#allocation341_spill] sm:$0xff] %v16312_v55  ;;  %v16332_v3 = vperm.slane %v3079_v48, %v10226_v63  ;;  %v20876_v17 = vrot.slane %v20875_v52, 4  ;;  %v20878_v62 = vrot.slane %v20877_v29, 4  ;;  %v3041_v55 = vsel %vm1962_vm0, %v16156_v44, %v3040_v26 }
 0x764   :  { %v16328_v36 = vpop.permute.xlu2 %8140  ;;  %8298 = vrot.lane.b32.xlu1 %v5055_v8, %s10013_s18  ;;  %v3122_v8 = vrot.slane %v16323_v42, 4  ;;  %v5306_v48 = vrot.slane %v16326_v20, 4 }
 0x765   :  { %20873 = vst [vmem:[#allocation34_spill] sm:$0xff] %v16328_v36  ;;  %v5263_v19 = vsel %vm1962_vm0, %v20876_v17, %v20875_v52  ;;  %v3689_v21 = vsel %vm1962_vm0, %v20878_v62, %v20877_v29  ;;  %v20879_v36 = vld [vmem:[#allocation398_spill] sm:$0xff] }
 0x766   :  { %v16334_v47 = vpop.permute.xlu1 %8150  ;;  %v3123_v52 = vsel %vm1962_vm0, %v3122_v8, %v16332_v3  ;;  %v16356_v17 = vperm.slane %v5263_v19, %v10226_v63  ;;  %v16359_v29 = vperm.slane %v3689_v21, %v10226_v63  ;;  %v3292_v21 = vrot.slane %v16199_v2, 4 }
 0x767   :  { %20874 = vst [vmem:[#allocation339_spill] sm:$0xff] %v16334_v47  ;;  %v20880_v47 = vrot.slane %v20879_v36, 4 }
 0x768   :  { %8402 = vrot.lane.b32.xlu0 %v3041_v55, %s10014_s19  ;;  %v5307_v26 = vsel %vm1962_vm0, %v5306_v48, %v16356_v17  ;;  %v3710_v8 = vrot.slane %v16359_v29, 4  ;;  %v3293_v11 = vsel %vm1962_vm0, %v16179_v14, %v3292_v21 }
 0x769   :  { %v5873_v60 = vsel %vm1962_vm0, %v20880_v47, %v20879_v36  ;;  %v20883_v47 = vld [vmem:[#allocation169_spill] sm:$0xff] }
 0x76a   :  { %v16361_v44 = vpop.permute.xlu0 %8190  ;;  %8276 = vrot.lane.b32.xlu2 %v3123_v52, %s10013_s18  ;;  %v16367_v36 = vperm.slane %v5873_v60, %v10226_v63  ;;  %v20884_v19 = vrot.slane %v20883_v47, 4 }
 0x76b   :  { %20881 = vst [vmem:[#allocation348_spill] sm:$0xff] %v16361_v44  ;;  %v20886_v44 = vld [vmem:[#allocation396_spill] sm:$0xff] }
 0x76c   :  { %v16369_v55 = vpop.permute.xlu2 %8146  ;;  %8304 = vrot.lane.b32.xlu1 %v5307_v26, %s10013_s18  ;;  %v3667_v62 = vsel %vm1962_vm0, %v20884_v19, %v20883_v47  ;;  %v20887_v48 = vrot.slane %v20886_v44, 4  ;;  %v5894_v2 = vrot.slane %v16367_v36, 4  ;;  %v20890_v19 = vld [vmem:[#allocation429_spill] sm:$0xff] }
 0x76d   :  { %20882 = vst [vmem:[#allocation102_spill] sm:$0xff] %v16369_v55  ;;  %v20889_v55 = vrot.slane %v20888_v27, 4  ;;  %v16391_v47 = vperm.slane %v3667_v62, %v10226_v63  ;;  %v20893_v62 = vld [vmem:[#allocation230_spill] sm:$0xff] }
 0x76e   :  { %v16378_v52 = vpop.permute.xlu1 %8156  ;;  %v5851_v60 = vsel %vm1962_vm0, %v20887_v48, %v20886_v44 }
 0x76f   :  { %20885 = vst [vmem:[#allocation376_spill] sm:$0xff] %v16378_v52  ;;  %v3941_v26 = vsel %vm1962_vm0, %v20889_v55, %v20888_v27  ;;  %v20891_v52 = vrot.slane %v20890_v19, 4  ;;  %v3711_v48 = vsel %vm1962_vm0, %v3710_v8, %v16391_v47  ;;  %v16402_v27 = vperm.slane %v5851_v60, %v10226_v63 }
 0x770   :  { %8408 = vrot.lane.b32.xlu0 %v3293_v11, %s10014_s19  ;;  %v16405_v14 = vperm.slane %v3941_v26, %v10226_v63  ;;  %v20894_v11 = vrot.slane %v20893_v62, 4  ;;  %v3880_v8 = vrot.slane %v16223_v31, 4  ;;  %v20896_v26 = vld [vmem:[#allocation432_spill] sm:$0xff]  ;;  %v20899_v31 = vld [vmem:[#allocation283_spill] sm:$0xff] }
 0x771   :  { %v6461_v44 = vsel %vm1962_vm0, %v20891_v52, %v20890_v19  ;;  %v5895_v52 = vsel %vm1962_vm0, %v5894_v2, %v16402_v27 }
 0x772   :  { %v16407_v55 = vpop.permute.xlu0 %8196  ;;  %8282 = vrot.lane.b32.xlu2 %v3711_v48, %s10013_s18  ;;  %v3919_v21 = vsel %vm1962_vm0, %v20894_v11, %v20893_v62  ;;  %v16418_v60 = vperm.slane %v6461_v44, %v10226_v63  ;;  %v20897_v48 = vrot.slane %v20896_v26, 4  ;;  %v3962_v62 = vrot.slane %v16405_v14, 4 }
 0x773   :  { %20892 = vst [vmem:[#allocation125_spill] sm:$0xff] %v16407_v55  ;;  %v16428_v50 = vperm.slane %v3919_v21, %v10226_v63  ;;  %v20900_v44 = vrot.slane %v20899_v31, 4  ;;  %v20901_v21 = vld [vmem:[#allocation93_spill] sm:$0xff] }
 0x774   :  { %v16420_v19 = vpop.permute.xlu2 %8152  ;;  %8310 = vrot.lane.b32.xlu1 %v5895_v52, %s10013_s18  ;;  %v6439_v55 = vsel %vm1962_vm0, %v20897_v48, %v20896_v26  ;;  %v3881_v52 = vsel %vm1962_vm0, %v16209_v25, %v3880_v8  ;;  %v6482_v26 = vrot.slane %v16418_v60, 4  ;;  %v20902_v48 = vrot.slane %v20901_v21, 4 }
 0x775   :  { %20895 = vst [vmem:[#allocation374_spill] sm:$0xff] %v16420_v19  ;;  %v4529_v11 = vsel %vm1962_vm0, %v20900_v44, %v20899_v31  ;;  %v16440_v19 = vperm.slane %v6439_v55, %v10226_v63  ;;  %v3963_v9 = vsel %vm1962_vm0, %v3962_v62, %v16428_v50 }
 0x776   :  { %v16431_v2 = vpop.permute.xlu1 %8162  ;;  %v16451_v31 = vperm.slane %v4529_v11, %v10226_v63 }
 0x777   :  { %20898 = vst [vmem:[#allocation164_spill] sm:$0xff] %v16431_v2  ;;  %v7049_v2 = vsel %vm1962_vm0, %v20902_v48, %v20901_v21  ;;  %v6483_v25 = vsel %vm1962_vm0, %v6482_v26, %v16440_v19  ;;  %v4468_v21 = vrot.slane %v16263_v6, 4 }
 0x778   :  { %8414 = vrot.lane.b32.xlu0 %v3881_v52, %s10014_s19  ;;  %v16459_v55 = vperm.slane %v7049_v2, %v10226_v63  ;;  %v20905_v52 = vld [vmem:[#allocation273_spill] sm:$0xff]  ;;  %v4550_v48 = vrot.slane %v16451_v31, 4 }
 0x779   :  { %v20906_v62 = vrot.slane %v20905_v52, 4  ;;  %v4469_v28 = vsel %vm1962_vm0, %v16239_v58, %v4468_v21  ;;  %v20912_v58 = vrot.slane %v14713_v16, 4 }
 0x77a   :  { %v16453_v44 = vpop.permute.xlu0 %8266  ;;  %8288 = vrot.lane.b32.xlu2 %v3963_v9, %s10013_s18  ;;  %v20907_v9 = vld [vmem:[#allocation324_spill] sm:$0xff]  ;;  %v7070_v6 = vrot.slane %v16459_v55, 4 }
 0x77b   :  { %20903 = vst [vmem:[#allocation394_spill] sm:$0xff] %v16453_v44  ;;  %v4507_v11 = vsel %vm1962_vm0, %v20906_v62, %v20905_v52  ;;  %v20908_v44 = vrot.slane %v20907_v9, 4 }
 0x77c   :  { %v16461_v8 = vpop.permute.xlu2 %8158  ;;  %8316 = vrot.lane.b32.xlu1 %v6483_v25, %s10013_s18  ;;  %v16483_v52 = vperm.slane %v4507_v11, %v10226_v63  ;;  %v5056_v11 = vrot.slane %v16298_v18, 4 }
 0x77d   :  { %20904 = vst [vmem:[#allocation431_spill] sm:$0xff] %v16461_v8  ;;  %v5117_v26 = vsel %vm1962_vm0, %v20908_v44, %v20907_v9  ;;  %v20910_v8 = vrot.slane %v20909_v7, 4 }
 0x77e   :  { %v16474_v2 = vpop.permute.xlu1 %8168  ;;  %v4551_v44 = vsel %vm1962_vm0, %v4550_v48, %v16483_v52  ;;  %v16493_v9 = vperm.slane %v5117_v26, %v10226_v63  ;;  %v20914_v48 = vld [vmem:[#allocation321_spill] sm:$0xff] }
 0x77f   :  { %v7027_v25 = vsel %vm1962_vm0, %v20910_v8, %v20909_v7  ;;  %v7301_v8 = vsel %vm1962_vm0, %v20912_v58, %v14713_v16  ;;  %v20915_v26 = vrot.slane %v20914_v48, 4  ;;  %v20917_v58 = vld [vmem:[#allocation352_spill] sm:$0xff] }
 0x780   :  { %8420 = vrot.lane.b32.xlu0 %v4469_v28, %s10014_s19  ;;  %v16490_v62 = vperm.slane %v7027_v25, %v10226_v63  ;;  %v5138_v16 = vrot.slane %v16493_v9, 4 }
 0x781   :  { %v5095_v25 = vsel %vm1962_vm0, %v20915_v26, %v20914_v48  ;;  %v5057_v48 = vsel %vm1962_vm0, %v16275_v22, %v5056_v11  ;;  %v20920_v22 = vld [vmem:[#allocation356_spill] sm:$0xff] }
 0x782   :  { %v16495_v7 = vpop.permute.xlu0 %8272  ;;  %8294 = vrot.lane.b32.xlu2 %v4551_v44, %s10013_s18  ;;  %v7071_v28 = vsel %vm1962_vm0, %v7070_v6, %v16490_v62  ;;  %v20916_v44 = vrot.slane %v14790_v35, 4  ;;  %v16518_v6 = vperm.slane %v7301_v8, %v10226_v63  ;;  %v16529_v26 = vperm.slane %v5095_v25, %v10226_v63 }
 0x783   :  { %20911 = vst [vmem:[#allocation161_spill] sm:$0xff] %v16495_v7  ;;  %v20921_v11 = vrot.slane %v20920_v22, 4 }
 0x784   :  { %v16505_v21 = vpop.permute.xlu2 %8164  ;;  %8322 = vrot.lane.b32.xlu1 %v7071_v28, %s10013_s18  ;;  %v7279_v7 = vsel %vm1962_vm0, %v20916_v44, %v14790_v35  ;;  %v20918_v28 = vrot.slane %v20917_v58, 4  ;;  %v5139_v8 = vsel %vm1962_vm0, %v5138_v16, %v16529_v26  ;;  %v7322_v44 = vrot.slane %v16518_v6, 4 }
 0x785   :  { %20913 = vst [vmem:[#allocation430_spill] sm:$0xff] %v16505_v21  ;;  %v16532_v35 = vperm.slane %v7279_v7, %v10226_v63  ;;  %v5683_v7 = vsel %vm1962_vm0, %v20921_v11, %v20920_v22  ;;  %v5308_v16 = vrot.slane %v16356_v17, 4  ;;  %v2536_v11 = vrot.slane %v16295_v53, 4 }
 0x786   :  { %v16520_v18 = vpop.permute.xlu1 %8174  ;;  %v5705_v21 = vsel %vm1962_vm0, %v20918_v28, %v20917_v58  ;;  %v5896_v53 = vrot.slane %v16402_v27, 4 }
 0x787   :  { %v16539_v24 = vperm.slane %v5705_v21, %v10226_v63  ;;  %v7323_v25 = vsel %vm1962_vm0, %v7322_v44, %v16532_v35  ;;  %v16555_v21 = vperm.slane %v5683_v7, %v10226_v63  ;;  %v5309_v44 = vsel %vm1962_vm0, %v16326_v20, %v5308_v16  ;;  %v20927_v20 = vld [vmem:[#allocation79_spill] sm:$0xff] }
 0x788   :  { %8426 = vrot.lane.b32.xlu0 %v5057_v48, %s10014_s19  ;;  %v20928_v16 = vrot.slane %v20927_v20, 4 }
 0x789   :  { %v5726_v48 = vrot.slane %v16539_v24, 4 }
 0x78a   :  { %v16541_v58 = vpop.permute.xlu0 %8278  ;;  %8300 = vrot.lane.b32.xlu2 %v5139_v8, %s10013_s18 }
 0x78b   :  { %20919 = vst [vmem:[#allocation208_spill] sm:$0xff] %v16541_v58  ;;  %v20923_v58 = vld [vmem:[#allocation413_spill] sm:$0xff]  ;;  %v5727_v17 = vsel %vm1962_vm0, %v5726_v48, %v16555_v21  ;;  %v5935_v48 = vsel %vm1962_vm0, %v20928_v16, %v20927_v20 }
 0x78c   :  { %v16550_v28 = vpop.permute.xlu2 %8170  ;;  %8328 = vrot.lane.b32.xlu1 %v7323_v25, %s10013_s18  ;;  %v20924_v57 = vrot.slane %v20923_v58, 4 }
 0x78d   :  { %20922 = vst [vmem:[#allocation440_spill] sm:$0xff] %v16550_v28 }
 0x78e   :  { %v16558_v8 = vpop.permute.xlu1 %8180  ;;  %v5957_v22 = vsel %vm1962_vm0, %v20924_v57, %v20923_v58  ;;  %v2537_v57 = vsel %vm1962_vm0, %v16266_v54, %v2536_v11  ;;  %v5897_v11 = vsel %vm1962_vm0, %v16367_v36, %v5896_v53  ;;  %v6484_v53 = vrot.slane %v16440_v19, 4 }
 0x78f   :  { %v16571_v7 = vperm.slane %v5957_v22, %v10226_v63 }
 0x790   :  { %8432 = vrot.lane.b32.xlu0 %v5309_v44, %s10014_s19 }
 0x791   :  { %v5978_v22 = vrot.slane %v16571_v7, 4 }
 0x792   :  { %v16573_v25 = vpop.permute.xlu0 %8284  ;;  %8306 = vrot.lane.b32.xlu2 %v5727_v17, %s10013_s18 }
 0x793   :  { %20925 = vst [vmem:[#allocation95_spill] sm:$0xff] %v16573_v25  ;;  %v20929_v25 = vld [vmem:[#allocation441_spill] sm:$0xff] }
 0x794   :  { %v16578_v58 = vpop.permute.xlu2 %8176  ;;  %8398 = vrot.lane.b32.xlu1 %v2537_v57, %s10014_s19  ;;  %v20930_v17 = vrot.slane %v20929_v25, 4  ;;  %v16596_v57 = vperm.slane %v5935_v48, %v10226_v63 }
 0x795   :  { %20926 = vst [vmem:[#allocation212_spill] sm:$0xff] %v16578_v58  ;;  %v3124_v58 = vrot.slane %v16332_v3, 4 }
 0x796   :  { %v16587_v44 = vpop.permute.xlu1 %8186  ;;  %v6545_v54 = vsel %vm1962_vm0, %v20930_v17, %v20929_v25  ;;  %v5979_v27 = vsel %vm1962_vm0, %v5978_v22, %v16596_v57  ;;  %v20932_v25 = vld [vmem:[#allocation448_spill] sm:$0xff] }
 0x797   :  { %v16603_v20 = vperm.slane %v6545_v54, %v10226_v63  ;;  %v20933_v36 = vrot.slane %v20932_v25, 4  ;;  %v3125_v3 = vsel %vm1962_vm0, %v16323_v42, %v3124_v58  ;;  %v6485_v42 = vsel %vm1962_vm0, %v16418_v60, %v6484_v53  ;;  %v20937_v60 = vld [vmem:[#allocation476_spill] sm:$0xff] }
 0x798   :  { %8438 = vrot.lane.b32.xlu0 %v5897_v11, %s10014_s19  ;;  %v3712_v58 = vrot.slane %v16391_v47, 4  ;;  %v20938_v53 = vrot.slane %v20937_v60, 4  ;;  %v7072_v47 = vrot.slane %v16490_v62, 4 }
 0x799   :  { %v6523_v48 = vsel %vm1962_vm0, %v20933_v36, %v20932_v25  ;;  %v6566_v54 = vrot.slane %v16603_v20, 4 }
 0x79a   :  { %v16605_v16 = vpop.permute.xlu0 %8290  ;;  %8312 = vrot.lane.b32.xlu2 %v5979_v27, %s10013_s18  ;;  %v16619_v22 = vperm.slane %v6523_v48, %v10226_v63  ;;  %v20935_v27 = vrot.slane %v14507_v0, 4 }
 0x79b   :  { %20931 = vst [vmem:[#allocation467_spill] sm:$0xff] %v16605_v16  ;;  %v20955_v16 = vld [vmem:[#allocation214_spill] sm:$0xff] }
 0x79c   :  { %v16615_v17 = vpop.permute.xlu2 %8182  ;;  %8404 = vrot.lane.b32.xlu1 %v3125_v3, %s10014_s19  ;;  %v7133_v25 = vsel %vm1962_vm0, %v20935_v27, %v14507_v0  ;;  %v6567_v19 = vsel %vm1962_vm0, %v6566_v54, %v16619_v22  ;;  %v3713_v0 = vsel %vm1962_vm0, %v16359_v29, %v3712_v58  ;;  %v7111_v54 = vsel %vm1962_vm0, %v20938_v53, %v20937_v60 }
 0x79d   :  { %20934 = vst [vmem:[#allocation268_spill] sm:$0xff] %v16615_v17  ;;  %v16635_v36 = vperm.slane %v7133_v25, %v10226_v63  ;;  %v16656_v29 = vperm.slane %v7111_v54, %v10226_v63  ;;  %v7324_v60 = vrot.slane %v16532_v35, 4  ;;  %v4552_v35 = vrot.slane %v16483_v52, 4  ;;  %v21040_v17 = vld [vmem:[#allocation434_spill] sm:$0xff] }
 0x79e   :  { %v16622_v11 = vpop.permute.xlu1 %8192 }
 0x79f   :  { %v7154_v27 = vrot.slane %v16635_v36, 4  ;;  %v7325_v54 = vsel %vm1962_vm0, %v16518_v6, %v7324_v60  ;;  %v20945_v60 = vld [vmem:[#allocation109_spill] sm:$0xff] }
 0x7a0   :  { %8444 = vrot.lane.b32.xlu0 %v6485_v42, %s10014_s19  ;;  %v7073_v42 = vsel %vm1962_vm0, %v16459_v55, %v7072_v47  ;;  %v20941_v47 = vld [vmem:[#allocation128_spill] sm:$0xff] }
 0x7a1   :  { %v7155_v58 = vsel %vm1962_vm0, %v7154_v27, %v16656_v29  ;;  %v16678_v27 = vperm.slane %v20941_v47, %v10226_v63  ;;  %v20946_v47 = vld [vmem:[#allocation85_spill] sm:$0xff] }
 0x7a2   :  { %v16637_v48 = vpop.permute.xlu0 %8296  ;;  %8318 = vrot.lane.b32.xlu2 %v6567_v19, %s10013_s18  ;;  %v3964_v19 = vrot.slane %v16428_v50, 4  ;;  %v2368_v50 = vrot.slane %v16026_v15, 4  ;;  %v4553_v15 = vsel %vm1962_vm0, %v16451_v31, %v4552_v35  ;;  %v5140_v31 = vrot.slane %v16529_v26, 4  ;;  %v20947_v35 = vld [vmem:[#allocation135_spill] sm:$0xff] }
 0x7a3   :  { %v2538_v6 = vrot.slane %v16678_v27, 4 }
 0x7a4   :  { %v16642_v3 = vpop.permute.xlu2 %8188  ;;  %8410 = vrot.lane.b32.xlu1 %v3713_v0, %s10014_s19  ;;  %v3965_v62 = vsel %vm1962_vm0, %v16405_v14, %v3964_v19  ;;  %v2369_v14 = vsel %vm1962_vm0, %v16019_v51, %v2368_v50  ;;  %v16705_v50 = vperm.slane %v20945_v60, %v10226_v63  ;;  %v5728_v60 = vrot.slane %v16555_v21, 4 }
 0x7a5   :  { %20936 = vst [vmem:[#allocation478_spill] sm:$0xff] %v16642_v3  ;;  %v5980_v21 = vrot.slane %v16596_v57, 4  ;;  %v20982_v3 = vld [vmem:[#allocation433_spill] sm:$0xff] }
 0x7a6   :  { %v16651_v25 = vpop.permute.xlu1 %8198  ;;  %v3126_v26 = vrot.slane %v16705_v50, 4 }
 0x7a8   :  { %8450 = vrot.lane.b32.xlu0 %v7073_v42, %s10014_s19 }
 0x7aa   :  { %v16662_v0 = vpop.permute.xlu0 %8302  ;;  %8324 = vrot.lane.b32.xlu2 %v7155_v58, %s10013_s18  ;;  %v20943_v58 = vld [vmem:[#allocation62_spill] sm:$0xff] }
 0x7ac   :  { %v16668_v55 = vpop.permute.xlu2 %8194  ;;  %8416 = vrot.lane.b32.xlu1 %v3965_v62, %s10014_s19  ;;  %v16695_v62 = vperm.slane %v20943_v58, %v10226_v63 }
 0x7ad   :  { %20939 = vst [vmem:[#allocation255_spill] sm:$0xff] %v16668_v55  ;;  %v20980_v55 = vld [vmem:[#allocation417_spill] sm:$0xff] }
 0x7ae   :  { %v16672_v53 = vpop.permute.xlu1 %8268  ;;  %v2539_v52 = vsel %vm1962_vm0, %v2538_v6, %v16695_v62 }
 0x7af   :  { %20940 = vst [vmem:[#allocation118_spill] sm:$0xff] %v16672_v53  ;;  %v21119_v53 = vld [vmem:[#allocation175_spill] sm:$0xff] }
 0x7b0   :  { %8456 = vrot.lane.b32.xlu0 %v7325_v54, %s10014_s19 }
 0x7b2   :  { %v16684_v42 = vpop.permute.xlu0 %8308  ;;  %8394 = vrot.lane.b32.xlu2 %v2369_v14, %s10014_s19  ;;  %v5141_v14 = vsel %vm1962_vm0, %v16493_v9, %v5140_v31  ;;  %v20950_v31 = vld [vmem:[#allocation142_spill] sm:$0xff] }
 0x7b4   :  { %v16690_v19 = vpop.permute.xlu2 %8200  ;;  %8422 = vrot.lane.b32.xlu1 %v4553_v15, %s10014_s19  ;;  %v16715_v15 = vperm.slane %v20947_v35, %v10226_v63 }
 0x7b5   :  { %20942 = vst [vmem:[#allocation296_spill] sm:$0xff] %v16690_v19  ;;  %v20978_v19 = vld [vmem:[#allocation87_spill] sm:$0xff] }
 0x7b6   :  { %v16697_v51 = vpop.permute.xlu1 %8274 }
 0x7b7   :  { %20944 = vst [vmem:[#allocation60_spill] sm:$0xff] %v16697_v51 }
 0x7b8   :  { %8526 = vrot.lane.b32.xlu0 %v2539_v52, %s10015_s20  ;;  %v3127_v52 = vsel %vm1962_vm0, %v3126_v26, %v16715_v15  ;;  %v20953_v26 = vld [vmem:[#allocation196_spill] sm:$0xff] }
 0x7ba   :  { %v16707_v54 = vpop.permute.xlu0 %8314  ;;  %8400 = vrot.lane.b32.xlu2 %v20946_v47, %s10014_s19  ;;  %v5729_v47 = vsel %vm1962_vm0, %v16539_v24, %v5728_v60 }
 0x7bc   :  { %v16717_v6 = vpop.permute.xlu2 %8270  ;;  %8428 = vrot.lane.b32.xlu1 %v5141_v14, %s10014_s19 }
 0x7bd   :  { %20948 = vst [vmem:[#allocation302_spill] sm:$0xff] %v16717_v6  ;;  %v20976_v6 = vld [vmem:[#allocation378_spill] sm:$0xff] }
 0x7be   :  { %v16721_v58 = vpop.permute.xlu1 %8280 }
 0x7bf   :  { %20949 = vst [vmem:[#allocation106_spill] sm:$0xff] %v16721_v58 }
 0x7c0   :  { %8532 = vrot.lane.b32.xlu0 %v3127_v52, %s10015_s20 }
 0x7c2   :  { %v16727_v9 = vpop.permute.xlu0 %8320  ;;  %8406 = vrot.lane.b32.xlu2 %v20950_v31, %s10014_s19  ;;  %v5981_v31 = vsel %vm1962_vm0, %v16571_v7, %v5980_v21 }
 0x7c4   :  { %v16733_v14 = vpop.permute.xlu2 %8276  ;;  %8434 = vrot.lane.b32.xlu1 %v5729_v47, %s10014_s19  ;;  %v6568_v47 = vrot.slane %v16619_v22, 4  ;;  %v7156_v22 = vrot.slane %v16656_v29, 4  ;;  %v20970_v29 = vld [vmem:[#allocation342_spill] sm:$0xff] }
 0x7c5   :  { %20951 = vst [vmem:[#allocation353_spill] sm:$0xff] %v16733_v14  ;;  %v20960_v14 = vld [vmem:[#allocation252_spill] sm:$0xff] }
 0x7c6   :  { %v16736_v35 = vpop.permute.xlu1 %8286 }
 0x7c7   :  { %20952 = vst [vmem:[#allocation131_spill] sm:$0xff] %v16736_v35  ;;  %v20990_v35 = vld [vmem:[#allocation216_spill] sm:$0xff] }
 0x7c8   :  { %8538 = vrot.lane.b32.xlu0 %v20953_v26, %s10015_s20  ;;  %v20958_v26 = vld [vmem:[#allocation233_spill] sm:$0xff] }
 0x7ca   :  { %v16741_v52 = vpop.permute.xlu0 %8326  ;;  %8412 = vrot.lane.b32.xlu2 %v20955_v16, %s10014_s19  ;;  %v6569_v16 = vsel %vm1962_vm0, %v16603_v20, %v6568_v47 }
 0x7cb   :  { %20954 = vst [vmem:[#allocation346_spill] sm:$0xff] %v16741_v52 }
 0x7cc   :  { %v16747_v24 = vpop.permute.xlu2 %8282  ;;  %8440 = vrot.lane.b32.xlu1 %v5981_v31, %s10014_s19  ;;  %v20963_v31 = vld [vmem:[#allocation287_spill] sm:$0xff] }
 0x7cd   :  { %20956 = vst [vmem:[#allocation193_spill] sm:$0xff] %v16747_v24  ;;  %v20965_v24 = vld [vmem:[#allocation292_spill] sm:$0xff] }
 0x7ce   :  { %v16750_v60 = vpop.permute.xlu1 %8292 }
 0x7cf   :  { %20957 = vst [vmem:[#allocation398_spill] sm:$0xff] %v16750_v60 }
 0x7d0   :  { %8544 = vrot.lane.b32.xlu0 %v20958_v26, %s10015_s20 }
 0x7d2   :  { %v16755_v57 = vpop.permute.xlu0 %8396  ;;  %8418 = vrot.lane.b32.xlu2 %v20960_v14, %s10014_s19  ;;  %v7157_v14 = vsel %vm1962_vm0, %v16635_v36, %v7156_v22  ;;  %v20974_v22 = vld [vmem:[#allocation358_spill] sm:$0xff] }
 0x7d3   :  { %20959 = vst [vmem:[#allocation169_spill] sm:$0xff] %v16755_v57 }
 0x7d4   :  { %v16761_v7 = vpop.permute.xlu2 %8288  ;;  %8446 = vrot.lane.b32.xlu1 %v6569_v16, %s10014_s19  ;;  %v20968_v16 = vld [vmem:[#allocation327_spill] sm:$0xff] }
 0x7d5   :  { %20961 = vst [vmem:[#allocation396_spill] sm:$0xff] %v16761_v7 }
 0x7d6   :  { %v16764_v21 = vpop.permute.xlu1 %8298 }
 0x7d7   :  { %20962 = vst [vmem:[#allocation220_spill] sm:$0xff] %v16764_v21 }
 0x7d8   :  { %8550 = vrot.lane.b32.xlu0 %v20963_v31, %s10015_s20 }
 0x7da   :  { %v16769_v26 = vpop.permute.xlu0 %8402  ;;  %8424 = vrot.lane.b32.xlu2 %v20965_v24, %s10014_s19  ;;  %v20972_v24 = vld [vmem:[#allocation112_spill] sm:$0xff] }
 0x7db   :  { %20964 = vst [vmem:[#allocation429_spill] sm:$0xff] %v16769_v26 }
 0x7dc   :  { %v16775_v20 = vpop.permute.xlu2 %8294  ;;  %8452 = vrot.lane.b32.xlu1 %v7157_v14, %s10014_s19 }
 0x7dd   :  { %20966 = vst [vmem:[#allocation230_spill] sm:$0xff] %v16775_v20  ;;  %v21095_v20 = vld [vmem:[#allocation66_spill] sm:$0xff] }
 0x7de   :  { %v16778_v47 = vpop.permute.xlu1 %8304 }
 0x7df   :  { %20967 = vst [vmem:[#allocation432_spill] sm:$0xff] %v16778_v47 }
 0x7e0   :  { %8556 = vrot.lane.b32.xlu0 %v20968_v16, %s10015_s20 }
 0x7e2   :  { %v16782_v31 = vpop.permute.xlu0 %8408  ;;  %8430 = vrot.lane.b32.xlu2 %v20970_v29, %s10014_s19 }
 0x7e3   :  { %20969 = vst [vmem:[#allocation283_spill] sm:$0xff] %v16782_v31  ;;  %v21048_v31 = vld [vmem:[#allocation218_spill] sm:$0xff] }
 0x7e4   :  { %v16786_v7 = vpop.permute.xlu2 %8300  ;;  %8522 = vrot.lane.b32.xlu1 %v20972_v24, %s10015_s20 }
 0x7e5   :  { %20971 = vst [vmem:[#allocation93_spill] sm:$0xff] %v16786_v7  ;;  %v21045_v7 = vld [vmem:[#allocation471_spill] sm:$0xff] }
 0x7e6   :  { %v16790_v36 = vpop.permute.xlu1 %8310 }
 0x7e7   :  { %20973 = vst [vmem:[#allocation273_spill] sm:$0xff] %v16790_v36  ;;  %v21028_v36 = vld [vmem:[#allocation304_spill] sm:$0xff] }
 0x7e8   :  { %8562 = vrot.lane.b32.xlu0 %v20974_v22, %s10015_s20 }
 0x7ea   :  { %v16794_v14 = vpop.permute.xlu0 %8414  ;;  %8436 = vrot.lane.b32.xlu2 %v20976_v6, %s10014_s19 }
 0x7eb   :  { %20975 = vst [vmem:[#allocation324_spill] sm:$0xff] %v16794_v14  ;;  %v20984_v14 = vld [vmem:[#allocation152_spill] sm:$0xff] }
 0x7ec   :  { %v16798_v16 = vpop.permute.xlu2 %8306  ;;  %8528 = vrot.lane.b32.xlu1 %v20978_v19, %s10015_s20 }
 0x7ed   :  { %20977 = vst [vmem:[#allocation473_spill] sm:$0xff] %v16798_v16  ;;  %v20986_v16 = vld [vmem:[#allocation449_spill] sm:$0xff] }
 0x7ee   :  { %v16802_v29 = vpop.permute.xlu1 %8316 }
 0x7ef   :  { %20979 = vst [vmem:[#allocation321_spill] sm:$0xff] %v16802_v29  ;;  %v20988_v29 = vld [vmem:[#allocation470_spill] sm:$0xff] }
 0x7f0   :  { %8568 = vrot.lane.b32.xlu0 %v20980_v55, %s10015_s20 }
 0x7f2   :  { %v16806_v24 = vpop.permute.xlu0 %8420  ;;  %8442 = vrot.lane.b32.xlu2 %v20982_v3, %s10014_s19 }
 0x7f3   :  { %20981 = vst [vmem:[#allocation352_spill] sm:$0xff] %v16806_v24  ;;  %v21122_v24 = vld [vmem:[#allocation191_spill] sm:$0xff] }
 0x7f4   :  { %v16810_v22 = vpop.permute.xlu2 %8312  ;;  %8534 = vrot.lane.b32.xlu1 %v20984_v14, %s10015_s20  ;;  %v21123_v60 = vrot.slane %v21122_v24, 4 }
 0x7f5   :  { %20983 = vst [vmem:[#allocation356_spill] sm:$0xff] %v16810_v22  ;;  %v21004_v22 = vld [vmem:[#allocation133_spill] sm:$0xff] }
 0x7f6   :  { %v16814_v6 = vpop.permute.xlu1 %8322 }
 0x7f7   :  { %20985 = vst [vmem:[#allocation413_spill] sm:$0xff] %v16814_v6  ;;  %v20994_v6 = vld [vmem:[#allocation254_spill] sm:$0xff] }
 0x7f8   :  { %8574 = vrot.lane.b32.xlu0 %v20986_v16, %s10015_s20 }
 0x7fa   :  { %v16818_v19 = vpop.permute.xlu0 %8426  ;;  %8448 = vrot.lane.b32.xlu2 %v20988_v29, %s10014_s19 }
 0x7fb   :  { %20987 = vst [vmem:[#allocation79_spill] sm:$0xff] %v16818_v19 }
 0x7fc   :  { %v16822_v55 = vpop.permute.xlu2 %8318  ;;  %8540 = vrot.lane.b32.xlu1 %v20990_v35, %s10015_s20  ;;  %v20996_v35 = vld [vmem:[#allocation129_spill] sm:$0xff] }
 0x7fd   :  { %20989 = vst [vmem:[#allocation441_spill] sm:$0xff] %v16822_v55 }
 0x7fe   :  { %v16826_v3 = vpop.permute.xlu1 %8328 }
 0x7ff   :  { %20991 = vst [vmem:[#allocation448_spill] sm:$0xff] %v16826_v3 }
 0x800   :  { %8580 = vrot.lane.b32.xlu0 %v14581_v1, %s10015_s20  ;;  %v20998_v1 = vld [vmem:[#allocation132_spill] sm:$0xff] }
 0x802   :  { %v16830_v14 = vpop.permute.xlu0 %8432  ;;  %8454 = vrot.lane.b32.xlu2 %v14619_v32, %s10014_s19  ;;  %v21000_v32 = vld [vmem:[#allocation291_spill] sm:$0xff] }
 0x803   :  { %20992 = vst [vmem:[#allocation476_spill] sm:$0xff] %v16830_v14 }
 0x804   :  { %v16834_v16 = vpop.permute.xlu2 %8324  ;;  %8546 = vrot.lane.b32.xlu1 %v20994_v6, %s10015_s20  ;;  %v21002_v6 = vld [vmem:[#allocation86_spill] sm:$0xff] }
 0x805   :  { %20993 = vst [vmem:[#allocation128_spill] sm:$0xff] %v16834_v16 }
 0x806   :  { %v16838_v29 = vpop.permute.xlu1 %8398 }
 0x807   :  { %20995 = vst [vmem:[#allocation62_spill] sm:$0xff] %v16838_v29 }
 0x808   :  { %8650 = vrot.lane.b32.xlu0 %v20996_v35, %s10016_s21 }
 0x80a   :  { %v16842_v3 = vpop.permute.xlu0 %8438  ;;  %8524 = vrot.lane.b32.xlu2 %v20998_v1, %s10015_s20 }
 0x80b   :  { %20997 = vst [vmem:[#allocation109_spill] sm:$0xff] %v16842_v3  ;;  %v21006_v3 = vld [vmem:[#allocation344_spill] sm:$0xff] }
 0x80c   :  { %v16846_v55 = vpop.permute.xlu2 %8394  ;;  %8552 = vrot.lane.b32.xlu1 %v21000_v32, %s10015_s20 }
 0x80d   :  { %20999 = vst [vmem:[#allocation85_spill] sm:$0xff] %v16846_v55  ;;  %v21008_v55 = vld [vmem:[#allocation153_spill] sm:$0xff] }
 0x80e   :  { %v16850_v16 = vpop.permute.xlu1 %8404 }
 0x80f   :  { %21001 = vst [vmem:[#allocation135_spill] sm:$0xff] %v16850_v16  ;;  %v21010_v16 = vld [vmem:[#allocation170_spill] sm:$0xff] }
 0x810   :  { %8656 = vrot.lane.b32.xlu0 %v21002_v6, %s10016_s21 }
 0x812   :  { %v16854_v29 = vpop.permute.xlu0 %8444  ;;  %8530 = vrot.lane.b32.xlu2 %v21004_v22, %s10015_s20 }
 0x813   :  { %21003 = vst [vmem:[#allocation142_spill] sm:$0xff] %v16854_v29  ;;  %v21012_v29 = vld [vmem:[#allocation377_spill] sm:$0xff] }
 0x814   :  { %v16858_v35 = vpop.permute.xlu2 %8400  ;;  %8558 = vrot.lane.b32.xlu1 %v21006_v3, %s10015_s20 }
 0x815   :  { %21005 = vst [vmem:[#allocation196_spill] sm:$0xff] %v16858_v35  ;;  %v21014_v35 = vld [vmem:[#allocation215_spill] sm:$0xff] }
 0x816   :  { %v16862_v1 = vpop.permute.xlu1 %8410 }
 0x817   :  { %21007 = vst [vmem:[#allocation214_spill] sm:$0xff] %v16862_v1  ;;  %v21016_v1 = vld [vmem:[#allocation217_spill] sm:$0xff] }
 0x818   :  { %8662 = vrot.lane.b32.xlu0 %v21008_v55, %s10016_s21 }
 0x81a   :  { %v16866_v32 = vpop.permute.xlu0 %8450  ;;  %8536 = vrot.lane.b32.xlu2 %v21010_v16, %s10015_s20 }
 0x81b   :  { %21009 = vst [vmem:[#allocation233_spill] sm:$0xff] %v16866_v32  ;;  %v21018_v32 = vld [vmem:[#allocation435_spill] sm:$0xff] }
 0x81c   :  { %v16870_v6 = vpop.permute.xlu2 %8406  ;;  %8564 = vrot.lane.b32.xlu1 %v21012_v29, %s10015_s20 }
 0x81d   :  { %21011 = vst [vmem:[#allocation252_spill] sm:$0xff] %v16870_v6  ;;  %v21020_v6 = vld [vmem:[#allocation253_spill] sm:$0xff] }
 0x81e   :  { %v16874_v22 = vpop.permute.xlu1 %8416 }
 0x81f   :  { %21013 = vst [vmem:[#allocation287_spill] sm:$0xff] %v16874_v22  ;;  %v21022_v22 = vld [vmem:[#allocation272_spill] sm:$0xff] }
 0x820   :  { %8668 = vrot.lane.b32.xlu0 %v21014_v35, %s10016_s21 }
 0x822   :  { %v16878_v3 = vpop.permute.xlu0 %8456  ;;  %8542 = vrot.lane.b32.xlu2 %v21016_v1, %s10015_s20 }
 0x823   :  { %21015 = vst [vmem:[#allocation292_spill] sm:$0xff] %v16878_v3  ;;  %v21024_v3 = vld [vmem:[#allocation472_spill] sm:$0xff] }
 0x824   :  { %v16882_v55 = vpop.permute.xlu2 %8412  ;;  %8570 = vrot.lane.b32.xlu1 %v21018_v32, %s10015_s20 }
 0x825   :  { %21017 = vst [vmem:[#allocation327_spill] sm:$0xff] %v16882_v55  ;;  %v21026_v55 = vld [vmem:[#allocation293_spill] sm:$0xff] }
 0x826   :  { %v16886_v16 = vpop.permute.xlu1 %8422 }
 0x827   :  { %21019 = vst [vmem:[#allocation342_spill] sm:$0xff] %v16886_v16 }
 0x828   :  { %8674 = vrot.lane.b32.xlu0 %v21020_v6, %s10016_s21 }
 0x82a   :  { %v16890_v29 = vpop.permute.xlu0 %8526  ;;  %8548 = vrot.lane.b32.xlu2 %v21022_v22, %s10015_s20 }
 0x82b   :  { %21021 = vst [vmem:[#allocation112_spill] sm:$0xff] %v16890_v29  ;;  %v21032_v29 = vld [vmem:[#allocation357_spill] sm:$0xff] }
 0x82c   :  { %v16894_v35 = vpop.permute.xlu2 %8418  ;;  %8576 = vrot.lane.b32.xlu1 %v21024_v3, %s10015_s20 }
 0x82d   :  { %21023 = vst [vmem:[#allocation358_spill] sm:$0xff] %v16894_v35  ;;  %v21030_v35 = vld [vmem:[#allocation343_spill] sm:$0xff] }
 0x82e   :  { %v16898_v1 = vpop.permute.xlu1 %8428 }
 0x82f   :  { %21025 = vst [vmem:[#allocation378_spill] sm:$0xff] %v16898_v1  ;;  %v21035_v1 = vld [vmem:[#allocation379_spill] sm:$0xff] }
 0x830   :  { %8680 = vrot.lane.b32.xlu0 %v21026_v55, %s10016_s21 }
 0x832   :  { %v16902_v32 = vpop.permute.xlu0 %8532  ;;  %8554 = vrot.lane.b32.xlu2 %v21028_v36, %s10015_s20 }
 0x833   :  { %21027 = vst [vmem:[#allocation87_spill] sm:$0xff] %v16902_v32  ;;  %v21033_v32 = vld [vmem:[#allocation134_spill] sm:$0xff] }
 0x834   :  { %v16906_v6 = vpop.permute.xlu2 %8424  ;;  %8582 = vrot.lane.b32.xlu1 %v14607_v61, %s10015_s20 }
 0x836   :  { %v16910_v22 = vpop.permute.xlu1 %8434 }
 0x837   :  { %21029 = vst [vmem:[#allocation417_spill] sm:$0xff] %v16910_v22  ;;  %v21037_v22 = vld [vmem:[#allocation400_spill] sm:$0xff] }
 0x838   :  { %8686 = vrot.lane.b32.xlu0 %v21030_v35, %s10016_s21 }
 0x83a   :  { %v16914_v3 = vpop.permute.xlu0 %8538  ;;  %8560 = vrot.lane.b32.xlu2 %v21032_v29, %s10015_s20 }
 0x83b   :  { %21031 = vst [vmem:[#allocation433_spill] sm:$0xff] %v16914_v3  ;;  %v21038_v3 = vld [vmem:[#allocation137_spill] sm:$0xff] }
 0x83c   :  { %v16918_v55 = vpop.permute.xlu2 %8430  ;;  %8652 = vrot.lane.b32.xlu1 %v21033_v32, %s10016_s21 }
 0x83e   :  { %v16922_v36 = vpop.permute.xlu1 %8440 }
 0x83f   :  { %21034 = vst [vmem:[#allocation152_spill] sm:$0xff] %v16922_v36  ;;  %v21042_v36 = vld [vmem:[#allocation88_spill] sm:$0xff] }
 0x840   :  { %8692 = vrot.lane.b32.xlu0 %v21035_v1, %s10016_s21 }
 0x842   :  { %v16926_v61 = vpop.permute.xlu0 %8544  ;;  %8566 = vrot.lane.b32.xlu2 %v21037_v22, %s10015_s20 }
 0x843   :  { %21036 = vst [vmem:[#allocation449_spill] sm:$0xff] %v16926_v61  ;;  %v21043_v61 = vld [vmem:[#allocation167_spill] sm:$0xff] }
 0x844   :  { %v16930_v35 = vpop.permute.xlu2 %8436  ;;  %8658 = vrot.lane.b32.xlu1 %v21038_v3, %s10016_s21 }
 0x846   :  { %v16934_v29 = vpop.permute.xlu1 %8446 }
 0x847   :  { %21039 = vst [vmem:[#allocation470_spill] sm:$0xff] %v16934_v29  ;;  %v21047_v29 = vld [vmem:[#allocation26_spill] sm:$0xff] }
 0x848   :  { %8698 = vrot.lane.b32.xlu0 %v21040_v17, %s10016_s21 }
 0x84a   :  { %v16938_v32 = vpop.permute.xlu0 %8550  ;;  %8572 = vrot.lane.b32.xlu2 %v21042_v36, %s10015_s20  ;;  %v21049_v36 = vld [vmem:[#allocation154_spill] sm:$0xff] }
 0x84b   :  { %21041 = vst [vmem:[#allocation216_spill] sm:$0xff] %v16938_v32  ;;  %v21050_v58 = vrot.slane %v21049_v36, 4 }
 0x84c   :  { %v16942_v1 = vpop.permute.xlu2 %8442  ;;  %8664 = vrot.lane.b32.xlu1 %v21043_v61, %s10016_s21 }
 0x84d   :  { %v2440_v61 = vsel %vm1962_vm0, %v21050_v58, %v21049_v36 }
 0x84e   :  { %v16946_v22 = vpop.permute.xlu1 %8452 }
 0x84f   :  { %21044 = vst [vmem:[#allocation254_spill] sm:$0xff] %v16946_v22  ;;  %v16965_v22 = vperm.slane %v2440_v61, %v10226_v63  ;;  %v21057_v61 = vld [vmem:[#allocation271_spill] sm:$0xff] }
 0x850   :  { %8704 = vrot.lane.b32.xlu0 %v21045_v7, %s10016_s21 }
 0x851   :  { %21052 = vst [vmem:[#allocation291_spill] sm:$0xff] %v16965_v22  ;;  %v2458_v58 = vrot.slane %v16965_v22, 4  ;;  %v21062_v22 = vld [vmem:[#allocation168_spill] sm:$0xff] }
 0x852   :  { %v16950_v3 = vpop.permute.xlu0 %8556  ;;  %8578 = vrot.lane.b32.xlu2 %v21047_v29, %s10015_s20  ;;  %v21054_v29 = vld [vmem:[#allocation59_spill] sm:$0xff] }
 0x853   :  { %21046 = vst [vmem:[#allocation129_spill] sm:$0xff] %v16950_v3 }
 0x854   :  { %v16954_v17 = vpop.permute.xlu2 %8448  ;;  %8670 = vrot.lane.b32.xlu1 %v21048_v31, %s10016_s21  ;;  %v21055_v31 = vrot.slane %v21054_v29, 4 }
 0x856   :  { %v16962_v14 = vpop.permute.xlu1 %8522  ;;  %v2418_v3 = vsel %vm1962_vm0, %v21055_v31, %v21054_v29  ;;  %v2540_v31 = vrot.slane %v16695_v62, 4 }
 0x857   :  { %21051 = vst [vmem:[#allocation132_spill] sm:$0xff] %v16962_v14  ;;  %v16983_v14 = vperm.slane %v2418_v3, %v10226_v63 }
 0x858   :  { %8710 = vrot.lane.b32.xlu0 %v14625_v56, %s10016_s21  ;;  %v21059_v56 = vld [vmem:[#allocation101_spill] sm:$0xff]  ;;  %v2541_v47 = vsel %vm1962_vm0, %v16678_v27, %v2540_v31 }
 0x859   :  { %21058 = vst [vmem:[#allocation344_spill] sm:$0xff] %v16983_v14  ;;  %v2459_v29 = vsel %vm1962_vm0, %v2458_v58, %v16983_v14  ;;  %v21127_v14 = vld [vmem:[#allocation160_spill] sm:$0xff] }
 0x85a   :  { %v16969_v7 = vpop.permute.xlu0 %8562  ;;  %8584 = vrot.lane.b32.xlu2 %v14816_v13, %s10015_s20 }
 0x85b   :  { %21053 = vst [vmem:[#allocation86_spill] sm:$0xff] %v16969_v7  ;;  %v21060_v7 = vrot.slane %v21059_v56, 4 }
 0x85c   :  { %v16978_v36 = vpop.permute.xlu2 %8454  ;;  %8676 = vrot.lane.b32.xlu1 %v21057_v61, %s10016_s21  ;;  %v21063_v61 = vrot.slane %v21062_v22, 4 }
 0x85d   :  { %21056 = vst [vmem:[#allocation133_spill] sm:$0xff] %v16978_v36  ;;  %v3028_v13 = vsel %vm1962_vm0, %v21060_v7, %v21059_v56  ;;  %v21129_v36 = vld [vmem:[#allocation195_spill] sm:$0xff] }
 0x85e   :  { %v16989_v32 = vpop.permute.xlu1 %8528  ;;  %v3006_v3 = vsel %vm1962_vm0, %v21063_v61, %v21062_v22  ;;  %v17002_v7 = vperm.slane %v3028_v13, %v10226_v63  ;;  %v3128_v61 = vrot.slane %v16715_v15, 4  ;;  %v21073_v15 = vld [vmem:[#allocation360_spill] sm:$0xff]  ;;  %v3728_v52 = vrot.slane %v21129_v36, 4 }
 0x85f   :  { %21061 = vst [vmem:[#allocation153_spill] sm:$0xff] %v16989_v32  ;;  %v17008_v62 = vperm.slane %v3006_v3, %v10226_v63  ;;  %v21071_v3 = vld [vmem:[#allocation192_spill] sm:$0xff] }
 0x860   :  { %8780 = vrot.lane.b32.xlu0 %v2459_v29, %s10017_s22  ;;  %21064 = vst [vmem:[#allocation170_spill] sm:$0xff] %v17002_v7  ;;  %v21068_v29 = vld [vmem:[#allocation316_spill] sm:$0xff]  ;;  %v3046_v22 = vrot.slane %v17002_v7, 4  ;;  %v21075_v7 = vld [vmem:[#allocation190_spill] sm:$0xff] }
 0x861   :  { %21066 = vst [vmem:[#allocation215_spill] sm:$0xff] %v17008_v62 }
 0x862   :  { %v17004_v56 = vpop.permute.xlu0 %8568  ;;  %8654 = vrot.lane.b32.xlu2 %v2541_v47, %s10016_s21  ;;  %v3047_v13 = vsel %vm1962_vm0, %v3046_v22, %v17008_v62  ;;  %v3129_v47 = vsel %vm1962_vm0, %v16705_v50, %v3128_v61  ;;  %v21077_v50 = vld [vmem:[#allocation202_spill] sm:$0xff]  ;;  %v21078_v61 = vld [vmem:[#allocation231_spill] sm:$0xff] }
 0x863   :  { %21065 = vst [vmem:[#allocation377_spill] sm:$0xff] %v17004_v56  ;;  %v21080_v62 = vld [vmem:[#allocation30_spill] sm:$0xff] }
 0x864   :  { %v17010_v58 = vpop.permute.xlu2 %8524  ;;  %8682 = vrot.lane.b32.xlu1 %v21068_v29, %s10016_s21  ;;  %v3298_v29 = vrot.slane %v21071_v3, 4 }
 0x865   :  { %21067 = vst [vmem:[#allocation217_spill] sm:$0xff] %v17010_v58  ;;  %v21114_v58 = vld [vmem:[#allocation14_spill] sm:$0xff] }
 0x866   :  { %v17016_v27 = vpop.permute.xlu1 %8534  ;;  %v3299_v22 = vsel %vm1962_vm0, %v3298_v29, %v21075_v7  ;;  %v21084_v29 = vld [vmem:[#allocation245_spill] sm:$0xff] }
 0x867   :  { %21069 = vst [vmem:[#allocation435_spill] sm:$0xff] %v17016_v27 }
 0x868   :  { %8786 = vrot.lane.b32.xlu0 %v3047_v13, %s10017_s22 }
 0x86a   :  { %v17023_v31 = vpop.permute.xlu0 %8574  ;;  %8660 = vrot.lane.b32.xlu2 %v3129_v47, %s10016_s21  ;;  %v3886_v47 = vrot.slane %v21078_v61, 4 }
 0x86b   :  { %21070 = vst [vmem:[#allocation253_spill] sm:$0xff] %v17023_v31 }
 0x86c   :  { %v17027_v32 = vpop.permute.xlu2 %8530  ;;  %8688 = vrot.lane.b32.xlu1 %v21073_v15, %s10016_s21 }
 0x86d   :  { %21072 = vst [vmem:[#allocation272_spill] sm:$0xff] %v17027_v32 }
 0x86e   :  { %v17031_v27 = vpop.permute.xlu1 %8540 }
 0x86f   :  { %21074 = vst [vmem:[#allocation472_spill] sm:$0xff] %v17031_v27  ;;  %v21082_v27 = vld [vmem:[#allocation229_spill] sm:$0xff] }
 0x870   :  { %8792 = vrot.lane.b32.xlu0 %v3299_v22, %s10017_s22  ;;  %v3887_v31 = vsel %vm1962_vm0, %v3886_v47, %v21082_v27  ;;  %v21085_v22 = vld [vmem:[#allocation286_spill] sm:$0xff] }
 0x872   :  { %v17036_v13 = vpop.permute.xlu0 %8580  ;;  %8666 = vrot.lane.b32.xlu2 %v21077_v50, %s10016_s21  ;;  %v4474_v50 = vrot.slane %v21085_v22, 4  ;;  %v21093_v22 = vld [vmem:[#allocation55_spill] sm:$0xff] }
 0x873   :  { %21076 = vst [vmem:[#allocation293_spill] sm:$0xff] %v17036_v13  ;;  %v21087_v13 = vld [vmem:[#allocation436_spill] sm:$0xff] }
 0x874   :  { %v17041_v3 = vpop.permute.xlu2 %8536  ;;  %8694 = vrot.lane.b32.xlu1 %v21080_v62, %s10016_s21 }
 0x875   :  { %21079 = vst [vmem:[#allocation304_spill] sm:$0xff] %v17041_v3  ;;  %v21089_v3 = vld [vmem:[#allocation285_spill] sm:$0xff] }
 0x876   :  { %v17045_v15 = vpop.permute.xlu1 %8546  ;;  %v4475_v27 = vsel %vm1962_vm0, %v4474_v50, %v21089_v3  ;;  %v21097_v3 = vld [vmem:[#allocation92_spill] sm:$0xff] }
 0x877   :  { %21081 = vst [vmem:[#allocation343_spill] sm:$0xff] %v17045_v15  ;;  %v21088_v15 = vld [vmem:[#allocation49_spill] sm:$0xff] }
 0x878   :  { %8798 = vrot.lane.b32.xlu0 %v3887_v31, %s10017_s22  ;;  %v2552_v56 = vrot.slane %v21088_v15, 4  ;;  %v21090_v31 = vld [vmem:[#allocation32_spill] sm:$0xff]  ;;  %v5062_v15 = vrot.slane %v21095_v20, 4 }
 0x879   :  { %v2468_v47 = vrot.slane %v21090_v31, 4 }
 0x87a   :  { %v17050_v7 = vpop.permute.xlu0 %8650  ;;  %8672 = vrot.lane.b32.xlu2 %v21084_v29, %s10016_s21  ;;  %v21092_v29 = vld [vmem:[#allocation294_spill] sm:$0xff] }
 0x87b   :  { %21083 = vst [vmem:[#allocation357_spill] sm:$0xff] %v17050_v7 }
 0x87c   :  { %v17055_v61 = vpop.permute.xlu2 %8542  ;;  %8700 = vrot.lane.b32.xlu1 %v21087_v13, %s10016_s21  ;;  %v21094_v13 = vld [vmem:[#allocation61_spill] sm:$0xff] }
 0x87d   :  { %21086 = vst [vmem:[#allocation134_spill] sm:$0xff] %v17055_v61  ;;  %v2469_v61 = vsel %vm1962_vm0, %v21093_v22, %v2468_v47  ;;  %v2553_v16 = vsel %vm1962_vm0, %v21094_v13, %v2552_v56  ;;  %v21100_v22 = vld [vmem:[#allocation115_spill] sm:$0xff] }
 0x87e   :  { %v17059_v62 = vpop.permute.xlu1 %8552  ;;  %v17080_v50 = vperm.slane %v2469_v61, %v10152_v4  ;;  %v21101_v56 = vrot.slane %v21100_v22, 4  ;;  %v21103_v61 = vld [vmem:[#allocation116_spill] sm:$0xff] }
 0x880   :  { %8804 = vrot.lane.b32.xlu0 %v4475_v27, %s10017_s22  ;;  %21098 = vst [vmem:[#allocation137_spill] sm:$0xff] %v17080_v50  ;;  %v2561_v27 = vperm.slane %v2553_v16, %v10152_v4  ;;  %v2524_v20 = vsel %vm1962_vm0, %v21101_v56, %v21100_v22  ;;  %v21104_v16 = vld [vmem:[#allocation372_spill] sm:$0xff] }
 0x881   :  { %v5314_v26 = vrot.slane %v21104_v16, 4  ;;  %v2529_v51 = vperm.slane %v2524_v20, %v10226_v63  ;;  %v21110_v20 = vrot.slane %v17080_v50, 4 }
 0x882   :  { %v17066_v7 = vpop.permute.xlu0 %8656  ;;  %8678 = vrot.lane.b32.xlu2 %v21092_v29, %s10016_s21  ;;  %v21099_v29 = vld [vmem:[#allocation323_spill] sm:$0xff] }
 0x883   :  { %21091 = vst [vmem:[#allocation379_spill] sm:$0xff] %v17066_v7  ;;  %v5063_v47 = vsel %vm1962_vm0, %v5062_v15, %v21099_v29  ;;  %v21105_v15 = vld [vmem:[#allocation80_spill] sm:$0xff]  ;;  %v2502_v16 = vsel %vm1962_vm0, %v21110_v20, %v17080_v50 }
 0x884   :  { %v17075_v32 = vpop.permute.xlu2 %8548  ;;  %8706 = vrot.lane.b32.xlu1 %v21097_v3, %s10016_s21  ;;  %v2585_v3 = vrot.slane %v2561_v27, 4  ;;  %v21106_v29 = vrot.slane %v21105_v15, 4  ;;  %v2507_v20 = vperm.slane %v2502_v16, %v10226_v63 }
 0x885   :  { %21096 = vst [vmem:[#allocation400_spill] sm:$0xff] %v17075_v32 }
 0x886   :  { %v17083_v31 = vpop.permute.xlu1 %8558  ;;  %v2608_v19 = vsel %vm1962_vm0, %v21106_v29, %v21105_v15  ;;  %v21111_v15 = vld [vmem:[#allocation371_spill] sm:$0xff] }
 0x887   :  { %v5315_v29 = vsel %vm1962_vm0, %v5314_v26, %v21111_v15  ;;  %v17133_v26 = vperm.slane %v21114_v58, %v10226_v63 }
 0x888   :  { %8810 = vrot.lane.b32.xlu0 %v5063_v47, %s10017_s22  ;;  %v21108_v47 = vld [vmem:[#allocation11_spill] sm:$0xff] }
 0x889   :  { %v21109_v56 = vrot.slane %v21108_v47, 4  ;;  %21115 = vst [vmem:[#allocation167_spill] sm:$0xff] %v17133_v26  ;;  %v21128_v26 = vrot.slane %v21127_v14, 4 }
 0x88a   :  { %v17093_v7 = vpop.permute.xlu0 %8662  ;;  %8684 = vrot.lane.b32.xlu2 %v21103_v61, %s10016_s21 }
 0x88b   :  { %21102 = vst [vmem:[#allocation434_spill] sm:$0xff] %v17093_v7  ;;  %v2356_v13 = vsel %vm1962_vm0, %v21109_v56, %v21108_v47  ;;  %v2586_v7 = vsel %vm1962_vm0, %v2585_v3, %v2561_v27  ;;  %v21112_v47 = vld [vmem:[#allocation100_spill] sm:$0xff] }
 0x88c   :  { %v17103_v22 = vpop.permute.xlu2 %8554  ;;  %8712 = vrot.lane.b32.xlu1 %v14894_v59, %s10016_s21  ;;  %v2613_v59 = vperm.slane %v2608_v19, %v10226_v63  ;;  %v17123_v21 = vperm.slane %v2356_v13, %v10226_v63  ;;  %v21113_v56 = vrot.slane %v21112_v47, 4  ;;  %v2591_v50 = vperm.slane %v2586_v7, %v10226_v63  ;;  %v21117_v19 = vld [vmem:[#allocation70_spill] sm:$0xff] }
 0x88d   :  { %21107 = vst [vmem:[#allocation88_spill] sm:$0xff] %v17103_v22  ;;  %v2542_v22 = vrot.slane %v2529_v51, 4 }
 0x88e   :  { %v17111_v61 = vpop.permute.xlu1 %8564  ;;  %v3112_v28 = vsel %vm1962_vm0, %v21113_v56, %v21112_v47  ;;  %v21120_v47 = vrot.slane %v21119_v53, 4  ;;  %v2626_v56 = vrot.slane %v2613_v59, 4  ;;  %v2628_v32 = vrot.slane %v2591_v50, 4 }
 0x88f   :  { %v2543_v13 = vsel %vm1962_vm0, %v2542_v22, %v2507_v20  ;;  %v17149_v58 = vperm.slane %v3112_v28, %v10226_v63  ;;  %v21124_v28 = vld [vmem:[#allocation162_spill] sm:$0xff]  ;;  %v21126_v22 = vld [vmem:[#allocation412_spill] sm:$0xff] }
 0x890   :  { %8816 = vrot.lane.b32.xlu0 %v5315_v29, %s10017_s22  ;;  %v21118_v29 = vld [vmem:[#allocation414_spill] sm:$0xff]  ;;  %v3090_v16 = vsel %vm1962_vm0, %v21120_v47, %v21119_v53  ;;  %v3700_v53 = vsel %vm1962_vm0, %v21123_v60, %v21122_v24  ;;  %v2334_v60 = vsel %vm1962_vm0, %v21128_v26, %v21127_v14  ;;  %v17177_v24 = vsel %vm1962_vm0, %v2626_v56, %v2591_v50 }
 0x891   :  { %v5902_v57 = vrot.slane %v21118_v29, 4  ;;  %v17192_v50 = vperm.slane %v3700_v53, %v10226_v63 }
 0x892   :  { %v17135_v15 = vpop.permute.xlu0 %8668  ;;  %8690 = vrot.lane.b32.xlu2 %v21117_v19, %s10016_s21  ;;  %v2544_v19 = vrot.slane %v2507_v20, 4 }
 0x893   :  { %21116 = vst [vmem:[#allocation471_spill] sm:$0xff] %v17135_v15  ;;  %v17168_v15 = vsel %vm1962_vm0, %v2561_v27, %v2585_v3  ;;  %v5903_v29 = vsel %vm1962_vm0, %v5902_v57, %v21126_v22  ;;  %v3130_v27 = vrot.slane %v17149_v58, 4  ;;  %v21130_v3 = vld [vmem:[#allocation298_spill] sm:$0xff]  ;;  %v21134_v22 = vld [vmem:[#allocation36_spill] sm:$0xff] }
 0x894   :  { %v17145_v7 = vpop.permute.xlu2 %8560  ;;  %8782 = vrot.lane.b32.xlu1 %v2543_v13, %s10017_s22  ;;  %v17161_v13 = vperm.slane %v3090_v16, %v10226_v63  ;;  %v17180_v16 = vsel %vm1962_vm0, %v2613_v59, %v2628_v32  ;;  %v17186_v57 = vsel %vm1962_vm0, %v2529_v51, %v2544_v19  ;;  %v9274_v14 = vsel %vm9258_vm1, %v21130_v3, %v14980_v10  ;;  %v21132_v51 = vld [vmem:[#allocation420_spill] sm:$0xff]  ;;  %v21138_v3 = vld [vmem:[#allocation178_spill] sm:$0xff] }
 0x895   :  { %21121 = vst [vmem:[#allocation26_spill] sm:$0xff] %v17145_v7  ;;  %v21125_v7 = vrot.slane %v21124_v28, 4  ;;  %v9307_v36 = vsel %vm9291_vm2, %v9274_v14, %v15067_v43  ;;  %v2339_v10 = vperm.slane %v2334_v60, %v10226_v63  ;;  %v21135_v43 = vrot.slane %v21134_v22, 4  ;;  %v21136_v60 = vld [vmem:[#allocation165_spill] sm:$0xff] }
 0x896   :  { %v17158_v47 = vpop.permute.xlu1 %8570  ;;  %v3131_v26 = vsel %vm1962_vm0, %v3130_v27, %v17161_v13  ;;  %v9340_v56 = vsel %vm9324_vm3, %v9307_v36, %v15604_v30  ;;  %v21137_v30 = vrot.slane %v21136_v60, 4  ;;  %v3729_v14 = vsel %vm1962_vm0, %v21138_v3, %v3728_v52 }
 0x897   :  { %v3174_v20 = vsel %vm1962_vm0, %v21125_v7, %v21124_v28  ;;  %v21133_v7 = vld [vmem:[#allocation464_spill] sm:$0xff]  ;;  %v9373_v53 = vsel %vm9357_vm4, %v9340_v56, %v15811_v23  ;;  %v3718_v23 = vrot.slane %v17192_v50, 4  ;;  %v2376_v56 = vrot.slane %v2339_v10, 4 }
 0x898   :  { %8822 = vrot.lane.b32.xlu0 %v5903_v29, %s10017_s22  ;;  %v17195_v32 = vperm.slane %v3174_v20, %v10226_v63  ;;  %v6490_v19 = vrot.slane %v21133_v7, 4  ;;  %v3678_v29 = vsel %vm1962_vm0, %v21135_v43, %v21134_v22  ;;  %v3132_v20 = vrot.slane %v17161_v13, 4  ;;  %v21139_v7 = vld [vmem:[#allocation219_spill] sm:$0xff]  ;;  %v21141_v43 = vld [vmem:[#allocation462_spill] sm:$0xff] }
 0x899   :  { %v3196_v27 = vsel %vm1962_vm0, %v21137_v30, %v21136_v60  ;;  %v9406_v36 = vsel %vm9390_vm5, %v9373_v53, %v15866_v39  ;;  %v17233_v13 = vperm.slane %v3678_v29, %v10226_v63  ;;  %v21140_v22 = vrot.slane %v21139_v7, 4  ;;  %v21142_v30 = vld [vmem:[#allocation333_spill] sm:$0xff] }
 0x89a   :  { %v17199_v59 = vpop.permute.xlu0 %8674  ;;  %8696 = vrot.lane.b32.xlu2 %v21132_v51, %s10016_s21  ;;  %v9439_v51 = vsel %vm9423_vm6, %v9406_v36, %v16120_v5  ;;  %v6491_v53 = vsel %vm1962_vm0, %v6490_v19, %v21141_v43  ;;  %v17244_v5 = vperm.slane %v3729_v14, %v10152_v4  ;;  %v17250_v60 = vperm.slane %v3196_v27, %v10226_v63  ;;  %v21143_v36 = vld [vmem:[#allocation460_spill] sm:$0xff] }
 0x89b   :  { %21131 = vst [vmem:[#allocation218_spill] sm:$0xff] %v17199_v59  ;;  %v3952_v52 = vsel %vm1962_vm0, %v21140_v22, %v21139_v7  ;;  %v9472_v39 = vsel %vm9456_vm7, %v9439_v51, %v16474_v2  ;;  %v9277_v3 = vsel %vm9258_vm1, %v21142_v30, %v14997_v41  ;;  %v3719_v19 = vsel %vm1962_vm0, %v3718_v23, %v17233_v13 }
 0x89c   :  { %v17215_v28 = vpop.permute.xlu2 %8566  ;;  %8788 = vrot.lane.b32.xlu1 %v3131_v26, %s10017_s22  ;;  %v9505_v29 = vsel %vm9489_vm8, %v9472_v39, %v16637_v48  ;;  %v9310_v48 = vsel %vm9291_vm2, %v9277_v3, %v15078_v38  ;;  %v17266_v41 = vperm.slane %v3952_v52, %v10226_v63  ;;  %v7078_v23 = vrot.slane %v14757_v45, 4  ;;  %v21145_v38 = vld [vmem:[#allocation257_spill] sm:$0xff] }
 0x89d   :  { %v9538_v2 = vsel %vm9522_vm9, %v9505_v29, %v16906_v6  ;;  %v9343_v6 = vsel %vm9324_vm3, %v9310_v48, %v15639_v40  ;;  %v21146_v7 = vrot.slane %v21145_v38, 4  ;;  %v19750_v22 = vrot.slane %v17244_v5, 4 }
 0x89e   :  { %v17230_v26 = vpop.permute.xlu1 %8576  ;;  %v9571_v14 = vsel %vm9555_vm10, %v9538_v2, %v17059_v62  ;;  %v9376_v39 = vsel %vm9357_vm4, %v9343_v6, %v15825_v37  ;;  %v21147_v40 = vrot.slane %v17123_v21, 4  ;;  %v17291_v45 = vsel %vm1962_vm0, %v17149_v58, %v3132_v20 }
 0x89f   :  { %v3930_v62 = vsel %vm1962_vm0, %v21146_v7, %v21145_v38  ;;  %v9409_v37 = vsel %vm9390_vm5, %v9376_v39, %v15878_v33  ;;  %v17301_v3 = vsel %vm1962_vm0, %v17123_v21, %v2376_v56  ;;  %v3970_v33 = vrot.slane %v17266_v41, 4  ;;  %v21151_v56 = vld [vmem:[#allocation25_spill] sm:$0xff]  ;;  %v21154_v7 = vld [vmem:[#allocation155_spill] sm:$0xff]  ;;  %v21157_v39 = vld [vmem:[#allocation386_spill] sm:$0xff] }
 0x8a0   :  { %8828 = vrot.lane.b32.xlu0 %v6491_v53, %s10017_s22  ;;  %v17287_v43 = vsel %vm1962_vm0, %v21147_v40, %v2339_v10  ;;  %v21148_v53 = vld [vmem:[#allocation207_spill] sm:$0xff]  ;;  %v21150_v10 = vrot.slane %v14698_v46, 4  ;;  %v9442_v20 = vsel %vm9423_vm6, %v9409_v37, %v16148_v12  ;;  %v17313_v48 = vperm.slane %v3930_v62, %v10226_v63  ;;  %v21159_v37 = vld [vmem:[#allocation405_spill] sm:$0xff] }
 0x8a1   :  { %v21149_v29 = vrot.slane %v21148_v53, 4  ;;  %v9475_v21 = vsel %vm9456_vm7, %v9442_v20, %v16520_v18  ;;  %v21155_v18 = vrot.slane %v21154_v7, 4 }
 0x8a2   :  { %v8681_v27 = vpop.permute.xlu0 %8680  ;;  %8702 = vrot.lane.b32.xlu2 %v21143_v36, %s10016_s21  ;;  %v7312_v58 = vsel %vm1962_vm0, %v21150_v10, %v14698_v46  ;;  %v3720_v46 = vrot.slane %v17233_v13, 4  ;;  %v21152_v36 = vld [vmem:[#allocation282_spill] sm:$0xff]  ;;  %v9508_v38 = vsel %vm9489_vm8, %v9475_v21, %v16662_v0  ;;  %v3762_v13 = vsel %vm1962_vm0, %v19750_v22, %v17244_v5 }
 0x8a3   :  { %v17271_v51 = vsel %vm9588_vm11, %v9571_v14, %v8681_v27  ;;  %v3784_v30 = vsel %vm1962_vm0, %v21149_v29, %v21148_v53  ;;  %v7079_v14 = vsel %vm1962_vm0, %v7078_v23, %v21151_v56  ;;  %v3214_v27 = vrot.slane %v17250_v60, 4  ;;  %v21156_v23 = vld [vmem:[#allocation347_spill] sm:$0xff] }
 0x8a4   :  { %21144 = vst [vmem:[#allocation154_spill] sm:$0xff] %v17271_v51  ;;  %v17281_v52 = vpop.permute.xlu2 %8572  ;;  %8794 = vrot.lane.b32.xlu1 %v3719_v19, %s10017_s22  ;;  %v21153_v12 = vrot.slane %v21152_v36, 4  ;;  %v7290_v62 = vsel %vm1962_vm0, %v21155_v18, %v21154_v7  ;;  %v9280_v40 = vsel %vm9258_vm1, %v21157_v39, %v21156_v23  ;;  %v9541_v53 = vsel %vm9522_vm9, %v9508_v38, %v16918_v55  ;;  %v21160_v56 = vld [vmem:[#allocation75_spill] sm:$0xff]  ;;  %v21161_v55 = vld [vmem:[#allocation265_spill] sm:$0xff] }
 0x8a5   :  { %v17343_v0 = vperm.slane %v7312_v58, %v10226_v63  ;;  %v17346_v29 = vperm.slane %v3784_v30, %v10226_v63  ;;  %v9313_v10 = vsel %vm9291_vm2, %v9280_v40, %v21159_v37  ;;  %v9574_v20 = vsel %vm9555_vm10, %v9541_v53, %v17083_v31  ;;  %v21165_v23 = vld [vmem:[#allocation311_spill] sm:$0xff]  ;;  %v21166_v39 = vld [vmem:[#allocation349_spill] sm:$0xff]  ;;  %v21167_v53 = vld [vmem:[#allocation306_spill] sm:$0xff] }
 0x8a6   :  { %v17310_v19 = vpop.permute.xlu1 %8582  ;;  %v4540_v6 = vsel %vm1962_vm0, %v21153_v12, %v21152_v36  ;;  %v21162_v58 = vrot.slane %v21161_v55, 4  ;;  %v9346_v30 = vsel %vm9324_vm3, %v9313_v10, %v15667_v34  ;;  %v17366_v31 = vperm.slane %v7290_v62, %v10226_v63  ;;  %v21169_v10 = vld [vmem:[#allocation210_spill] sm:$0xff] }
 0x8a7   :  { %21158 = vst [vmem:[#allocation59_spill] sm:$0xff] %v17343_v0  ;;  %v4545_v38 = vperm.slane %v4540_v6, %v10226_v63  ;;  %v9379_v7 = vsel %vm9357_vm4, %v9346_v30, %v15838_v49  ;;  %v17376_v18 = vsel %vm1962_vm0, %v3214_v27, %v17195_v32  ;;  %v17380_v34 = vsel %vm1962_vm0, %v17192_v50, %v3720_v46 }
 0x8a8   :  { %8834 = vrot.lane.b32.xlu0 %v7079_v14, %s10017_s22  ;;  %v3971_v14 = vsel %vm1962_vm0, %v3970_v33, %v17313_v48  ;;  %v4372_v36 = vsel %vm1962_vm0, %v21162_v58, %v21161_v55  ;;  %21164 = vst [vmem:[#allocation101_spill] sm:$0xff] %v17366_v31  ;;  %v17383_v62 = vperm.slane %v3762_v13, %v10226_v63  ;;  %v5156_v6 = vrot.slane %v21165_v23, 4  ;;  %v21170_v13 = vld [vmem:[#allocation258_spill] sm:$0xff] }
 0x8a9   :  { %v9412_v49 = vsel %vm9390_vm5, %v9379_v7, %v21166_v39  ;;  %v7330_v40 = vrot.slane %v17343_v0, 4  ;;  %v21168_v37 = vrot.slane %v21167_v53, 4  ;;  %v3802_v46 = vrot.slane %v17346_v29, 4  ;;  %v21172_v7 = vld [vmem:[#allocation350_spill] sm:$0xff] }
 0x8aa   :  { %v8687_v21 = vpop.permute.xlu0 %8686  ;;  %8708 = vrot.lane.b32.xlu2 %v21160_v56, %s10016_s21  ;;  %v4558_v30 = vrot.slane %v4545_v38, 4  ;;  %v21173_v23 = vrot.slane %v21172_v7, 4 }
 0x8ab   :  { %v17363_v12 = vsel %vm9588_vm11, %v9574_v20, %v8687_v21  ;;  %v4518_v27 = vsel %vm1962_vm0, %v21168_v37, %v21167_v53  ;;  %v9445_v20 = vsel %vm9423_vm6, %v9412_v49, %v21169_v10  ;;  %v21171_v21 = vrot.slane %v21170_v13, 4  ;;  %v21174_v49 = vld [vmem:[#allocation281_spill] sm:$0xff]  ;;  %v21176_v10 = vld [vmem:[#allocation322_spill] sm:$0xff] }
 0x8ac   :  { %21163 = vst [vmem:[#allocation271_spill] sm:$0xff] %v17363_v12  ;;  %v17371_v33 = vpop.permute.xlu2 %8578  ;;  %8800 = vrot.lane.b32.xlu1 %v3971_v14, %s10017_s22  ;;  %v17403_v14 = vperm.slane %v4372_v36, %v10226_v63  ;;  %v9478_v55 = vsel %vm9456_vm7, %v9445_v20, %v16558_v8  ;;  %v7331_v58 = vsel %vm1962_vm0, %v7330_v40, %v17366_v31  ;;  %v21175_v53 = vrot.slane %v21174_v49, 4 }
 0x8ad   :  { %v4350_v56 = vsel %vm1962_vm0, %v21171_v21, %v21170_v13  ;;  %v5128_v39 = vsel %vm1962_vm0, %v21173_v23, %v21172_v7  ;;  %v9511_v36 = vsel %vm9489_vm8, %v9478_v55, %v16684_v42  ;;  %v4523_v8 = vperm.slane %v4518_v27, %v10226_v63  ;;  %v21177_v13 = vld [vmem:[#allocation388_spill] sm:$0xff]  ;;  %v21178_v21 = vld [vmem:[#allocation425_spill] sm:$0xff]  ;;  %v21179_v42 = vld [vmem:[#allocation183_spill] sm:$0xff] }
 0x8ae   :  { %v17395_v50 = vpop.permute.xlu1 %8652  ;;  %v4624_v37 = vsel %vm1962_vm0, %v21175_v53, %v21174_v49  ;;  %v3972_v40 = vrot.slane %v17313_v48, 4  ;;  %v5157_v20 = vsel %vm1962_vm0, %v21176_v10, %v5156_v6  ;;  %v9283_v7 = vsel %vm9258_vm1, %v21178_v21, %v21177_v13  ;;  %v21180_v53 = vld [vmem:[#allocation381_spill] sm:$0xff] }
 0x8af   :  { %v9544_v23 = vsel %vm9522_vm9, %v9511_v36, %v16930_v35  ;;  %v17430_v49 = vperm.slane %v4350_v56, %v10226_v63  ;;  %v9316_v55 = vsel %vm9291_vm2, %v9283_v7, %v21179_v42  ;;  %v17439_v6 = vperm.slane %v5128_v39, %v10226_v63  ;;  %v21184_v7 = vld [vmem:[#allocation301_spill] sm:$0xff] }
 0x8b0   :  { %8840 = vrot.lane.b32.xlu0 %v7331_v58, %s10017_s22  ;;  %v9577_v27 = vsel %vm9555_vm10, %v9544_v23, %v17111_v61  ;;  %v4390_v58 = vrot.slane %v17403_v14, 4  ;;  %v9349_v35 = vsel %vm9324_vm3, %v9316_v55, %v21180_v53  ;;  %v4559_v36 = vsel %vm1962_vm0, %v4558_v30, %v4523_v8  ;;  %v21186_v30 = vld [vmem:[#allocation392_spill] sm:$0xff]  ;;  %v21187_v55 = vld [vmem:[#allocation354_spill] sm:$0xff] }
 0x8b1   :  { %v17449_v10 = vperm.slane %v4624_v37, %v10226_v63  ;;  %v17452_v61 = vperm.slane %v5157_v20, %v10152_v4  ;;  %v4560_v21 = vrot.slane %v4523_v8, 4  ;;  %v21185_v23 = vrot.slane %v21184_v7, 4 }
 0x8b2   :  { %v8693_v48 = vpop.permute.xlu0 %8692  ;;  %8778 = vrot.lane.b32.xlu2 %v17287_v43, %s10017_s22  ;;  %v21183_v43 = vld [vmem:[#allocation156_spill] sm:$0xff]  ;;  %v21188_v4 = vrot.slane %v21187_v55, 4  ;;  %v17475_v8 = vsel %vm1962_vm0, %v17266_v41, %v3972_v40 }
 0x8b3   :  { %v17445_v56 = vsel %vm9588_vm11, %v9577_v27, %v8693_v48  ;;  %21182 = vst [vmem:[#allocation316_spill] sm:$0xff] %v17452_v61  ;;  %v9382_v39 = vsel %vm9357_vm4, %v9349_v35, %v21183_v43  ;;  %v4602_v42 = vsel %vm1962_vm0, %v21185_v23, %v21184_v7  ;;  %v17471_v27 = vsel %vm1962_vm0, %v3802_v46, %v17383_v62  ;;  %v21189_v48 = vld [vmem:[#allocation426_spill] sm:$0xff] }
 0x8b4   :  { %21181 = vst [vmem:[#allocation168_spill] sm:$0xff] %v17445_v56  ;;  %v17456_v13 = vpop.permute.xlu2 %8584  ;;  %8806 = vrot.lane.b32.xlu1 %v4559_v36, %s10017_s22  ;;  %v9415_v37 = vsel %vm9390_vm5, %v9382_v39, %v21186_v30  ;;  %v5106_v20 = vsel %vm1962_vm0, %v21188_v4, %v21187_v55  ;;  %v5146_v36 = vrot.slane %v17439_v6, 4  ;;  %v17484_v43 = vsel %vm1962_vm0, %v4390_v58, %v17430_v49  ;;  %v21190_v46 = vld [vmem:[#allocation338_spill] sm:$0xff]  ;;  %v21192_v58 = vld [vmem:[#allocation351_spill] sm:$0xff] }
 0x8b5   :  { %v9448_v53 = vsel %vm9423_vm6, %v9415_v37, %v21189_v48  ;;  %v17487_v39 = vsel %vm1962_vm0, %v4545_v38, %v4560_v21  ;;  %v21191_v7 = vrot.slane %v21190_v46, 4  ;;  %v17496_v23 = vperm.slane %v4602_v42, %v10226_v63  ;;  %v21194_v42 = vld [vmem:[#allocation363_spill] sm:$0xff]  ;;  %v21233_v56 = vld [vmem:[#allocation110_spill] sm:$0xff] }
 0x8b6   :  { %v17479_v35 = vpop.permute.xlu1 %8658  ;;  %v9481_v40 = vsel %vm9456_vm7, %v9448_v53, %v16587_v44  ;;  %v4642_v30 = vrot.slane %v17449_v10, 4  ;;  %v21193_v55 = vrot.slane %v21192_v58, 4  ;;  %v5111_v44 = vperm.slane %v5106_v20, %v10226_v63  ;;  %v21196_v53 = vld [vmem:[#allocation277_spill] sm:$0xff] }
 0x8b7   :  { %v5212_v41 = vsel %vm1962_vm0, %v21191_v7, %v21190_v46  ;;  %v9514_v21 = vsel %vm9489_vm8, %v9481_v40, %v16707_v54  ;;  %v21195_v4 = vrot.slane %v21194_v42, 4  ;;  %v21197_v46 = vld [vmem:[#allocation455_spill] sm:$0xff] }
 0x8b8   :  { %v5716_v38 = vsel %vm1962_vm0, %v21193_v55, %v21192_v58  ;;  %8910 = vrot.lane.b32.xlu0 %v17186_v57, %s10018_s23  ;;  %v9286_v7 = vsel %vm9258_vm1, %v21197_v46, %v21196_v53  ;;  %v9547_v58 = vsel %vm9522_vm9, %v9514_v21, %v16942_v1  ;;  %v21198_v55 = vld [vmem:[#allocation391_spill] sm:$0xff]  ;;  %v21203_v46 = vld [vmem:[#allocation361_spill] sm:$0xff] }
 0x8b9   :  { %v5800_v48 = vsel %vm1962_vm0, %v21195_v4, %v21194_v42  ;;  %v21199_v54 = vrot.slane %v21198_v55, 4  ;;  %v21200_v57 = vld [vmem:[#allocation51_spill] sm:$0xff]  ;;  %v9580_v22 = vsel %vm9555_vm10, %v9547_v58, %v17158_v47  ;;  %v5147_v42 = vsel %vm1962_vm0, %v5146_v36, %v5111_v44  ;;  %v21205_v58 = vld [vmem:[#allocation238_spill] sm:$0xff] }
 0x8ba   :  { %v9319_v20 = vsel %vm9291_vm2, %v9286_v7, %v21200_v57  ;;  %v8699_v2 = vpop.permute.xlu0 %8698  ;;  %8784 = vrot.lane.b32.xlu2 %v17177_v24, %s10017_s22  ;;  %v17530_v4 = vperm.slane %v5212_v41, %v10226_v63  ;;  %v21201_v1 = vld [vmem:[#allocation411_spill] sm:$0xff]  ;;  %v5721_v47 = vperm.slane %v5716_v38, %v10226_v63  ;;  %v17553_v57 = vperm.slane %v5800_v48, %v10226_v63  ;;  %v21212_v48 = vld [vmem:[#allocation437_spill] sm:$0xff] }
 0x8bb   :  { %v5694_v40 = vsel %vm1962_vm0, %v21199_v54, %v21198_v55  ;;  %v21202_v21 = vrot.slane %v21201_v1, 4  ;;  %v9352_v7 = vsel %vm9324_vm3, %v9319_v20, %v21203_v46  ;;  %v17539_v55 = vsel %vm9588_vm11, %v9580_v22, %v8699_v2  ;;  %v21206_v22 = vld [vmem:[#allocation439_spill] sm:$0xff]  ;;  %v21207_v2 = vld [vmem:[#allocation276_spill] sm:$0xff] }
 0x8bc   :  { %21204 = vst [vmem:[#allocation192_spill] sm:$0xff] %v17539_v55  ;;  %v9385_v24 = vsel %vm9357_vm4, %v9352_v7, %v21205_v58  ;;  %v17544_v36 = vpop.permute.xlu2 %8654  ;;  %8812 = vrot.lane.b32.xlu1 %v5147_v42, %s10017_s22  ;;  %v5699_v41 = vperm.slane %v5694_v40, %v10226_v63  ;;  %v17550_v54 = vsel %vm1962_vm0, %v4642_v30, %v17496_v23  ;;  %v21208_v20 = vld [vmem:[#allocation444_spill] sm:$0xff]  ;;  %v21209_v46 = vld [vmem:[#allocation395_spill] sm:$0xff]  ;;  %v21211_v7 = vld [vmem:[#allocation290_spill] sm:$0xff]  ;;  %v21213_v37 = vrot.slane %v21212_v48, 4 }
 0x8bd   :  { %v5968_v53 = vsel %vm1962_vm0, %v21202_v21, %v21201_v1  ;;  %v17558_v38 = vsel %vm9258_vm1, %v21207_v2, %v21206_v22  ;;  %v9418_v1 = vsel %vm9390_vm5, %v9385_v24, %v21208_v20  ;;  %v5148_v21 = vrot.slane %v5111_v44, 4 }
 0x8be   :  { %v21210_v42 = vrot.slane %v21209_v46, 4  ;;  %v9451_v30 = vsel %vm9423_vm6, %v9418_v1, %v21211_v7  ;;  %v17568_v58 = vpop.permute.xlu1 %8664  ;;  %v5946_v22 = vsel %vm1962_vm0, %v21213_v37, %v21212_v48  ;;  %v5973_v2 = vperm.slane %v5968_v53, %v10226_v63 }
 0x8bf   :  { %v21214_v44 = vrot.slane %v17452_v61, 4  ;;  %v9484_v20 = vsel %vm9456_vm7, %v9451_v30, %v16622_v11  ;;  %v17583_v1 = vsel %vm1962_vm0, %v17439_v6, %v5148_v21  ;;  %v5736_v53 = vrot.slane %v5699_v41, 4  ;;  %v21215_v11 = vld [vmem:[#allocation126_spill] sm:$0xff]  ;;  %v21216_v30 = vld [vmem:[#allocation329_spill] sm:$0xff] }
 0x8c0   :  { %v5778_v40 = vsel %vm1962_vm0, %v21210_v42, %v21209_v46  ;;  %v5734_v46 = vrot.slane %v5721_v47, 4  ;;  %v5230_v42 = vrot.slane %v17530_v4, 4  ;;  %v9517_v37 = vsel %vm9489_vm8, %v9484_v20, %v16727_v9  ;;  %8916 = vrot.lane.b32.xlu0 %v17291_v45, %s10018_s23  ;;  %v21217_v20 = vld [vmem:[#allocation78_spill] sm:$0xff]  ;;  %v21218_v45 = vld [vmem:[#allocation307_spill] sm:$0xff] }
 0x8c1   :  { %v5190_v24 = vsel %vm1962_vm0, %v21214_v44, %v17452_v61  ;;  %v17591_v7 = vperm.slane %v5778_v40, %v10226_v63  ;;  %v5818_v48 = vrot.slane %v17553_v57, 4  ;;  %v9289_v44 = vsel %vm9258_vm1, %v21216_v30, %v21215_v11  ;;  %v21219_v40 = vld [vmem:[#allocation77_spill] sm:$0xff] }
 0x8c2   :  { %v9550_v6 = vsel %vm9522_vm9, %v9517_v37, %v16954_v17  ;;  %v5951_v21 = vperm.slane %v5946_v22, %v10226_v63  ;;  %v17601_v9 = vperm.slane %v5190_v24, %v10226_v63  ;;  %v17606_v0 = vsel %vm9258_vm1, %v21218_v45, %v21217_v20  ;;  %v8705_v11 = vpop.permute.xlu0 %8704  ;;  %8790 = vrot.lane.b32.xlu2 %v17376_v18, %s10017_s22  ;;  %v21220_v22 = vld [vmem:[#allocation251_spill] sm:$0xff]  ;;  %v21223_v45 = vld [vmem:[#allocation368_spill] sm:$0xff] }
 0x8c3   :  { %v9322_v31 = vsel %vm9291_vm2, %v9289_v44, %v21219_v40  ;;  %v9583_v55 = vsel %vm9555_vm10, %v9550_v6, %v17230_v26  ;;  %v5986_v17 = vrot.slane %v5973_v2, 4  ;;  %v5735_v30 = vsel %vm1962_vm0, %v5734_v46, %v5699_v41  ;;  %v21222_v44 = vld [vmem:[#allocation421_spill] sm:$0xff]  ;;  %v21224_v6 = vld [vmem:[#allocation278_spill] sm:$0xff] }
 0x8c4   :  { %v9355_v24 = vsel %vm9324_vm3, %v9322_v31, %v21220_v22  ;;  %v17617_v37 = vsel %vm9588_vm11, %v9583_v55, %v8705_v11  ;;  %v17622_v20 = vsel %vm1962_vm0, %v5230_v42, %v17601_v9  ;;  %v17627_v26 = vsel %vm9258_vm1, %v21223_v45, %v21222_v44  ;;  %v17631_v40 = vpop.permute.xlu2 %8660  ;;  %8818 = vrot.lane.b32.xlu1 %v5735_v30, %s10017_s22  ;;  %v21225_v41 = vld [vmem:[#allocation438_spill] sm:$0xff]  ;;  %v21227_v11 = vld [vmem:[#allocation261_spill] sm:$0xff]  ;;  %v21228_v22 = vld [vmem:[#allocation260_spill] sm:$0xff] }
 0x8c5   :  { %21221 = vst [vmem:[#allocation360_spill] sm:$0xff] %v17617_v37  ;;  %v9388_v18 = vsel %vm9357_vm4, %v9355_v24, %v21224_v6  ;;  %v17635_v31 = vsel %vm1962_vm0, %v5721_v47, %v5736_v53  ;;  %v17639_v55 = vsel %vm1962_vm0, %v5818_v48, %v17591_v7  ;;  %v21226_v46 = vrot.slane %v21225_v41, 4  ;;  %v21229_v44 = vld [vmem:[#allocation475_spill] sm:$0xff]  ;;  %v21230_v6 = vld [vmem:[#allocation428_spill] sm:$0xff] }
 0x8c6   :  { %v9272_v24 = vsel %vm9258_vm1, %v21228_v22, %v21227_v11  ;;  %v9421_v45 = vsel %vm9390_vm5, %v9388_v18, %v21229_v44  ;;  %v5988_v30 = vrot.slane %v5951_v21, 4  ;;  %v21231_v47 = vrot.slane %v21230_v6, 4  ;;  %v21232_v48 = vld [vmem:[#allocation312_spill] sm:$0xff]  ;;  %v21234_v11 = vld [vmem:[#allocation145_spill] sm:$0xff]  ;;  %v21236_v44 = vld [vmem:[#allocation19_spill] sm:$0xff] }
 0x8c7   :  { %v6556_v42 = vsel %vm1962_vm0, %v21226_v46, %v21225_v41  ;;  %v9305_v37 = vsel %vm9291_vm2, %v9272_v24, %v21232_v48  ;;  %v9454_v12 = vsel %vm9423_vm6, %v9421_v45, %v21233_v56  ;;  %v17658_v41 = vpop.permute.xlu1 %8670  ;;  %v5987_v46 = vsel %vm1962_vm0, %v5986_v17, %v5951_v21  ;;  %v21238_v56 = vld [vmem:[#allocation43_spill] sm:$0xff]  ;;  %v21239_v48 = vld [vmem:[#allocation42_spill] sm:$0xff] }
 0x8c8   :  { %v6388_v53 = vsel %vm1962_vm0, %v21231_v47, %v21230_v6  ;;  %v21235_v22 = vrot.slane %v21234_v11, 4  ;;  %v9338_v51 = vsel %vm9324_vm3, %v9305_v37, %v21236_v44  ;;  %v9487_v6 = vsel %vm9456_vm7, %v9454_v12, %v16651_v25  ;;  %v21237_v47 = vld [vmem:[#allocation201_spill] sm:$0xff]  ;;  %v21240_v17 = vld [vmem:[#allocation346_spill] sm:$0xff]  ;;  %8922 = vrot.lane.b32.xlu0 %v17380_v34, %s10018_s23 }
 0x8c9   :  { %v17670_v24 = vsel %vm1962_vm0, %v5973_v2, %v5988_v30  ;;  %v9260_v45 = vsel %vm9258_vm1, %v21238_v56, %v21237_v47  ;;  %v9371_v21 = vsel %vm9357_vm4, %v9338_v51, %v21239_v48  ;;  %v9520_v61 = vsel %vm9489_vm8, %v9487_v6, %v21240_v17  ;;  %v21241_v25 = vld [vmem:[#allocation390_spill] sm:$0xff]  ;;  %v21242_v2 = vld [vmem:[#allocation31_spill] sm:$0xff]  ;;  %v21247_v56 = vld [vmem:[#allocation456_spill] sm:$0xff] }
 0x8ca   :  { %v7144_v18 = vsel %vm1962_vm0, %v21235_v22, %v21234_v11  ;;  %v17682_v37 = vperm.slane %v6556_v42, %v10226_v63  ;;  %v9293_v12 = vsel %vm9291_vm2, %v9260_v45, %v21241_v25  ;;  %v9404_v30 = vsel %vm9390_vm5, %v9371_v21, %v21242_v2  ;;  %v21243_v11 = vld [vmem:[#allocation133_spill] sm:$0xff]  ;;  %v21244_v44 = vld [vmem:[#allocation474_spill] sm:$0xff]  ;;  %v8711_v48 = vpop.permute.xlu0 %8710  ;;  %8796 = vrot.lane.b32.xlu2 %v17471_v27, %s10017_s22  ;;  %v21248_v21 = vld [vmem:[#allocation256_spill] sm:$0xff] }
 0x8cb   :  { %v9553_v22 = vsel %vm9522_vm9, %v9520_v61, %v21243_v11  ;;  %v21245_v51 = vrot.slane %v21244_v44, 4  ;;  %v21246_v47 = vld [vmem:[#allocation114_spill] sm:$0xff]  ;;  %v9437_v42 = vsel %vm9423_vm6, %v9404_v30, %v21247_v56  ;;  %v17703_v61 = vperm.slane %v7144_v18, %v10226_v63  ;;  %v21256_v56 = vld [vmem:[#allocation111_spill] sm:$0xff] }
 0x8cc   :  { %v9326_v34 = vsel %vm9324_vm3, %v9293_v12, %v21246_v47  ;;  %v9586_v45 = vsel %vm9555_vm10, %v9553_v22, %v17310_v19  ;;  %v21249_v25 = vld [vmem:[#allocation430_spill] sm:$0xff]  ;;  %v17713_v30 = vperm.slane %v6388_v53, %v10226_v63  ;;  %v21251_v19 = vld [vmem:[#allocation317_spill] sm:$0xff]  ;;  %v17719_v18 = vpop.permute.xlu2 %8666  ;;  %8824 = vrot.lane.b32.xlu1 %v5987_v46, %s10017_s22  ;;  %v21255_v53 = vld [vmem:[#allocation15_spill] sm:$0xff]  ;;  %v6574_v46 = vrot.slane %v17682_v37, 4 }
 0x8cd   :  { %v6534_v6 = vsel %vm1962_vm0, %v21245_v51, %v21244_v44  ;;  %v9359_v17 = vsel %vm9357_vm4, %v9326_v34, %v21248_v21  ;;  %v9470_v2 = vsel %vm9456_vm7, %v9437_v42, %v21249_v25  ;;  %v17710_v12 = vsel %vm9588_vm11, %v9586_v45, %v8711_v48  ;;  %v21252_v22 = vld [vmem:[#allocation398_spill] sm:$0xff]  ;;  %v21253_v51 = vld [vmem:[#allocation423_spill] sm:$0xff]  ;;  %v21257_v45 = vld [vmem:[#allocation280_spill] sm:$0xff] }
 0x8ce   :  { %21250 = vst [vmem:[#allocation190_spill] sm:$0xff] %v17710_v12  ;;  %v9392_v11 = vsel %vm9390_vm5, %v9359_v17, %v21251_v19  ;;  %v9503_v27 = vsel %vm9489_vm8, %v9470_v2, %v21252_v22  ;;  %v17723_v44 = vperm.slane %v6534_v6, %v10226_v63  ;;  %v21254_v47 = vrot.slane %v21253_v51, 4  ;;  %v21258_v21 = vld [vmem:[#allocation352_spill] sm:$0xff]  ;;  %v21260_v2 = vld [vmem:[#allocation34_spill] sm:$0xff]  ;;  %v21267_v12 = vld [vmem:[#allocation169_spill] sm:$0xff] }
 0x8cf   :  { %v9275_v42 = vsel %vm9258_vm1, %v21256_v56, %v21255_v53  ;;  %v9425_v48 = vsel %vm9423_vm6, %v9392_v11, %v21257_v45  ;;  %v9536_v17 = vsel %vm9522_vm9, %v9503_v27, %v21258_v21  ;;  %v21259_v25 = vld [vmem:[#allocation176_spill] sm:$0xff]  ;;  %v7162_v53 = vrot.slane %v17703_v61, 4  ;;  %v21262_v56 = vld [vmem:[#allocation13_spill] sm:$0xff]  ;;  %v21263_v45 = vld [vmem:[#allocation118_spill] sm:$0xff] }
 0x8d0   :  { %v7122_v34 = vsel %vm1962_vm0, %v21254_v47, %v21253_v51  ;;  %v9308_v6 = vsel %vm9291_vm2, %v9275_v42, %v21259_v25  ;;  %v9458_v19 = vsel %vm9456_vm7, %v9425_v48, %v21260_v2  ;;  %v21261_v22 = vld [vmem:[#allocation400_spill] sm:$0xff]  ;;  %v8677_v47 = vpop.permute.xlu1 %8676  ;;  %8928 = vrot.lane.b32.xlu0 %v17475_v8, %s10018_s23 }
 0x8d1   :  { %v9569_v51 = vsel %vm9555_vm10, %v9536_v17, %v21261_v22  ;;  %v9341_v11 = vsel %vm9324_vm3, %v9308_v6, %v21262_v56  ;;  %v9491_v27 = vsel %vm9489_vm8, %v9458_v19, %v21263_v45  ;;  %v17752_v42 = vperm.slane %v7122_v34, %v10226_v63  ;;  %v21264_v25 = vld [vmem:[#allocation240_spill] sm:$0xff]  ;;  %v21266_v17 = vld [vmem:[#allocation54_spill] sm:$0xff]  ;;  %v21268_v6 = vld [vmem:[#allocation443_spill] sm:$0xff] }
 0x8d2   :  { %v17749_v21 = vsel %vm9588_vm11, %v9569_v51, %v8677_v47  ;;  %v21265_v48 = vld [vmem:[#allocation96_spill] sm:$0xff]  ;;  %v9374_v22 = vsel %vm9357_vm4, %v9341_v11, %v21266_v17  ;;  %v9524_v59 = vsel %vm9522_vm9, %v9491_v27, %v21267_v12  ;;  %v21269_v51 = vld [vmem:[#allocation73_spill] sm:$0xff]  ;;  %v6575_v45 = vsel %vm1962_vm0, %v6574_v46, %v17723_v44  ;;  %v21272_v12 = vld [vmem:[#allocation318_spill] sm:$0xff]  ;;  %8802 = vrot.lane.b32.xlu2 %v17484_v43, %s10017_s22 }
 0x8d3   :  { %v9263_v2 = vsel %vm9258_vm1, %v21265_v48, %v21264_v25  ;;  %v9407_v34 = vsel %vm9390_vm5, %v9374_v22, %v21269_v51  ;;  %v21270_v47 = vld [vmem:[#allocation217_spill] sm:$0xff]  ;;  %v8781_v48 = vpop.permute.xlu0 %8780  ;;  %v21274_v17 = vld [vmem:[#allocation150_spill] sm:$0xff]  ;;  %v21275_v22 = vld [vmem:[#allocation12_spill] sm:$0xff] }
 0x8d4   :  { %v9296_v19 = vsel %vm9291_vm2, %v9263_v2, %v21268_v6  ;;  %v9557_v56 = vsel %vm9555_vm10, %v9524_v59, %v21270_v47  ;;  %v21271_v11 = vld [vmem:[#allocation365_spill] sm:$0xff]  ;;  %v9440_v27 = vsel %vm9423_vm6, %v9407_v34, %v21272_v12  ;;  %v7163_v2 = vsel %vm1962_vm0, %v7162_v53, %v17752_v42  ;;  %v21273_v59 = vld [vmem:[#allocation382_spill] sm:$0xff]  ;;  %8830 = vrot.lane.b32.xlu1 %v6575_v45, %s10017_s22 }
 0x8d5   :  { %v9329_v25 = vsel %vm9324_vm3, %v9296_v19, %v21271_v11  ;;  %v9590_v8 = vsel %vm9588_vm11, %v9557_v56, %v17395_v50  ;;  %v9266_v46 = vsel %vm9258_vm1, %v21274_v17, %v21273_v59  ;;  %v21276_v19 = vld [vmem:[#allocation440_spill] sm:$0xff]  ;;  %v21278_v50 = vld [vmem:[#allocation419_spill] sm:$0xff]  ;;  %v21279_v47 = vld [vmem:[#allocation222_spill] sm:$0xff]  ;;  %v17803_v17 = vpop.permute.xlu2 %8672 }
 0x8d6   :  { %v9362_v6 = vsel %vm9357_vm4, %v9329_v25, %v21275_v22  ;;  %v9473_v51 = vsel %vm9456_vm7, %v9440_v27, %v21276_v19  ;;  %v17789_v34 = vsel %vm9621_vm12, %v9590_v8, %v8781_v48  ;;  %v17794_v43 = vsel %vm9258_vm1, %v21279_v47, %v21278_v50  ;;  %v21280_v56 = vld [vmem:[#allocation174_spill] sm:$0xff]  ;;  %v21281_v11 = vld [vmem:[#allocation56_spill] sm:$0xff]  ;;  %21283 = vst [vmem:[#allocation231_spill] sm:$0xff] %v17803_v17  ;;  %v21286_v22 = vld [vmem:[#allocation457_spill] sm:$0xff] }
 0x8d7   :  { %21277 = vst [vmem:[#allocation202_spill] sm:$0xff] %v17789_v34  ;;  %v9306_v53 = vsel %vm9291_vm2, %v17558_v38, %v21280_v56  ;;  %v9395_v12 = vsel %vm9390_vm5, %v9362_v6, %v21281_v11  ;;  %v21282_v59 = vld [vmem:[#allocation220_spill] sm:$0xff]  ;;  %v21284_v27 = vld [vmem:[#allocation122_spill] sm:$0xff]  ;;  %v21287_v50 = vld [vmem:[#allocation315_spill] sm:$0xff] }
 0x8d8   :  { %v9506_v25 = vsel %vm9489_vm8, %v9473_v51, %v21282_v59  ;;  %v21285_v8 = vld [vmem:[#allocation18_spill] sm:$0xff]  ;;  %v9339_v19 = vsel %vm9324_vm3, %v9306_v53, %v21286_v22  ;;  %v9428_v38 = vsel %vm9423_vm6, %v9395_v12, %v21287_v50  ;;  %v21288_v47 = vld [vmem:[#allocation79_spill] sm:$0xff]  ;;  %v21290_v11 = vld [vmem:[#allocation140_spill] sm:$0xff]  ;;  %8934 = vrot.lane.b32.xlu0 %v17487_v39, %s10018_s23 }
 0x8d9   :  { %v9278_v48 = vsel %vm9258_vm1, %v21285_v8, %v21284_v27  ;;  %v9539_v6 = vsel %vm9522_vm9, %v9506_v25, %v21288_v47  ;;  %v21289_v56 = vld [vmem:[#allocation203_spill] sm:$0xff]  ;;  %v9372_v59 = vsel %vm9357_vm4, %v9339_v19, %v21290_v11  ;;  %v21291_v45 = vld [vmem:[#allocation102_spill] sm:$0xff]  ;;  %v21292_v17 = vld [vmem:[#allocation88_spill] sm:$0xff]  ;;  %v8683_v8 = vpop.permute.xlu1 %8682 }
 0x8da   :  { %v9311_v51 = vsel %vm9291_vm2, %v9278_v48, %v21289_v56  ;;  %v9461_v34 = vsel %vm9456_vm7, %v9428_v38, %v21291_v45  ;;  %v9572_v27 = vsel %vm9555_vm10, %v9539_v6, %v21292_v17  ;;  %v21293_v53 = vld [vmem:[#allocation335_spill] sm:$0xff]  ;;  %v21294_v12 = vld [vmem:[#allocation124_spill] sm:$0xff]  ;;  %v21296_v19 = vld [vmem:[#allocation221_spill] sm:$0xff]  ;;  %8808 = vrot.lane.b32.xlu2 %v17550_v54, %s10017_s22 }
 0x8db   :  { %v9344_v22 = vsel %vm9324_vm3, %v9311_v51, %v21293_v53  ;;  %v9405_v50 = vsel %vm9390_vm5, %v9372_v59, %v21294_v12  ;;  %v21295_v25 = vld [vmem:[#allocation60_spill] sm:$0xff]  ;;  %v17830_v48 = vsel %vm9588_vm11, %v9572_v27, %v8683_v8  ;;  %v21297_v56 = vld [vmem:[#allocation387_spill] sm:$0xff]  ;;  %v21300_v51 = vld [vmem:[#allocation429_spill] sm:$0xff] }
 0x8dc   :  { %v9494_v47 = vsel %vm9489_vm8, %v9461_v34, %v21295_v25  ;;  %v9281_v38 = vsel %vm9258_vm1, %v21297_v56, %v21296_v19  ;;  %v21298_v11 = vld [vmem:[#allocation123_spill] sm:$0xff]  ;;  %v21302_v27 = vld [vmem:[#allocation158_spill] sm:$0xff]  ;;  %v21304_v19 = vld [vmem:[#allocation272_spill] sm:$0xff]  ;;  %8836 = vrot.lane.b32.xlu1 %v7163_v2, %s10017_s22 }
 0x8dd   :  { %v9377_v17 = vsel %vm9357_vm4, %v9344_v22, %v21298_v11  ;;  %v21299_v6 = vld [vmem:[#allocation299_spill] sm:$0xff]  ;;  %v9527_v53 = vsel %vm9522_vm9, %v9494_v47, %v21300_v51  ;;  %v21303_v12 = vld [vmem:[#allocation250_spill] sm:$0xff]  ;;  %v21305_v56 = vld [vmem:[#allocation9_spill] sm:$0xff]  ;;  %v8787_v51 = vpop.permute.xlu0 %8786 }
 0x8de   :  { %v9438_v45 = vsel %vm9423_vm6, %v9405_v50, %v21299_v6  ;;  %v21301_v34 = vld [vmem:[#allocation27_spill] sm:$0xff]  ;;  %v9410_v8 = vsel %vm9390_vm5, %v9377_v17, %v21302_v27  ;;  %v9560_v22 = vsel %vm9555_vm10, %v9527_v53, %v21304_v19  ;;  %v21306_v11 = vld [vmem:[#allocation370_spill] sm:$0xff]  ;;  %v21308_v17 = vld [vmem:[#allocation380_spill] sm:$0xff] }
 0x8df   :  { %v9299_v59 = vsel %vm9291_vm2, %v9266_v46, %v21301_v34  ;;  %v9471_v25 = vsel %vm9456_vm7, %v9438_v45, %v21303_v12  ;;  %v9443_v47 = vsel %vm9423_vm6, %v9410_v8, %v21306_v11  ;;  %v21307_v6 = vld [vmem:[#allocation230_spill] sm:$0xff]  ;;  %v9593_v46 = vsel %vm9588_vm11, %v9560_v22, %v17479_v35  ;;  %v21309_v53 = vld [vmem:[#allocation212_spill] sm:$0xff]  ;;  %v8679_v11 = vpop.permute.xlu2 %8678 }
 0x8e0   :  { %v9332_v50 = vsel %vm9324_vm3, %v9299_v59, %v21305_v56  ;;  %v9504_v39 = vsel %vm9489_vm8, %v9471_v25, %v21307_v6  ;;  %v9476_v34 = vsel %vm9456_vm7, %v9443_v47, %v21309_v53  ;;  %v21310_v59 = vld [vmem:[#allocation342_spill] sm:$0xff]  ;;  %v17868_v8 = vsel %vm9621_vm12, %v9593_v46, %v8787_v51  ;;  %v21311_v12 = vld [vmem:[#allocation408_spill] sm:$0xff]  ;;  %v21312_v25 = vld [vmem:[#allocation127_spill] sm:$0xff]  ;;  %8940 = vrot.lane.b32.xlu0 %v17583_v1, %s10018_s23 }
 0x8e1   :  { %v9365_v45 = vsel %vm9357_vm4, %v9332_v50, %v21308_v17  ;;  %v9537_v27 = vsel %vm9522_vm9, %v9504_v39, %v21310_v59  ;;  %v9309_v35 = vsel %vm9291_vm2, %v17606_v0, %v21311_v12  ;;  %v21313_v54 = vld [vmem:[#allocation432_spill] sm:$0xff]  ;;  %v21315_v47 = vld [vmem:[#allocation63_spill] sm:$0xff]  ;;  %v21316_v39 = vld [vmem:[#allocation366_spill] sm:$0xff] }
 0x8e2   :  { %v9398_v19 = vsel %vm9390_vm5, %v9365_v45, %v21312_v25  ;;  %v9509_v22 = vsel %vm9489_vm8, %v9476_v34, %v21313_v54  ;;  %v21314_v56 = vld [vmem:[#allocation216_spill] sm:$0xff]  ;;  %v9342_v6 = vsel %vm9324_vm3, %v9309_v35, %v21315_v47  ;;  %v21318_v45 = vld [vmem:[#allocation39_spill] sm:$0xff]  ;;  %v21321_v12 = vld [vmem:[#allocation26_spill] sm:$0xff]  ;;  %v8689_v25 = vpop.permute.xlu1 %8688  ;;  %8814 = vrot.lane.b32.xlu2 %v17622_v20, %s10017_s22 }
 0x8e3   :  { %v9570_v50 = vsel %vm9555_vm10, %v9537_v27, %v21314_v56  ;;  %v9431_v46 = vsel %vm9423_vm6, %v9398_v19, %v21316_v39  ;;  %v21317_v51 = vld [vmem:[#allocation476_spill] sm:$0xff]  ;;  %v9314_v53 = vsel %vm9291_vm2, %v9281_v38, %v21318_v45  ;;  %v21320_v27 = vld [vmem:[#allocation374_spill] sm:$0xff]  ;;  %v21336_v1 = vld [vmem:[#allocation93_spill] sm:$0xff] }
 0x8e4   :  { %v9542_v0 = vsel %vm9522_vm9, %v9509_v22, %v21317_v51  ;;  %v17887_v17 = vsel %vm9588_vm11, %v9570_v50, %v8679_v11  ;;  %v21319_v34 = vld [vmem:[#allocation8_spill] sm:$0xff]  ;;  %v9464_v2 = vsel %vm9456_vm7, %v9431_v46, %v21320_v27  ;;  %v21324_v50 = vld [vmem:[#allocation106_spill] sm:$0xff]  ;;  %v21342_v20 = vld [vmem:[#allocation273_spill] sm:$0xff]  ;;  %8906 = vrot.lane.b32.xlu1 %v17301_v3, %s10018_s23 }
 0x8e5   :  { %v9375_v59 = vsel %vm9357_vm4, %v9342_v6, %v21319_v34  ;;  %v9575_v35 = vsel %vm9555_vm10, %v9542_v0, %v21321_v12  ;;  %v21322_v19 = vld [vmem:[#allocation20_spill] sm:$0xff]  ;;  %v9497_v11 = vsel %vm9489_vm8, %v9464_v2, %v21324_v50  ;;  %v21326_v6 = vld [vmem:[#allocation445_spill] sm:$0xff]  ;;  %v21327_v46 = vld [vmem:[#allocation226_spill] sm:$0xff] }
 0x8e6   :  { %v9347_v54 = vsel %vm9324_vm3, %v9314_v53, %v21322_v19  ;;  %v21323_v22 = vld [vmem:[#allocation184_spill] sm:$0xff]  ;;  %v17904_v38 = vsel %vm9588_vm11, %v9575_v35, %v8689_v25  ;;  %v21328_v0 = vld [vmem:[#allocation139_spill] sm:$0xff]  ;;  %v21331_v2 = vld [vmem:[#allocation206_spill] sm:$0xff] }
 0x8e7   :  { %v9408_v56 = vsel %vm9390_vm5, %v9375_v59, %v21323_v22  ;;  %v21325_v47 = vld [vmem:[#allocation308_spill] sm:$0xff]  ;;  %v9380_v51 = vsel %vm9357_vm4, %v9347_v54, %v21327_v46  ;;  %v21329_v53 = vld [vmem:[#allocation283_spill] sm:$0xff]  ;;  %v21332_v35 = vld [vmem:[#allocation262_spill] sm:$0xff] }
 0x8e8   :  { %v9284_v39 = vsel %vm9258_vm1, %v21326_v6, %v21325_v47  ;;  %v9441_v45 = vsel %vm9423_vm6, %v9408_v56, %v21328_v0  ;;  %v9530_v34 = vsel %vm9522_vm9, %v9497_v11, %v21329_v53  ;;  %v21330_v59 = vld [vmem:[#allocation48_spill] sm:$0xff]  ;;  %v9413_v12 = vsel %vm9390_vm5, %v9380_v51, %v21331_v2  ;;  %v21335_v50 = vld [vmem:[#allocation407_spill] sm:$0xff]  ;;  %v8793_v6 = vpop.permute.xlu0 %8792  ;;  %v21339_v53 = vld [vmem:[#allocation378_spill] sm:$0xff]  ;;  %8946 = vrot.lane.b32.xlu0 %v17635_v31, %s10018_s23 }
 0x8e9   :  { %v9302_v27 = vsel %vm9291_vm2, %v17794_v43, %v21330_v59  ;;  %v9474_v25 = vsel %vm9456_vm7, %v9441_v45, %v21332_v35  ;;  %v21333_v19 = vld [vmem:[#allocation304_spill] sm:$0xff]  ;;  %v9446_v11 = vsel %vm9423_vm6, %v9413_v12, %v21335_v50  ;;  %v21337_v46 = vld [vmem:[#allocation83_spill] sm:$0xff]  ;;  %v21341_v2 = vld [vmem:[#allocation177_spill] sm:$0xff] }
 0x8ea   :  { %v9563_v54 = vsel %vm9555_vm10, %v9530_v34, %v21333_v19  ;;  %v21334_v22 = vld [vmem:[#allocation244_spill] sm:$0xff]  ;;  %v9507_v47 = vsel %vm9489_vm8, %v9474_v25, %v21336_v1  ;;  %v21343_v25 = vld [vmem:[#allocation129_spill] sm:$0xff]  ;;  %v21345_v50 = vld [vmem:[#allocation403_spill] sm:$0xff]  ;;  %8820 = vrot.lane.b32.xlu2 %v17639_v55, %s10017_s22 }
 0x8eb   :  { %v9335_v56 = vsel %vm9324_vm3, %v9302_v27, %v21334_v22  ;;  %v9596_v43 = vsel %vm9588_vm11, %v9563_v54, %v17568_v58  ;;  %v21338_v0 = vld [vmem:[#allocation268_spill] sm:$0xff]  ;;  %v9540_v34 = vsel %vm9522_vm9, %v9507_v47, %v21339_v53  ;;  %v21340_v27 = vld [vmem:[#allocation274_spill] sm:$0xff]  ;;  %v8685_v54 = vpop.permute.xlu2 %8684  ;;  %v21344_v22 = vld [vmem:[#allocation57_spill] sm:$0xff]  ;;  %v8695_v53 = vpop.permute.xlu1 %8694 }
 0x8ec   :  { %v9368_v51 = vsel %vm9357_vm4, %v9335_v56, %v21337_v46  ;;  %v9479_v45 = vsel %vm9456_vm7, %v9446_v11, %v21338_v0  ;;  %v17943_v59 = vsel %vm9621_vm12, %v9596_v43, %v8793_v6  ;;  %v9312_v58 = vsel %vm9291_vm2, %v17627_v26, %v21340_v27  ;;  %v21346_v26 = vld [vmem:[#allocation109_spill] sm:$0xff]  ;;  %v21348_v46 = vld [vmem:[#allocation199_spill] sm:$0xff]  ;;  %8912 = vrot.lane.b32.xlu1 %v17180_v16, %s10018_s23 }
 0x8ed   :  { %v9401_v12 = vsel %vm9390_vm5, %v9368_v51, %v21341_v2  ;;  %v9512_v35 = vsel %vm9489_vm8, %v9479_v45, %v21342_v20  ;;  %v9573_v19 = vsel %vm9555_vm10, %v9540_v34, %v21343_v25  ;;  %v9345_v56 = vsel %vm9324_vm3, %v9312_v58, %v21344_v22  ;;  %v21347_v43 = vld [vmem:[#allocation105_spill] sm:$0xff]  ;;  %v21349_v0 = vld [vmem:[#allocation431_spill] sm:$0xff]  ;;  %v21350_v34 = vld [vmem:[#allocation402_spill] sm:$0xff] }
 0x8ee   :  { %v9434_v11 = vsel %vm9423_vm6, %v9401_v12, %v21345_v50  ;;  %v9545_v1 = vsel %vm9522_vm9, %v9512_v35, %v21346_v26  ;;  %v17963_v47 = vsel %vm9588_vm11, %v9573_v19, %v8685_v54  ;;  %v9317_v6 = vsel %vm9291_vm2, %v9284_v39, %v21347_v43  ;;  %v21351_v58 = vld [vmem:[#allocation243_spill] sm:$0xff]  ;;  %v21354_v19 = vld [vmem:[#allocation138_spill] sm:$0xff]  ;;  %v21359_v43 = vld [vmem:[#allocation289_spill] sm:$0xff] }
 0x8ef   :  { %v9378_v51 = vsel %vm9357_vm4, %v9345_v56, %v21348_v46  ;;  %v9467_v3 = vsel %vm9456_vm7, %v9434_v11, %v21349_v0  ;;  %v9578_v45 = vsel %vm9555_vm10, %v9545_v1, %v17215_v28  ;;  %v9350_v27 = vsel %vm9324_vm3, %v9317_v6, %v21350_v34  ;;  %v21352_v12 = vld [vmem:[#allocation131_spill] sm:$0xff]  ;;  %v21355_v28 = vld [vmem:[#allocation324_spill] sm:$0xff]  ;;  %v21356_v56 = vld [vmem:[#allocation450_spill] sm:$0xff] }
 0x8f0   :  { %v9411_v2 = vsel %vm9390_vm5, %v9378_v51, %v21351_v58  ;;  %v9500_v20 = vsel %vm9489_vm8, %v9467_v3, %v21352_v12  ;;  %v17980_v39 = vsel %vm9588_vm11, %v9578_v45, %v8695_v53  ;;  %v21353_v35 = vld [vmem:[#allocation259_spill] sm:$0xff]  ;;  %v21357_v50 = vrot.slane %v21356_v56, 4  ;;  %v21360_v46 = vld [vmem:[#allocation134_spill] sm:$0xff]  ;;  %v21361_v3 = vld [vmem:[#allocation108_spill] sm:$0xff]  ;;  %v8799_v12 = vpop.permute.xlu0 %8798  ;;  %8952 = vrot.lane.b32.xlu0 %v17670_v24, %s10018_s23 }
 0x8f1   :  { %v9383_v25 = vsel %vm9357_vm4, %v9350_v27, %v21353_v35  ;;  %v9444_v54 = vsel %vm9423_vm6, %v9411_v2, %v21354_v19  ;;  %v9533_v22 = vsel %vm9522_vm9, %v9500_v20, %v21355_v28  ;;  %v21358_v26 = vld [vmem:[#allocation247_spill] sm:$0xff]  ;;  %v6406_v0 = vrot.slane %v17713_v30, 4  ;;  %v21362_v45 = vld [vmem:[#allocation404_spill] sm:$0xff]  ;;  %v21363_v53 = vld [vmem:[#allocation454_spill] sm:$0xff] }
 0x8f2   :  { %v6366_v11 = vsel %vm1962_vm0, %v21357_v50, %v21356_v56  ;;  %v9416_v1 = vsel %vm9390_vm5, %v9383_v25, %v21358_v26  ;;  %v9477_v6 = vsel %vm9456_vm7, %v9444_v54, %v21359_v43  ;;  %v9566_v51 = vsel %vm9555_vm10, %v9533_v22, %v21360_v46  ;;  %v21364_v27 = vld [vmem:[#allocation473_spill] sm:$0xff]  ;;  %v21365_v20 = vld [vmem:[#allocation478_spill] sm:$0xff]  ;;  %v21367_v28 = vld [vmem:[#allocation23_spill] sm:$0xff] }
 0x8f3   :  { %v9282_v31 = vsel %vm9258_vm1, %v21362_v45, %v21361_v3  ;;  %v9449_v34 = vsel %vm9423_vm6, %v9416_v1, %v21363_v53  ;;  %v9510_v58 = vsel %vm9489_vm8, %v9477_v6, %v21364_v27  ;;  %v9599_v2 = vsel %vm9588_vm11, %v9566_v51, %v17658_v41  ;;  %v21366_v25 = vld [vmem:[#allocation417_spill] sm:$0xff]  ;;  %v21371_v1 = vld [vmem:[#allocation86_spill] sm:$0xff]  ;;  %v8691_v6 = vpop.permute.xlu2 %8690 }
 0x8f4   :  { %v9482_v35 = vsel %vm9456_vm7, %v9449_v34, %v21365_v20  ;;  %v9543_v19 = vsel %vm9522_vm9, %v9510_v58, %v21366_v25  ;;  %v18017_v54 = vsel %vm9621_vm12, %v9599_v2, %v8799_v12  ;;  %v21368_v22 = vrot.slane %v21367_v28, 4  ;;  %v21369_v50 = vld [vmem:[#allocation297_spill] sm:$0xff]  ;;  %v21372_v51 = vld [vmem:[#allocation50_spill] sm:$0xff]  ;;  %v21377_v20 = vld [vmem:[#allocation451_spill] sm:$0xff] }
 0x8f5   :  { %v9315_v41 = vsel %vm9291_vm2, %v9282_v31, %v21369_v50  ;;  %v21370_v26 = vld [vmem:[#allocation321_spill] sm:$0xff]  ;;  %v9576_v43 = vsel %vm9555_vm10, %v9543_v19, %v21371_v1  ;;  %v6576_v46 = vrot.slane %v17723_v44, 4  ;;  %v21374_v53 = vld [vmem:[#allocation326_spill] sm:$0xff] }
 0x8f6   :  { %v6640_v56 = vsel %vm1962_vm0, %v21368_v22, %v21367_v28  ;;  %v9515_v55 = vsel %vm9489_vm8, %v9482_v35, %v21370_v26  ;;  %v21373_v3 = vld [vmem:[#allocation477_spill] sm:$0xff]  ;;  %v9348_v34 = vsel %vm9324_vm3, %v9315_v41, %v21374_v53  ;;  %v21375_v31 = vld [vmem:[#allocation142_spill] sm:$0xff]  ;;  %v18040_v58 = vsel %vm9588_vm11, %v9576_v43, %v8691_v6  ;;  %v8701_v35 = vpop.permute.xlu1 %8700  ;;  %v21379_v22 = vld [vmem:[#allocation279_spill] sm:$0xff] }
 0x8f7   :  { %v9287_v45 = vsel %vm9258_vm1, %v21373_v3, %v21372_v51  ;;  %v9548_v27 = vsel %vm9522_vm9, %v9515_v55, %v21375_v31  ;;  %v21376_v2 = vld [vmem:[#allocation314_spill] sm:$0xff]  ;;  %v9381_v16 = vsel %vm9357_vm4, %v9348_v34, %v21377_v20  ;;  %v18049_v25 = vperm.slane %v6640_v56, %v10226_v63  ;;  %v21383_v3 = vld [vmem:[#allocation300_spill] sm:$0xff]  ;;  %v21385_v24 = vld [vmem:[#allocation17_spill] sm:$0xff] }
 0x8f8   :  { %v9320_v12 = vsel %vm9291_vm2, %v9287_v45, %v21376_v2  ;;  %v9581_v44 = vsel %vm9555_vm10, %v9548_v27, %v17281_v52  ;;  %v21378_v19 = vld [vmem:[#allocation198_spill] sm:$0xff]  ;;  %v9414_v50 = vsel %vm9390_vm5, %v9381_v16, %v21379_v22  ;;  %v18059_v26 = vperm.slane %v6366_v11, %v10226_v63  ;;  %v21381_v52 = vld [vmem:[#allocation213_spill] sm:$0xff]  ;;  %v21386_v27 = vld [vmem:[#allocation356_spill] sm:$0xff]  ;;  %v8805_v2 = vpop.permute.xlu0 %8804 }
 0x8f9   :  { %v9353_v28 = vsel %vm9324_vm3, %v9320_v12, %v21378_v19  ;;  %v18056_v41 = vsel %vm9588_vm11, %v9581_v44, %v8701_v35  ;;  %v21380_v55 = vld [vmem:[#allocation310_spill] sm:$0xff]  ;;  %v9447_v43 = vsel %vm9423_vm6, %v9414_v50, %v21381_v52  ;;  %v21382_v56 = vrot.slane %v17195_v32, 4  ;;  %v21384_v45 = vld [vmem:[#allocation341_spill] sm:$0xff]  ;;  %v21392_v19 = vld [vmem:[#allocation152_spill] sm:$0xff] }
 0x8fa   :  { %v9386_v1 = vsel %vm9357_vm4, %v9353_v28, %v21380_v55  ;;  %v3804_v51 = vrot.slane %v17383_v62, 4  ;;  %v9480_v53 = vsel %vm9456_vm7, %v9447_v43, %v21384_v45  ;;  %v6407_v34 = vsel %vm1962_vm0, %v6406_v0, %v18059_v26  ;;  %v21387_v62 = vld [vmem:[#allocation69_spill] sm:$0xff]  ;;  %v21389_v0 = vld [vmem:[#allocation136_spill] sm:$0xff]  ;;  %v21390_v44 = vld [vmem:[#allocation38_spill] sm:$0xff] }
 0x8fb   :  { %v3217_v6 = vsel %vm1962_vm0, %v17250_v60, %v21382_v56  ;;  %v9419_v11 = vsel %vm9390_vm5, %v9386_v1, %v21383_v3  ;;  %v6577_v31 = vsel %vm1962_vm0, %v17682_v37, %v6576_v46  ;;  %v9513_v60 = vsel %vm9489_vm8, %v9480_v53, %v21386_v27  ;;  %8826 = vrot.lane.b32.xlu2 %v6407_v34, %s10017_s22  ;;  %v21391_v46 = vld [vmem:[#allocation255_spill] sm:$0xff]  ;;  %v21393_v50 = vld [vmem:[#allocation144_spill] sm:$0xff]  ;;  %v21395_v52 = vld [vmem:[#allocation309_spill] sm:$0xff]  ;;  %v8697_v53 = vpop.permute.xlu2 %8696 }
 0x8fc   :  { %v9452_v32 = vsel %vm9423_vm6, %v9419_v11, %v21385_v24  ;;  %v21388_v12 = vrot.slane %v21387_v62, 4  ;;  %v6658_v16 = vrot.slane %v18049_v25, 4  ;;  %v9285_v37 = vsel %vm9258_vm1, %v21390_v44, %v21389_v0  ;;  %v21396_v56 = vld [vmem:[#allocation413_spill] sm:$0xff]  ;;  %8918 = vrot.lane.b32.xlu1 %v3217_v6, %s10018_s23  ;;  %v21398_v34 = vld [vmem:[#allocation119_spill] sm:$0xff]  ;;  %8958 = vrot.lane.b32.xlu0 %v6577_v31, %s10018_s23 }
 0x8fd   :  { %v9485_v35 = vsel %vm9456_vm7, %v9452_v32, %v21391_v46  ;;  %v9546_v28 = vsel %vm9522_vm9, %v9513_v60, %v21392_v19  ;;  %v18099_v22 = vsel %vm9621_vm12, %v17749_v21, %v8805_v2  ;;  %v21394_v55 = vrot.slane %v21393_v50, 4  ;;  %v21397_v11 = vld [vmem:[#allocation377_spill] sm:$0xff]  ;;  %v21400_v32 = vld [vmem:[#allocation16_spill] sm:$0xff] }
 0x8fe   :  { %v6618_v20 = vsel %vm1962_vm0, %v21388_v12, %v21387_v62  ;;  %v9318_v43 = vsel %vm9291_vm2, %v9285_v37, %v21395_v52  ;;  %v9518_v3 = vsel %vm9489_vm8, %v9485_v35, %v21396_v56  ;;  %v9579_v45 = vsel %vm9555_vm10, %v9546_v28, %v21397_v11  ;;  %v21399_v21 = vld [vmem:[#allocation241_spill] sm:$0xff]  ;;  %v8707_v46 = vpop.permute.xlu1 %8706  ;;  %v21404_v19 = vld [vmem:[#allocation452_spill] sm:$0xff] }
 0x8ff   :  { %v7228_v1 = vsel %vm1962_vm0, %v21394_v55, %v21393_v50  ;;  %v9290_v24 = vsel %vm9258_vm1, %v21399_v21, %v21398_v34  ;;  %v9351_v27 = vsel %vm9324_vm3, %v9318_v43, %v21400_v32  ;;  %v21401_v60 = vld [vmem:[#allocation233_spill] sm:$0xff]  ;;  %v18120_v62 = vsel %vm9588_vm11, %v9579_v45, %v8697_v53  ;;  %v21405_v50 = vld [vmem:[#allocation331_spill] sm:$0xff]  ;;  %v21406_v43 = vld [vmem:[#allocation332_spill] sm:$0xff] }
 0x900   :  { %v9551_v2 = vsel %vm9522_vm9, %v9518_v3, %v21401_v60  ;;  %v21402_v12 = vld [vmem:[#allocation65_spill] sm:$0xff]  ;;  %v18129_v35 = vperm.slane %v6618_v20, %v10226_v63  ;;  %v21407_v56 = vrot.slane %v21406_v43, 4  ;;  %v21410_v20 = vld [vmem:[#allocation364_spill] sm:$0xff] }
 0x901   :  { %v9323_v0 = vsel %vm9291_vm2, %v9290_v24, %v21402_v12  ;;  %v21403_v44 = vld [vmem:[#allocation305_spill] sm:$0xff]  ;;  %v9584_v6 = vsel %vm9555_vm10, %v9551_v2, %v17371_v33  ;;  %v21411_v34 = vld [vmem:[#allocation224_spill] sm:$0xff]  ;;  %v18151_v24 = vperm.slane %v7228_v1, %v10226_v63  ;;  %v8811_v1 = vpop.permute.xlu0 %8810 }
 0x902   :  { %v9384_v37 = vsel %vm9357_vm4, %v9351_v27, %v21403_v44  ;;  %v9356_v28 = vsel %vm9324_vm3, %v9323_v0, %v21404_v19  ;;  %v18136_v52 = vsel %vm9588_vm11, %v9584_v6, %v8707_v46  ;;  %v7206_v3 = vsel %vm1962_vm0, %v21407_v56, %v21406_v43  ;;  %v21408_v11 = vld [vmem:[#allocation21_spill] sm:$0xff]  ;;  %v21413_v60 = vld [vmem:[#allocation348_spill] sm:$0xff] }
 0x903   :  { %v9417_v55 = vsel %vm9390_vm5, %v9384_v37, %v21405_v50  ;;  %v21409_v33 = vld [vmem:[#allocation45_spill] sm:$0xff]  ;;  %v9389_v53 = vsel %vm9357_vm4, %v9356_v28, %v21410_v20  ;;  %v6659_v12 = vsel %vm1962_vm0, %v6658_v16, %v18129_v35  ;;  %v3805_v0 = vsel %vm1962_vm0, %v17346_v29, %v3804_v51  ;;  %v21414_v44 = vld [vmem:[#allocation52_spill] sm:$0xff]  ;;  %v21416_v28 = vld [vmem:[#allocation151_spill] sm:$0xff] }
 0x904   :  { %v9261_v45 = vsel %vm9258_vm1, %v21409_v33, %v21408_v11  ;;  %v9450_v21 = vsel %vm9423_vm6, %v9417_v55, %v21411_v34  ;;  %v21412_v32 = vld [vmem:[#allocation29_spill] sm:$0xff]  ;;  %8832 = vrot.lane.b32.xlu2 %v6659_v12, %s10017_s22  ;;  %v7164_v46 = vrot.slane %v17752_v42, 4  ;;  %v18168_v19 = vperm.slane %v7206_v3, %v10226_v63  ;;  %v21417_v50 = vld [vmem:[#allocation71_spill] sm:$0xff]  ;;  %v21418_v55 = vld [vmem:[#allocation296_spill] sm:$0xff]  ;;  %v8703_v34 = vpop.permute.xlu2 %8702  ;;  %8924 = vrot.lane.b32.xlu1 %v3805_v0, %s10018_s23 }
 0x905   :  { %v9422_v27 = vsel %vm9390_vm5, %v9389_v53, %v21412_v32  ;;  %v9483_v2 = vsel %vm9456_vm7, %v9450_v21, %v21413_v60  ;;  %v21415_v6 = vld [vmem:[#allocation441_spill] sm:$0xff]  ;;  %v9288_v16 = vsel %vm9258_vm1, %v21417_v50, %v21416_v28  ;;  %v21419_v51 = vld [vmem:[#allocation470_spill] sm:$0xff]  ;;  %v18179_v56 = vsel %vm9621_vm12, %v17830_v48, %v8811_v1  ;;  %v21421_v33 = vld [vmem:[#allocation448_spill] sm:$0xff] }
 0x906   :  { %v9455_v37 = vsel %vm9423_vm6, %v9422_v27, %v21414_v44  ;;  %v9516_v31 = vsel %vm9489_vm8, %v9483_v2, %v21415_v6  ;;  %v21420_v11 = vld [vmem:[#allocation362_spill] sm:$0xff]  ;;  %v21422_v20 = vld [vmem:[#allocation253_spill] sm:$0xff]  ;;  %v7246_v21 = vrot.slane %v18151_v24, 4  ;;  %v21423_v32 = vld [vmem:[#allocation236_spill] sm:$0xff]  ;;  %v8713_v28 = vpop.permute.xlu1 %8712 }
 0x907   :  { %v9488_v29 = vsel %vm9456_vm7, %v9455_v37, %v21418_v55  ;;  %v9549_v43 = vsel %vm9522_vm9, %v9516_v31, %v21419_v51  ;;  %v9321_v42 = vsel %vm9291_vm2, %v9288_v16, %v21420_v11  ;;  %v9294_v27 = vsel %vm9291_vm2, %v9261_v45, %v21423_v32  ;;  %v21424_v60 = vld [vmem:[#allocation147_spill] sm:$0xff]  ;;  %v21425_v2 = vld [vmem:[#allocation292_spill] sm:$0xff]  ;;  %v21427_v31 = vld [vmem:[#allocation345_spill] sm:$0xff] }
 0x908   :  { %v9521_v3 = vsel %vm9489_vm8, %v9488_v29, %v21421_v33  ;;  %v9582_v53 = vsel %vm9555_vm10, %v9549_v43, %v21422_v20  ;;  %v9354_v48 = vsel %vm9324_vm3, %v9321_v42, %v21424_v60  ;;  %v21426_v37 = vld [vmem:[#allocation68_spill] sm:$0xff]  ;;  %v18206_v45 = vperm.slane %v17168_v15, %v10226_v63  ;;  %v21428_v50 = vld [vmem:[#allocation235_spill] sm:$0xff]  ;;  %v21429_v55 = vld [vmem:[#allocation393_spill] sm:$0xff] }
 0x909   :  { %v9554_v12 = vsel %vm9522_vm9, %v9521_v3, %v21425_v2  ;;  %v18196_v44 = vsel %vm9588_vm11, %v9582_v53, %v8703_v34  ;;  %v9327_v6 = vsel %vm9324_vm3, %v9294_v27, %v21426_v37  ;;  %v9387_v0 = vsel %vm9357_vm4, %v9354_v48, %v21427_v31  ;;  %v21430_v11 = vld [vmem:[#allocation406_spill] sm:$0xff]  ;;  %v21431_v42 = vld [vmem:[#allocation249_spill] sm:$0xff]  ;;  %v21433_v53 = vld [vmem:[#allocation76_spill] sm:$0xff] }
 0x90a   :  { %v9587_v1 = vsel %vm9555_vm10, %v9554_v12, %v17456_v13  ;;  %v9360_v16 = vsel %vm9357_vm4, %v9327_v6, %v21428_v50  ;;  %v9420_v29 = vsel %vm9390_vm5, %v9387_v0, %v21429_v55  ;;  %v7165_v43 = vsel %vm1962_vm0, %v17703_v61, %v7164_v46  ;;  %v21432_v3 = vld [vmem:[#allocation82_spill] sm:$0xff]  ;;  %v21434_v32 = vld [vmem:[#allocation125_spill] sm:$0xff]  ;;  %v21435_v27 = vld [vmem:[#allocation163_spill] sm:$0xff]  ;;  %v8817_v0 = vpop.permute.xlu0 %8816 }
 0x90b   :  { %v18213_v51 = vsel %vm9588_vm11, %v9587_v1, %v8713_v28  ;;  %v9393_v13 = vsel %vm9390_vm5, %v9360_v16, %v21430_v11  ;;  %v9453_v33 = vsel %vm9423_vm6, %v9420_v29, %v21431_v42  ;;  %8964 = vrot.lane.b32.xlu0 %v7165_v43, %s10018_s23  ;;  %v4392_v15 = vrot.slane %v17430_v49, 4  ;;  %v21436_v48 = vld [vmem:[#allocation200_spill] sm:$0xff]  ;;  %v21438_v12 = vld [vmem:[#allocation81_spill] sm:$0xff]  ;;  %v21441_v50 = vld [vmem:[#allocation302_spill] sm:$0xff] }
 0x90c   :  { %v18225_v20 = vperm.slane %v21432_v3, %v10226_v63  ;;  %v9426_v34 = vsel %vm9423_vm6, %v9393_v13, %v21433_v53  ;;  %v9486_v61 = vsel %vm9456_vm7, %v9453_v33, %v21434_v32  ;;  %v7247_v46 = vsel %vm1962_vm0, %v7246_v21, %v18168_v19  ;;  %v21437_v2 = vld [vmem:[#allocation28_spill] sm:$0xff]  ;;  %v21442_v55 = vld [vmem:[#allocation254_spill] sm:$0xff]  ;;  %v21444_v13 = vld [vmem:[#allocation121_spill] sm:$0xff]  ;;  %v8709_v32 = vpop.permute.xlu2 %8708 }
 0x90d   :  { %v18235_v60 = vperm.slane %v21435_v27, %v10226_v63  ;;  %v9259_v49 = vsel %vm9258_vm1, %v21437_v2, %v21436_v48  ;;  %v9459_v37 = vsel %vm9456_vm7, %v9426_v34, %v21438_v12  ;;  %v21439_v6 = vld [vmem:[#allocation128_spill] sm:$0xff]  ;;  %8838 = vrot.lane.b32.xlu2 %v7247_v46, %s10017_s22  ;;  %v4393_v21 = vsel %vm1962_vm0, %v17403_v14, %v4392_v15  ;;  %v21445_v33 = vld [vmem:[#allocation141_spill] sm:$0xff]  ;;  %v21446_v15 = vld [vmem:[#allocation62_spill] sm:$0xff] }
 0x90e   :  { %v9519_v31 = vsel %vm9489_vm8, %v9486_v61, %v21439_v6  ;;  %v21440_v1 = vld [vmem:[#allocation44_spill] sm:$0xff]  ;;  %v9492_v16 = vsel %vm9489_vm8, %v9459_v37, %v21441_v50  ;;  %v18255_v43 = vsel %vm9621_vm12, %v17904_v38, %v8817_v0  ;;  %v21447_v53 = vld [vmem:[#allocation293_spill] sm:$0xff]  ;;  %8930 = vrot.lane.b32.xlu1 %v4393_v21, %s10018_s23  ;;  %v21448_v61 = vld [vmem:[#allocation10_spill] sm:$0xff]  ;;  %v8783_v21 = vpop.permute.xlu1 %8782 }
 0x90f   :  { %v9292_v28 = vsel %vm9291_vm2, %v9259_v49, %v21440_v1  ;;  %v9552_v29 = vsel %vm9522_vm9, %v9519_v31, %v21442_v55  ;;  %v21443_v11 = vld [vmem:[#allocation72_spill] sm:$0xff]  ;;  %v9525_v3 = vsel %vm9522_vm9, %v9492_v16, %v21446_v15  ;;  %v21449_v46 = vld [vmem:[#allocation33_spill] sm:$0xff]  ;;  %v21452_v6 = vld [vmem:[#allocation35_spill] sm:$0xff]  ;;  %v4644_v1 = vrot.slane %v17496_v23, 4 }
 0x910   :  { %v9264_v42 = vsel %vm9258_vm1, %v21444_v13, %v21443_v11  ;;  %v9325_v14 = vsel %vm9324_vm3, %v9292_v28, %v21445_v33  ;;  %v9585_v34 = vsel %vm9555_vm10, %v9552_v29, %v21447_v53  ;;  %v21450_v48 = vld [vmem:[#allocation112_spill] sm:$0xff]  ;;  %v21451_v12 = vld [vmem:[#allocation385_spill] sm:$0xff]  ;;  %v21453_v28 = vld [vmem:[#allocation22_spill] sm:$0xff] }
 0x911   :  { %v9297_v38 = vsel %vm9291_vm2, %v9264_v42, %v21448_v61  ;;  %v9358_v27 = vsel %vm9357_vm4, %v9325_v14, %v21449_v46  ;;  %v9558_v2 = vsel %vm9555_vm10, %v9525_v3, %v21450_v48  ;;  %v18274_v49 = vsel %vm9588_vm11, %v9585_v34, %v8709_v32  ;;  %v21454_v16 = vld [vmem:[#allocation427_spill] sm:$0xff]  ;;  %v21457_v33 = vld [vmem:[#allocation453_spill] sm:$0xff]  ;;  %v21459_v15 = vld [vmem:[#allocation344_spill] sm:$0xff] }
 0x912   :  { %v9330_v37 = vsel %vm9324_vm3, %v9297_v38, %v21451_v12  ;;  %v9391_v31 = vsel %vm9390_vm5, %v9358_v27, %v21452_v6  ;;  %v9591_v0 = vsel %vm9588_vm11, %v9558_v2, %v17544_v36  ;;  %v21455_v11 = vld [vmem:[#allocation167_spill] sm:$0xff]  ;;  %v21460_v3 = vrot.slane %v21459_v15, 4  ;;  %v21462_v61 = vld [vmem:[#allocation157_spill] sm:$0xff]  ;;  %v21463_v46 = vld [vmem:[#allocation394_spill] sm:$0xff] }
 0x913   :  { %v9363_v50 = vsel %vm9357_vm4, %v9330_v37, %v21453_v28  ;;  %v9424_v55 = vsel %vm9423_vm6, %v9391_v31, %v21454_v16  ;;  %v18288_v29 = vsel %vm9621_vm12, %v9591_v0, %v8783_v21  ;;  %v21456_v13 = vrot.slane %v21455_v11, 4  ;;  %v21458_v14 = vld [vmem:[#allocation459_spill] sm:$0xff]  ;;  %v21467_v31 = vld [vmem:[#allocation74_spill] sm:$0xff] }
 0x914   :  { %v9396_v36 = vsel %vm9390_vm5, %v9363_v50, %v21457_v33  ;;  %v9457_v23 = vsel %vm9456_vm7, %v9424_v55, %v21458_v14  ;;  %v21461_v53 = vld [vmem:[#allocation291_spill] sm:$0xff]  ;;  %v2630_v32 = vrot.slane %v18225_v20, 4  ;;  %v21468_v21 = vld [vmem:[#allocation334_spill] sm:$0xff]  ;;  %v21469_v50 = vld [vmem:[#allocation85_spill] sm:$0xff]  ;;  %v8823_v55 = vpop.permute.xlu0 %8822 }
 0x915   :  { %v2379_v42 = vsel %vm1962_vm0, %v21456_v13, %v18235_v60  ;;  %v2461_v34 = vsel %vm1962_vm0, %v21461_v53, %v21460_v3  ;;  %v9429_v38 = vsel %vm9423_vm6, %v9396_v36, %v21462_v61  ;;  %v9490_v27 = vsel %vm9489_vm8, %v9457_v23, %v21463_v46  ;;  %v21464_v48 = vld [vmem:[#allocation215_spill] sm:$0xff]  ;;  %v21471_v36 = vld [vmem:[#allocation353_spill] sm:$0xff]  ;;  %v21472_v23 = vld [vmem:[#allocation132_spill] sm:$0xff] }
 0x916   :  { %9034 = vrot.lane.b32.xlu0 %v2379_v42, %s10019_s24  ;;  %v3048_v2 = vrot.slane %v21464_v48, 4  ;;  %v21465_v12 = vld [vmem:[#allocation171_spill] sm:$0xff]  ;;  %v9462_v28 = vsel %vm9456_vm7, %v9429_v38, %v21468_v21  ;;  %v9523_v16 = vsel %vm9522_vm9, %v9490_v27, %v21469_v50  ;;  %8908 = vrot.lane.b32.xlu2 %v2461_v34, %s10018_s23  ;;  %v4645_v13 = vsel %vm1962_vm0, %v17449_v10, %v4644_v1  ;;  %v21473_v53 = vld [vmem:[#allocation146_spill] sm:$0xff]  ;;  %v21475_v38 = vld [vmem:[#allocation113_spill] sm:$0xff] }
 0x917   :  { %v18311_v37 = vperm.slane %v21465_v12, %v10226_v63  ;;  %v21466_v6 = vld [vmem:[#allocation295_spill] sm:$0xff]  ;;  %v9495_v14 = vsel %vm9489_vm8, %v9462_v28, %v21471_v36  ;;  %v9556_v15 = vsel %vm9555_vm10, %v9523_v16, %v21472_v23  ;;  %v18331_v3 = vsel %vm9621_vm12, %v17980_v39, %v8823_v55  ;;  %v21477_v27 = vld [vmem:[#allocation357_spill] sm:$0xff]  ;;  %v8779_v12 = vpop.permute.xlu2 %8778  ;;  %8936 = vrot.lane.b32.xlu1 %v4645_v13, %s10018_s23  ;;  %v8789_v36 = vpop.permute.xlu1 %8788 }
 0x918   :  { %v9262_v0 = vsel %vm9258_vm1, %v21467_v31, %v21466_v6  ;;  %v21470_v42 = vld [vmem:[#allocation47_spill] sm:$0xff]  ;;  %v9589_v48 = vsel %vm9588_vm11, %v9556_v15, %v21477_v27  ;;  %v21478_v6 = vld [vmem:[#allocation117_spill] sm:$0xff]  ;;  %v21479_v31 = vld [vmem:[#allocation418_spill] sm:$0xff] }
 0x919   :  { %v9295_v33 = vsel %vm9291_vm2, %v9262_v0, %v21470_v42  ;;  %v21474_v61 = vld [vmem:[#allocation179_spill] sm:$0xff]  ;;  %v18350_v50 = vsel %vm9621_vm12, %v9589_v48, %v8779_v12  ;;  %v21481_v16 = vld [vmem:[#allocation401_spill] sm:$0xff]  ;;  %v21488_v48 = vld [vmem:[#allocation166_spill] sm:$0xff] }
 0x91a   :  { %v9267_v34 = vsel %vm9258_vm1, %v21474_v61, %v21473_v53  ;;  %v9328_v10 = vsel %vm9324_vm3, %v9295_v33, %v21475_v38  ;;  %v21476_v1 = vld [vmem:[#allocation135_spill] sm:$0xff]  ;;  %v21482_v42 = vld [vmem:[#allocation469_spill] sm:$0xff]  ;;  %v21484_v53 = vld [vmem:[#allocation458_spill] sm:$0xff]  ;;  %v18377_v12 = vperm.slane %v21488_v48, %v10226_v63 }
 0x91b   :  { %v9528_v46 = vsel %vm9522_vm9, %v9495_v14, %v21476_v1  ;;  %v9300_v39 = vsel %vm9291_vm2, %v9267_v34, %v21478_v6  ;;  %v9361_v0 = vsel %vm9357_vm4, %v9328_v10, %v21479_v31  ;;  %v21480_v21 = vld [vmem:[#allocation87_spill] sm:$0xff]  ;;  %v2631_v14 = vsel %vm1962_vm0, %v2630_v32, %v18206_v45  ;;  %v21485_v38 = vld [vmem:[#allocation170_spill] sm:$0xff]  ;;  %v21489_v6 = vld [vmem:[#allocation205_spill] sm:$0xff] }
 0x91c   :  { %v9561_v28 = vsel %vm9555_vm10, %v9528_v46, %v21480_v21  ;;  %v9333_v55 = vsel %vm9324_vm3, %v9300_v39, %v21481_v16  ;;  %v9394_v33 = vsel %vm9390_vm5, %v9361_v0, %v21482_v42  ;;  %v21483_v23 = vld [vmem:[#allocation91_spill] sm:$0xff]  ;;  %v3049_v10 = vsel %vm1962_vm0, %v21485_v38, %v3048_v2  ;;  %v21486_v1 = vld [vmem:[#allocation246_spill] sm:$0xff]  ;;  %v21490_v31 = vld [vmem:[#allocation161_spill] sm:$0xff] }
 0x91d   :  { %v9594_v13 = vsel %vm9588_vm11, %v9561_v28, %v17631_v40  ;;  %v9366_v15 = vsel %vm9357_vm4, %v9333_v55, %v21483_v23  ;;  %v9427_v61 = vsel %vm9423_vm6, %v9394_v33, %v21484_v53  ;;  %v21487_v40 = vld [vmem:[#allocation313_spill] sm:$0xff]  ;;  %v5232_v32 = vrot.slane %v17601_v9, 4  ;;  %v21491_v21 = vld [vmem:[#allocation211_spill] sm:$0xff]  ;;  %v21492_v16 = vld [vmem:[#allocation46_spill] sm:$0xff] }
 0x91e   :  { %v18365_v34 = vsel %vm9621_vm12, %v9594_v13, %v8789_v36  ;;  %v9399_v46 = vsel %vm9390_vm5, %v9366_v15, %v21486_v1  ;;  %v9460_v27 = vsel %vm9456_vm7, %v9427_v61, %v21487_v40  ;;  %9040 = vrot.lane.b32.xlu0 %v2631_v14, %s10019_s24  ;;  %v3218_v0 = vrot.slane %v18311_v37, 4  ;;  %v21493_v55 = vld [vmem:[#allocation149_spill] sm:$0xff]  ;;  %v21494_v42 = vld [vmem:[#allocation159_spill] sm:$0xff]  ;;  %v21495_v13 = vld [vmem:[#allocation196_spill] sm:$0xff]  ;;  %v8829_v14 = vpop.permute.xlu0 %8828  ;;  %8914 = vrot.lane.b32.xlu2 %v3049_v10, %s10018_s23 }
 0x91f   :  { %v9432_v39 = vsel %vm9423_vm6, %v9399_v46, %v21489_v6  ;;  %v9493_v2 = vsel %vm9489_vm8, %v9460_v27, %v21490_v31  ;;  %v18386_v28 = vperm.slane %v21491_v21, %v10226_v63  ;;  %v9265_v9 = vsel %vm9258_vm1, %v21493_v55, %v21492_v16  ;;  %v21496_v15 = vld [vmem:[#allocation94_spill] sm:$0xff]  ;;  %v21497_v61 = vld [vmem:[#allocation193_spill] sm:$0xff]  ;;  %v21501_v6 = vld [vmem:[#allocation424_spill] sm:$0xff]  ;;  %v8785_v21 = vpop.permute.xlu2 %8784 }
 0x920   :  { %v9465_v33 = vsel %vm9456_vm7, %v9432_v39, %v21494_v42  ;;  %v9526_v36 = vsel %vm9522_vm9, %v9493_v2, %v21495_v13  ;;  %v5233_v23 = vsel %vm1962_vm0, %v17530_v4, %v5232_v32  ;;  %v9298_v53 = vsel %vm9291_vm2, %v9265_v9, %v21496_v15  ;;  %v21498_v1 = vld [vmem:[#allocation153_spill] sm:$0xff]  ;;  %v21499_v27 = vld [vmem:[#allocation442_spill] sm:$0xff]  ;;  %v21503_v31 = vld [vmem:[#allocation379_spill] sm:$0xff] }
 0x921   :  { %v9498_v38 = vsel %vm9489_vm8, %v9465_v33, %v21497_v61  ;;  %v9559_v46 = vsel %vm9555_vm10, %v9526_v36, %v21498_v1  ;;  %v18406_v40 = vsel %vm9621_vm12, %v18056_v41, %v8829_v14  ;;  %v21500_v48 = vld [vmem:[#allocation237_spill] sm:$0xff]  ;;  %v9331_v4 = vsel %vm9324_vm3, %v9298_v53, %v21501_v6  ;;  %v21502_v32 = vld [vmem:[#allocation214_spill] sm:$0xff]  ;;  %8942 = vrot.lane.b32.xlu1 %v5233_v23, %s10018_s23  ;;  %v21504_v16 = vld [vmem:[#allocation148_spill] sm:$0xff]  ;;  %v8795_v61 = vpop.permute.xlu1 %8794 }
 0x922   :  { %v9270_v10 = vsel %vm9258_vm1, %v21500_v48, %v21499_v27  ;;  %v9531_v39 = vsel %vm9522_vm9, %v9498_v38, %v21502_v32  ;;  %v9592_v2 = vsel %vm9588_vm11, %v9559_v46, %v21503_v31  ;;  %v21505_v55 = vld [vmem:[#allocation90_spill] sm:$0xff]  ;;  %v21506_v42 = vld [vmem:[#allocation433_spill] sm:$0xff]  ;;  %v5820_v38 = vrot.slane %v17591_v7, 4  ;;  %v21510_v27 = vld [vmem:[#allocation107_spill] sm:$0xff] }
 0x923   :  { %v9303_v41 = vsel %vm9291_vm2, %v9270_v10, %v21504_v16  ;;  %v9364_v9 = vsel %vm9357_vm4, %v9331_v4, %v21505_v55  ;;  %v9564_v33 = vsel %vm9555_vm10, %v9531_v39, %v21506_v42  ;;  %v18425_v13 = vsel %vm9621_vm12, %v9592_v2, %v8785_v21  ;;  %v21507_v36 = vld [vmem:[#allocation197_spill] sm:$0xff]  ;;  %v21511_v4 = vld [vmem:[#allocation58_spill] sm:$0xff]  ;;  %v21512_v39 = vld [vmem:[#allocation339_spill] sm:$0xff] }
 0x924   :  { %v9336_v14 = vsel %vm9324_vm3, %v9303_v41, %v21507_v36  ;;  %v21508_v15 = vld [vmem:[#allocation53_spill] sm:$0xff]  ;;  %v9597_v23 = vsel %vm9588_vm11, %v9564_v33, %v17719_v18  ;;  %v3219_v6 = vsel %vm1962_vm0, %v3218_v0, %v18377_v12  ;;  %v21513_v7 = vld [vmem:[#allocation248_spill] sm:$0xff]  ;;  %v21515_v16 = vrot.slane %v17244_v5, 4 }
 0x925   :  { %v9397_v53 = vsel %vm9390_vm5, %v9364_v9, %v21508_v15  ;;  %v21509_v1 = vld [vmem:[#allocation89_spill] sm:$0xff]  ;;  %v18439_v10 = vsel %vm9621_vm12, %v9597_v23, %v8795_v61  ;;  %v21514_v2 = vld [vmem:[#allocation208_spill] sm:$0xff]  ;;  %v3806_v0 = vrot.slane %v18386_v28, 4  ;;  %v21520_v23 = vld [vmem:[#allocation194_spill] sm:$0xff]  ;;  %v5821_v61 = vsel %vm1962_vm0, %v17553_v57, %v5820_v38 }
 0x926   :  { %v9369_v46 = vsel %vm9357_vm4, %v9336_v14, %v21509_v1  ;;  %v9430_v48 = vsel %vm9423_vm6, %v9397_v53, %v21510_v27  ;;  %9046 = vrot.lane.b32.xlu0 %v3219_v6, %s10019_s24  ;;  %v3763_v41 = vsel %vm1962_vm0, %v17244_v5, %v21515_v16  ;;  %v21516_v55 = vld [vmem:[#allocation97_spill] sm:$0xff]  ;;  %v21517_v9 = vld [vmem:[#allocation204_spill] sm:$0xff]  ;;  %v8835_v53 = vpop.permute.xlu0 %8834  ;;  %8920 = vrot.lane.b32.xlu2 %v21520_v23, %s10018_s23  ;;  %v21526_v57 = vld [vmem:[#allocation434_spill] sm:$0xff] }
 0x927   :  { %v9402_v32 = vsel %vm9390_vm5, %v9369_v46, %v21511_v4  ;;  %v9463_v18 = vsel %vm9456_vm7, %v9430_v48, %v21512_v39  ;;  %v9268_v42 = vsel %vm9258_vm1, %v21517_v9, %v21516_v55  ;;  %v21518_v33 = vld [vmem:[#allocation389_spill] sm:$0xff]  ;;  %v21519_v14 = vld [vmem:[#allocation252_spill] sm:$0xff]  ;;  %v21523_v48 = vld [vmem:[#allocation435_spill] sm:$0xff]  ;;  %v18476_v4 = vsel %vm9621_vm12, %v18136_v52, %v8835_v53 }
 0x928   :  { %v9435_v31 = vsel %vm9423_vm6, %v9402_v32, %v21513_v7  ;;  %v9496_v21 = vsel %vm9489_vm8, %v9463_v18, %v21514_v2  ;;  %v21521_v5 = vld [vmem:[#allocation180_spill] sm:$0xff]  ;;  %v21524_v32 = vld [vmem:[#allocation234_spill] sm:$0xff]  ;;  %v21525_v18 = vld [vmem:[#allocation287_spill] sm:$0xff]  ;;  %v18493_v9 = vperm.slane %v3763_v41, %v10226_v63 }
 0x929   :  { %v9468_v36 = vsel %vm9456_vm7, %v9435_v31, %v21518_v33  ;;  %v9529_v15 = vsel %vm9522_vm9, %v9496_v21, %v21519_v14  ;;  %v9301_v1 = vsel %vm9291_vm2, %v9268_v42, %v21521_v5  ;;  %v21522_v46 = vld [vmem:[#allocation396_spill] sm:$0xff]  ;;  %v8791_v31 = vpop.permute.xlu2 %8790  ;;  %8948 = vrot.lane.b32.xlu1 %v5821_v61, %s10018_s23  ;;  %v21527_v2 = vld [vmem:[#allocation67_spill] sm:$0xff]  ;;  %v21528_v16 = vld [vmem:[#allocation449_spill] sm:$0xff] }
 0x92a   :  { %v9501_v27 = vsel %vm9489_vm8, %v9468_v36, %v21522_v46  ;;  %v9562_v6 = vsel %vm9555_vm10, %v9529_v15, %v21523_v48  ;;  %v9334_v39 = vsel %vm9324_vm3, %v9301_v1, %v21524_v32  ;;  %v21529_v42 = vld [vmem:[#allocation99_spill] sm:$0xff]  ;;  %v8801_v15 = vpop.permute.xlu1 %8800  ;;  %v21531_v53 = vld [vmem:[#allocation269_spill] sm:$0xff]  ;;  %v21532_v61 = vld [vmem:[#allocation84_spill] sm:$0xff]  ;;  %v3807_v41 = vsel %vm1962_vm0, %v3806_v0, %v18493_v9 }
 0x92b   :  { %v9534_v7 = vsel %vm9522_vm9, %v9501_v27, %v21525_v18  ;;  %v9595_v38 = vsel %vm9588_vm11, %v9562_v6, %v21526_v57  ;;  %v9367_v21 = vsel %vm9357_vm4, %v9334_v39, %v21527_v2  ;;  %v21530_v36 = vld [vmem:[#allocation231_spill] sm:$0xff]  ;;  %v18501_v23 = vperm.slane %v21531_v53, %v10226_v63  ;;  %v21533_v46 = vld [vmem:[#allocation376_spill] sm:$0xff]  ;;  %v21536_v18 = vld [vmem:[#allocation242_spill] sm:$0xff] }
 0x92c   :  { %v9567_v55 = vsel %vm9555_vm10, %v9534_v7, %v21528_v16  ;;  %v18490_v52 = vsel %vm9621_vm12, %v9595_v38, %v8791_v31  ;;  %v9400_v33 = vsel %vm9390_vm5, %v9367_v21, %v21529_v42  ;;  %v21534_v48 = vld [vmem:[#allocation95_spill] sm:$0xff]  ;;  %v6408_v32 = vrot.slane %v18059_v26, 4  ;;  %v21538_v0 = vld [vmem:[#allocation232_spill] sm:$0xff] }
 0x92d   :  { %v9600_v14 = vsel %vm9588_vm11, %v9567_v55, %v21530_v36  ;;  %v9433_v5 = vsel %vm9423_vm6, %v9400_v33, %v21532_v61  ;;  %v21535_v39 = vld [vmem:[#allocation223_spill] sm:$0xff]  ;;  %v4394_v2 = vrot.slane %v18501_v23, 4  ;;  %v21540_v55 = vld [vmem:[#allocation472_spill] sm:$0xff]  ;;  %v21541_v36 = vld [vmem:[#allocation37_spill] sm:$0xff] }
 0x92e   :  { %v18506_v1 = vsel %vm9621_vm12, %v9600_v14, %v8801_v15  ;;  %v9466_v27 = vsel %vm9456_vm7, %v9433_v5, %v21533_v46  ;;  %9052 = vrot.lane.b32.xlu0 %v3807_v41, %s10019_s24  ;;  %v9271_v7 = vsel %vm9258_vm1, %v21536_v18, %v21535_v39  ;;  %v21537_v57 = vld [vmem:[#allocation327_spill] sm:$0xff]  ;;  %v8841_v31 = vpop.permute.xlu0 %8840  ;;  %8926 = vrot.lane.b32.xlu2 %v21538_v0, %s10018_s23  ;;  %v21543_v5 = vld [vmem:[#allocation384_spill] sm:$0xff]  ;;  %vm9753_vm1 = vcmask 261120  }
 0x92f   :  { %v9499_v6 = vsel %vm9489_vm8, %v9466_v27, %v21534_v48  ;;  %v21539_v21 = vld [vmem:[#allocation239_spill] sm:$0xff]  ;;  %v18530_v26 = vsel %vm9621_vm12, %v18213_v51, %v8841_v31  ;;  %v6409_v33 = vsel %vm1962_vm0, %v17713_v30, %v6408_v32  ;;  %v21544_v51 = vld [vmem:[#allocation264_spill] sm:$0xff]  ;;  %v21545_v30 = vld [vmem:[#allocation181_spill] sm:$0xff] }
 0x930   :  { %v9532_v38 = vsel %vm9522_vm9, %v9499_v6, %v21537_v57  ;;  %v9304_v16 = vsel %vm9291_vm2, %v9271_v7, %v21539_v21  ;;  %v21542_v15 = vld [vmem:[#allocation471_spill] sm:$0xff]  ;;  %v18546_v27 = vperm.slane %v21544_v51, %v10226_v63  ;;  %v21546_v32 = vld [vmem:[#allocation98_spill] sm:$0xff]  ;;  %v21547_v57 = vld [vmem:[#allocation284_spill] sm:$0xff] }
 0x931   :  { %v9565_v42 = vsel %vm9555_vm10, %v9532_v38, %v21540_v55  ;;  %v9337_v14 = vsel %vm9324_vm3, %v9304_v16, %v21541_v36  ;;  %v8797_v61 = vpop.permute.xlu2 %8796  ;;  %8954 = vrot.lane.b32.xlu1 %v6409_v33, %s10018_s23  ;;  %v18560_v38 = vperm.slane %v21547_v57, %v10226_v63  ;;  %v21548_v31 = vld [vmem:[#allocation164_spill] sm:$0xff]  ;;  %v21549_v21 = vld [vmem:[#allocation467_spill] sm:$0xff]  ;;  %v6660_v55 = vrot.slane %v18129_v35, 4 }
 0x932   :  { %v9598_v53 = vsel %vm9588_vm11, %v9565_v42, %v21542_v15  ;;  %v9370_v41 = vsel %vm9357_vm4, %v9337_v14, %v21543_v5  ;;  %v8807_v6 = vpop.permute.xlu1 %8806  ;;  %v4395_v7 = vsel %vm1962_vm0, %v4394_v2, %v18546_v27  ;;  %v21551_v2 = vld [vmem:[#allocation288_spill] sm:$0xff]  ;;  %v21552_v36 = vld [vmem:[#allocation303_spill] sm:$0xff] }
 0x933   :  { %v18542_v46 = vsel %vm9621_vm12, %v9598_v53, %v8797_v61  ;;  %v9403_v48 = vsel %vm9390_vm5, %v9370_v41, %v21545_v30  ;;  %v18554_v18 = vsel %vm9621_vm12, %v17887_v17, %v8807_v6  ;;  %v21550_v17 = vld [vmem:[#allocation358_spill] sm:$0xff]  ;;  %v18574_v14 = vperm.slane %v21552_v36, %v10226_v63  ;;  %v21553_v15 = vld [vmem:[#allocation343_spill] sm:$0xff] }
 0x934   :  { %v9436_v39 = vsel %vm9423_vm6, %v9403_v48, %v21546_v32  ;;  %v6661_v35 = vsel %vm1962_vm0, %v18049_v25, %v6660_v55  ;;  %v4646_v5 = vrot.slane %v18560_v38, 4  ;;  %v21554_v41 = vld [vmem:[#allocation218_spill] sm:$0xff]  ;;  %v7248_v25 = vrot.slane %v18168_v19, 4 }
 0x935   :  { %v9469_v0 = vsel %vm9456_vm7, %v9436_v39, %v21548_v31  ;;  %v21555_v39 = vld [vmem:[#allocation340_spill] sm:$0xff]  ;;  %v21557_v31 = vld [vmem:[#allocation325_spill] sm:$0xff] }
 0x936   :  { %9058 = vrot.lane.b32.xlu0 %v4395_v7, %s10019_s24  ;;  %v9502_v16 = vsel %vm9489_vm8, %v9469_v0, %v21549_v21  ;;  %v8911_v33 = vpop.permute.xlu0 %8910  ;;  %8932 = vrot.lane.b32.xlu2 %v21551_v2, %s10018_s23  ;;  %v18600_v7 = vperm.slane %v21555_v39, %v10226_v63  ;;  %v21558_v0 = vld [vmem:[#allocation316_spill] sm:$0xff]  ;;  %v7249_v19 = vsel %vm1962_vm0, %v18151_v24, %v7248_v25  ;;  %v21568_v25 = vld [vmem:[#allocation271_spill] sm:$0xff] }
 0x937   :  { %v9535_v42 = vsel %vm9522_vm9, %v9502_v16, %v21550_v17  ;;  %v18580_v61 = vsel %vm9654_vm13, %v18288_v29, %v8911_v33  ;;  %v4647_v29 = vsel %vm1962_vm0, %v4646_v5, %v18574_v14  ;;  %v21559_v21 = vrot.slane %v21558_v0, 4  ;;  %v21564_v5 = vld [vmem:[#allocation373_spill] sm:$0xff] }
 0x938   :  { %v9568_v53 = vsel %vm9555_vm10, %v9535_v42, %v21553_v15  ;;  %21556 = vst [vmem:[#allocation30_spill] sm:$0xff] %v18600_v7  ;;  %v5234_v55 = vrot.slane %v18600_v7, 4  ;;  %v21560_v42 = vld [vmem:[#allocation154_spill] sm:$0xff]  ;;  %v21562_v15 = vld [vmem:[#allocation367_spill] sm:$0xff] }
 0x939   :  { %v9601_v51 = vsel %vm9588_vm11, %v9568_v53, %v21554_v41  ;;  %v8803_v30 = vpop.permute.xlu2 %8802  ;;  %8960 = vrot.lane.b32.xlu1 %v6661_v35, %s10018_s23  ;;  %v18632_v53 = vperm.slane %v21562_v15, %v10226_v63 }
 0x93a   :  { %v18589_v48 = vsel %vm9621_vm12, %v9601_v51, %v8803_v30  ;;  %v8813_v6 = vpop.permute.xlu1 %8812 }
 0x93b   :  { %v18593_v32 = vsel %vm9621_vm12, %v17963_v47, %v8813_v6  ;;  %v5191_v47 = vsel %vm1962_vm0, %v21558_v0, %v21559_v21  ;;  %21563 = vst [vmem:[#allocation245_spill] sm:$0xff] %v18632_v53  ;;  %v5822_v30 = vrot.slane %v18632_v53, 4  ;;  %v21569_v0 = vld [vmem:[#allocation186_spill] sm:$0xff] }
 0x93c   :  { %v18622_v2 = vperm.slane %v5191_v47, %v10226_v63  ;;  %v21570_v21 = vrot.slane %v21569_v0, 4 }
 0x93e   :  { %9064 = vrot.lane.b32.xlu0 %v4647_v29, %s10019_s24  ;;  %v8917_v57 = vpop.permute.xlu0 %8916  ;;  %8938 = vrot.lane.b32.xlu2 %v21557_v31, %s10018_s23  ;;  %21561 = vst [vmem:[#allocation229_spill] sm:$0xff] %v18622_v2  ;;  %v5235_v24 = vsel %vm1962_vm0, %v5234_v55, %v18622_v2  ;;  %v21567_v29 = vld [vmem:[#allocation172_spill] sm:$0xff]  ;;  %v3281_v47 = vsel %vm1962_vm0, %v21569_v0, %v21570_v21  ;;  %v21571_v55 = vld [vmem:[#allocation415_spill] sm:$0xff]  ;;  %v21578_v21 = vld [vmem:[#allocation209_spill] sm:$0xff] }
 0x93f   :  { %v18611_v16 = vsel %vm9654_vm13, %v18365_v34, %v8917_v57  ;;  %v21607_v2 = vld [vmem:[#allocation188_spill] sm:$0xff] }
 0x941   :  { %v8809_v17 = vpop.permute.xlu2 %8808  ;;  %8966 = vrot.lane.b32.xlu1 %v7249_v19, %s10018_s23 }
 0x942   :  { %v18619_v33 = vsel %vm9621_vm12, %v21560_v42, %v8809_v17  ;;  %v8819_v36 = vpop.permute.xlu1 %8818 }
 0x943   :  { %v18626_v34 = vsel %vm9621_vm12, %v18040_v58, %v8819_v36  ;;  %v21565_v58 = vld [vmem:[#allocation399_spill] sm:$0xff]  ;;  %v21572_v36 = vld [vmem:[#allocation185_spill] sm:$0xff] }
 0x944   :  { %v18643_v51 = vperm.slane %v21565_v58, %v10226_v63 }
 0x946   :  { %9070 = vrot.lane.b32.xlu0 %v5235_v24, %s10019_s24  ;;  %v8923_v35 = vpop.permute.xlu0 %8922  ;;  %8944 = vrot.lane.b32.xlu2 %v21564_v5, %s10018_s23  ;;  %21566 = vst [vmem:[#allocation286_spill] sm:$0xff] %v18643_v51  ;;  %v21573_v24 = vld [vmem:[#allocation168_spill] sm:$0xff]  ;;  %v21574_v5 = vld [vmem:[#allocation182_spill] sm:$0xff] }
 0x947   :  { %v18639_v41 = vsel %vm9654_vm13, %v18439_v10, %v8923_v35  ;;  %v5823_v10 = vsel %vm1962_vm0, %v5822_v30, %v18643_v51  ;;  %v21575_v58 = vrot.slane %v21574_v5, 4 }
 0x949   :  { %v8815_v6 = vpop.permute.xlu2 %8814  ;;  %9036 = vrot.lane.b32.xlu1 %v21567_v29, %s10019_s24  ;;  %v3259_v30 = vsel %vm1962_vm0, %v21574_v5, %v21575_v58  ;;  %v21576_v29 = vld [vmem:[#allocation461_spill] sm:$0xff] }
 0x94a   :  { %v18650_v39 = vsel %vm9621_vm12, %v21568_v25, %v8815_v6  ;;  %v8825_v57 = vpop.permute.xlu1 %8824  ;;  %v18690_v25 = vperm.slane %v3259_v30, %v10226_v63 }
 0x94b   :  { %v18654_v31 = vsel %vm9621_vm12, %v18120_v62, %v8825_v57  ;;  %v18670_v62 = vperm.slane %v3281_v47, %v10226_v63  ;;  %v18702_v47 = vperm.slane %v21578_v21, %v10226_v63 }
 0x94d   :  { %v3302_v6 = vrot.slane %v18670_v62, 4  ;;  %v3890_v30 = vrot.slane %v18702_v47, 4 }
 0x94e   :  { %9076 = vrot.lane.b32.xlu0 %v5823_v10, %s10019_s24  ;;  %v8929_v19 = vpop.permute.xlu0 %8928  ;;  %8950 = vrot.lane.b32.xlu2 %v21571_v55, %s10018_s23  ;;  %v21577_v10 = vld [vmem:[#allocation465_spill] sm:$0xff] }
 0x94f   :  { %v18667_v17 = vsel %vm9654_vm13, %v18506_v1, %v8929_v19  ;;  %v21579_v55 = vld [vmem:[#allocation225_spill] sm:$0xff] }
 0x951   :  { %v8821_v42 = vpop.permute.xlu2 %8820  ;;  %9042 = vrot.lane.b32.xlu1 %v21572_v36, %s10019_s24 }
 0x952   :  { %v18676_v15 = vsel %vm9621_vm12, %v21573_v24, %v8821_v42  ;;  %v8831_v35 = vpop.permute.xlu1 %8830  ;;  %v21580_v42 = vrot.slane %v21579_v55, 4  ;;  %v21581_v24 = vld [vmem:[#allocation192_spill] sm:$0xff] }
 0x953   :  { %v18684_v1 = vsel %vm9621_vm12, %v18196_v44, %v8831_v35  ;;  %v3303_v44 = vsel %vm1962_vm0, %v3302_v6, %v18690_v25  ;;  %v21582_v6 = vld [vmem:[#allocation103_spill] sm:$0xff] }
 0x954   :  { %v3847_v36 = vsel %vm1962_vm0, %v21579_v55, %v21580_v42  ;;  %v21586_v55 = vld [vmem:[#allocation360_spill] sm:$0xff] }
 0x955   :  { %v18718_v58 = vperm.slane %v3847_v36, %v10226_v63  ;;  %v21587_v36 = vld [vmem:[#allocation101_spill] sm:$0xff] }
 0x956   :  { %9082 = vrot.lane.b32.xlu0 %v21576_v29, %s10019_s24  ;;  %v8935_v57 = vpop.permute.xlu0 %8934  ;;  %8956 = vrot.lane.b32.xlu2 %v21577_v10, %s10018_s23 }
 0x957   :  { %v18696_v0 = vsel %vm9654_vm13, %v18554_v18, %v8935_v57  ;;  %v21583_v57 = vld [vmem:[#allocation328_spill] sm:$0xff] }
 0x959   :  { %v8827_v19 = vpop.permute.xlu2 %8826  ;;  %9048 = vrot.lane.b32.xlu1 %v3303_v44, %s10019_s24  ;;  %v21585_v44 = vld [vmem:[#allocation270_spill] sm:$0xff] }
 0x95a   :  { %v18711_v35 = vsel %vm9621_vm12, %v21581_v24, %v8827_v19  ;;  %v8837_v18 = vpop.permute.xlu1 %8836  ;;  %v18733_v21 = vperm.slane %v21585_v44, %v10226_v63  ;;  %v7332_v24 = vrot.slane %v21587_v36, 4  ;;  %v21591_v44 = vld [vmem:[#allocation59_spill] sm:$0xff]  ;;  %v21592_v36 = vld [vmem:[#allocation120_spill] sm:$0xff] }
 0x95b   :  { %v18715_v5 = vsel %vm9621_vm12, %v18274_v49, %v8837_v18  ;;  %v3891_v49 = vsel %vm1962_vm0, %v3890_v30, %v18718_v58  ;;  %v18759_v53 = vperm.slane %v21592_v36, %v10226_v63 }
 0x95e   :  { %9088 = vrot.lane.b32.xlu0 %v21582_v6, %s10019_s24  ;;  %v8941_v29 = vpop.permute.xlu0 %8940  ;;  %8962 = vrot.lane.b32.xlu2 %v21583_v57, %s10018_s23  ;;  %v21588_v6 = vld [vmem:[#allocation275_spill] sm:$0xff]  ;;  %v4478_v57 = vrot.slane %v18733_v21, 4 }
 0x95f   :  { %v18727_v10 = vsel %vm9654_vm13, %v18593_v32, %v8941_v29  ;;  %v21589_v32 = vrot.slane %v21588_v6, 4 }
 0x960   :  { %21584 = vst [vmem:[#allocation436_spill] sm:$0xff] %v18727_v10 }
 0x961   :  { %v8833_v19 = vpop.permute.xlu2 %8832  ;;  %9054 = vrot.lane.b32.xlu1 %v3891_v49, %s10019_s24  ;;  %v4435_v29 = vsel %vm1962_vm0, %v21588_v6, %v21589_v32  ;;  %v21590_v49 = vld [vmem:[#allocation422_spill] sm:$0xff] }
 0x962   :  { %v18738_v42 = vsel %vm9621_vm12, %v21586_v55, %v8833_v19  ;;  %v8907_v18 = vpop.permute.xlu1 %8906  ;;  %v7333_v19 = vsel %vm1962_vm0, %v21591_v44, %v7332_v24  ;;  %v18755_v55 = vperm.slane %v4435_v29, %v10226_v63  ;;  %v21594_v24 = vld [vmem:[#allocation137_spill] sm:$0xff]  ;;  %v21596_v44 = vld [vmem:[#allocation190_spill] sm:$0xff] }
 0x963   :  { %v18747_v30 = vsel %vm9654_vm13, %v18350_v50, %v8907_v18  ;;  %v21595_v29 = vrot.slane %v21594_v24, 4 }
 0x964   :  { %v4479_v18 = vsel %vm1962_vm0, %v4478_v57, %v18755_v55 }
 0x966   :  { %9094 = vrot.lane.b32.xlu0 %v21590_v49, %s10019_s24  ;;  %v8947_v6 = vpop.permute.xlu0 %8946  ;;  %8968 = vrot.lane.b32.xlu2 %v7333_v19, %s10018_s23  ;;  %v2503_v49 = vsel %vm1962_vm0, %v21594_v24, %v21595_v29  ;;  %v2546_v19 = vrot.slane %v18759_v53, 4  ;;  %v21599_v29 = vld [vmem:[#allocation355_spill] sm:$0xff] }
 0x967   :  { %v18764_v50 = vsel %vm9654_vm13, %v18626_v34, %v8947_v6  ;;  %v18781_v57 = vperm.slane %v2503_v49, %v10226_v63  ;;  %v21597_v6 = vld [vmem:[#allocation173_spill] sm:$0xff]  ;;  %v21600_v49 = vld [vmem:[#allocation336_spill] sm:$0xff] }
 0x968   :  { %21593 = vst [vmem:[#allocation49_spill] sm:$0xff] %v18764_v50  ;;  %v21602_v50 = vld [vmem:[#allocation130_spill] sm:$0xff] }
 0x969   :  { %v8839_v32 = vpop.permute.xlu2 %8838  ;;  %9060 = vrot.lane.b32.xlu1 %v4479_v18, %s10019_s24  ;;  %v2547_v18 = vsel %vm1962_vm0, %v2546_v19, %v18781_v57  ;;  %v21603_v10 = vrot.slane %v21602_v50, 4 }
 0x96a   :  { %v18775_v36 = vsel %vm9621_vm12, %v21596_v44, %v8839_v32  ;;  %v8913_v51 = vpop.permute.xlu1 %8912  ;;  %v21601_v44 = vld [vmem:[#allocation202_spill] sm:$0xff] }
 0x96b   :  { %v9658_v34 = vsel %vm9654_vm13, %v18425_v13, %v8913_v51  ;;  %v18794_v13 = vperm.slane %v21599_v29, %v10226_v63  ;;  %v21604_v29 = vld [vmem:[#allocation187_spill] sm:$0xff] }
 0x96e   :  { %9164 = vrot.lane.b32.xlu0 %v21597_v6, %s10020_s25  ;;  %v8953_v24 = vpop.permute.xlu0 %8952  ;;  %9038 = vrot.lane.b32.xlu2 %v2547_v18, %s10019_s24  ;;  %v5275_v18 = vsel %vm1962_vm0, %v21602_v50, %v21603_v10 }
 0x96f   :  { %v18790_v32 = vsel %vm9654_vm13, %v18654_v31, %v8953_v24  ;;  %v5318_v24 = vrot.slane %v18794_v13, 4 }
 0x970   :  { %21598 = vst [vmem:[#allocation285_spill] sm:$0xff] %v18790_v32  ;;  %v21605_v32 = vld [vmem:[#allocation410_spill] sm:$0xff] }
 0x971   :  { %v8909_v51 = vpop.permute.xlu2 %8908  ;;  %9066 = vrot.lane.b32.xlu1 %v21600_v49, %s10019_s24  ;;  %v21606_v49 = vrot.slane %v21605_v32, 4 }
 0x972   :  { %v18800_v6 = vsel %vm9654_vm13, %v21601_v44, %v8909_v51  ;;  %v8919_v19 = vpop.permute.xlu1 %8918  ;;  %v5283_v44 = vperm.slane %v5275_v18, %v10226_v63  ;;  %v3304_v18 = vrot.slane %v18690_v25, 4  ;;  %v21610_v25 = vld [vmem:[#allocation228_spill] sm:$0xff] }
 0x973   :  { %v9661_v31 = vsel %vm9654_vm13, %v18490_v52, %v8919_v19  ;;  %v5885_v51 = vsel %vm1962_vm0, %v21605_v32, %v21606_v49 }
 0x974   :  { %v5319_v52 = vsel %vm1962_vm0, %v5318_v24, %v5283_v44  ;;  %v18824_v50 = vperm.slane %v5885_v51, %v10226_v63  ;;  %v3305_v24 = vsel %vm1962_vm0, %v18670_v62, %v3304_v18 }
 0x976   :  { %9170 = vrot.lane.b32.xlu0 %v21604_v29, %s10020_s25  ;;  %v8959_v7 = vpop.permute.xlu0 %8958  ;;  %9044 = vrot.lane.b32.xlu2 %v21607_v2, %s10019_s24  ;;  %v21608_v2 = vld [vmem:[#allocation409_spill] sm:$0xff]  ;;  %v5906_v51 = vrot.slane %v18824_v50, 4 }
 0x977   :  { %v18820_v10 = vsel %vm9654_vm13, %v18684_v1, %v8959_v7  ;;  %v21609_v49 = vrot.slane %v21608_v2, 4 }
 0x979   :  { %v8915_v19 = vpop.permute.xlu2 %8914  ;;  %9072 = vrot.lane.b32.xlu1 %v5319_v52, %s10019_s24  ;;  %v5863_v7 = vsel %vm1962_vm0, %v21608_v2, %v21609_v49 }
 0x97a   :  { %v18829_v32 = vsel %vm9654_vm13, %v17868_v8, %v8915_v19  ;;  %v8925_v29 = vpop.permute.xlu1 %8924  ;;  %v5871_v8 = vperm.slane %v5863_v7, %v10226_v63 }
 0x97b   :  { %v9664_v1 = vsel %vm9654_vm13, %v18542_v46, %v8925_v29  ;;  %v3892_v46 = vrot.slane %v18718_v58, 4  ;;  %v21611_v58 = vld [vmem:[#allocation266_spill] sm:$0xff] }
 0x97c   :  { %v5907_v2 = vsel %vm1962_vm0, %v5906_v51, %v5871_v8 }
 0x97d   :  { %v3893_v49 = vsel %vm1962_vm0, %v18702_v47, %v3892_v46  ;;  %v4480_v47 = vrot.slane %v18755_v55, 4 }
 0x97e   :  { %9176 = vrot.lane.b32.xlu0 %v3305_v24, %s10020_s25  ;;  %v8965_v52 = vpop.permute.xlu0 %8964  ;;  %9050 = vrot.lane.b32.xlu2 %v21610_v25, %s10019_s24  ;;  %v21612_v24 = vld [vmem:[#allocation463_spill] sm:$0xff] }
 0x97f   :  { %v18847_v19 = vsel %vm9654_vm13, %v18715_v5, %v8965_v52  ;;  %v4481_v25 = vsel %vm1962_vm0, %v18733_v21, %v4480_v47 }
 0x981   :  { %v8921_v29 = vpop.permute.xlu2 %8920  ;;  %9078 = vrot.lane.b32.xlu1 %v5907_v2, %s10019_s24  ;;  %v21613_v2 = vld [vmem:[#allocation320_spill] sm:$0xff] }
 0x982   :  { %v18854_v62 = vsel %vm9654_vm13, %v17943_v59, %v8921_v29  ;;  %v8931_v63 = vpop.permute.xlu1 %8930  ;;  %v21614_v29 = vld [vmem:[#allocation143_spill] sm:$0xff] }
 0x983   :  { %v9667_v18 = vsel %vm9654_vm13, %v18589_v48, %v8931_v63  ;;  %v21615_v63 = vld [vmem:[#allocation337_spill] sm:$0xff] }
 0x986   :  { %9182 = vrot.lane.b32.xlu0 %v3893_v49, %s10020_s25  ;;  %9056 = vrot.lane.b32.xlu2 %v21611_v58, %s10019_s24 }
 0x988   :  { %v9035_v5 = vpop.permute.xlu0 %9034 }
 0x989   :  { %v18865_v7 = vsel %vm9687_vm14, %v18747_v30, %v9035_v5  ;;  %v8927_v59 = vpop.permute.xlu2 %8926  ;;  %9084 = vrot.lane.b32.xlu1 %v21612_v24, %s10019_s24  ;;  %v21616_v5 = vld [vmem:[#allocation359_spill] sm:$0xff]  ;;  %v5320_v24 = vrot.slane %v5283_v44, 4 }
 0x98a   :  { %v18871_v48 = vsel %vm9654_vm13, %v18017_v54, %v8927_v59  ;;  %v8937_v51 = vpop.permute.xlu1 %8936  ;;  %v21617_v59 = vld [vmem:[#allocation446_spill] sm:$0xff] }
 0x98b   :  { %v9670_v52 = vsel %vm9654_vm13, %v18619_v33, %v8937_v51  ;;  %v5321_v51 = vsel %vm1962_vm0, %v18794_v13, %v5320_v24  ;;  %v5908_v13 = vrot.slane %v5871_v8, 4  ;;  %v21623_v24 = vld [vmem:[#allocation227_spill] sm:$0xff] }
 0x98e   :  { %9188 = vrot.lane.b32.xlu0 %v4481_v25, %s10020_s25  ;;  %9062 = vrot.lane.b32.xlu2 %v21613_v2, %s10019_s24 }
 0x990   :  { %v9041_v30 = vpop.permute.xlu0 %9040 }
 0x991   :  { %v18882_v46 = vsel %vm9687_vm14, %v9658_v34, %v9041_v30  ;;  %v8933_v54 = vpop.permute.xlu2 %8932  ;;  %9090 = vrot.lane.b32.xlu1 %v21614_v29, %s10019_s24  ;;  %v21618_v30 = vld [vmem:[#allocation397_spill] sm:$0xff]  ;;  %v5909_v29 = vsel %vm1962_vm0, %v18824_v50, %v5908_v13  ;;  %v21627_v13 = vld [vmem:[#allocation263_spill] sm:$0xff] }
 0x992   :  { %v18888_v55 = vsel %vm9654_vm13, %v18099_v22, %v8933_v54 }
 0x993   :  { %v8943_v33 = vpop.permute.xlu1 %8942 }
 0x994   :  { %v9673_v21 = vsel %vm9654_vm13, %v18650_v39, %v8943_v33 }
 0x996   :  { %9194 = vrot.lane.b32.xlu0 %v21615_v63, %s10020_s25  ;;  %9068 = vrot.lane.b32.xlu2 %v21616_v5, %s10019_s24 }
 0x998   :  { %v9047_v49 = vpop.permute.xlu0 %9046 }
 0x999   :  { %v18897_v34 = vsel %vm9687_vm14, %v9661_v31, %v9047_v49  ;;  %v8939_v58 = vpop.permute.xlu2 %8938  ;;  %9096 = vrot.lane.b32.xlu1 %v21617_v59, %s10019_s24  ;;  %v2548_v31 = vrot.slane %v18781_v57, 4  ;;  %v21621_v49 = vld [vmem:[#allocation466_spill] sm:$0xff] }
 0x99a   :  { %v18903_v22 = vsel %vm9654_vm13, %v18179_v56, %v8939_v58  ;;  %v21622_v58 = vld [vmem:[#allocation40_spill] sm:$0xff] }
 0x99b   :  { %v8949_v39 = vpop.permute.xlu1 %8948  ;;  %v2549_v56 = vsel %vm1962_vm0, %v18759_v53, %v2548_v31  ;;  %v21619_v53 = vld [vmem:[#allocation447_spill] sm:$0xff] }
 0x99c   :  { %v9676_v47 = vsel %vm9654_vm13, %v18676_v15, %v8949_v39 }
 0x99e   :  { %9200 = vrot.lane.b32.xlu0 %v5321_v51, %s10020_s25  ;;  %9074 = vrot.lane.b32.xlu2 %v21618_v30, %s10019_s24  ;;  %v21624_v51 = vld [vmem:[#allocation104_spill] sm:$0xff] }
 0x9a0   :  { %v9053_v25 = vpop.permute.xlu0 %9052 }
 0x9a1   :  { %v18914_v2 = vsel %vm9687_vm14, %v9664_v1, %v9053_v25  ;;  %v8945_v44 = vpop.permute.xlu2 %8944  ;;  %9166 = vrot.lane.b32.xlu1 %v2549_v56, %s10020_s25  ;;  %v21625_v25 = vld [vmem:[#allocation330_spill] sm:$0xff]  ;;  %v21626_v56 = vld [vmem:[#allocation267_spill] sm:$0xff] }
 0x9a2   :  { %v18921_v15 = vsel %vm9654_vm13, %v18255_v43, %v8945_v44  ;;  %v21620_v43 = vld [vmem:[#allocation189_spill] sm:$0xff] }
 0x9a3   :  { %v8955_v54 = vpop.permute.xlu1 %8954 }
 0x9a4   :  { %v9679_v57 = vsel %vm9654_vm13, %v18711_v35, %v8955_v54 }
 0x9a6   :  { %9206 = vrot.lane.b32.xlu0 %v5909_v29, %s10020_s25  ;;  %9080 = vrot.lane.b32.xlu2 %v21619_v53, %s10019_s24  ;;  %v21628_v53 = vld [vmem:[#allocation319_spill] sm:$0xff] }
 0x9a8   :  { %v9059_v1 = vpop.permute.xlu0 %9058 }
 0x9a9   :  { %v18931_v33 = vsel %vm9687_vm14, %v9667_v18, %v9059_v1  ;;  %v8951_v63 = vpop.permute.xlu2 %8950  ;;  %9172 = vrot.lane.b32.xlu1 %v21620_v43, %s10020_s25 }
 0x9aa   :  { %v18937_v8 = vsel %vm9654_vm13, %v18331_v3, %v8951_v63  ;;  %v2632_v63 = vrot.slane %v18206_v45, 4  ;;  %v3220_v45 = vrot.slane %v18377_v12, 4  ;;  %v3808_v12 = vrot.slane %v18493_v9, 4 }
 0x9ab   :  { %v8961_v35 = vpop.permute.xlu1 %8960  ;;  %v4396_v9 = vrot.slane %v18546_v27, 4 }
 0x9ac   :  { %v9682_v50 = vsel %vm9654_vm13, %v18738_v42, %v8961_v35 }
 0x9ae   :  { %9212 = vrot.lane.b32.xlu0 %v21621_v49, %s10020_s25  ;;  %9086 = vrot.lane.b32.xlu2 %v21622_v58, %s10019_s24  ;;  %v21629_v49 = vld [vmem:[#allocation375_spill] sm:$0xff] }
 0x9b0   :  { %v9065_v5 = vpop.permute.xlu0 %9064 }
 0x9b1   :  { %v18946_v18 = vsel %vm9687_vm14, %v9670_v52, %v9065_v5  ;;  %v8957_v59 = vpop.permute.xlu2 %8956  ;;  %9178 = vrot.lane.b32.xlu1 %v21623_v24, %s10020_s25  ;;  %v21630_v24 = vld [vmem:[#allocation416_spill] sm:$0xff] }
 0x9b2   :  { %v18952_v3 = vsel %vm9654_vm13, %v18406_v40, %v8957_v59 }
 0x9b3   :  { %v8967_v39 = vpop.permute.xlu1 %8966 }
 0x9b4   :  { %v9685_v42 = vsel %vm9654_vm13, %v18775_v36, %v8967_v39  ;;  %v2380_v36 = vrot.slane %v18235_v60, 4 }
 0x9b6   :  { %9218 = vrot.lane.b32.xlu0 %v21624_v51, %s10020_s25  ;;  %9092 = vrot.lane.b32.xlu2 %v21625_v25, %s10019_s24  ;;  %v2381_v54 = vsel %vm1962_vm0, %v21455_v11, %v2380_v36  ;;  %v2633_v11 = vsel %vm1962_vm0, %v18225_v20, %v2632_v63  ;;  %v3221_v20 = vsel %vm1962_vm0, %v18311_v37, %v3220_v45  ;;  %v21631_v25 = vld [vmem:[#allocation468_spill] sm:$0xff] }
 0x9b7   :  { %v3809_v37 = vsel %vm1962_vm0, %v18386_v28, %v3808_v12  ;;  %v4397_v28 = vsel %vm1962_vm0, %v18501_v23, %v4396_v9  ;;  %v4648_v23 = vrot.slane %v18574_v14, 4  ;;  %v21638_v12 = vld [vmem:[#allocation245_spill] sm:$0xff] }
 0x9b8   :  { %v9071_v31 = vpop.permute.xlu0 %9070 }
 0x9b9   :  { %v18961_v52 = vsel %vm9687_vm14, %v9673_v21, %v9071_v31  ;;  %v8963_v30 = vpop.permute.xlu2 %8962  ;;  %9184 = vrot.lane.b32.xlu1 %v21626_v56, %s10020_s25 }
 0x9ba   :  { %v18967_v40 = vsel %vm9654_vm13, %v18476_v4, %v8963_v30 }
 0x9bb   :  { %v9037_v44 = vpop.permute.xlu1 %9036 }
 0x9be   :  { %9224 = vrot.lane.b32.xlu0 %v21627_v13, %s10020_s25  ;;  %9162 = vrot.lane.b32.xlu2 %v2381_v54, %s10020_s25  ;;  %v21632_v13 = vld [vmem:[#allocation24_spill] sm:$0xff] }
 0x9c0   :  { %v9077_v29 = vpop.permute.xlu0 %9076 }
 0x9c1   :  { %v18976_v21 = vsel %vm9687_vm14, %v9676_v47, %v9077_v29  ;;  %v8969_v1 = vpop.permute.xlu2 %8968  ;;  %9190 = vrot.lane.b32.xlu1 %v21628_v53, %s10020_s25 }
 0x9c2   :  { %v18982_v60 = vsel %vm9654_vm13, %v18530_v26, %v8969_v1 }
 0x9c3   :  { %v9043_v4 = vpop.permute.xlu1 %9042 }
 0x9c6   :  { %9168 = vrot.lane.b32.xlu2 %v2633_v11, %s10020_s25 }
 0x9c8   :  { %v9083_v43 = vpop.permute.xlu0 %9082 }
 0x9c9   :  { %v18989_v47 = vsel %vm9687_vm14, %v9679_v57, %v9083_v43  ;;  %v9039_v35 = vpop.permute.xlu2 %9038  ;;  %9196 = vrot.lane.b32.xlu1 %v21629_v49, %s10020_s25  ;;  %v21635_v43 = vld [vmem:[#allocation30_spill] sm:$0xff] }
 0x9ca   :  { %v18995_v26 = vsel %vm9687_vm14, %v18580_v61, %v9039_v35 }
 0x9cb   :  { %v9049_v5 = vpop.permute.xlu1 %9048 }
 0x9ce   :  { %9174 = vrot.lane.b32.xlu2 %v3221_v20, %s10020_s25  ;;  %v21636_v20 = vld [vmem:[#allocation436_spill] sm:$0xff] }
 0x9d0   :  { %v9089_v58 = vpop.permute.xlu0 %9088 }
 0x9d1   :  { %v19002_v57 = vsel %vm9687_vm14, %v9682_v50, %v9089_v58  ;;  %v9045_v59 = vpop.permute.xlu2 %9044  ;;  %9202 = vrot.lane.b32.xlu1 %v21630_v24, %s10020_s25  ;;  %v21637_v58 = vld [vmem:[#allocation286_spill] sm:$0xff] }
 0x9d2   :  { %v19008_v61 = vsel %vm9687_vm14, %v18611_v16, %v9045_v59  ;;  %v5824_v59 = vrot.slane %v21637_v58, 4 }
 0x9d3   :  { %v9055_v39 = vpop.permute.xlu1 %9054 }
 0x9d6   :  { %9180 = vrot.lane.b32.xlu2 %v3809_v37, %s10020_s25  ;;  %v5825_v37 = vsel %vm1962_vm0, %v21638_v12, %v5824_v59 }
 0x9d8   :  { %v9095_v51 = vpop.permute.xlu0 %9094 }
 0x9d9   :  { %v19015_v50 = vsel %vm9687_vm14, %v9685_v42, %v9095_v51  ;;  %v9051_v31 = vpop.permute.xlu2 %9050  ;;  %9208 = vrot.lane.b32.xlu1 %v21631_v25, %s10020_s25  ;;  %v9689_v42 = vsel %vm9687_vm14, %v18800_v6, %v9037_v44  ;;  %v4649_v6 = vsel %vm1962_vm0, %v18560_v38, %v4648_v23  ;;  %v9692_v44 = vsel %vm9687_vm14, %v18829_v32, %v9043_v4  ;;  %v21634_v38 = vld [vmem:[#allocation229_spill] sm:$0xff] }
 0x9da   :  { %v19021_v16 = vsel %vm9687_vm14, %v18639_v41, %v9051_v31  ;;  %v5236_v11 = vrot.slane %v21634_v38, 4  ;;  %v9695_v4 = vsel %vm9687_vm14, %v18854_v62, %v9049_v5  ;;  %v9698_v62 = vsel %vm9687_vm14, %v18871_v48, %v9055_v39  ;;  %v21639_v25 = vld [vmem:[#allocation49_spill] sm:$0xff] }
 0x9db   :  { %v9061_v30 = vpop.permute.xlu1 %9060 }
 0x9dc   :  { %v5237_v32 = vsel %vm1962_vm0, %v21635_v43, %v5236_v11 }
 0x9de   :  { %9186 = vrot.lane.b32.xlu2 %v4397_v28, %s10020_s25 }
 0x9e0   :  { %v9165_v56 = vpop.permute.xlu0 %9164 }
 0x9e1   :  { %v9722_v36 = vsel %vm9720_vm15, %v9689_v42, %v9165_v56  ;;  %v9057_v41 = vpop.permute.xlu2 %9056  ;;  %9214 = vrot.lane.b32.xlu1 %v21632_v13, %s10020_s25  ;;  %v9701_v42 = vsel %vm9687_vm14, %v18888_v55, %v9061_v30  ;;  %v21642_v55 = vld [vmem:[#allocation383_spill] sm:$0xff] }
 0x9e2   :  { %9755 = vst.msk [vmem:[#allocation5 + $0x8] sm:$0xff] %vm9753_vm1, %v9722_v36  ;;  %v19035_v27 = vsel %vm9687_vm14, %v18667_v17, %v9057_v41  ;;  %v21633_v17 = vld [vmem:[#allocation64_spill] sm:$0xff]  ;;  %v21640_v36 = vld [vmem:[#allocation41_spill] sm:$0xff] }
 0x9e3   :  { %v9067_v54 = vpop.permute.xlu1 %9066  ;;  %v21641_v41 = vld [vmem:[#allocation285_spill] sm:$0xff] }
 0x9e6   :  { %9192 = vrot.lane.b32.xlu2 %v4649_v6, %s10020_s25  ;;  %v9704_v6 = vsel %vm9687_vm14, %v18903_v22, %v9067_v54  ;;  %v21643_v22 = vld [vmem:[#allocation369_spill] sm:$0xff] }
 0x9e8   :  { %v9171_v29 = vpop.permute.xlu0 %9170 }
 0x9e9   :  { %v9725_v1 = vsel %vm9720_vm15, %v9692_v44, %v9171_v29  ;;  %v9063_v53 = vpop.permute.xlu2 %9062  ;;  %9220 = vrot.lane.b32.xlu1 %v21633_v17, %s10020_s25 }
 0x9ea   :  { %9758 = vst.msk [vmem:[#allocation5 + $0x20] sm:$0xff] %vm9753_vm1, %v9725_v1  ;;  %v19049_v14 = vsel %vm9687_vm14, %v18696_v0, %v9063_v53 }
 0x9eb   :  { %v9073_v63 = vpop.permute.xlu1 %9072 }
 0x9ec   :  { %v9707_v17 = vsel %vm9687_vm14, %v18921_v15, %v9073_v63 }
 0x9ee   :  { %9198 = vrot.lane.b32.xlu2 %v5237_v32, %s10020_s25 }
 0x9f0   :  { %v9177_v35 = vpop.permute.xlu0 %9176 }
 0x9f1   :  { %v9728_v49 = vsel %vm9720_vm15, %v9695_v4, %v9177_v35  ;;  %v9069_v45 = vpop.permute.xlu2 %9068 }
 0x9f2   :  { %9761 = vst.msk [vmem:[#allocation5 + $0x38] sm:$0xff] %vm9753_vm1, %v9728_v49  ;;  %v19061_v0 = vsel %vm9687_vm14, %v21636_v20, %v9069_v45 }
 0x9f3   :  { %v9079_v24 = vpop.permute.xlu1 %9078 }
 0x9f4   :  { %v9710_v15 = vsel %vm9687_vm14, %v18937_v8, %v9079_v24 }
 0x9f6   :  { %9204 = vrot.lane.b32.xlu2 %v5825_v37, %s10020_s25 }
 0x9f8   :  { %v9183_v5 = vpop.permute.xlu0 %9182 }
 0x9f9   :  { %v9731_v51 = vsel %vm9720_vm15, %v9698_v62, %v9183_v5  ;;  %v9075_v31 = vpop.permute.xlu2 %9074 }
 0x9fa   :  { %9764 = vst.msk [vmem:[#allocation5 + $0x50] sm:$0xff] %vm9753_vm1, %v9731_v51  ;;  %v19073_v9 = vsel %vm9687_vm14, %v21639_v25, %v9075_v31 }
 0x9fb   :  { %v9085_v28 = vpop.permute.xlu1 %9084 }
 0x9fc   :  { %v9713_v8 = vsel %vm9687_vm14, %v18952_v3, %v9085_v28 }
 0x9fe   :  { %9210 = vrot.lane.b32.xlu2 %v21640_v36, %s10020_s25 }
 0xa00   :  { %v9189_v56 = vpop.permute.xlu0 %9188 }
 0xa01   :  { %v9734_v48 = vsel %vm9720_vm15, %v9701_v42, %v9189_v56  ;;  %v9081_v39 = vpop.permute.xlu2 %9080 }
 0xa02   :  { %9767 = vst.msk [vmem:[#allocation5 + $0x68] sm:$0xff] %vm9753_vm1, %v9734_v48  ;;  %v19083_v13 = vsel %vm9687_vm14, %v21641_v41, %v9081_v39 }
 0xa03   :  { %v9091_v23 = vpop.permute.xlu1 %9090 }
 0xa04   :  { %v9716_v3 = vsel %vm9687_vm14, %v18967_v40, %v9091_v23 }
 0xa06   :  { %9216 = vrot.lane.b32.xlu2 %v21642_v55, %s10020_s25 }
 0xa08   :  { %v9195_v44 = vpop.permute.xlu0 %9194 }
 0xa09   :  { %v9737_v30 = vsel %vm9720_vm15, %v9704_v6, %v9195_v44  ;;  %v9087_v29 = vpop.permute.xlu2 %9086 }
 0xa0a   :  { %9770 = vst.msk [vmem:[#allocation5 + $0x80] sm:$0xff] %vm9753_vm1, %v9737_v30  ;;  %v19093_v1 = vsel %vm9687_vm14, %v18820_v10, %v9087_v29 }
 0xa0b   :  { %v9097_v53 = vpop.permute.xlu1 %9096 }
 0xa0c   :  { %v9719_v40 = vsel %vm9687_vm14, %v18982_v60, %v9097_v53 }
 0xa0e   :  { %9222 = vrot.lane.b32.xlu2 %v21643_v22, %s10020_s25 }
 0xa10   :  { %v9201_v38 = vpop.permute.xlu0 %9200 }
 0xa11   :  { %v9740_v54 = vsel %vm9720_vm15, %v9707_v17, %v9201_v38  ;;  %v9093_v11 = vpop.permute.xlu2 %9092 }
 0xa12   :  { %9773 = vst.msk [vmem:[#allocation5 + $0x98] sm:$0xff] %vm9753_vm1, %v9740_v54  ;;  %v19103_v43 = vsel %vm9687_vm14, %v18847_v19, %v9093_v11 }
 0xa13   :  { %v9167_v32 = vpop.permute.xlu1 %9166 }
 0xa14   :  { %v9723_v10 = vsel %vm9720_vm15, %v18995_v26, %v9167_v32 }
 0xa15   :  { %9756 = vst.msk [vmem:[#allocation5 + $0x10] sm:$0xff] %vm9753_vm1, %v9723_v10 }
 0xa18   :  { %v9207_v63 = vpop.permute.xlu0 %9206 }
 0xa19   :  { %v9743_v4 = vsel %vm9720_vm15, %v9710_v15, %v9207_v63  ;;  %v9163_v35 = vpop.permute.xlu2 %9162 }
 0xa1a   :  { %9776 = vst.msk [vmem:[#allocation5 + $0xb0] sm:$0xff] %vm9753_vm1, %v9743_v4  ;;  %v9721_v49 = vsel %vm9720_vm15, %v18865_v7, %v9163_v35 }
 0xa1b   :  { %9754 = vst.msk [vmem:[#allocation5] sm:$0xff] %vm9753_vm1, %v9721_v49  ;;  %v9173_v19 = vpop.permute.xlu1 %9172 }
 0xa1c   :  { %v9726_v26 = vsel %vm9720_vm15, %v19008_v61, %v9173_v19 }
 0xa1d   :  { %9759 = vst.msk [vmem:[#allocation5 + $0x28] sm:$0xff] %vm9753_vm1, %v9726_v26 }
 0xa20   :  { %v9213_v45 = vpop.permute.xlu0 %9212 }
 0xa21   :  { %v9746_v20 = vsel %vm9720_vm15, %v9713_v8, %v9213_v45  ;;  %v9169_v58 = vpop.permute.xlu2 %9168 }
 0xa22   :  { %9779 = vst.msk [vmem:[#allocation5 + $0xc8] sm:$0xff] %vm9753_vm1, %v9746_v20  ;;  %v9724_v7 = vsel %vm9720_vm15, %v18882_v46, %v9169_v58 }
 0xa23   :  { %9757 = vst.msk [vmem:[#allocation5 + $0x18] sm:$0xff] %vm9753_vm1, %v9724_v7  ;;  %v9179_v59 = vpop.permute.xlu1 %9178 }
 0xa24   :  { %v9729_v61 = vsel %vm9720_vm15, %v19021_v16, %v9179_v59 }
 0xa25   :  { %9762 = vst.msk [vmem:[#allocation5 + $0x40] sm:$0xff] %vm9753_vm1, %v9729_v61 }
 0xa28   :  { %v9219_v24 = vpop.permute.xlu0 %9218 }
 0xa29   :  { %v9749_v12 = vsel %vm9720_vm15, %v9716_v3, %v9219_v24  ;;  %v9175_v37 = vpop.permute.xlu2 %9174 }
 0xa2a   :  { %9782 = vst.msk [vmem:[#allocation5 + $0xe0] sm:$0xff] %vm9753_vm1, %v9749_v12  ;;  %v9727_v46 = vsel %vm9720_vm15, %v18897_v34, %v9175_v37 }
 0xa2b   :  { %9760 = vst.msk [vmem:[#allocation5 + $0x30] sm:$0xff] %vm9753_vm1, %v9727_v46  ;;  %v9185_v62 = vpop.permute.xlu1 %9184 }
 0xa2c   :  { %v9732_v16 = vsel %vm9720_vm15, %v19035_v27, %v9185_v62 }
 0xa2d   :  { %9765 = vst.msk [vmem:[#allocation5 + $0x58] sm:$0xff] %vm9753_vm1, %v9732_v16 }
 0xa30   :  { %v9225_v5 = vpop.permute.xlu0 %9224 }
 0xa31   :  { %v9752_v51 = vsel %vm9720_vm15, %v9719_v40, %v9225_v5  ;;  %v9181_v31 = vpop.permute.xlu2 %9180 }
 0xa32   :  { %9785 = vst.msk [vmem:[#allocation5 + $0xf8] sm:$0xff] %vm9753_vm1, %v9752_v51  ;;  %v9730_v34 = vsel %vm9720_vm15, %v18914_v2, %v9181_v31 }
 0xa33   :  { %9763 = vst.msk [vmem:[#allocation5 + $0x48] sm:$0xff] %vm9753_vm1, %v9730_v34  ;;  %v9191_v25 = vpop.permute.xlu1 %9190 }
 0xa34   :  { %v9735_v27 = vsel %vm9720_vm15, %v19049_v14, %v9191_v25 }
 0xa35   :  { %9768 = vst.msk [vmem:[#allocation5 + $0x70] sm:$0xff] %vm9753_vm1, %v9735_v27 }
 0xa39   :  { %v9187_v28 = vpop.permute.xlu2 %9186 }
 0xa3a   :  { %v9733_v60 = vsel %vm9720_vm15, %v18931_v33, %v9187_v28 }
 0xa3b   :  { %9766 = vst.msk [vmem:[#allocation5 + $0x60] sm:$0xff] %vm9753_vm1, %v9733_v60  ;;  %v9197_v42 = vpop.permute.xlu1 %9196 }
 0xa3c   :  { %v9738_v56 = vsel %vm9720_vm15, %v19061_v0, %v9197_v42 }
 0xa3d   :  { %9771 = vst.msk [vmem:[#allocation5 + $0x88] sm:$0xff] %vm9753_vm1, %v9738_v56 }
 0xa41   :  { %v9193_v2 = vpop.permute.xlu2 %9192 }
 0xa42   :  { %v9736_v36 = vsel %vm9720_vm15, %v18946_v18, %v9193_v2 }
 0xa43   :  { %9769 = vst.msk [vmem:[#allocation5 + $0x78] sm:$0xff] %vm9753_vm1, %v9736_v36  ;;  %v9203_v14 = vpop.permute.xlu1 %9202 }
 0xa44   :  { %v9741_v48 = vsel %vm9720_vm15, %v19073_v9, %v9203_v14 }
 0xa45   :  { %9774 = vst.msk [vmem:[#allocation5 + $0xa0] sm:$0xff] %vm9753_vm1, %v9741_v48 }
 0xa49   :  { %v9199_v33 = vpop.permute.xlu2 %9198 }
 0xa4a   :  { %v9739_v39 = vsel %vm9720_vm15, %v18961_v52, %v9199_v33 }
 0xa4b   :  { %9772 = vst.msk [vmem:[#allocation5 + $0x90] sm:$0xff] %vm9753_vm1, %v9739_v39  ;;  %v9209_v0 = vpop.permute.xlu1 %9208 }
 0xa4c   :  { %v9744_v41 = vsel %vm9720_vm15, %v19083_v13, %v9209_v0 }
 0xa4d   :  { %9777 = vst.msk [vmem:[#allocation5 + $0xb8] sm:$0xff] %vm9753_vm1, %v9744_v41 }
 0xa51   :  { %v9205_v18 = vpop.permute.xlu2 %9204 }
 0xa52   :  { %v9742_v23 = vsel %vm9720_vm15, %v18976_v21, %v9205_v18 }
 0xa53   :  { %9775 = vst.msk [vmem:[#allocation5 + $0xa8] sm:$0xff] %vm9753_vm1, %v9742_v23  ;;  %v9215_v9 = vpop.permute.xlu1 %9214 }
 0xa54   :  { %v9747_v6 = vsel %vm9720_vm15, %v19093_v1, %v9215_v9 }
 0xa55   :  { %9780 = vst.msk [vmem:[#allocation5 + $0xd0] sm:$0xff] %vm9753_vm1, %v9747_v6 }
 0xa59   :  { %v9211_v52 = vpop.permute.xlu2 %9210 }
 0xa5a   :  { %v9745_v44 = vsel %vm9720_vm15, %v18989_v47, %v9211_v52 }
 0xa5b   :  { %9778 = vst.msk [vmem:[#allocation5 + $0xc0] sm:$0xff] %vm9753_vm1, %v9745_v44  ;;  %v9221_v13 = vpop.permute.xlu1 %9220 }
 0xa5c   :  { %v9750_v55 = vsel %vm9720_vm15, %v19103_v43, %v9221_v13 }
 0xa5d   :  { %9783 = vst.msk [vmem:[#allocation5 + $0xe8] sm:$0xff] %vm9753_vm1, %v9750_v55 }
 0xa61   :  { %v9217_v21 = vpop.permute.xlu2 %9216 }
 0xa62   :  { %v9748_v30 = vsel %vm9720_vm15, %v19002_v57, %v9217_v21 }
 0xa63   :  { %9781 = vst.msk [vmem:[#allocation5 + $0xd8] sm:$0xff] %vm9753_vm1, %v9748_v30 }
 0xa69   :  { %v9223_v47 = vpop.permute.xlu2 %9222 }
 0xa6a   :  { %v9751_v29 = vsel %vm9720_vm15, %v19015_v50, %v9223_v47 }
 0xa6b   :  { %9784 = vst.msk [vmem:[#allocation5 + $0xf0] sm:$0xff] %vm9753_vm1, %v9751_v29 }
 0xa6c   :  { %9798 = dma.vmem_to_hbm [thread:$0]  %s9791_s27, 4096, %s9793_s30, [#allocation4], %s10003_s11, %s10003_s11, %s10004_s12  }
 0xa6d   :  { %10000 = dma.done.wait [#allocation4], 4096  }
 0xa6e   :  { %10001 = vsyncadd [#allocation4], 4294963200 }
 0xa6f   :  { %9803 = vsyncpa [#allocation3], 1 }
 0xa70   :  { %9804 = vsyncpa [#allocation4], 1 }

</bundles_post_ra>
